<compile_context>
chip_gen: v6e
topology: v6e:2x2x1
jax: 0.10.0
libtpu: 0.0.40
codegen_flags: <defaults>
</compile_context>

<pallas_src>
import functools

import jax
import jax.numpy as jnp
from jax.experimental import pallas as pl
from jax.experimental.pallas import tpu as pltpu

BN_EPS = 1e-5
LEAKY_SLOPE = 0.01  # nn.LeakyReLU default negative_slope
LANE = 128


# ----------------------------------------------------------------------------
# Parameter construction (deterministic, shapes implied by FFNN.__init__)
# ----------------------------------------------------------------------------
def build_ffnn(key, first_section, second_section):
    """Returns (ops, params): `ops` is the layer plan, `params` a flat f32 list."""
    first_width_mult, first_depth, first_norm = first_section
    second_width_mult, second_depth, second_norm = second_section
    fw = int(first_width_mult * 384)
    sw = int(second_width_mult * 384)

    ops = []
    params = []
    keys = iter(jax.random.split(key, 256))

    def add_linear(din, dout):
        bound = 1.0 / float(din) ** 0.5
        W = jax.random.uniform(next(keys), (din, dout), jnp.float32, -bound, bound)
        b = jax.random.uniform(next(keys), (dout,), jnp.float32, -bound, bound)
        params.extend([W, b])
        ops.append("linear")

    def add_bn(dim):
        gamma = 1.0 + 0.1 * jax.random.normal(next(keys), (dim,), jnp.float32)
        beta = 0.1 * jax.random.normal(next(keys), (dim,), jnp.float32)
        mean = 0.1 * jax.random.normal(next(keys), (dim,), jnp.float32)
        var = 0.5 + jnp.abs(jax.random.normal(next(keys), (dim,), jnp.float32))
        params.extend([gamma, beta, mean, var])
        ops.append("bn")

    # first_layer: Linear(384, fw) + Dropout (identity in eval)
    add_linear(384, fw)

    # first_section residual blocks
    for _ in range(first_depth):
        ops.append("res_save")
        if first_norm:
            add_bn(fw)
        ops.append("lrelu")
        add_linear(fw, fw)
        if first_norm:
            add_bn(fw)
        ops.append("lrelu")
        add_linear(fw, fw)
        ops.append("res_add")

    # transition_layer: LeakyReLU, Linear(fw, sw), Dropout
    ops.append("lrelu")
    add_linear(fw, sw)

    # second_section residual blocks
    for _ in range(second_depth):
        ops.append("res_save")
        if second_norm:
            add_bn(sw)
        ops.append("lrelu")
        add_linear(sw, sw)
        if second_norm:
            add_bn(sw)
        ops.append("lrelu")
        add_linear(sw, sw)
        ops.append("res_add")

    # last_layer: LeakyReLU, Linear(sw, 1)
    ops.append("lrelu")
    add_linear(sw, 1)

    return ops, params


# ----------------------------------------------------------------------------
# Param preprocessing: fold BN-after-Linear, precompute scale/shift, pad to
# lane multiples, cast weights to bf16, reshape vectors to (1, D).
# ----------------------------------------------------------------------------
def _pad_up(n, m=LANE):
    return ((n + m - 1) // m) * m


def _pad2d(a, rows, cols):
    return jnp.pad(a, ((0, rows - a.shape[0]), (0, cols - a.shape[1])))


def prepare_params(ops, params):
    """Returns (plan, flat_params, out_width_padded)."""
    fused = []
    plan = []
    idx = 0
    i = 0
    while i < len(ops):
        op = ops[i]
        if op == "linear":
            W, b = params[idx], params[idx + 1]
            idx += 2
            # Fold an eval-mode BN that *directly* follows this Linear
            # (no residual save in between -> semantics unchanged).
            if i + 1 < len(ops) and ops[i + 1] == "bn":
                gamma, beta, mean, var = params[idx:idx + 4]
                idx += 4
                s = gamma / jnp.sqrt(var + BN_EPS)
                f = beta - mean * s
                W = W * s[None, :]
                b = b * s + f
                i += 1  # consume the bn op
            plan.append("linear")
            fused.append(("linear", W, b))
        elif op == "bn":
            gamma, beta, mean, var = params[idx:idx + 4]
            idx += 4
            s = gamma / jnp.sqrt(var + BN_EPS)
            f = beta - mean * s
            plan.append("scale_shift")
            fused.append(("scale_shift", s, f))
        else:  # lrelu / res_save / res_add
            plan.append(op)
            fused.append((op,))
        i += 1

    flat = []
    out_width = None
    for entry in fused:
        kind = entry[0]
        if kind == "linear":
            W, b = entry[1], entry[2]
            din_p, dout_p = _pad_up(W.shape[0]), _pad_up(W.shape[1])
            flat.append(_pad2d(W, din_p, dout_p).astype(jnp.bfloat16))
            flat.append(_pad2d(b.reshape(1, -1), 1, dout_p).astype(jnp.float32))
            out_width = dout_p
        elif kind == "scale_shift":
            s, f = entry[1], entry[2]
            d_p = _pad_up(s.shape[0])
            flat.append(_pad2d(s.reshape(1, -1), 1, d_p).astype(jnp.float32))
            flat.append(_pad2d(f.reshape(1, -1), 1, d_p).astype(jnp.float32))
    return tuple(plan), flat, out_width


# ----------------------------------------------------------------------------
# Fused Pallas kernel: whole forward pass for one batch tile in VMEM.
# ----------------------------------------------------------------------------
def make_kernel(plan):
    def kernel(*refs):
        x_ref = refs[0]
        out_ref = refs[-1]
        prefs = refs[1:-1]

        x = x_ref[...].astype(jnp.float32)
        idx = 0
        residual = None
        for op in plan:
            if op == "linear":
                W = prefs[idx][...]            # bf16 (din_p, dout_p)
                b = prefs[idx + 1][...]        # f32  (1, dout_p)
                idx += 2
                x = jnp.dot(x.astype(jnp.bfloat16), W,
                            preferred_element_type=jnp.float32) + b
            elif op == "scale_shift":
                s = prefs[idx][...]            # f32 (1, d)
                f = prefs[idx + 1][...]
                idx += 2
                x = x * s + f
            elif op == "lrelu":
                x = jnp.where(x > 0, x, LEAKY_SLOPE * x)
            elif op == "res_save":
                residual = x
            elif op == "res_add":
                x = x + residual
            else:
                raise ValueError(op)
        out_ref[...] = x.astype(out_ref.dtype)

    return kernel


@functools.partial(jax.jit, static_argnames=("plan", "out_width", "tb"))
def ffnn_forward(x, flat_params, plan, out_width, tb=128):
    batch, din = x.shape
    tb = min(tb, max(8, ((batch + 7) // 8) * 8))
    grid = (pl.cdiv(batch, tb),)

    x_spec = pl.BlockSpec((tb, din), lambda i: (i, 0))
    # Weights/biases: full-array blocks with constant index maps -> resident.
    param_specs = [pl.BlockSpec(p.shape, lambda i: (0, 0)) for p in flat_params]
    out_spec = pl.BlockSpec((tb, out_width), lambda i: (i, 0))

    # Cost estimate (advisory).
    flops = 0
    idx = 0
    for op in plan:
        if op == "linear":
            W = flat_params[idx]
            flops += 2 * batch * W.shape[0] * W.shape[1]
            idx += 2
        elif op == "scale_shift":
            idx += 2
    param_bytes = sum(p.size * p.dtype.itemsize for p in flat_params)
    bytes_accessed = param_bytes + x.size * x.dtype.itemsize + batch * out_width * 4
    cost = pl.CostEstimate(flops=flops, transcendentals=0,
                           bytes_accessed=bytes_accessed)

    # Real VMEM footprint (+ headroom), capped well below a v7x TC's 64 MiB.
    act_bytes = 8 * tb * max(din, 512) * 4
    vmem_limit = min(max(2 * param_bytes + 2 * act_bytes + (4 << 20), 16 << 20),
                     32 << 20)

    out = pl.pallas_call(
        make_kernel(plan),
        out_shape=jax.ShapeDtypeStruct((batch, out_width), jnp.float32),
        grid=grid,
        in_specs=[x_spec] + param_specs,
        out_specs=out_spec,
        compiler_params=pltpu.CompilerParams(
            dimension_semantics=("parallel",),
            vmem_limit_bytes=vmem_limit),
        cost_estimate=cost,
    )(x, *flat_params)
    # Final Linear has out_features=1; padded to 128 lanes -> slice outside.
    return out[:, :1]


# ----------------------------------------------------------------------------
# References
# ----------------------------------------------------------------------------
def ffnn_reference(x, params, ops):
    """Exact f32 mirror of the PyTorch eval() forward."""
    x = x.astype(jnp.float32)
    idx = 0
    residual = None
    for op in ops:
        if op == "linear":
            W, b = params[idx], params[idx + 1]
            idx += 2
            x = x @ W + b[None, :]
        elif op == "bn":
            gamma, beta, mean, var = params[idx:idx + 4]
            idx += 4
            x = (x - mean[None, :]) / jnp.sqrt(var[None, :] + BN_EPS) \
                * gamma[None, :] + beta[None, :]
        elif op == "lrelu":
            x = jnp.where(x > 0, x, LEAKY_SLOPE * x)
        elif op == "res_save":
            residual = x
        elif op == "res_add":
            x = x + residual
    return x


def ffnn_fused_reference(x, flat_params, plan):
    """Pure-JAX mirror of the fused/bf16 kernel math (for tight comparison)."""
    x = x.astype(jnp.float32)
    idx = 0
    residual = None
    for op in plan:
        if op == "linear":
            W, b = flat_params[idx], flat_params[idx + 1]
            idx += 2
            x = jnp.dot(x.astype(jnp.bfloat16), W,
                        preferred_element_type=jnp.float32) + b
        elif op == "scale_shift":
            s, f = flat_params[idx], flat_params[idx + 1]
            idx += 2
            x = x * s + f
        elif op == "lrelu":
            x = jnp.where(x > 0, x, LEAKY_SLOPE * x)
        elif op == "res_save":
            residual = x
        elif op == "res_add":
            x = x + residual
    return x


if __name__ == "__main__":
    # Config: first_section=(width_mult, depth, norm), second_section likewise.
    first_section = (1.0, 2, True)    # first_width  = 384
    second_section = (0.5, 2, True)   # second_width = 192 (padded to 256)
    dropout = 0.1                     # identity in eval mode

    key = jax.random.PRNGKey(0)
    k_params, k_x = jax.random.split(key)

    ops, params = build_ffnn(k_params, first_section, second_section)
    plan, flat_params, out_width = prepare_params(ops, params)

    batch = 256
    x = jax.random.normal(k_x, (batch, 384), jnp.float32)

    out = ffnn_forward(x, flat_params, plan, out_width, tb=128)
    out = jax.block_until_ready(out)
    assert out.shape == (batch, 1)

    # Tight check vs a pure-JAX mirror of the fused bf16 math.
    mirror = ffnn_fused_reference(x, flat_params, list(plan))[:, :1]
    assert jnp.allclose(out, mirror, atol=2e-3, rtol=2e-3), "mismatch vs fused ref"

    # Loose sanity check vs the exact f32 PyTorch-equivalent reference
    # (bf16 matmuls introduce a few-percent relative error by design).
    ref = ffnn_reference(x, params, ops)
    rel = float(jnp.max(jnp.abs(out - ref)) / (jnp.max(jnp.abs(ref)) + 1.0))
    assert rel < 0.1, f"relative error vs f32 reference too large: {rel}"

    print("KERNEL_OK")
</pallas_src>

<mosaic_0001>
module attributes {stable_mosaic.version = 11 : i64} {
  func.func @kernel(%arg0: i32, %arg1: memref<128x384xf32, #tpu.memory_space<vmem>>, %arg2: memref<384x384xbf16, #tpu.memory_space<vmem>>, %arg3: memref<1x384xf32, #tpu.memory_space<vmem>>, %arg4: memref<1x384xf32, #tpu.memory_space<vmem>>, %arg5: memref<1x384xf32, #tpu.memory_space<vmem>>, %arg6: memref<384x384xbf16, #tpu.memory_space<vmem>>, %arg7: memref<1x384xf32, #tpu.memory_space<vmem>>, %arg8: memref<384x384xbf16, #tpu.memory_space<vmem>>, %arg9: memref<1x384xf32, #tpu.memory_space<vmem>>, %arg10: memref<1x384xf32, #tpu.memory_space<vmem>>, %arg11: memref<1x384xf32, #tpu.memory_space<vmem>>, %arg12: memref<384x384xbf16, #tpu.memory_space<vmem>>, %arg13: memref<1x384xf32, #tpu.memory_space<vmem>>, %arg14: memref<384x384xbf16, #tpu.memory_space<vmem>>, %arg15: memref<1x384xf32, #tpu.memory_space<vmem>>, %arg16: memref<384x256xbf16, #tpu.memory_space<vmem>>, %arg17: memref<1x256xf32, #tpu.memory_space<vmem>>, %arg18: memref<1x256xf32, #tpu.memory_space<vmem>>, %arg19: memref<1x256xf32, #tpu.memory_space<vmem>>, %arg20: memref<256x256xbf16, #tpu.memory_space<vmem>>, %arg21: memref<1x256xf32, #tpu.memory_space<vmem>>, %arg22: memref<256x256xbf16, #tpu.memory_space<vmem>>, %arg23: memref<1x256xf32, #tpu.memory_space<vmem>>, %arg24: memref<1x256xf32, #tpu.memory_space<vmem>>, %arg25: memref<1x256xf32, #tpu.memory_space<vmem>>, %arg26: memref<256x256xbf16, #tpu.memory_space<vmem>>, %arg27: memref<1x256xf32, #tpu.memory_space<vmem>>, %arg28: memref<256x256xbf16, #tpu.memory_space<vmem>>, %arg29: memref<1x256xf32, #tpu.memory_space<vmem>>, %arg30: memref<256x128xbf16, #tpu.memory_space<vmem>>, %arg31: memref<1x128xf32, #tpu.memory_space<vmem>>, %arg32: memref<128x128xf32, #tpu.memory_space<vmem>>) attributes {dimension_semantics = [#tpu.dimension_semantics<parallel>], iteration_bounds = array<i64: 2>, scalar_prefetch = 0 : i64, scratch_operands = 0 : i64, tpu.core_type = #tpu.core_type<tc>, window_params = [{transform_indices = @transform_0, window_bounds = array<i64: 128, 384>}, {pipeline_mode = #tpu.pipeline_mode<synchronous>, transform_indices = @transform_1, window_bounds = array<i64: 384, 384>}, {pipeline_mode = #tpu.pipeline_mode<synchronous>, transform_indices = @transform_2, window_bounds = array<i64: 1, 384>}, {pipeline_mode = #tpu.pipeline_mode<synchronous>, transform_indices = @transform_3, window_bounds = array<i64: 1, 384>}, {pipeline_mode = #tpu.pipeline_mode<synchronous>, transform_indices = @transform_4, window_bounds = array<i64: 1, 384>}, {pipeline_mode = #tpu.pipeline_mode<synchronous>, transform_indices = @transform_5, window_bounds = array<i64: 384, 384>}, {pipeline_mode = #tpu.pipeline_mode<synchronous>, transform_indices = @transform_6, window_bounds = array<i64: 1, 384>}, {pipeline_mode = #tpu.pipeline_mode<synchronous>, transform_indices = @transform_7, window_bounds = array<i64: 384, 384>}, {pipeline_mode = #tpu.pipeline_mode<synchronous>, transform_indices = @transform_8, window_bounds = array<i64: 1, 384>}, {pipeline_mode = #tpu.pipeline_mode<synchronous>, transform_indices = @transform_9, window_bounds = array<i64: 1, 384>}, {pipeline_mode = #tpu.pipeline_mode<synchronous>, transform_indices = @transform_10, window_bounds = array<i64: 1, 384>}, {pipeline_mode = #tpu.pipeline_mode<synchronous>, transform_indices = @transform_11, window_bounds = array<i64: 384, 384>}, {pipeline_mode = #tpu.pipeline_mode<synchronous>, transform_indices = @transform_12, window_bounds = array<i64: 1, 384>}, {pipeline_mode = #tpu.pipeline_mode<synchronous>, transform_indices = @transform_13, window_bounds = array<i64: 384, 384>}, {pipeline_mode = #tpu.pipeline_mode<synchronous>, transform_indices = @transform_14, window_bounds = array<i64: 1, 384>}, {pipeline_mode = #tpu.pipeline_mode<synchronous>, transform_indices = @transform_15, window_bounds = array<i64: 384, 256>}, {pipeline_mode = #tpu.pipeline_mode<synchronous>, transform_indices = @transform_16, window_bounds = array<i64: 1, 256>}, {pipeline_mode = #tpu.pipeline_mode<synchronous>, transform_indices = @transform_17, window_bounds = array<i64: 1, 256>}, {pipeline_mode = #tpu.pipeline_mode<synchronous>, transform_indices = @transform_18, window_bounds = array<i64: 1, 256>}, {pipeline_mode = #tpu.pipeline_mode<synchronous>, transform_indices = @transform_19, window_bounds = array<i64: 256, 256>}, {pipeline_mode = #tpu.pipeline_mode<synchronous>, transform_indices = @transform_20, window_bounds = array<i64: 1, 256>}, {pipeline_mode = #tpu.pipeline_mode<synchronous>, transform_indices = @transform_21, window_bounds = array<i64: 256, 256>}, {pipeline_mode = #tpu.pipeline_mode<synchronous>, transform_indices = @transform_22, window_bounds = array<i64: 1, 256>}, {pipeline_mode = #tpu.pipeline_mode<synchronous>, transform_indices = @transform_23, window_bounds = array<i64: 1, 256>}, {pipeline_mode = #tpu.pipeline_mode<synchronous>, transform_indices = @transform_24, window_bounds = array<i64: 1, 256>}, {pipeline_mode = #tpu.pipeline_mode<synchronous>, transform_indices = @transform_25, window_bounds = array<i64: 256, 256>}, {pipeline_mode = #tpu.pipeline_mode<synchronous>, transform_indices = @transform_26, window_bounds = array<i64: 1, 256>}, {pipeline_mode = #tpu.pipeline_mode<synchronous>, transform_indices = @transform_27, window_bounds = array<i64: 256, 256>}, {pipeline_mode = #tpu.pipeline_mode<synchronous>, transform_indices = @transform_28, window_bounds = array<i64: 1, 256>}, {pipeline_mode = #tpu.pipeline_mode<synchronous>, transform_indices = @transform_29, window_bounds = array<i64: 256, 128>}, {pipeline_mode = #tpu.pipeline_mode<synchronous>, transform_indices = @transform_30, window_bounds = array<i64: 1, 128>}, {transform_indices = @transform_31, window_bounds = array<i64: 128, 128>}]} {
    %c0 = arith.constant 0 : index
    %c0_0 = arith.constant 0 : index
    %0 = vector.load %arg1[%c0, %c0_0] : memref<128x384xf32, #tpu.memory_space<vmem>>, vector<128x384xf32>
    %c0_1 = arith.constant 0 : index
    %c0_2 = arith.constant 0 : index
    %1 = vector.load %arg2[%c0_1, %c0_2] : memref<384x384xbf16, #tpu.memory_space<vmem>>, vector<384x384xbf16>
    %c0_3 = arith.constant 0 : index
    %c0_4 = arith.constant 0 : index
    %2 = vector.load %arg3[%c0_3, %c0_4] : memref<1x384xf32, #tpu.memory_space<vmem>>, vector<1x384xf32>
    %3 = arith.truncf %0 : vector<128x384xf32> to vector<128x384xbf16>
    %cst = arith.constant dense<0.000000e+00> : vector<128x384xf32>
    %4 = tpu.matmul %3, %1, %cst {dimension_numbers = #tpu.dot_dimension_numbers<[1], [0], [0], [1], [0, 0, 1, 1], [], []>} : vector<128x384xbf16>, vector<384x384xbf16>, vector<128x384xf32> -> vector<128x384xf32>
    %5 = vector.broadcast %2 : vector<1x384xf32> to vector<128x384xf32>
    %6 = arith.addf %4, %5 : vector<128x384xf32>
    %c0_5 = arith.constant 0 : index
    %c0_6 = arith.constant 0 : index
    %7 = vector.load %arg4[%c0_5, %c0_6] : memref<1x384xf32, #tpu.memory_space<vmem>>, vector<1x384xf32>
    %c0_7 = arith.constant 0 : index
    %c0_8 = arith.constant 0 : index
    %8 = vector.load %arg5[%c0_7, %c0_8] : memref<1x384xf32, #tpu.memory_space<vmem>>, vector<1x384xf32>
    %9 = vector.broadcast %7 : vector<1x384xf32> to vector<128x384xf32>
    %10 = arith.mulf %6, %9 : vector<128x384xf32>
    %11 = vector.broadcast %8 : vector<1x384xf32> to vector<128x384xf32>
    %12 = arith.addf %10, %11 : vector<128x384xf32>
    %cst_9 = arith.constant 0.000000e+00 : f32
    %13 = vector.broadcast %cst_9 : f32 to vector<128x384xf32>
    %14 = arith.cmpf ogt, %12, %13 : vector<128x384xf32>
    %cst_10 = arith.constant 0.00999999977 : f32
    %15 = vector.broadcast %cst_10 : f32 to vector<128x384xf32>
    %16 = arith.mulf %15, %12 : vector<128x384xf32>
    %17 = arith.select %14, %12, %16 : vector<128x384xi1>, vector<128x384xf32>
    %c0_11 = arith.constant 0 : index
    %c0_12 = arith.constant 0 : index
    %18 = vector.load %arg6[%c0_11, %c0_12] : memref<384x384xbf16, #tpu.memory_space<vmem>>, vector<384x384xbf16>
    %c0_13 = arith.constant 0 : index
    %c0_14 = arith.constant 0 : index
    %19 = vector.load %arg7[%c0_13, %c0_14] : memref<1x384xf32, #tpu.memory_space<vmem>>, vector<1x384xf32>
    %20 = arith.truncf %17 : vector<128x384xf32> to vector<128x384xbf16>
    %cst_15 = arith.constant dense<0.000000e+00> : vector<128x384xf32>
    %21 = tpu.matmul %20, %18, %cst_15 {dimension_numbers = #tpu.dot_dimension_numbers<[1], [0], [0], [1], [0, 0, 1, 1], [], []>} : vector<128x384xbf16>, vector<384x384xbf16>, vector<128x384xf32> -> vector<128x384xf32>
    %22 = vector.broadcast %19 : vector<1x384xf32> to vector<128x384xf32>
    %23 = arith.addf %21, %22 : vector<128x384xf32>
    %cst_16 = arith.constant 0.000000e+00 : f32
    %24 = vector.broadcast %cst_16 : f32 to vector<128x384xf32>
    %25 = arith.cmpf ogt, %23, %24 : vector<128x384xf32>
    %cst_17 = arith.constant 0.00999999977 : f32
    %26 = vector.broadcast %cst_17 : f32 to vector<128x384xf32>
    %27 = arith.mulf %26, %23 : vector<128x384xf32>
    %28 = arith.select %25, %23, %27 : vector<128x384xi1>, vector<128x384xf32>
    %c0_18 = arith.constant 0 : index
    %c0_19 = arith.constant 0 : index
    %29 = vector.load %arg8[%c0_18, %c0_19] : memref<384x384xbf16, #tpu.memory_space<vmem>>, vector<384x384xbf16>
    %c0_20 = arith.constant 0 : index
    %c0_21 = arith.constant 0 : index
    %30 = vector.load %arg9[%c0_20, %c0_21] : memref<1x384xf32, #tpu.memory_space<vmem>>, vector<1x384xf32>
    %31 = arith.truncf %28 : vector<128x384xf32> to vector<128x384xbf16>
    %cst_22 = arith.constant dense<0.000000e+00> : vector<128x384xf32>
    %32 = tpu.matmul %31, %29, %cst_22 {dimension_numbers = #tpu.dot_dimension_numbers<[1], [0], [0], [1], [0, 0, 1, 1], [], []>} : vector<128x384xbf16>, vector<384x384xbf16>, vector<128x384xf32> -> vector<128x384xf32>
    %33 = vector.broadcast %30 : vector<1x384xf32> to vector<128x384xf32>
    %34 = arith.addf %32, %33 : vector<128x384xf32>
    %35 = arith.addf %34, %6 : vector<128x384xf32>
    %c0_23 = arith.constant 0 : index
    %c0_24 = arith.constant 0 : index
    %36 = vector.load %arg10[%c0_23, %c0_24] : memref<1x384xf32, #tpu.memory_space<vmem>>, vector<1x384xf32>
    %c0_25 = arith.constant 0 : index
    %c0_26 = arith.constant 0 : index
    %37 = vector.load %arg11[%c0_25, %c0_26] : memref<1x384xf32, #tpu.memory_space<vmem>>, vector<1x384xf32>
    %38 = vector.broadcast %36 : vector<1x384xf32> to vector<128x384xf32>
    %39 = arith.mulf %35, %38 : vector<128x384xf32>
    %40 = vector.broadcast %37 : vector<1x384xf32> to vector<128x384xf32>
    %41 = arith.addf %39, %40 : vector<128x384xf32>
    %cst_27 = arith.constant 0.000000e+00 : f32
    %42 = vector.broadcast %cst_27 : f32 to vector<128x384xf32>
    %43 = arith.cmpf ogt, %41, %42 : vector<128x384xf32>
    %cst_28 = arith.constant 0.00999999977 : f32
    %44 = vector.broadcast %cst_28 : f32 to vector<128x384xf32>
    %45 = arith.mulf %44, %41 : vector<128x384xf32>
    %46 = arith.select %43, %41, %45 : vector<128x384xi1>, vector<128x384xf32>
    %c0_29 = arith.constant 0 : index
    %c0_30 = arith.constant 0 : index
    %47 = vector.load %arg12[%c0_29, %c0_30] : memref<384x384xbf16, #tpu.memory_space<vmem>>, vector<384x384xbf16>
    %c0_31 = arith.constant 0 : index
    %c0_32 = arith.constant 0 : index
    %48 = vector.load %arg13[%c0_31, %c0_32] : memref<1x384xf32, #tpu.memory_space<vmem>>, vector<1x384xf32>
    %49 = arith.truncf %46 : vector<128x384xf32> to vector<128x384xbf16>
    %cst_33 = arith.constant dense<0.000000e+00> : vector<128x384xf32>
    %50 = tpu.matmul %49, %47, %cst_33 {dimension_numbers = #tpu.dot_dimension_numbers<[1], [0], [0], [1], [0, 0, 1, 1], [], []>} : vector<128x384xbf16>, vector<384x384xbf16>, vector<128x384xf32> -> vector<128x384xf32>
    %51 = vector.broadcast %48 : vector<1x384xf32> to vector<128x384xf32>
    %52 = arith.addf %50, %51 : vector<128x384xf32>
    %cst_34 = arith.constant 0.000000e+00 : f32
    %53 = vector.broadcast %cst_34 : f32 to vector<128x384xf32>
    %54 = arith.cmpf ogt, %52, %53 : vector<128x384xf32>
    %cst_35 = arith.constant 0.00999999977 : f32
    %55 = vector.broadcast %cst_35 : f32 to vector<128x384xf32>
    %56 = arith.mulf %55, %52 : vector<128x384xf32>
    %57 = arith.select %54, %52, %56 : vector<128x384xi1>, vector<128x384xf32>
    %c0_36 = arith.constant 0 : index
    %c0_37 = arith.constant 0 : index
    %58 = vector.load %arg14[%c0_36, %c0_37] : memref<384x384xbf16, #tpu.memory_space<vmem>>, vector<384x384xbf16>
    %c0_38 = arith.constant 0 : index
    %c0_39 = arith.constant 0 : index
    %59 = vector.load %arg15[%c0_38, %c0_39] : memref<1x384xf32, #tpu.memory_space<vmem>>, vector<1x384xf32>
    %60 = arith.truncf %57 : vector<128x384xf32> to vector<128x384xbf16>
    %cst_40 = arith.constant dense<0.000000e+00> : vector<128x384xf32>
    %61 = tpu.matmul %60, %58, %cst_40 {dimension_numbers = #tpu.dot_dimension_numbers<[1], [0], [0], [1], [0, 0, 1, 1], [], []>} : vector<128x384xbf16>, vector<384x384xbf16>, vector<128x384xf32> -> vector<128x384xf32>
    %62 = vector.broadcast %59 : vector<1x384xf32> to vector<128x384xf32>
    %63 = arith.addf %61, %62 : vector<128x384xf32>
    %64 = arith.addf %63, %35 : vector<128x384xf32>
    %cst_41 = arith.constant 0.000000e+00 : f32
    %65 = vector.broadcast %cst_41 : f32 to vector<128x384xf32>
    %66 = arith.cmpf ogt, %64, %65 : vector<128x384xf32>
    %cst_42 = arith.constant 0.00999999977 : f32
    %67 = vector.broadcast %cst_42 : f32 to vector<128x384xf32>
    %68 = arith.mulf %67, %64 : vector<128x384xf32>
    %69 = arith.select %66, %64, %68 : vector<128x384xi1>, vector<128x384xf32>
    %c0_43 = arith.constant 0 : index
    %c0_44 = arith.constant 0 : index
    %70 = vector.load %arg16[%c0_43, %c0_44] : memref<384x256xbf16, #tpu.memory_space<vmem>>, vector<384x256xbf16>
    %c0_45 = arith.constant 0 : index
    %c0_46 = arith.constant 0 : index
    %71 = vector.load %arg17[%c0_45, %c0_46] : memref<1x256xf32, #tpu.memory_space<vmem>>, vector<1x256xf32>
    %72 = arith.truncf %69 : vector<128x384xf32> to vector<128x384xbf16>
    %cst_47 = arith.constant dense<0.000000e+00> : vector<128x256xf32>
    %73 = tpu.matmul %72, %70, %cst_47 {dimension_numbers = #tpu.dot_dimension_numbers<[1], [0], [0], [1], [0, 0, 1, 1], [], []>} : vector<128x384xbf16>, vector<384x256xbf16>, vector<128x256xf32> -> vector<128x256xf32>
    %74 = vector.broadcast %71 : vector<1x256xf32> to vector<128x256xf32>
    %75 = arith.addf %73, %74 : vector<128x256xf32>
    %c0_48 = arith.constant 0 : index
    %c0_49 = arith.constant 0 : index
    %76 = vector.load %arg18[%c0_48, %c0_49] : memref<1x256xf32, #tpu.memory_space<vmem>>, vector<1x256xf32>
    %c0_50 = arith.constant 0 : index
    %c0_51 = arith.constant 0 : index
    %77 = vector.load %arg19[%c0_50, %c0_51] : memref<1x256xf32, #tpu.memory_space<vmem>>, vector<1x256xf32>
    %78 = vector.broadcast %76 : vector<1x256xf32> to vector<128x256xf32>
    %79 = arith.mulf %75, %78 : vector<128x256xf32>
    %80 = vector.broadcast %77 : vector<1x256xf32> to vector<128x256xf32>
    %81 = arith.addf %79, %80 : vector<128x256xf32>
    %cst_52 = arith.constant 0.000000e+00 : f32
    %82 = vector.broadcast %cst_52 : f32 to vector<128x256xf32>
    %83 = arith.cmpf ogt, %81, %82 : vector<128x256xf32>
    %cst_53 = arith.constant 0.00999999977 : f32
    %84 = vector.broadcast %cst_53 : f32 to vector<128x256xf32>
    %85 = arith.mulf %84, %81 : vector<128x256xf32>
    %86 = arith.select %83, %81, %85 : vector<128x256xi1>, vector<128x256xf32>
    %c0_54 = arith.constant 0 : index
    %c0_55 = arith.constant 0 : index
    %87 = vector.load %arg20[%c0_54, %c0_55] : memref<256x256xbf16, #tpu.memory_space<vmem>>, vector<256x256xbf16>
    %c0_56 = arith.constant 0 : index
    %c0_57 = arith.constant 0 : index
    %88 = vector.load %arg21[%c0_56, %c0_57] : memref<1x256xf32, #tpu.memory_space<vmem>>, vector<1x256xf32>
    %89 = arith.truncf %86 : vector<128x256xf32> to vector<128x256xbf16>
    %cst_58 = arith.constant dense<0.000000e+00> : vector<128x256xf32>
    %90 = tpu.matmul %89, %87, %cst_58 {dimension_numbers = #tpu.dot_dimension_numbers<[1], [0], [0], [1], [0, 0, 1, 1], [], []>} : vector<128x256xbf16>, vector<256x256xbf16>, vector<128x256xf32> -> vector<128x256xf32>
    %91 = vector.broadcast %88 : vector<1x256xf32> to vector<128x256xf32>
    %92 = arith.addf %90, %91 : vector<128x256xf32>
    %cst_59 = arith.constant 0.000000e+00 : f32
    %93 = vector.broadcast %cst_59 : f32 to vector<128x256xf32>
    %94 = arith.cmpf ogt, %92, %93 : vector<128x256xf32>
    %cst_60 = arith.constant 0.00999999977 : f32
    %95 = vector.broadcast %cst_60 : f32 to vector<128x256xf32>
    %96 = arith.mulf %95, %92 : vector<128x256xf32>
    %97 = arith.select %94, %92, %96 : vector<128x256xi1>, vector<128x256xf32>
    %c0_61 = arith.constant 0 : index
    %c0_62 = arith.constant 0 : index
    %98 = vector.load %arg22[%c0_61, %c0_62] : memref<256x256xbf16, #tpu.memory_space<vmem>>, vector<256x256xbf16>
    %c0_63 = arith.constant 0 : index
    %c0_64 = arith.constant 0 : index
    %99 = vector.load %arg23[%c0_63, %c0_64] : memref<1x256xf32, #tpu.memory_space<vmem>>, vector<1x256xf32>
    %100 = arith.truncf %97 : vector<128x256xf32> to vector<128x256xbf16>
    %cst_65 = arith.constant dense<0.000000e+00> : vector<128x256xf32>
    %101 = tpu.matmul %100, %98, %cst_65 {dimension_numbers = #tpu.dot_dimension_numbers<[1], [0], [0], [1], [0, 0, 1, 1], [], []>} : vector<128x256xbf16>, vector<256x256xbf16>, vector<128x256xf32> -> vector<128x256xf32>
    %102 = vector.broadcast %99 : vector<1x256xf32> to vector<128x256xf32>
    %103 = arith.addf %101, %102 : vector<128x256xf32>
    %104 = arith.addf %103, %75 : vector<128x256xf32>
    %c0_66 = arith.constant 0 : index
    %c0_67 = arith.constant 0 : index
    %105 = vector.load %arg24[%c0_66, %c0_67] : memref<1x256xf32, #tpu.memory_space<vmem>>, vector<1x256xf32>
    %c0_68 = arith.constant 0 : index
    %c0_69 = arith.constant 0 : index
    %106 = vector.load %arg25[%c0_68, %c0_69] : memref<1x256xf32, #tpu.memory_space<vmem>>, vector<1x256xf32>
    %107 = vector.broadcast %105 : vector<1x256xf32> to vector<128x256xf32>
    %108 = arith.mulf %104, %107 : vector<128x256xf32>
    %109 = vector.broadcast %106 : vector<1x256xf32> to vector<128x256xf32>
    %110 = arith.addf %108, %109 : vector<128x256xf32>
    %cst_70 = arith.constant 0.000000e+00 : f32
    %111 = vector.broadcast %cst_70 : f32 to vector<128x256xf32>
    %112 = arith.cmpf ogt, %110, %111 : vector<128x256xf32>
    %cst_71 = arith.constant 0.00999999977 : f32
    %113 = vector.broadcast %cst_71 : f32 to vector<128x256xf32>
    %114 = arith.mulf %113, %110 : vector<128x256xf32>
    %115 = arith.select %112, %110, %114 : vector<128x256xi1>, vector<128x256xf32>
    %c0_72 = arith.constant 0 : index
    %c0_73 = arith.constant 0 : index
    %116 = vector.load %arg26[%c0_72, %c0_73] : memref<256x256xbf16, #tpu.memory_space<vmem>>, vector<256x256xbf16>
    %c0_74 = arith.constant 0 : index
    %c0_75 = arith.constant 0 : index
    %117 = vector.load %arg27[%c0_74, %c0_75] : memref<1x256xf32, #tpu.memory_space<vmem>>, vector<1x256xf32>
    %118 = arith.truncf %115 : vector<128x256xf32> to vector<128x256xbf16>
    %cst_76 = arith.constant dense<0.000000e+00> : vector<128x256xf32>
    %119 = tpu.matmul %118, %116, %cst_76 {dimension_numbers = #tpu.dot_dimension_numbers<[1], [0], [0], [1], [0, 0, 1, 1], [], []>} : vector<128x256xbf16>, vector<256x256xbf16>, vector<128x256xf32> -> vector<128x256xf32>
    %120 = vector.broadcast %117 : vector<1x256xf32> to vector<128x256xf32>
    %121 = arith.addf %119, %120 : vector<128x256xf32>
    %cst_77 = arith.constant 0.000000e+00 : f32
    %122 = vector.broadcast %cst_77 : f32 to vector<128x256xf32>
    %123 = arith.cmpf ogt, %121, %122 : vector<128x256xf32>
    %cst_78 = arith.constant 0.00999999977 : f32
    %124 = vector.broadcast %cst_78 : f32 to vector<128x256xf32>
    %125 = arith.mulf %124, %121 : vector<128x256xf32>
    %126 = arith.select %123, %121, %125 : vector<128x256xi1>, vector<128x256xf32>
    %c0_79 = arith.constant 0 : index
    %c0_80 = arith.constant 0 : index
    %127 = vector.load %arg28[%c0_79, %c0_80] : memref<256x256xbf16, #tpu.memory_space<vmem>>, vector<256x256xbf16>
    %c0_81 = arith.constant 0 : index
    %c0_82 = arith.constant 0 : index
    %128 = vector.load %arg29[%c0_81, %c0_82] : memref<1x256xf32, #tpu.memory_space<vmem>>, vector<1x256xf32>
    %129 = arith.truncf %126 : vector<128x256xf32> to vector<128x256xbf16>
    %cst_83 = arith.constant dense<0.000000e+00> : vector<128x256xf32>
    %130 = tpu.matmul %129, %127, %cst_83 {dimension_numbers = #tpu.dot_dimension_numbers<[1], [0], [0], [1], [0, 0, 1, 1], [], []>} : vector<128x256xbf16>, vector<256x256xbf16>, vector<128x256xf32> -> vector<128x256xf32>
    %131 = vector.broadcast %128 : vector<1x256xf32> to vector<128x256xf32>
    %132 = arith.addf %130, %131 : vector<128x256xf32>
    %133 = arith.addf %132, %104 : vector<128x256xf32>
    %cst_84 = arith.constant 0.000000e+00 : f32
    %134 = vector.broadcast %cst_84 : f32 to vector<128x256xf32>
    %135 = arith.cmpf ogt, %133, %134 : vector<128x256xf32>
    %cst_85 = arith.constant 0.00999999977 : f32
    %136 = vector.broadcast %cst_85 : f32 to vector<128x256xf32>
    %137 = arith.mulf %136, %133 : vector<128x256xf32>
    %138 = arith.select %135, %133, %137 : vector<128x256xi1>, vector<128x256xf32>
    %c0_86 = arith.constant 0 : index
    %c0_87 = arith.constant 0 : index
    %139 = vector.load %arg30[%c0_86, %c0_87] : memref<256x128xbf16, #tpu.memory_space<vmem>>, vector<256x128xbf16>
    %c0_88 = arith.constant 0 : index
    %c0_89 = arith.constant 0 : index
    %140 = vector.load %arg31[%c0_88, %c0_89] : memref<1x128xf32, #tpu.memory_space<vmem>>, vector<1x128xf32>
    %141 = arith.truncf %138 : vector<128x256xf32> to vector<128x256xbf16>
    %cst_90 = arith.constant dense<0.000000e+00> : vector<128x128xf32>
    %142 = tpu.matmul %141, %139, %cst_90 {dimension_numbers = #tpu.dot_dimension_numbers<[1], [0], [0], [1], [0, 0, 1, 1], [], []>} : vector<128x256xbf16>, vector<256x128xbf16>, vector<128x128xf32> -> vector<128x128xf32>
    %143 = vector.broadcast %140 : vector<1x128xf32> to vector<128x128xf32>
    %144 = arith.addf %142, %143 : vector<128x128xf32>
    %c0_91 = arith.constant 0 : index
    %c0_92 = arith.constant 0 : index
    %145 = vector.load %arg32[%c0_91, %c0_92] : memref<128x128xf32, #tpu.memory_space<vmem>>, vector<128x128xf32>
    tpu.vector_store %arg32[%c0_91, %c0_92], %144 {strides = array<i32>} : memref<128x128xf32, #tpu.memory_space<vmem>>, vector<128x128xf32>,
    return
  }
  func.func @transform_0(%arg0: i32) -> (i32, i32) {
    %c0_i32 = arith.constant 0 : i32
    %c0_i32_0 = arith.constant 0 : i32
    return %arg0, %c0_i32 : i32, i32
  }
  func.func @transform_1(%arg0: i32) -> (i32, i32) {
    %c0_i32 = arith.constant 0 : i32
    %c0_i32_0 = arith.constant 0 : i32
    %c0_i32_1 = arith.constant 0 : i32
    return %c0_i32, %c0_i32_0 : i32, i32
  }
  func.func @transform_2(%arg0: i32) -> (i32, i32) {
    %c0_i32 = arith.constant 0 : i32
    %c0_i32_0 = arith.constant 0 : i32
    %c0_i32_1 = arith.constant 0 : i32
    return %c0_i32, %c0_i32_0 : i32, i32
  }
  func.func @transform_3(%arg0: i32) -> (i32, i32) {
    %c0_i32 = arith.constant 0 : i32
    %c0_i32_0 = arith.constant 0 : i32
    %c0_i32_1 = arith.constant 0 : i32
    return %c0_i32, %c0_i32_0 : i32, i32
  }
  func.func @transform_4(%arg0: i32) -> (i32, i32) {
    %c0_i32 = arith.constant 0 : i32
    %c0_i32_0 = arith.constant 0 : i32
    %c0_i32_1 = arith.constant 0 : i32
    return %c0_i32, %c0_i32_0 : i32, i32
  }
  func.func @transform_5(%arg0: i32) -> (i32, i32) {
    %c0_i32 = arith.constant 0 : i32
    %c0_i32_0 = arith.constant 0 : i32
    %c0_i32_1 = arith.constant 0 : i32
    return %c0_i32, %c0_i32_0 : i32, i32
  }
  func.func @transform_6(%arg0: i32) -> (i32, i32) {
    %c0_i32 = arith.constant 0 : i32
    %c0_i32_0 = arith.constant 0 : i32
    %c0_i32_1 = arith.constant 0 : i32
    return %c0_i32, %c0_i32_0 : i32, i32
  }
  func.func @transform_7(%arg0: i32) -> (i32, i32) {
    %c0_i32 = arith.constant 0 : i32
    %c0_i32_0 = arith.constant 0 : i32
    %c0_i32_1 = arith.constant 0 : i32
    return %c0_i32, %c0_i32_0 : i32, i32
  }
  func.func @transform_8(%arg0: i32) -> (i32, i32) {
    %c0_i32 = arith.constant 0 : i32
    %c0_i32_0 = arith.constant 0 : i32
    %c0_i32_1 = arith.constant 0 : i32
    return %c0_i32, %c0_i32_0 : i32, i32
  }
  func.func @transform_9(%arg0: i32) -> (i32, i32) {
    %c0_i32 = arith.constant 0 : i32
    %c0_i32_0 = arith.constant 0 : i32
    %c0_i32_1 = arith.constant 0 : i32
    return %c0_i32, %c0_i32_0 : i32, i32
  }
  func.func @transform_10(%arg0: i32) -> (i32, i32) {
    %c0_i32 = arith.constant 0 : i32
    %c0_i32_0 = arith.constant 0 : i32
    %c0_i32_1 = arith.constant 0 : i32
    return %c0_i32, %c0_i32_0 : i32, i32
  }
  func.func @transform_11(%arg0: i32) -> (i32, i32) {
    %c0_i32 = arith.constant 0 : i32
    %c0_i32_0 = arith.constant 0 : i32
    %c0_i32_1 = arith.constant 0 : i32
    return %c0_i32, %c0_i32_0 : i32, i32
  }
  func.func @transform_12(%arg0: i32) -> (i32, i32) {
    %c0_i32 = arith.constant 0 : i32
    %c0_i32_0 = arith.constant 0 : i32
    %c0_i32_1 = arith.constant 0 : i32
    return %c0_i32, %c0_i32_0 : i32, i32
  }
  func.func @transform_13(%arg0: i32) -> (i32, i32) {
    %c0_i32 = arith.constant 0 : i32
    %c0_i32_0 = arith.constant 0 : i32
    %c0_i32_1 = arith.constant 0 : i32
    return %c0_i32, %c0_i32_0 : i32, i32
  }
  func.func @transform_14(%arg0: i32) -> (i32, i32) {
    %c0_i32 = arith.constant 0 : i32
    %c0_i32_0 = arith.constant 0 : i32
    %c0_i32_1 = arith.constant 0 : i32
    return %c0_i32, %c0_i32_0 : i32, i32
  }
  func.func @transform_15(%arg0: i32) -> (i32, i32) {
    %c0_i32 = arith.constant 0 : i32
    %c0_i32_0 = arith.constant 0 : i32
    %c0_i32_1 = arith.constant 0 : i32
    return %c0_i32, %c0_i32_0 : i32, i32
  }
  func.func @transform_16(%arg0: i32) -> (i32, i32) {
    %c0_i32 = arith.constant 0 : i32
    %c0_i32_0 = arith.constant 0 : i32
    %c0_i32_1 = arith.constant 0 : i32
    return %c0_i32, %c0_i32_0 : i32, i32
  }
  func.func @transform_17(%arg0: i32) -> (i32, i32) {
    %c0_i32 = arith.constant 0 : i32
    %c0_i32_0 = arith.constant 0 : i32
    %c0_i32_1 = arith.constant 0 : i32
    return %c0_i32, %c0_i32_0 : i32, i32
  }
  func.func @transform_18(%arg0: i32) -> (i32, i32) {
    %c0_i32 = arith.constant 0 : i32
    %c0_i32_0 = arith.constant 0 : i32
    %c0_i32_1 = arith.constant 0 : i32
    return %c0_i32, %c0_i32_0 : i32, i32
  }
  func.func @transform_19(%arg0: i32) -> (i32, i32) {
    %c0_i32 = arith.constant 0 : i32
    %c0_i32_0 = arith.constant 0 : i32
    %c0_i32_1 = arith.constant 0 : i32
    return %c0_i32, %c0_i32_0 : i32, i32
  }
  func.func @transform_20(%arg0: i32) -> (i32, i32) {
    %c0_i32 = arith.constant 0 : i32
    %c0_i32_0 = arith.constant 0 : i32
    %c0_i32_1 = arith.constant 0 : i32
    return %c0_i32, %c0_i32_0 : i32, i32
  }
  func.func @transform_21(%arg0: i32) -> (i32, i32) {
    %c0_i32 = arith.constant 0 : i32
    %c0_i32_0 = arith.constant 0 : i32
    %c0_i32_1 = arith.constant 0 : i32
    return %c0_i32, %c0_i32_0 : i32, i32
  }
  func.func @transform_22(%arg0: i32) -> (i32, i32) {
    %c0_i32 = arith.constant 0 : i32
    %c0_i32_0 = arith.constant 0 : i32
    %c0_i32_1 = arith.constant 0 : i32
    return %c0_i32, %c0_i32_0 : i32, i32
  }
  func.func @transform_23(%arg0: i32) -> (i32, i32) {
    %c0_i32 = arith.constant 0 : i32
    %c0_i32_0 = arith.constant 0 : i32
    %c0_i32_1 = arith.constant 0 : i32
    return %c0_i32, %c0_i32_0 : i32, i32
  }
  func.func @transform_24(%arg0: i32) -> (i32, i32) {
    %c0_i32 = arith.constant 0 : i32
    %c0_i32_0 = arith.constant 0 : i32
    %c0_i32_1 = arith.constant 0 : i32
    return %c0_i32, %c0_i32_0 : i32, i32
  }
  func.func @transform_25(%arg0: i32) -> (i32, i32) {
    %c0_i32 = arith.constant 0 : i32
    %c0_i32_0 = arith.constant 0 : i32
    %c0_i32_1 = arith.constant 0 : i32
    return %c0_i32, %c0_i32_0 : i32, i32
  }
  func.func @transform_26(%arg0: i32) -> (i32, i32) {
    %c0_i32 = arith.constant 0 : i32
    %c0_i32_0 = arith.constant 0 : i32
    %c0_i32_1 = arith.constant 0 : i32
    return %c0_i32, %c0_i32_0 : i32, i32
  }
  func.func @transform_27(%arg0: i32) -> (i32, i32) {
    %c0_i32 = arith.constant 0 : i32
    %c0_i32_0 = arith.constant 0 : i32
    %c0_i32_1 = arith.constant 0 : i32
    return %c0_i32, %c0_i32_0 : i32, i32
  }
  func.func @transform_28(%arg0: i32) -> (i32, i32) {
    %c0_i32 = arith.constant 0 : i32
    %c0_i32_0 = arith.constant 0 : i32
    %c0_i32_1 = arith.constant 0 : i32
    return %c0_i32, %c0_i32_0 : i32, i32
  }
  func.func @transform_29(%arg0: i32) -> (i32, i32) {
    %c0_i32 = arith.constant 0 : i32
    %c0_i32_0 = arith.constant 0 : i32
    %c0_i32_1 = arith.constant 0 : i32
    return %c0_i32, %c0_i32_0 : i32, i32
  }
  func.func @transform_30(%arg0: i32) -> (i32, i32) {
    %c0_i32 = arith.constant 0 : i32
    %c0_i32_0 = arith.constant 0 : i32
    %c0_i32_1 = arith.constant 0 : i32
    return %c0_i32, %c0_i32_0 : i32, i32
  }
  func.func @transform_31(%arg0: i32) -> (i32, i32) {
    %c0_i32 = arith.constant 0 : i32
    %c0_i32_0 = arith.constant 0 : i32
    return %arg0, %c0_i32 : i32, i32
  }
}

</mosaic_0001>

<bundles_post_ra>
// kernel: ffnn_forward.1
= control target key start
LH: loop header
LB: loop body
LE: loop exit
PB: predicated region body
PF: predicated region fallthrough
CT: control target
= control target key end

     0   :  { %s12654_s6 = smov 1   ;;  %s12655_s10 = smov 2   ;;  %s15876_s0 = inlined_call_operand.smem [shape: u32[32], index: -1, kind: input, shape index: {}] }
   0x1   :  { %s12715_s5 = sld [smem:[%s15876_s0]]   ;;  %s12656_s14 = smov 3  }
   0x2   :  { %s12720_s9 = sld [smem:[%s15876_s0 + %s12654_s6]]   ;;  %s12657_s18 = smov 4  }
   0x3   :  { %s12725_s13 = sld [smem:[%s15876_s0 + %s12655_s10]]   ;;  %s12658_s22 = smov 5  }
   0x4   :  { %s12730_s17 = sld [smem:[%s15876_s0 + %s12656_s14]]   ;;  %s12659_s26 = smov 6  }
   0x5   :  { %s12735_s21 = sld [smem:[%s15876_s0 + %s12657_s18]]   ;;  %s12660_s30 = smov 7  }
   0x6   :  { %s12740_s25 = sld [smem:[%s15876_s0 + %s12658_s22]]   ;;  %s12661_s4 = smov 8  }
   0x7   :  { %15977 = sst [smem:[#allocation29_spill]] %s12715_s5  ;;  %s12662_s10 = smov 9  }
   0x8   :  { %15978 = sst [smem:[#allocation30_spill]] %s12720_s9  ;;  %s12663_s15 = smov 10  }
   0x9   :  { %s12745_s29 = sld [smem:[%s15876_s0 + %s12659_s26]]   ;;  %s12664_s20 = smov 11  }
   0xa   :  { %s12750_s3 = sld [smem:[%s15876_s0 + %s12660_s30]]   ;;  %s12665_s26 = smov 12  }
   0xb   :  { %s12755_s8 = sld [smem:[%s15876_s0 + %s12661_s4]]   ;;  %s12666_s1 = smov 13  }
   0xc   :  { %s12760_s14 = sld [smem:[%s15876_s0 + %s12662_s10]]   ;;  %s12667_s7 = smov 14  }
   0xd   :  { %s12765_s19 = sld [smem:[%s15876_s0 + %s12663_s15]]   ;;  %s12668_s15 = smov 15  }
   0xe   :  { %s12770_s24 = sld [smem:[%s15876_s0 + %s12664_s20]]   ;;  %s12669_s22 = smov 16  }
   0xf   :  { %15979 = sst [smem:[#allocation31_spill]] %s12745_s29  ;;  %s12670_s28 = smov 17  }
  0x10   :  { %15980 = sst [smem:[#allocation32_spill]] %s12750_s3 }
  0x11   :  { %15981 = sst [smem:[#allocation33_spill]] %s12755_s8 }
  0x12   :  { %15982 = sst [smem:[#allocation34_spill]] %s12760_s14 }
  0x13   :  { %15983 = sst [smem:[#allocation35_spill]] %s12765_s19 }
  0x14   :  { %s12775_s30 = sld [smem:[%s15876_s0 + %s12665_s26]]  }
  0x15   :  { %s12780_s6 = sld [smem:[%s15876_s0 + %s12666_s1]]  }
  0x16   :  { %s12785_s12 = sld [smem:[%s15876_s0 + %s12667_s7]]   ;;  %s12671_s7 = smov 18  }
  0x17   :  { %s12790_s20 = sld [smem:[%s15876_s0 + %s12668_s15]]   ;;  %s12672_s15 = smov 19  }
  0x18   :  { %s12795_s27 = sld [smem:[%s15876_s0 + %s12669_s22]]   ;;  %s12673_s22 = smov 20  }
  0x19   :  { %s12800_s4 = sld [smem:[%s15876_s0 + %s12670_s28]]   ;;  %s12674_s28 = smov 21  }
  0x1a   :  { %15984 = sst [smem:[#allocation36_spill]] %s12775_s30 }
  0x1b   :  { %s12810_s30 = sld [smem:[%s15876_s0 + %s12672_s15]]   ;;  %s12676_s15 = smov 23  }
  0x1c   :  { %15985 = sst [smem:[#allocation37_spill]] %s12785_s12 }
  0x1d   :  { %s12805_s12 = sld [smem:[%s15876_s0 + %s12671_s7]]   ;;  %s12675_s7 = smov 22  }
  0x1e   :  { %15986 = sst [smem:[#allocation38_spill]] %s12795_s27 }
  0x1f   :  { %15987 = sst [smem:[#allocation39_spill]] %s12800_s4 }
  0x20   :  { %s12815_s27 = sld [smem:[%s15876_s0 + %s12673_s22]]   ;;  %s12677_s22 = smov 24  }
  0x21   :  { %s12820_s4 = sld [smem:[%s15876_s0 + %s12674_s28]]   ;;  %s12678_s28 = smov 25  }
  0x22   :  { %s12830_s19 = sld [smem:[%s15876_s0 + %s12676_s15]]   ;;  %s12680_s15 = smov 27  }
  0x23   :  { %15988 = sst [smem:[#allocation40_spill]] %s12805_s12 }
  0x24   :  { %s12825_s12 = sld [smem:[%s15876_s0 + %s12675_s7]]   ;;  %s12679_s7 = smov 26  }
  0x25   :  { %s12840_s14 = sld [smem:[%s15876_s0 + %s12678_s28]]   ;;  %s12682_s28 = smov 29  }
  0x26   :  { %15989 = sst [smem:[#allocation41_spill]] %s12815_s27 }
  0x27   :  { %15990 = sst [smem:[#allocation42_spill]] %s12820_s4 }
  0x28   :  { %15992 = sst [smem:[#allocation44_spill]] %s12830_s19 }
  0x29   :  { %s12835_s27 = sld [smem:[%s15876_s0 + %s12677_s22]]   ;;  %s12681_s22 = smov 28  }
  0x2a   :  { %15991 = sst [smem:[#allocation43_spill]] %s12825_s12 }
  0x2b   :  { %s12845_s12 = sld [smem:[%s15876_s0 + %s12679_s7]]   ;;  %s12683_s7 = smov 30  }
  0x2c   :  { %s12850_s19 = sld [smem:[%s15876_s0 + %s12680_s15]]   ;;  %s12684_s15 = smov 31  }
  0x2d   :  { %s12860_s8 = sld [smem:[%s15876_s0 + %s12682_s28]]  }
  0x2e   :  { %s12870_s29 = sld [smem:[%s15876_s0 + %s12684_s15]]  }
  0x2f   :  { %15993 = sst [smem:[#allocation45_spill]] %s12835_s27 }
  0x30   :  { %s12855_s27 = sld [smem:[%s15876_s0 + %s12681_s22]]  }
  0x31   :  { %15994 = sst [smem:[#allocation46_spill]] %s12845_s12 }
  0x32   :  { %s12865_s12 = sld [smem:[%s15876_s0 + %s12683_s7]]  }
  0x34   :  { %15996 = sst [smem:[#allocation48_spill]] %s12870_s29 }
  0x38   :  { %15995 = sst [smem:[#allocation47_spill]] %s12865_s12 }
  0x39   :  { %68 = vsyncpa [#allocation3], 0 }
  0x3a   :  { %70 = vsyncpa [#allocation3 + $0x1], 0 }
  0x3b   :  { %71 = vsyncpa [#allocation5], 0 }
  0x3c   :  { %72 = vsyncpa [#allocation8], 0 }
  0x3d   :  { %73 = vsyncpa [#allocation11], 0 }
  0x3e   :  { %74 = vsyncpa [#allocation14], 0 }
  0x3f   :  { %75 = vsyncpa [#allocation17], 0 }
  0x40   :  { %76 = vsyncpa [#allocation20], 0  ;;  %s12872_s22 = smov 0   ;;  %s12874_s23 = smov 0  }
  0x41   :  { %s12876_s26 = smov 0   ;;  %s12878_s28 = smov 0  }
  0x42 LB: > { %s15997_s5 = sld [smem:[#allocation29_spill]]  ;;  %s12685_s0 = smov [#allocation4]   ;;  %s12640_s22 = sphi %s12872_s22, %s16199_s22   ;;  %s12652_s28 = sphi %s12878_s28, %s16202_s28   ;;  %s12648_s26 = sphi %s12876_s26, %s16201_s26   ;;  %s12644_s23 = sphi %s12874_s23, %s16200_s23  }
  0x43   : > { %s781_s1 = sshll.u32 %s12685_s0, 4  ;;  %s15877_s2 = sadd.s32 4294967295, %s12652_s28   ;;  %s782_s1 = int_to_ptr.vmem [resolvable:$true] %s781_s1 }
  0x44   : > { %p10064_p0 = scmp.ge.s32.totalorder %s12652_s28, 1  ;;  %p12896_p1 = scmp.eq.s32.totalorder %s15877_s2, 0 }
  0x45   : > { %p769_p2 = scmp.lt.s32.totalorder %s12652_s28, 3  ;;  %s12686_s11 = smov [#allocation7]  }
  0x46   : > { %s15998_s7 = scalar_select %p12896_p1, 1, 0 }
  0x47   : > { %p12901_p3 = pnand %p10064_p0, %p769_p2  ;;  %s811_s15 = sshll.u32 %s12686_s11, 4  ;;  %s12913_s15 = int_to_ptr.vmem [resolvable:$true] %s811_s15 }
  0x48   : > { %s12687_s18 = smov [#allocation10]   ;;  %s12265_s29 = scalar_lea.vmem %s782_s1, 9216 }
  0x49   : > { %s15999_s10 = scalar_select %p12901_p3, 1, 0 }
  0x4a   : > { %p11344_p4 = pneg %p12901_p3  ;;  %s849_s0 = sshll.u32 %s12687_s18, 4  ;;  %s12915_s0 = int_to_ptr.vmem [resolvable:$true] %s849_s0 }
  0x4b   : > { %p12266_p7 = scmp.ne.s32.totalorder %s782_s1, %s12265_s29  ;;  %p12273_p10 = scmp.lt.s32.totalorder %s782_s1, %s782_s1 }
  0x4c   : > { %p12909_p5 = pnand %p11344_p4, %p12896_p1  ;;  %p12274_p11 = scmp.lt.s32.totalorder %s12265_s29, %s12265_s29 }
  0x4e   : > { %p12919_p6 = pneg %p12909_p5  ;;  %p12275_p12 = por %p12274_p11, %p12273_p10 }
  0x50   : > { %p12268_p8 = pnand %p12266_p7, %p12919_p6 }
  0x52   : > { %p12269_p9 = pneg %p12268_p8 }
  0x54   : > { %p12276_p13 = pnand %p12275_p12, %p12269_p9 }
  0x56   : > { %12279 = shalt.err (!%p12276_p13)
}
  0x57   : > { %s15878_s11 = smov 192   ;;  %s16002_s9 = sld [smem:[#allocation30_spill]] }
  0x58   : > { %s15880_s18 = smov 12   ;;  %s12291_s12 = scalar_lea.vmem %s12913_s15, 9216 }
  0x59   : > { %p12292_p0 = scmp.ne.s32.totalorder %s12913_s15, %s12291_s12  ;;  %p12299_p7 = scmp.lt.s32.totalorder %s12913_s15, %s12913_s15 }
  0x5a   : > { %p12300_p8 = scmp.lt.s32.totalorder %s12291_s12, %s12291_s12 }
  0x5b   : > { %p12294_p2 = pnand %p12292_p0, %p12919_p6 }
  0x5c   : > { %p12301_p9 = por %p12300_p8, %p12299_p7 }
  0x5d   : > { %11347 = dma.hbm_to_vmem [thread:$0]  (!%p12909_p5), %s16002_s9, 9216, %s782_s1, [#allocation5], %s15878_s11, %s15878_s11, %s15880_s18  }
  0x5e   : > { %p12295_p4 = pneg %p12294_p2 }
  0x60   : > { %p12302_p10 = pnand %p12301_p9, %p12295_p4 }
  0x62   : > { %12305 = shalt.err (!%p12302_p10)
}
  0x63   : > { %11353 = dma.hbm_to_vmem [thread:$0]  (!%p12909_p5), %s12740_s25, 9216, %s12913_s15, [#allocation8], %s15878_s11, %s15878_s11, %s15880_s18  }
  0x64   : > { %s12317_s29 = scalar_lea.vmem %s12915_s0, 9216  ;;  %p12325_p0 = scmp.lt.s32.totalorder %s12915_s0, %s12915_s0 }
  0x65   : > { %p12318_p11 = scmp.ne.s32.totalorder %s12915_s0, %s12317_s29  ;;  %p12326_p2 = scmp.lt.s32.totalorder %s12317_s29, %s12317_s29 }
  0x67   : > { %p12320_p12 = pnand %p12318_p11, %p12919_p6  ;;  %p12327_p4 = por %p12326_p2, %p12325_p0 }
  0x69   : > { %p12321_p13 = pneg %p12320_p12 }
  0x6b   : > { %p12328_p7 = pnand %p12327_p4, %p12321_p13 }
  0x6d   : > { %12331 = shalt.err (!%p12328_p7)
}
  0x6e   : > { %11359 = dma.hbm_to_vmem [thread:$0]  (!%p12909_p5), %s12770_s24, 9216, %s12915_s0, [#allocation11], %s15878_s11, %s15878_s11, %s15880_s18  }
  0x6f   : > { %s12690_s12 = smov [#allocation13]  }
  0x70   : > { %s881_s1 = sshll.u32 %s12690_s12, 4  ;;  %s882_s1 = int_to_ptr.vmem [resolvable:$true] %s881_s1 }
  0x71   : > { %s12343_s15 = scalar_lea.vmem %s882_s1, 6144  ;;  %p12351_p11 = scmp.lt.s32.totalorder %s882_s1, %s882_s1 }
  0x72   : > { %p12344_p8 = scmp.ne.s32.totalorder %s882_s1, %s12343_s15  ;;  %p12352_p12 = scmp.lt.s32.totalorder %s12343_s15, %s12343_s15 }
  0x74   : > { %p12346_p9 = pnand %p12344_p8, %p12919_p6  ;;  %p12353_p13 = por %p12352_p12, %p12351_p11 }
  0x76   : > { %p12347_p10 = pneg %p12346_p9 }
  0x78   : > { %p12354_p0 = pnand %p12353_p13, %p12347_p10 }
  0x7a   : > { %12357 = shalt.err (!%p12354_p0)
}
  0x7b   : > { %s15885_s29 = smov 128   ;;  %s15887_s9 = smov 8  }
  0x7c   : > { %11365 = dma.hbm_to_vmem [thread:$0]  (!%p12909_p5), %s12790_s20, 6144, %s882_s1, [#allocation14], %s15885_s29, %s15885_s29, %s15887_s9  }
  0x7d   : > { %s12693_s0 = smov [#allocation16]   ;;  %s12694_s11 = smov [#allocation19]  }
  0x7e   : > { %s919_s12 = sshll.u32 %s12693_s0, 4  ;;  %s957_s18 = sshll.u32 %s12694_s11, 4  ;;  %s920_s12 = int_to_ptr.vmem [resolvable:$true] %s919_s12  ;;  %s958_s18 = int_to_ptr.vmem [resolvable:$true] %s957_s18 }
  0x7f   : > { %s12369_s15 = scalar_lea.vmem %s920_s12, 4096  ;;  %p12377_p8 = scmp.lt.s32.totalorder %s920_s12, %s920_s12 }
  0x80   : > { %p12370_p2 = scmp.ne.s32.totalorder %s920_s12, %s12369_s15  ;;  %p12378_p9 = scmp.lt.s32.totalorder %s12369_s15, %s12369_s15 }
  0x82   : > { %p12372_p4 = pnand %p12370_p2, %p12919_p6  ;;  %p12379_p10 = por %p12378_p9, %p12377_p8 }
  0x84   : > { %p12373_p7 = pneg %p12372_p4 }
  0x86   : > { %p12380_p11 = pnand %p12379_p10, %p12373_p7 }
  0x88   : > { %12383 = shalt.err (!%p12380_p11)
}
  0x89   : > { %s16003_s4 = sld [smem:[#allocation42_spill]]  ;;  %s12395_s11 = scalar_lea.vmem %s958_s18, 4096 }
  0x8a   : > { %p12396_p12 = scmp.ne.s32.totalorder %s958_s18, %s12395_s11  ;;  %p12403_p2 = scmp.lt.s32.totalorder %s958_s18, %s958_s18 }
  0x8b   : > { %p12404_p4 = scmp.lt.s32.totalorder %s12395_s11, %s12395_s11 }
  0x8c   : > { %p12398_p13 = pnand %p12396_p12, %p12919_p6 }
  0x8d   : > { %p12405_p3 = por %p12404_p4, %p12403_p2 }
  0x8e   : > { %p12399_p0 = pneg %p12398_p13 }
  0x8f   : > { %11371 = dma.hbm_to_vmem [thread:$0]  (!%p12909_p5), %s16003_s4, 4096, %s920_s12, [#allocation17], %s15885_s29, %s15885_s29, %s15887_s9  }
  0x90   : > { %p12406_p1 = pnand %p12405_p3, %p12399_p0 }
  0x92   : > { %12409 = shalt.err (!%p12406_p1)
}
  0x93   : > { %11377 = dma.hbm_to_vmem [thread:$0]  (!%p12909_p5), %s12850_s19, 4096, %s958_s18, [#allocation20], %s15885_s29, %s15885_s29, %s15887_s9  }
  0x94   : > { %s12695_s1 = smov [#allocation6]   ;;  %s12696_s12 = smov [#allocation9]  }
  0x95   : > { %s798_s0 = sshll.u32 %s12695_s1, 4  ;;  %s827_s15 = sshll.u32 %s12696_s12, 4  ;;  %s799_s0 = int_to_ptr.vmem [resolvable:$true] %s798_s0  ;;  %s828_s15 = int_to_ptr.vmem [resolvable:$true] %s827_s15 }
  0x96   : > { %s12421_s4 = scalar_lea.vmem %s799_s0, 48  ;;  %s12428_s11 = scalar_lea.vmem %s799_s0, 64 }
  0x97   : > { %p12422_p7 = scmp.ne.s32.totalorder %s799_s0, %s12421_s4  ;;  %p12429_p1 = scmp.lt.s32.totalorder %s799_s0, %s799_s0 }
  0x98   : > { %p12430_p9 = scmp.lt.s32.totalorder %s12428_s11, %s12421_s4 }
  0x99   : > { %p12424_p8 = pnand %p12422_p7, %p12919_p6 }
  0x9a   : > { %p12431_p10 = por %p12430_p9, %p12429_p1 }
  0x9b   : > { %p12425_p3 = pneg %p12424_p8 }
  0x9d   : > { %p12432_p11 = pnand %p12431_p10, %p12425_p3 }
  0x9f   : > { %12435 = shalt.err (!%p12432_p11)
}
  0xa0   : > { %11350 = dma.hbm_to_vmem [thread:$0]  (!%p12909_p5), %s12730_s17, 48, %s799_s0, [#allocation5]  }
  0xa1   : > { %s12447_s18 = scalar_lea.vmem %s828_s15, 9216  ;;  %p12455_p2 = scmp.lt.s32.totalorder %s828_s15, %s828_s15 }
  0xa2   : > { %p12448_p12 = scmp.ne.s32.totalorder %s828_s15, %s12447_s18  ;;  %p12456_p4 = scmp.lt.s32.totalorder %s12447_s18, %s12447_s18 }
  0xa4   : > { %p12450_p13 = pnand %p12448_p12, %p12919_p6  ;;  %p12457_p7 = por %p12456_p4, %p12455_p2 }
  0xa6   : > { %p12451_p0 = pneg %p12450_p13 }
  0xa8   : > { %p12458_p8 = pnand %p12457_p7, %p12451_p0 }
  0xaa   : > { %12461 = shalt.err (!%p12458_p8)
}
  0xab   : > { %s16004_s4 = smov 12   ;;  %s16005_s1 = smov 192  }
  0xac   : > { %s16006_s3 = sld [smem:[#allocation32_spill]]  ;;  %s12697_s12 = smov [#allocation12]  }
  0xad   : > { %s865_s0 = sshll.u32 %s12697_s12, 4  ;;  %s12698_s11 = smov [#allocation15]   ;;  %s866_s0 = int_to_ptr.vmem [resolvable:$true] %s865_s0 }
  0xae   : > { %s903_s29 = sshll.u32 %s12698_s11, 4  ;;  %s12473_s9 = scalar_lea.vmem %s866_s0, 9216  ;;  %s904_s29 = int_to_ptr.vmem [resolvable:$true] %s903_s29 }
  0xaf   : > { %p12474_p3 = scmp.ne.s32.totalorder %s866_s0, %s12473_s9  ;;  %p12481_p10 = scmp.lt.s32.totalorder %s866_s0, %s866_s0 }
  0xb0   : > { %p12482_p11 = scmp.lt.s32.totalorder %s12473_s9, %s12473_s9 }
  0xb1   : > { %p12476_p1 = pnand %p12474_p3, %p12919_p6 }
  0xb2   : > { %11356 = dma.hbm_to_vmem [thread:$0]  (!%p12909_p5), %s16006_s3, 9216, %s828_s15, [#allocation8], %s16005_s1, %s16005_s1, %s16004_s4  }
  0xb3   : > { %p12477_p9 = pneg %p12476_p1  ;;  %p12483_p12 = por %p12482_p11, %p12481_p10 }
  0xb5   : > { %p12484_p13 = pnand %p12483_p12, %p12477_p9 }
  0xb7   : > { %12487 = shalt.err (!%p12484_p13)
}
  0xb8   : > { %11362 = dma.hbm_to_vmem [thread:$0]  (!%p12909_p5), %s12780_s6, 9216, %s866_s0, [#allocation11], %s16005_s1, %s16005_s1, %s16004_s4  }
  0xb9   : > { %s12499_s15 = scalar_lea.vmem %s904_s29, 4096  ;;  %p12507_p7 = scmp.lt.s32.totalorder %s904_s29, %s904_s29 }
  0xba   : > { %p12500_p0 = scmp.ne.s32.totalorder %s904_s29, %s12499_s15  ;;  %p12508_p8 = scmp.lt.s32.totalorder %s12499_s15, %s12499_s15 }
  0xbc   : > { %p12502_p2 = pnand %p12500_p0, %p12919_p6  ;;  %p12509_p3 = por %p12508_p8, %p12507_p7 }
  0xbe   : > { %p12503_p4 = pneg %p12502_p2 }
  0xc0   : > { %p12510_p1 = pnand %p12509_p3, %p12503_p4 }
  0xc2   : > { %12513 = shalt.err (!%p12510_p1)
}
  0xc3   : > { %s16007_s9 = smov 8   ;;  %s16008_s18 = smov 128  }
  0xc4   : > { %11368 = dma.hbm_to_vmem [thread:$0]  (!%p12909_p5), %s12810_s30, 4096, %s904_s29, [#allocation14], %s16008_s18, %s16008_s18, %s16007_s9  }
  0xc5   : > { %s12699_s12 = smov [#allocation18]   ;;  %s12700_s1 = smov [#allocation21]  }
  0xc6   : > { %s941_s4 = sshll.u32 %s12699_s12, 4  ;;  %s973_s0 = sshll.u32 %s12700_s1, 4  ;;  %s942_s4 = int_to_ptr.vmem [resolvable:$true] %s941_s4  ;;  %s974_s0 = int_to_ptr.vmem [resolvable:$true] %s973_s0 }
  0xc7   : > { %s12525_s11 = scalar_lea.vmem %s942_s4, 4096  ;;  %p12533_p12 = scmp.lt.s32.totalorder %s942_s4, %s942_s4 }
  0xc8   : > { %p12526_p9 = scmp.ne.s32.totalorder %s942_s4, %s12525_s11  ;;  %p12534_p13 = scmp.lt.s32.totalorder %s12525_s11, %s12525_s11 }
  0xca   : > { %p12528_p10 = pnand %p12526_p9, %p12919_p6  ;;  %p12535_p0 = por %p12534_p13, %p12533_p12 }
  0xcc   : > { %p12529_p11 = pneg %p12528_p10 }
  0xce   : > { %p12536_p2 = pnand %p12535_p0, %p12529_p11 }
  0xd0   : > { %12539 = shalt.err (!%p12536_p2)
}
  0xd1   : > { %11374 = dma.hbm_to_vmem [thread:$0]  (!%p12909_p5), %s12840_s14, 4096, %s942_s4, [#allocation17], %s16008_s18, %s16008_s18, %s16007_s9  }
  0xd2   : > { %s12551_s29 = scalar_lea.vmem %s974_s0, 2048  ;;  %p12559_p3 = scmp.lt.s32.totalorder %s974_s0, %s974_s0 }
  0xd3   : > { %p12552_p4 = scmp.ne.s32.totalorder %s974_s0, %s12551_s29  ;;  %p12560_p1 = scmp.lt.s32.totalorder %s12551_s29, %s12551_s29 }
  0xd5   : > { %p12554_p7 = pnand %p12552_p4, %p12919_p6  ;;  %p12561_p9 = por %p12560_p1, %p12559_p3 }
  0xd7   : > { %p12555_p8 = pneg %p12554_p7 }
  0xd9   : > { %p12562_p10 = pnand %p12561_p9, %p12555_p8 }
  0xdb   : > { %12565 = shalt.err (!%p12562_p10)
}
  0xdc   : > { %s12701_s15 = smov 64   ;;  %s12702_s2 = smov 4  }
  0xdd   : > { %11380 = dma.hbm_to_vmem [thread:$0]  (!%p12909_p5), %s12860_s8, 2048, %s974_s0, [#allocation20], %s12701_s15, %s12701_s15, %s12702_s2  }
  0xde   : > { %s13024_s9 = sadd.s32 1, %s12652_s28   ;;  %s89_s18 = sadd.s32 1, %s12648_s26 }
  0xdf   : > { %s86_s12 = ssub.s32 %s12652_s28, %s13024_s9  ;;  %p96_p6 = scmp.ne.s32.totalorder %s12648_s26, %s12644_s23 }
  0xe0   : > { %p87_p11 = scmp.eq.s32.totalorder %s86_s12, 0  ;;  %p97_p12 = scmp.eq.s32.totalorder %s12652_s28, 0 }
  0xe1   : > { %p102_p13 = scmp.ne.s32.totalorder %s12644_s23, %s12640_s22  ;;  %p11397_p0 = scmp.lt.s32.totalorder %s12652_s28, 2 }
  0xe2   : > { %s13036_s4 = scalar_select %p87_p11, %s12648_s26, %s89_s18  }
  0xe3   : > { %p98_p2 = por %p97_p12, %p96_p6  ;;  %p16009_p4 = scmp.ne.s32.totalorder %s15998_s7, 0 }
  0xe4   : > { %s990_s16 = sand.u32 1, %s12648_s26   ;;  %s11292_s0 = smul.u32 6144, %s12652_s28 }
  0xe5   : > { %p13040_p7 = por %p16009_p4, %p102_p13  ;;  %s11291_s11 = smul.u32 384, %s990_s16 }
  0xe6   : > { %s13047_s29 = scalar_lea.hbm %s15997_s5, %s11292_s0  ;;  %p13049_p5 = pnand %p11397_p0, %p98_p2 }
  0xe7   : > { %s16010_s1 = scalar_select %p13040_p7, 1, 0 }
  0xe8   : > { %s994_s15 = scalar_lea.vmem [#allocation2], %s11291_s11  ;;  %s13055_s18 = scalar_lea.sflag [#allocation3], %s990_s16 }
  0xe9   : > { %s1002_s2 = sshll.u32 %s994_s15, 4  ;;  %s12566_s12 = scalar_lea.hbm %s13047_s29, 6144  ;;  %s13053_s2 = int_to_ptr.vmem [resolvable:$true] %s1002_s2 }
  0xea   : > { %p12567_p8 = scmp.ne.s32.totalorder %s13047_s29, %s12566_s12  ;;  %p12568_p3 = pneg %p13049_p5 }
  0xeb   : > { %s12571_s0 = scalar_lea.hbm %s15997_s5, 12288  ;;  %p12572_p10 = scmp.lt.s32.totalorder %s13047_s29, %s15997_s5 }
  0xec   : > { %p12569_p1 = pnand %p12568_p3, %p12567_p8  ;;  %p12573_p6 = scmp.lt.s32.totalorder %s12571_s0, %s12566_s12 }
  0xee   : > { %p12570_p9 = pneg %p12569_p1  ;;  %p12574_p11 = por %p12573_p6, %p12572_p10 }
  0xf0   : > { %p12575_p12 = pnand %p12574_p11, %p12570_p9 }
  0xf2   : > { %12578 = shalt.err (!%p12575_p12)
}
  0xf3   : > { %s12579_s11 = scalar_lea.vmem %s13053_s2, 6144  ;;  %s12703_s16 = smov [#allocation2]  }
  0xf4   : > { %p12580_p13 = scmp.ne.s32.totalorder %s13053_s2, %s12579_s11  ;;  %s12584_s15 = sshll.u32 %s12703_s16, 4  ;;  %s12585_s15 = int_to_ptr.vmem [resolvable:$false] %s12584_s15 }
  0xf5   : > { %s12586_s3 = scalar_lea.vmem %s12585_s15, 12288  ;;  %p12587_p4 = scmp.lt.s32.totalorder %s13053_s2, %s12585_s15 }
  0xf6   : > { %p12582_p0 = pnand %p12580_p13, %p12568_p3  ;;  %p12588_p8 = scmp.lt.s32.totalorder %s12586_s3, %s12579_s11 }
  0xf8   : > { %p12583_p2 = pneg %p12582_p0  ;;  %p12589_p1 = por %p12588_p8, %p12587_p4 }
  0xfa   : > { %p12590_p7 = pnand %p12589_p1, %p12583_p2 }
  0xfc   : > { %12593 = shalt.err (!%p12590_p7)
}
  0xfd   : > { %s12704_s12 = smov 384   ;;  %s12705_s0 = smov 24  }
  0xfe   : > { %11384 = dma.hbm_to_vmem [thread:$0]  (!%p13049_p5), %s13047_s29, 6144, %s13053_s2, %s13055_s18, %s12704_s12, %s12704_s12, %s12705_s0  }
  0xff   : > { %p16012_p3 = scmp.ne.s32.totalorder %s15999_s10, 0 }
 0x101   : > { %1014 = sbr.rel (%p16012_p3) target bundleno = 3015 (0xbc7), region = 144 }
 0x106   : > { %s1016_s16 = sand.u32 1, %s12644_s23   ;;  %p16013_p9 = scmp.ne.s32.totalorder %s16010_s1, 0 }
 0x107   : > { %s11293_s5 = smul.u32 384, %s1016_s16  ;;  %s1017_s15 = scalar_lea.sflag [#allocation3], %s1016_s16 }
 0x109   : > { %s13075_s3 = scalar_lea.vmem [#allocation2], %s11293_s5 }
 0x10a   : > { %12611 = dma.done.wait (%p16013_p9), %s1017_s15, 6144  }
 0x10b   : > { %12613 = vsyncadd (%p16013_p9), %s1017_s15, 4294961152  ;;  %p16014_p7 = scmp.ne.s32.totalorder %s15998_s7, 0 }
 0x10d   : > { %12615 = dma.done.wait (%p16014_p7), [#allocation5], 9264  }
 0x10e   : > { %12617 = vsyncadd (%p16014_p7), [#allocation5], 4294958032 }
 0x10f   : > { %12619 = dma.done.wait (%p16014_p7), [#allocation8], 18432  }
 0x110   : > { %12621 = vsyncadd (%p16014_p7), [#allocation8], 4294948864 }
 0x111   : > { %12623 = dma.done.wait (%p16014_p7), [#allocation11], 18432  }
 0x112   : > { %12625 = vsyncadd (%p16014_p7), [#allocation11], 4294948864 }
 0x113   : > { %12627 = dma.done.wait (%p16014_p7), [#allocation14], 10240  }
 0x114   : > { %12629 = vsyncadd (%p16014_p7), [#allocation14], 4294957056 }
 0x115   : > { %12631 = dma.done.wait (%p16014_p7), [#allocation17], 8192  }
 0x116   : > { %12633 = vsyncadd (%p16014_p7), [#allocation17], 4294959104 }
 0x117   : > { %12635 = dma.done.wait (%p16014_p7), [#allocation20], 6144  }
 0x118   : > { %12637 = vsyncadd (%p16014_p7), [#allocation20], 4294961152  ;;  %v15891_v0 = vmov 0   ;;  %v11494_v1 = vld [vmem:[#allocation4 + $0xac] ss:$12 sps:$4 sm:$0xff]   ;;  %v1157_v34 = vld [vmem:[%s13075_s3 + $0x10] sm:$0xff] }
 0x119   : > { %1869 = vmatprep.mubr.bf16.mxu1 %v15891_v0  ;;  %v11496_v2 = vld [vmem:[#allocation4 + $0x22c] ss:$12 sps:$4 sm:$0xff]   ;;  %1724 = vmatprep.subr.bf16.mxu0 %v11494_v1  ;;  %v11498_v3 = vld [vmem:[#allocation4 + $0xa8] ss:$12 sps:$4 sm:$0xff]   ;;  %v11504_v7 = vld [vmem:[#allocation4 + $0x90] ss:$12 sps:$4 sm:$0xff]  }
 0x11a   : > { %v11499_v4 = vld [vmem:[#allocation4 + $0x228] ss:$12 sps:$4 sm:$0xff]   ;;  %1837 = vmatprep.subr.bf16.mxu1 %v11496_v2  ;;  %1725 = vmatpush1.bf16.msra.mxu0 %v11498_v3  ;;  %v11505_v8 = vld [vmem:[#allocation4 + $0x210] ss:$12 sps:$4 sm:$0xff]   ;;  %v11510_v11 = vld [vmem:[#allocation4 + $0x78] ss:$12 sps:$4 sm:$0xff]  }
 0x11b   : > { %v11500_v5 = vld [vmem:[#allocation4 + $0x94] ss:$12 sps:$4 sm:$0xff]   ;;  %1838 = vmatpush1.bf16.msra.mxu1 %v11499_v4  ;;  %v11506_v9 = vld [vmem:[#allocation4 + $0x7c] ss:$12 sps:$4 sm:$0xff]   ;;  %v11511_v12 = vld [vmem:[#allocation4 + $0x1f8] ss:$12 sps:$4 sm:$0xff]  }
 0x11c   : > { %v11502_v6 = vld [vmem:[#allocation4 + $0x214] ss:$12 sps:$4 sm:$0xff]   ;;  %1726 = vmatprep.subr.bf16.mxu0 %v11500_v5  ;;  %v11508_v10 = vld [vmem:[#allocation4 + $0x1fc] ss:$12 sps:$4 sm:$0xff]   ;;  %v11512_v13 = vld [vmem:[#allocation4 + $0x64] ss:$12 sps:$4 sm:$0xff]  }
 0x11d   : > { %1839 = vmatprep.subr.bf16.mxu1 %v11502_v6  ;;  %v11514_v14 = vld [vmem:[#allocation4 + $0x1e4] ss:$12 sps:$4 sm:$0xff]   ;;  %v11516_v15 = vld [vmem:[#allocation4 + $0x60] ss:$12 sps:$4 sm:$0xff]   ;;  %v11522_v19 = vld [vmem:[#allocation4 + $0x48] ss:$12 sps:$4 sm:$0xff]  }
 0x11e   : > { %1727 = vmatpush1.bf16.msra.mxu0 %v11504_v7  ;;  %v11517_v16 = vld [vmem:[#allocation4 + $0x1e0] ss:$12 sps:$4 sm:$0xff]   ;;  %v11523_v20 = vld [vmem:[#allocation4 + $0x1c8] ss:$12 sps:$4 sm:$0xff]   ;;  %v11528_v23 = vld [vmem:[#allocation4 + $0x30] ss:$12 sps:$4 sm:$0xff]  }
 0x11f   : > { %1840 = vmatpush1.bf16.msra.mxu1 %v11505_v8  ;;  %1728 = vmatprep.subr.bf16.mxu0 %v11506_v9  ;;  %v11518_v17 = vld [vmem:[#allocation4 + $0x4c] ss:$12 sps:$4 sm:$0xff]   ;;  %v11524_v21 = vld [vmem:[#allocation4 + $0x34] ss:$12 sps:$4 sm:$0xff]   ;;  %v11529_v24 = vld [vmem:[#allocation4 + $0x1b0] ss:$12 sps:$4 sm:$0xff]  }
 0x120   : > { %1841 = vmatprep.subr.bf16.mxu1 %v11508_v10  ;;  %v11520_v18 = vld [vmem:[#allocation4 + $0x1cc] ss:$12 sps:$4 sm:$0xff]   ;;  %v11526_v22 = vld [vmem:[#allocation4 + $0x1b4] ss:$12 sps:$4 sm:$0xff]   ;;  %v11530_v25 = vld [vmem:[#allocation4 + $0x1c] ss:$12 sps:$4 sm:$0xff]  }
 0x121   : > { %v11532_v26 = vld [vmem:[#allocation4 + $0x19c] ss:$12 sps:$4 sm:$0xff]   ;;  %v11534_v27 = vld [vmem:[#allocation4 + $0x18] ss:$12 sps:$4 sm:$0xff]   ;;  %v11540_v31 = vld [vmem:[#allocation4] ss:$12 sps:$4 sm:$0xff]  }
 0x122   : > { %1729 = vmatpush1.bf16.msra.mxu0 %v11510_v11  ;;  %v11535_v28 = vld [vmem:[#allocation4 + $0x198] ss:$12 sps:$4 sm:$0xff]   ;;  %v11541_v32 = vld [vmem:[#allocation4 + $0x180] ss:$12 sps:$4 sm:$0xff]   ;;  %v11553_v36 = vld [vmem:[#allocation4 + $0x170] ss:$12 sps:$4 sm:$0xff]  }
 0x123   : > { %1842 = vmatpush1.bf16.msra.mxu1 %v11511_v12  ;;  %1730 = vmatprep.subr.bf16.mxu0 %v11512_v13  ;;  %v11536_v29 = vld [vmem:[#allocation4 + $0x4] ss:$12 sps:$4 sm:$0xff]   ;;  %v11542_v33 = vld [vmem:[#allocation4 + $0x16c] ss:$12 sps:$4 sm:$0xff]   ;;  %v11544_v38 = vld [vmem:[#allocation4 + $0x168] ss:$12 sps:$4 sm:$0xff]  }
 0x124   : > { %1843 = vmatprep.subr.bf16.mxu1 %v11514_v14  ;;  %v11538_v30 = vld [vmem:[#allocation4 + $0x184] ss:$12 sps:$4 sm:$0xff]   ;;  %v1160_v35 = vld [vmem:[%s13075_s3 + $0x28] sm:$0xff]  ;;  %v11545_v39 = vld [vmem:[#allocation4 + $0x154] ss:$12 sps:$4 sm:$0xff]   ;;  %s16068_s5 = sld [smem:[#allocation31_spill]] }
 0x125   : > { %v13108_v37 = vpack.c.bf16 %v1160_v35, %v1157_v34  ;;  %v11555_v40 = vld [vmem:[#allocation4 + $0xb0] ss:$12 sps:$4 sm:$0xff]   ;;  %v11561_v41 = vld [vmem:[#allocation4 + $0x158] ss:$12 sps:$4 sm:$0xff]   ;;  %v11569_v48 = vld [vmem:[#allocation4 + $0x140] ss:$12 sps:$4 sm:$0xff]  }
 0x126   : > { %1731 = vmatpush1.bf16.msra.mxu0 %v11516_v15  ;;  %v11547_v42 = vld [vmem:[#allocation4 + $0x150] ss:$12 sps:$4 sm:$0xff]   ;;  %v1163_v44 = vld [vmem:[%s13075_s3 + $0x40] sm:$0xff]  ;;  %v1156_v50 = vld [vmem:[%s13075_s3 + $0x8] sm:$0xff]  ;;  %s16071_s7 = sld [smem:[#allocation33_spill]] }
 0x127   : > { %1844 = vmatpush1.bf16.msra.mxu1 %v11517_v16  ;;  %1732 = vmatprep.subr.bf16.mxu0 %v11518_v17  ;;  %v11548_v43 = vld [vmem:[#allocation4 + $0x13c] ss:$12 sps:$4 sm:$0xff]   ;;  %v11563_v46 = vld [vmem:[#allocation4 + $0x98] ss:$12 sps:$4 sm:$0xff]   ;;  %v11571_v52 = vld [vmem:[#allocation4 + $0x80] ss:$12 sps:$4 sm:$0xff]  }
 0x128   : > { %1845 = vmatprep.subr.bf16.mxu1 %v11520_v18  ;;  %v1166_v45 = vld [vmem:[%s13075_s3 + $0x58] sm:$0xff]  ;;  %v11551_v51 = vld [vmem:[#allocation4 + $0x124] ss:$12 sps:$4 sm:$0xff]   ;;  %v11554_v54 = vld [vmem:[#allocation4 + $0x120] ss:$12 sps:$4 sm:$0xff]   ;;  %s16072_s10 = sld [smem:[#allocation34_spill]] }
 0x129   : > { %v13114_v47 = vpack.c.bf16 %v1166_v45, %v1163_v44  ;;  %v11550_v49 = vld [vmem:[#allocation4 + $0x138] ss:$12 sps:$4 sm:$0xff]   ;;  %v1169_v55 = vld [vmem:[%s13075_s3 + $0x70] sm:$0xff]  ;;  %v1172_v57 = vld [vmem:[%s13075_s3 + $0x88] sm:$0xff]  ;;  %s16073_s1 = sld [smem:[#allocation35_spill]] }
 0x12a   : > { %1733 = vmatpush1.bf16.msra.mxu0 %v11522_v19  ;;  %v1159_v53 = vld [vmem:[%s13075_s3 + $0x20] sm:$0xff]  ;;  %v11573_v58 = vld [vmem:[#allocation4 + $0x128] ss:$12 sps:$4 sm:$0xff]   ;;  %v11556_v59 = vld [vmem:[#allocation4 + $0x10c] ss:$12 sps:$4 sm:$0xff]   ;;  %v13125_v61 = vpack.c.bf16 %v1172_v57, %v1169_v55  ;;  %s16152_s29 = sld [smem:[#allocation36_spill]] }
 0x12b   : > { %1846 = vmatpush1.bf16.msra.mxu1 %v11523_v20  ;;  %1734 = vmatprep.subr.bf16.mxu0 %v11524_v21  ;;  %v13119_v56 = vpack.c.bf16 %v1159_v53, %v1156_v50  ;;  %v11574_v60 = vld [vmem:[#allocation4 + $0x68] ss:$12 sps:$4 sm:$0xff]   ;;  %v11576_v1 = vld [vmem:[#allocation4 + $0x110] ss:$12 sps:$4 sm:$0xff]   ;;  %v1175_v4 = vld [vmem:[%s13075_s3 + $0xa0] sm:$0xff]  ;;  %s16153_s22 = sld [smem:[#allocation37_spill]] }
 0x12c   : > { %1847 = vmatprep.subr.bf16.mxu1 %v11526_v22  ;;  %v11558_v62 = vld [vmem:[#allocation4 + $0x108] ss:$12 sps:$4 sm:$0xff]   ;;  %v11577_v2 = vld [vmem:[#allocation4 + $0x50] ss:$12 sps:$4 sm:$0xff]   ;;  %v11579_v7 = vld [vmem:[#allocation4 + $0xf8] ss:$12 sps:$4 sm:$0xff]  }
 0x12d   : > { %1756 = vmatprep.mubr.bf16.mxu0 %v13119_v56  ;;  %v11559_v63 = vld [vmem:[#allocation4 + $0xf4] ss:$12 sps:$4 sm:$0xff]   ;;  %v11562_v3 = vld [vmem:[#allocation4 + $0xf0] ss:$12 sps:$4 sm:$0xff]   ;;  %v11580_v9 = vld [vmem:[#allocation4 + $0x38] ss:$12 sps:$4 sm:$0xff]  }
 0x12e   : > { %1735 = vmatpush1.bf16.msra.mxu0 %v11528_v23  ;;  %v1178_v5 = vld [vmem:[%s13075_s3 + $0xb8] sm:$0xff]  ;;  %v11567_v11 = vld [vmem:[#allocation4 + $0xc4] ss:$12 sps:$4 sm:$0xff]   ;;  %v11570_v12 = vld [vmem:[#allocation4 + $0xc0] ss:$12 sps:$4 sm:$0xff]   ;;  %s16186_s2 = sld [smem:[#allocation38_spill]] }
 0x12f   : > { %1848 = vmatpush1.bf16.msra.mxu1 %v11529_v24  ;;  %1736 = vmatprep.subr.bf16.mxu0 %v11530_v25  ;;  %v11564_v6 = vld [vmem:[#allocation4 + $0xdc] ss:$12 sps:$4 sm:$0xff]   ;;  %v13131_v8 = vpack.c.bf16 %v1178_v5, %v1175_v4  ;;  %v11566_v10 = vld [vmem:[#allocation4 + $0xd8] ss:$12 sps:$4 sm:$0xff]   ;;  %v1181_v15 = vld [vmem:[%s13075_s3 + $0xd0] sm:$0xff]  ;;  %s16187_s18 = sld [smem:[#allocation39_spill]] }
 0x130   : > { %1849 = vmatprep.subr.bf16.mxu1 %v11532_v26  ;;  %v1155_v13 = vld [vmem:[%s13075_s3] sm:$0xff]  ;;  %v1158_v14 = vld [vmem:[%s13075_s3 + $0x18] sm:$0xff]  ;;  %v1184_v16 = vld [vmem:[%s13075_s3 + $0xe8] sm:$0xff]  ;;  %s16188_s11 = sld [smem:[#allocation40_spill]] }
 0x131   : > { %v11581_v17 = vld [vmem:[#allocation4 + $0xe0] ss:$12 sps:$4 sm:$0xff]   ;;  %v11572_v18 = vld [vmem:[#allocation4 + $0x230] ss:$12 sps:$4 sm:$0xff]   ;;  %v11584_v22 = vld [vmem:[#allocation4 + $0xc8] ss:$12 sps:$4 sm:$0xff]   ;;  %v13141_v24 = vpack.c.bf16 %v1158_v14, %v1155_v13  ;;  %v13143_v25 = vpack.c.bf16 %v1184_v16, %v1181_v15 }
 0x132   : > { %1737 = vmatpush1.bf16.msra.mxu0 %v11534_v27  ;;  %v1162_v19 = vld [vmem:[%s13075_s3 + $0x38] sm:$0xff]  ;;  %v1165_v20 = vld [vmem:[%s13075_s3 + $0x50] sm:$0xff]  ;;  %v11583_v21 = vld [vmem:[#allocation4 + $0x20] ss:$12 sps:$4 sm:$0xff]   ;;  %s16189_s12 = sld [smem:[#allocation41_spill]] }
 0x133   : > { %1850 = vmatpush1.bf16.msra.mxu1 %v11535_v28  ;;  %1738 = vmatprep.subr.bf16.mxu0 %v11536_v29  ;;  %v11585_v23 = vld [vmem:[#allocation4 + $0x8] ss:$12 sps:$4 sm:$0xff]   ;;  %v13145_v26 = vpack.c.bf16 %v1165_v20, %v1162_v19  ;;  %v11575_v27 = vld [vmem:[#allocation4 + $0x218] ss:$12 sps:$4 sm:$0xff]   ;;  %v11578_v34 = vld [vmem:[#allocation4 + $0x200] ss:$12 sps:$4 sm:$0xff]  }
 0x134   : > { %1851 = vmatprep.subr.bf16.mxu1 %v11538_v30  ;;  %v1161_v28 = vld [vmem:[%s13075_s3 + $0x30] sm:$0xff]  ;;  %v1164_v29 = vld [vmem:[%s13075_s3 + $0x48] sm:$0xff]  ;;  %v1187_v30 = vld [vmem:[%s13075_s3 + $0x100] sm:$0xff]  ;;  %s16190_s0 = sld [smem:[#allocation43_spill]] }
 0x135   : > { %v13157_v35 = vpack.c.bf16 %v1164_v29, %v1161_v28  ;;  %v11582_v44 = vld [vmem:[#allocation4 + $0x1e8] ss:$12 sps:$4 sm:$0xff]   ;;  %v1174_v45 = vld [vmem:[%s13075_s3 + $0x98] sm:$0xff]  ;;  %v1199_v55 = vld [vmem:[%s13075_s3 + $0x160] sm:$0xff]  ;;  %s16191_s16 = sld [smem:[#allocation44_spill]] }
 0x136   : > { %1739 = vmatpush1.bf16.msra.mxu0 %v11540_v31  ;;  %v1190_v31 = vld [vmem:[%s13075_s3 + $0x118] sm:$0xff]  ;;  %v1173_v53 = vld [vmem:[%s13075_s3 + $0x90] sm:$0xff]  ;;  %v1192_v14 = vld [vmem:[%s13075_s3 + $0x128] sm:$0xff]  ;;  %s16192_s15 = sld [smem:[#allocation45_spill]] }
 0x137   : > { %1852 = vmatpush1.bf16.msra.mxu1 %v11541_v32  ;;  %1740 = vmatprep.subr.bf16.mxu0 %v11542_v33  ;;  %v1168_v32 = vld [vmem:[%s13075_s3 + $0x68] sm:$0xff]  ;;  %v1171_v33 = vld [vmem:[%s13075_s3 + $0x80] sm:$0xff]  ;;  %v1202_v57 = vld [vmem:[%s13075_s3 + $0x178] sm:$0xff] }
 0x138   : > { %10651 = vmatprep.subr.bf16.mxu1 %v11553_v36  ;;  %v13159_v36 = vpack.c.bf16 %v1190_v31, %v1187_v30  ;;  %v1182_v4 = vld [vmem:[%s13075_s3 + $0xd8] sm:$0xff]  ;;  %v1195_v15 = vld [vmem:[%s13075_s3 + $0x140] sm:$0xff]  ;;  %v1197_v31 = vld [vmem:[%s13075_s3 + $0x150] sm:$0xff] }
 0x139   : > { %v1186_v5 = vld [vmem:[%s13075_s3 + $0xf8] sm:$0xff]  ;;  %v11598_v16 = vld [vmem:[#allocation7 + $0x7c] ss:$12 sps:$4 sm:$0xff]   ;;  %v13215_v19 = vpack.c.bf16 %v1195_v15, %v1192_v14 }
 0x13a   : > { %1870 = vmatmul.mubr.bf16.vlgmr.msra.gmra.mxu1 %v13108_v37  ;;  %1741 = vmatpush2.bf16.msra.mxu0 %v11544_v38  ;;  %v13161_v38 = vpack.c.bf16 %v1171_v33, %v1168_v32  ;;  %v11595_v13 = vld [vmem:[#allocation7 + $0x94] ss:$12 sps:$4 sm:$0xff]   ;;  %v1200_v32 = vld [vmem:[%s13075_s3 + $0x168] sm:$0xff] }
 0x13b   : > { %1879 = vmatprep.mubr.bf16.mxu1 %v15891_v0  ;;  %1742 = vmatprep.subr.bf16.mxu0 %v11545_v39  ;;  %v11592_v39 = vld [vmem:[#allocation7 + $0xac] ss:$12 sps:$4 sm:$0xff]   ;;  %v1191_v20 = vld [vmem:[%s13075_s3 + $0x120] sm:$0xff]  ;;  %v11602_v29 = vld [vmem:[#allocation7 + $0x48] ss:$12 sps:$4 sm:$0xff]  }
 0x13c   : > { %10652 = vmatpush3.bf16.msra.mxu1 %v11555_v40  ;;  %v1167_v40 = vld [vmem:[%s13075_s3 + $0x60] sm:$0xff] }
 0x13d   : > { %10653 = vmatprep.subr.bf16.mxu1 %v11561_v41  ;;  %v1170_v41 = vld [vmem:[%s13075_s3 + $0x78] sm:$0xff] }
 0x13e   : > { %1743 = vmatpush2.bf16.msra.mxu0 %v11547_v42  ;;  %v1193_v42 = vld [vmem:[%s13075_s3 + $0x130] sm:$0xff]  ;;  %v11607_v33 = vld [vmem:[#allocation7 + $0x34] ss:$12 sps:$4 sm:$0xff]  }
 0x13f   : > { %1744 = vmatprep.subr.bf16.mxu0 %v11548_v43  ;;  %v1196_v43 = vld [vmem:[%s13075_s3 + $0x148] sm:$0xff] }
 0x140   : > { %10654 = vmatpush3.bf16.msra.mxu1 %v11563_v46  ;;  %v1177_v46 = vld [vmem:[%s13075_s3 + $0xb0] sm:$0xff]  ;;  %v13175_v50 = vpack.c.bf16 %v1196_v43, %v1193_v42  ;;  %v11614_v43 = vld [vmem:[#allocation7 + $0x168] ss:$12 sps:$4 sm:$0xff]  }
 0x141   : > { %10655 = vmatprep.subr.bf16.mxu1 %v11569_v48  ;;  %v11586_v48 = vld [vmem:[#allocation4 + $0x1d0] ss:$12 sps:$4 sm:$0xff]  }
 0x142   : > { %1880 = vmatmul.mubr.bf16.gmra.mxu1 %v13114_v47  ;;  %1745 = vmatpush2.bf16.msra.mxu0 %v11550_v49  ;;  %v13173_v49 = vpack.c.bf16 %v1170_v41, %v1167_v40  ;;  %v11613_v40 = vld [vmem:[#allocation7 + $0x4] ss:$12 sps:$4 sm:$0xff]   ;;  %v11611_v41 = vld [vmem:[#allocation7] ss:$12 sps:$4 sm:$0xff]  }
 0x143   : > { %1889 = vmatprep.mubr.bf16.mxu1 %v15891_v0  ;;  %1746 = vmatprep.subr.bf16.mxu0 %v11551_v51  ;;  %v13177_v51 = vpack.c.bf16 %v1177_v46, %v1174_v45  ;;  %v11616_v42 = vld [vmem:[#allocation7 + $0x16c] ss:$12 sps:$4 sm:$0xff]   ;;  %v11617_v45 = vld [vmem:[#allocation7 + $0x150] ss:$12 sps:$4 sm:$0xff]  }
 0x144   : > { %10656 = vmatpush3.bf16.msra.mxu1 %v11571_v52  ;;  %v11587_v52 = vld [vmem:[#allocation4 + $0x1b8] ss:$12 sps:$4 sm:$0xff]   ;;  %v11622_v46 = vld [vmem:[#allocation7 + $0x13c] ss:$12 sps:$4 sm:$0xff]  }
 0x145   : > { %10657 = vmatprep.subr.bf16.mxu1 %v11573_v58  ;;  %v1180_v58 = vld [vmem:[%s13075_s3 + $0xc8] sm:$0xff] }
 0x146   : > { %1747 = vmatpush2.bf16.msra.mxu0 %v11554_v54  ;;  %v1176_v54 = vld [vmem:[%s13075_s3 + $0xa8] sm:$0xff] }
 0x147   : > { %1748 = vmatprep.subr.bf16.mxu0 %v11556_v59  ;;  %v1183_v59 = vld [vmem:[%s13075_s3 + $0xe0] sm:$0xff] }
 0x148   : > { %10658 = vmatpush3.bf16.msra.mxu1 %v11574_v60  ;;  %v11588_v60 = vld [vmem:[#allocation4 + $0x1a0] ss:$12 sps:$4 sm:$0xff]  }
 0x149   : > { %10659 = vmatprep.subr.bf16.mxu1 %v11576_v1  ;;  %v13193_v1 = vpack.c.bf16 %v1183_v59, %v1180_v58  ;;  %v13251_v58 = vld [vmem:[#allocation7 + $0x1f8] ss:$12 sps:$4 sm:$0xff]   ;;  %v13253_v59 = vld [vmem:[#allocation7 + $0x1fc] ss:$12 sps:$4 sm:$0xff]  }
 0x14a   : > { %1890 = vmatmul.mubr.bf16.gmra.mxu1 %v13125_v61  ;;  %1749 = vmatpush2.bf16.msra.mxu0 %v11558_v62  ;;  %v13189_v62 = vpack.c.bf16 %v1176_v54, %v1173_v53  ;;  %v11632_v53 = vld [vmem:[#allocation7 + $0xd8] ss:$12 sps:$4 sm:$0xff]  }
 0x14b   : > { %1899 = vmatprep.mubr.bf16.mxu1 %v15891_v0  ;;  %1750 = vmatprep.subr.bf16.mxu0 %v11559_v63  ;;  %v13191_v63 = vpack.c.bf16 %v1202_v57, %v1199_v55  ;;  %v11637_v54 = vld [vmem:[#allocation7 + $0xc4] ss:$12 sps:$4 sm:$0xff]   ;;  %v11640_v55 = vld [vmem:[#allocation7 + $0x22c] ss:$12 sps:$4 sm:$0xff]   ;;  %v13247_v57 = vld [vmem:[#allocation7 + $0x214] ss:$12 sps:$4 sm:$0xff]  }
 0x14c   : > { %10660 = vmatpush3.bf16.msra.mxu1 %v11577_v2  ;;  %v11589_v2 = vld [vmem:[#allocation4 + $0x188] ss:$12 sps:$4 sm:$0xff]  }
 0x14d   : > { %10661 = vmatprep.subr.bf16.mxu1 %v11579_v7 }
 0x14e   : > { %1751 = vmatpush2.bf16.msra.mxu0 %v11562_v3  ;;  %v1179_v3 = vld [vmem:[%s13075_s3 + $0xc0] sm:$0xff] }
 0x14f   : > { %1752 = vmatprep.subr.bf16.mxu0 %v11564_v6  ;;  %v1189_v6 = vld [vmem:[%s13075_s3 + $0x110] sm:$0xff]  ;;  %v13203_v7 = vpack.c.bf16 %v1182_v4, %v1179_v3  ;;  %v13271_v3 = vld [vmem:[#allocation7 + $0x1b4] ss:$12 sps:$4 sm:$0xff]   ;;  %v13274_v4 = vld [vmem:[#allocation7 + $0x198] ss:$12 sps:$4 sm:$0xff]  }
 0x150   : > { %10662 = vmatpush3.bf16.msra.mxu1 %v11580_v9  ;;  %v11590_v9 = vld [vmem:[#allocation7 + $0xa8] ss:$12 sps:$4 sm:$0xff]  }
 0x151   : > { %10663 = vmatprep.subr.bf16.mxu1 %v11581_v17 }
 0x152   : > { %1900 = vmatmul.mubr.bf16.gmra.mxu1 %v13131_v8  ;;  %1753 = vmatpush2.bf16.msra.mxu0 %v11566_v10  ;;  %v13205_v10 = vpack.c.bf16 %v1189_v6, %v1186_v5  ;;  %v13276_v5 = vld [vmem:[#allocation7 + $0x19c] ss:$12 sps:$4 sm:$0xff]   ;;  %v13280_v6 = vld [vmem:[#allocation7 + $0x180] ss:$12 sps:$4 sm:$0xff]  }
 0x153   : > { %1909 = vmatprep.mubr.bf16.mxu1 %v15891_v0  ;;  %1754 = vmatprep.subr.bf16.mxu0 %v11567_v11  ;;  %v1185_v11 = vld [vmem:[%s13075_s3 + $0xf0] sm:$0xff] }
 0x154   : > { %10664 = vmatpush3.bf16.msra.mxu1 %v11583_v21  ;;  %v1194_v21 = vld [vmem:[%s13075_s3 + $0x138] sm:$0xff] }
 0x155   : > { %10665 = vmatprep.subr.bf16.mxu1 %v11584_v22  ;;  %v11601_v22 = vld [vmem:[#allocation7 + $0x64] ss:$12 sps:$4 sm:$0xff]   ;;  %v1318_v28 = vpack.c.bf16 %v1194_v21, %v1191_v20 }
 0x156   : > { %1755 = vmatpush2.bf16.msra.mxu0 %v11570_v12  ;;  %v1188_v12 = vld [vmem:[%s13075_s3 + $0x108] sm:$0xff] }
 0x157   : > { %11115 = vmatprep.subr.bf16.mxu0 %v11572_v18  ;;  %v1315_v17 = vpack.c.bf16 %v1188_v12, %v1185_v11 }
 0x158   : > { %10666 = vmatpush3.bf16.msra.mxu1 %v11585_v23  ;;  %v1198_v23 = vld [vmem:[%s13075_s3 + $0x158] sm:$0xff] }
 0x159   : > { %1757 = vmatmul.mubr.bf16.vlgmr.msra.gmra.mxu0 %v13141_v24  ;;  %2939 = vmatprep.subr.bf16.mxu1 %v11592_v39  ;;  %v11608_v39 = vld [vmem:[#allocation7 + $0x18] ss:$12 sps:$4 sm:$0xff]  }
 0x15a   : > { %1910 = vmatmul.mubr.bf16.gmra.mxu1 %v13143_v25  ;;  %11116 = vmatpush3.bf16.msra.mxu0 %v11572_v18  ;;  %v11596_v18 = vld [vmem:[#allocation7 + $0x78] ss:$12 sps:$4 sm:$0xff]  }
 0x15b   : > { %1766 = vmatprep.mubr.bf16.mxu0 %v13145_v26  ;;  %1919 = vmatprep.mubr.bf16.mxu1 %v15891_v0 }
 0x15c   : > { %11117 = vmatprep.subr.bf16.mxu0 %v11575_v27 }
 0x15e   : > { %11118 = vmatpush3.bf16.msra.mxu0 %v11575_v27  ;;  %v11604_v27 = vld [vmem:[#allocation7 + $0x4c] ss:$12 sps:$4 sm:$0xff]  }
 0x15f   : > { %11119 = vmatprep.subr.bf16.mxu0 %v11578_v34 }
 0x161   : > { %1767 = vmatmul.mubr.bf16.gmra.mxu0 %v13157_v35 }
 0x162   : > { %1920 = vmatmul.mubr.bf16.gmra.mxu1 %v13159_v36  ;;  %1776 = vmatprep.mubr.bf16.mxu0 %v13161_v38 }
 0x163   : > { %1929 = vmatprep.mubr.bf16.mxu1 %v15891_v0  ;;  %11120 = vmatpush3.bf16.msra.mxu0 %v11578_v34  ;;  %v11605_v34 = vld [vmem:[#allocation7 + $0x30] ss:$12 sps:$4 sm:$0xff]  }
 0x164   : > { %11121 = vmatprep.subr.bf16.mxu0 %v11582_v44 }
 0x167   : > { %11122 = vmatpush3.bf16.msra.mxu0 %v11582_v44  ;;  %v11619_v44 = vld [vmem:[#allocation7 + $0x154] ss:$12 sps:$4 sm:$0xff]  }
 0x168   : > { %11123 = vmatprep.subr.bf16.mxu0 %v11586_v48 }
 0x169   : > { %1777 = vmatmul.mubr.bf16.gmra.mxu0 %v13173_v49 }
 0x16a   : > { %1930 = vmatmul.mubr.bf16.gmra.mxu1 %v13175_v50  ;;  %1786 = vmatprep.mubr.bf16.mxu0 %v13177_v51 }
 0x16b   : > { %1939 = vmatprep.mubr.bf16.mxu1 %v15891_v0  ;;  %11124 = vmatpush3.bf16.msra.mxu0 %v11586_v48  ;;  %v11625_v48 = vld [vmem:[#allocation7 + $0x124] ss:$12 sps:$4 sm:$0xff]  }
 0x16c   : > { %11125 = vmatprep.subr.bf16.mxu0 %v11587_v52 }
 0x16f   : > { %11126 = vmatpush3.bf16.msra.mxu0 %v11587_v52  ;;  %v11629_v52 = vld [vmem:[#allocation7 + $0xf0] ss:$12 sps:$4 sm:$0xff]  }
 0x170   : > { %11127 = vmatprep.subr.bf16.mxu0 %v11588_v60 }
 0x171   : > { %1787 = vmatmul.mubr.bf16.gmra.mxu0 %v13189_v62 }
 0x172   : > { %1940 = vmatmul.mubr.bf16.gmra.mxu1 %v13191_v63  ;;  %1796 = vmatprep.mubr.bf16.mxu0 %v13193_v1 }
 0x173   : > { %1982 = vmatprep.mubr.bf16.mxu1 %v13119_v56  ;;  %11128 = vmatpush3.bf16.msra.mxu0 %v11588_v60  ;;  %v11593_v56 = vld [vmem:[#allocation7 + $0x90] ss:$12 sps:$4 sm:$0xff]  }
 0x174   : > { %11129 = vmatprep.subr.bf16.mxu0 %v11589_v2  ;;  %v13257_v60 = vld [vmem:[#allocation7 + $0x1e4] ss:$12 sps:$4 sm:$0xff]  }
 0x177   : > { %11130 = vmatpush3.bf16.msra.mxu0 %v11589_v2  ;;  %v13269_v2 = vld [vmem:[#allocation7 + $0x1b0] ss:$12 sps:$4 sm:$0xff]  }
 0x178   : > { %3052 = vmatprep.subr.bf16.mxu0 %v11640_v55 }
 0x179   : > { %1797 = vmatmul.mubr.bf16.gmra.mxu0 %v13203_v7 }
 0x17a   : > { %1983 = vmatmul.mubr.bf16.vlgmr.msra.gmra.mxu1 %v13141_v24  ;;  %1806 = vmatprep.mubr.bf16.mxu0 %v13205_v10  ;;  %v1201_v24 = vld [vmem:[%s13075_s3 + $0x170] sm:$0xff]  ;;  %s16194_s3 = sld [smem:[#allocation46_spill]] }
 0x17b   : > { %1990 = vmatprep.mubr.bf16.mxu1 %v13145_v26  ;;  %2940 = vmatpush1.bf16.msra.mxu1 %v11590_v9  ;;  %v11599_v26 = vld [vmem:[#allocation7 + $0x60] ss:$12 sps:$4 sm:$0xff]   ;;  %v1322_v30 = vpack.c.bf16 %v1201_v24, %v1198_v23  ;;  %v11662_v9 = vld [vmem:[#allocation7 + $0x170] ss:$12 sps:$4 sm:$0xff]  }
 0x17c   : > { %2941 = vmatprep.subr.bf16.mxu1 %v11595_v13 }
 0x17f   : > { %2942 = vmatpush1.bf16.msra.mxu1 %v11593_v56 }
 0x180   : > { %2943 = vmatprep.subr.bf16.mxu1 %v11598_v16 }
 0x181   : > { %1807 = vmatmul.mubr.bf16.gmra.mxu0 %v1315_v17 }
 0x182   : > { %1991 = vmatmul.mubr.bf16.gmra.mxu1 %v13157_v35  ;;  %1816 = vmatprep.mubr.bf16.mxu0 %v13215_v19  ;;  %v11610_v35 = vld [vmem:[#allocation7 + $0x1c] ss:$12 sps:$4 sm:$0xff]  }
 0x183   : > { %1998 = vmatprep.mubr.bf16.mxu1 %v13161_v38  ;;  %2944 = vmatpush1.bf16.msra.mxu1 %v11596_v18  ;;  %v1321_v38 = vpack.c.bf16 %v1200_v32, %v1197_v31  ;;  %v1325_v18 = vlaneseq }
 0x184   : > { %2945 = vmatprep.subr.bf16.mxu1 %v11601_v22 }
 0x185   : > { %v13297_v21 = vshrl.u32 %v1325_v18, 7 }
 0x187   : > { %2946 = vmatpush1.bf16.msra.mxu1 %v11599_v26  ;;  %v13304_v24 = vsub.s32 0, %v13297_v21 }
 0x188   : > { %2947 = vmatprep.subr.bf16.mxu1 %v11604_v27  ;;  %v13309_v27 = vld [vmem:[%s12725_s13] sm:$0x7] }
 0x189   : > { %1817 = vmatmul.mubr.bf16.gmra.mxu0 %v1318_v28  ;;  %16015 = vst [vmem:[#allocation49_spill] sm:$0xff] %v13304_v24  ;;  %v13320_v31 = vrot.slane %v13309_v27, %v13304_v24 }
 0x18a   : > { %1999 = vmatmul.mubr.bf16.gmra.mxu1 %v13173_v49  ;;  %1826 = vmatprep.mubr.bf16.mxu0 %v1322_v30  ;;  %v11623_v49 = vld [vmem:[#allocation7 + $0x120] ss:$12 sps:$4 sm:$0xff]  }
 0x18b   : > { %2006 = vmatprep.mubr.bf16.mxu1 %v13177_v51  ;;  %2948 = vmatpush1.bf16.msra.mxu1 %v11602_v29  ;;  %v11631_v51 = vld [vmem:[#allocation7 + $0xf4] ss:$12 sps:$4 sm:$0xff]  }
 0x18c   : > { %2949 = vmatprep.subr.bf16.mxu1 %v11607_v33  ;;  %v13325_v33 = vld [vmem:[%s12735_s21] sm:$0x7] }
 0x18d   : > { %16017 = vst [vmem:[#allocation51_spill] sm:$0xff] %v13325_v33 }
 0x18f   : > { %2950 = vmatpush1.bf16.msra.mxu1 %v11605_v34 }
 0x190   : > { %2951 = vmatprep.subr.bf16.mxu1 %v11610_v35 }
 0x191   : > { %1827 = vmatmul.mubr.bf16.gmra.mxu0 %v1321_v38 }
 0x192   : > { %2007 = vmatmul.mubr.bf16.gmra.mxu1 %v13189_v62  ;;  %11131 = vmatprep.mubr.bf16.mxu0 %v13108_v37  ;;  %v11620_v37 = vld [vmem:[#allocation7 + $0x138] ss:$12 sps:$4 sm:$0xff]   ;;  %v13259_v62 = vld [vmem:[#allocation7 + $0x1e0] ss:$12 sps:$4 sm:$0xff]  }
 0x193   : > { %2014 = vmatprep.mubr.bf16.mxu1 %v13193_v1  ;;  %2952 = vmatpush1.bf16.msra.mxu1 %v11608_v39  ;;  %v13265_v1 = vld [vmem:[#allocation7 + $0x1c8] ss:$12 sps:$4 sm:$0xff]  }
 0x194   : > { %2953 = vmatprep.subr.bf16.mxu1 %v11613_v40 }
 0x197   : > { %2954 = vmatpush1.bf16.msra.mxu1 %v11611_v41 }
 0x198   : > { %2955 = vmatprep.subr.bf16.mxu1 %v11616_v42 }
 0x199   : > { %11132 = vmatmul.mubr.bf16.vlgmr.msra.gmra.mxu0 %v13114_v47  ;;  %v11628_v47 = vld [vmem:[#allocation7 + $0x10c] ss:$12 sps:$4 sm:$0xff]  }
 0x19a   : > { %2015 = vmatmul.mubr.bf16.gmra.mxu1 %v13203_v7  ;;  %11135 = vmatprep.mubr.bf16.mxu0 %v13125_v61  ;;  %v11626_v61 = vld [vmem:[#allocation7 + $0x108] ss:$12 sps:$4 sm:$0xff]   ;;  %v13282_v7 = vld [vmem:[#allocation7 + $0x184] ss:$12 sps:$4 sm:$0xff]  }
 0x19b   : > { %2022 = vmatprep.mubr.bf16.mxu1 %v13205_v10  ;;  %2956 = vmatpush2.bf16.msra.mxu1 %v11614_v43 }
 0x19c   : > { %2957 = vmatprep.subr.bf16.mxu1 %v11619_v44  ;;  %v13344_v44 = vrot.slane %v13325_v33, %v13304_v24 }
 0x19f   : > { %2958 = vmatpush2.bf16.msra.mxu1 %v11617_v45 }
 0x1a0   : > { %2959 = vmatprep.subr.bf16.mxu1 %v11622_v46 }
 0x1a1   : > { %11136 = vmatmul.mubr.bf16.gmra.mxu0 %v13131_v8  ;;  %v11634_v8 = vld [vmem:[#allocation7 + $0xdc] ss:$12 sps:$4 sm:$0xff]  }
 0x1a2   : > { %2023 = vmatmul.mubr.bf16.gmra.mxu1 %v1315_v17  ;;  %11139 = vmatprep.mubr.bf16.mxu0 %v13143_v25  ;;  %v11635_v25 = vld [vmem:[#allocation7 + $0xc0] ss:$12 sps:$4 sm:$0xff]  }
 0x1a3   : > { %2030 = vmatprep.mubr.bf16.mxu1 %v13215_v19  ;;  %2960 = vmatpush2.bf16.msra.mxu1 %v11620_v37 }
 0x1a4   : > { %2961 = vmatprep.subr.bf16.mxu1 %v11625_v48 }
 0x1a7   : > { %2962 = vmatpush2.bf16.msra.mxu1 %v11623_v49 }
 0x1a8   : > { %2963 = vmatprep.subr.bf16.mxu1 %v11628_v47 }
 0x1a9   : > { %11140 = vmatmul.mubr.bf16.gmra.mxu0 %v13159_v36  ;;  %v13242_v36 = vld [vmem:[#allocation7 + $0x228] ss:$12 sps:$4 sm:$0xff]  }
 0x1aa   : > { %2031 = vmatmul.mubr.bf16.gmra.mxu1 %v1318_v28  ;;  %11143 = vmatprep.mubr.bf16.mxu0 %v13175_v50  ;;  %v13245_v50 = vld [vmem:[#allocation7 + $0x210] ss:$12 sps:$4 sm:$0xff]   ;;  %v13312_v28 = vsub.s32 1, %v13297_v21 }
 0x1ab   : > { %2038 = vmatprep.mubr.bf16.mxu1 %v1322_v30  ;;  %2964 = vmatpush2.bf16.msra.mxu1 %v11626_v61  ;;  %v13316_v30 = vld [vmem:[#allocation6] sm:$0x7] }
 0x1ac   : > { %2965 = vmatprep.subr.bf16.mxu1 %v11631_v51  ;;  %3053 = vmatpush1.bf16.msra.mxu0 %v13242_v36  ;;  %16016 = vst [vmem:[#allocation50_spill] sm:$0xff] %v13312_v28  ;;  %v13329_v34 = vrot.slane %v13309_v27, %v13312_v28  ;;  %v13336_v40 = vrot.slane %v13316_v30, %v13304_v24 }
 0x1ad   : > { %3054 = vmatprep.subr.bf16.mxu0 %v13247_v57  ;;  %v13349_v46 = vrot.slane %v13316_v30, %v13312_v28  ;;  %v13360_v51 = vrot.slane %v13325_v33, %v13312_v28 }
 0x1af   : > { %2966 = vmatpush2.bf16.msra.mxu1 %v11629_v52 }
 0x1b0   : > { %2967 = vmatprep.subr.bf16.mxu1 %v11634_v8  ;;  %3055 = vmatpush1.bf16.msra.mxu0 %v13245_v50 }
 0x1b1   : > { %11144 = vmatmul.mubr.bf16.gmra.mxu0 %v13191_v63  ;;  %3056 = vmatprep.subr.bf16.mxu0 %v13253_v59  ;;  %v13263_v63 = vld [vmem:[#allocation7 + $0x1cc] ss:$12 sps:$4 sm:$0xff]  }
 0x1b2   : > { %2039 = vmatmul.mubr.bf16.gmra.mxu1 %v1321_v38  ;;  %3084 = vmatprep.mubr.bf16.mxu0 %v15891_v0 }
 0x1b3   : > { %2968 = vmatpush2.bf16.msra.mxu1 %v11632_v53 }
 0x1b4   : > { %2969 = vmatprep.subr.bf16.mxu1 %v11637_v54  ;;  %3057 = vmatpush1.bf16.msra.mxu0 %v13251_v58 }
 0x1b5   : > { %3058 = vmatprep.subr.bf16.mxu0 %v13257_v60 }
 0x1b7   : > { %2970 = vmatpush2.bf16.msra.mxu1 %v11635_v25 }
 0x1b8   : > { %11275 = vmatprep.subr.bf16.mxu1 %v11640_v55  ;;  %3059 = vmatpush1.bf16.msra.mxu0 %v13259_v62 }
 0x1b9   : > { %3060 = vmatprep.subr.bf16.mxu0 %v13263_v63 }
 0x1bc   : > { %3061 = vmatpush1.bf16.msra.mxu0 %v13265_v1 }
 0x1bd   : > { %3062 = vmatprep.subr.bf16.mxu0 %v13271_v3 }
 0x1c0   : > { %3063 = vmatpush1.bf16.msra.mxu0 %v13269_v2 }
 0x1c1   : > { %3064 = vmatprep.subr.bf16.mxu0 %v13276_v5 }
 0x1c4   : > { %3065 = vmatpush1.bf16.msra.mxu0 %v13274_v4 }
 0x1c5   : > { %3066 = vmatprep.subr.bf16.mxu0 %v13282_v7 }
 0x1c8   : > { %3067 = vmatpush1.bf16.msra.mxu0 %v13280_v6 }
 0x1c9   : > { %10731 = vmatprep.subr.bf16.mxu0 %v11662_v9 }
 0x1fa   : > { %v1871_v10 = vpop.f32.mrf.mxu1 }
 0x1fc   : > { %v1873_v11 = vpop.f32.mrf.mxu1 }
 0x1fe   : > { %v1875_v12 = vpop.f32.mrf.mxu1 }
 0x200   : > { %v1877_v13 = vpop.f32.mrf.mxu1 }
 0x202   : > { %v1881_v14 = vpop.f32.mrf.mxu1 }
 0x204   : > { %v1883_v15 = vpop.f32.mrf.mxu1 }
 0x206   : > { %v13287_v56 = vpop.f32.mrf.mxu1 }
 0x208   : > { %v13289_v16 = vpop.f32.mrf.mxu1 }
 0x20a   : > { %v13291_v17 = vpop.f32.mrf.mxu1 }
 0x20c   : > { %v13293_v19 = vpop.f32.mrf.mxu1 }
 0x20e   : > { %v13295_v20 = vpop.f32.mrf.mxu1 }
 0x210   : > { %v13299_v22 = vpop.f32.mrf.mxu1 }
 0x212   : > { %v13301_v23 = vpop.f32.mrf.mxu1 }
 0x214   : > { %v13306_v26 = vpop.f32.mrf.mxu1 }
 0x216   : > { %v13314_v29 = vpop.f32.mrf.mxu1 }
 0x218   : > { %v13322_v32 = vpop.f32.mrf.mxu1 }
 0x219   : > { %v1758_v35 = vpop.f32.mrf.mxu0 }
 0x21a   : > { %v13331_v38 = vpop.f32.mrf.mxu1  ;;  %v1759_v39 = vadd.f32 %v1758_v35, %v13320_v31 }
 0x21b   : > { %v1760_v41 = vpop.f32.mrf.mxu0 }
 0x21c   : > { %v13338_v42 = vpop.f32.mrf.mxu1  ;;  %v13340_v43 = vadd.f32 %v1871_v10, %v1759_v39  ;;  %v1761_v45 = vadd.f32 %v1760_v41, %v13329_v34 }
 0x21d   : > { %v1762_v37 = vpop.f32.mrf.mxu0 }
 0x21e   : > { %16018 = vst [vmem:[#allocation52_spill] sm:$0xff] %v13340_v43  ;;  %v13351_v48 = vpop.f32.mrf.mxu1  ;;  %v2162_v49 = vmul.f32 %v13336_v40, %v13340_v43  ;;  %v13355_v47 = vadd.f32 %v1873_v11, %v1761_v45  ;;  %v1763_v61 = vadd.f32 %v1762_v37, %v13320_v31 }
 0x21f   : > { %v1764_v52 = vpop.f32.mrf.mxu0 }
 0x220   : > { %16019 = vst [vmem:[#allocation53_spill] sm:$0xff] %v13355_v47  ;;  %v13362_v8 = vpop.f32.mrf.mxu1  ;;  %v2226_v53 = vadd.f32 %v13344_v44, %v2162_v49  ;;  %v2163_v54 = vmul.f32 %v13349_v46, %v13355_v47  ;;  %v13367_v25 = vadd.f32 %v1875_v12, %v1763_v61  ;;  %v1765_v55 = vadd.f32 %v1764_v52, %v13329_v34 }
 0x221   : > { %v1768_v9 = vpop.f32.mrf.mxu0 }
 0x222   : > { %16020 = vst [vmem:[#allocation54_spill] sm:$0xff] %v13367_v25  ;;  %v13370_v10 = vpop.f32.mrf.mxu1  ;;  %v2165_v11 = vmul.f32 %v13336_v40, %v13367_v25  ;;  %v2322_v18 = vmul.f32 0.01, %v2226_v53  ;;  %v2227_v35 = vadd.f32 %v13360_v51, %v2163_v54  ;;  %v13375_v39 = vadd.f32 %v1877_v13, %v1765_v55 }
 0x223   : > { %v1769_v41 = vadd.f32 %v1768_v9, %v13320_v31  ;;  %v1770_v45 = vpop.f32.mrf.mxu0  ;;  %vm2274_vm0 = vcmp.gt.f32.partialorder %v2226_v53, 0.0 }
 0x224   : > { %16021 = vst [vmem:[#allocation55_spill] sm:$0xff] %v13375_v39  ;;  %v13378_v37 = vpop.f32.mrf.mxu1  ;;  %v2229_v12 = vadd.f32 %v13344_v44, %v2165_v11  ;;  %v1771_v49 = vadd.f32 %v1770_v45, %v13329_v34  ;;  %v2166_v61 = vmul.f32 %v13349_v46, %v13375_v39  ;;  %v2370_v9 = vsel %vm2274_vm0, %v2226_v53, %v2322_v18 }
 0x225   : > { %v13384_v52 = vadd.f32 %v1881_v14, %v1769_v41  ;;  %v1772_v0 = vpop.f32.mrf.mxu0  ;;  %v2323_v14 = vmul.f32 0.01, %v2227_v35  ;;  %vm2275_vm2 = vcmp.gt.f32.partialorder %v2227_v35, 0.0 }
 0x226   : > { %v13386_v25 = vpop.f32.mrf.mxu1  ;;  %vm2277_vm1 = vcmp.gt.f32.partialorder %v2229_v12, 0.0  ;;  %v2325_v13 = vmul.f32 0.01, %v2229_v12  ;;  %v13388_v54 = vadd.f32 %v1883_v15, %v1771_v49  ;;  %v1773_v55 = vadd.f32 %v1772_v0, %v13320_v31 }
 0x227   : > { %16022 = vst [vmem:[#allocation56_spill] sm:$0xff] %v13384_v52  ;;  %v2230_v47 = vadd.f32 %v13360_v51, %v2166_v61  ;;  %v2168_v11 = vmul.f32 %v13336_v40, %v13384_v52  ;;  %v1774_v45 = vpop.f32.mrf.mxu0 }
 0x228   : > { %16023 = vst [vmem:[#allocation57_spill] sm:$0xff] %v13388_v54  ;;  %v13394_v43 = vpop.f32.mrf.mxu1  ;;  %v2169_v41 = vmul.f32 %v13349_v46, %v13388_v54  ;;  %v13399_v39 = vadd.f32 %v13287_v56, %v1773_v55  ;;  %v1775_v15 = vadd.f32 %v1774_v45, %v13329_v34  ;;  %v2373_v0 = vsel %vm2277_vm1, %v2229_v12, %v2325_v13 }
 0x229   : > { %v2232_v53 = vadd.f32 %v13344_v44, %v2168_v11  ;;  %v1778_v18 = vpop.f32.mrf.mxu0  ;;  %vm2278_vm3 = vcmp.gt.f32.partialorder %v2230_v47, 0.0  ;;  %v2326_v61 = vmul.f32 0.01, %v2230_v47  ;;  %v2371_v12 = vsel %vm2275_vm2, %v2227_v35, %v2323_v14 }
 0x22a   : > { %16024 = vst [vmem:[#allocation58_spill] sm:$0xff] %v13399_v39  ;;  %v13403_v49 = vpop.f32.mrf.mxu1  ;;  %v2233_v52 = vadd.f32 %v13360_v51, %v2169_v41  ;;  %v2171_v24 = vmul.f32 %v13336_v40, %v13399_v39  ;;  %v13409_v54 = vadd.f32 %v13289_v16, %v1775_v15  ;;  %v1779_v56 = vadd.f32 %v1778_v18, %v13320_v31 }
 0x22b   : > { %v1780_v55 = vpop.f32.mrf.mxu0  ;;  %v2374_v13 = vsel %vm2278_vm3, %v2230_v47, %v2326_v61  ;;  %vm2280_vm4 = vcmp.gt.f32.partialorder %v2232_v53, 0.0  ;;  %v2328_v11 = vmul.f32 0.01, %v2232_v53 }
 0x22c   : > { %16025 = vst [vmem:[#allocation59_spill] sm:$0xff] %v13409_v54  ;;  %v13412_v45 = vpop.f32.mrf.mxu1  ;;  %v2235_v28 = vadd.f32 %v13344_v44, %v2171_v24  ;;  %v2172_v41 = vmul.f32 %v13349_v46, %v13409_v54  ;;  %v13418_v33 = vadd.f32 %v13291_v17, %v1779_v56  ;;  %v1781_v16 = vadd.f32 %v1780_v55, %v13329_v34 }
 0x22d   : > { %16026 = vst [vmem:[#allocation60_spill] sm:$0xff] %v13412_v45  ;;  %v1782_v15 = vpop.f32.mrf.mxu0  ;;  %v13423_v18 = vpack.c.bf16 %v2374_v13, %v2371_v12  ;;  %v13425_v45 = vpack.c.bf16 %v2373_v0, %v2370_v9  ;;  %vm2281_vm5 = vcmp.gt.f32.partialorder %v2233_v52, 0.0  ;;  %v2329_v47 = vmul.f32 0.01, %v2233_v52 }
 0x22e   : > { %16027 = vst [vmem:[#allocation61_spill] sm:$0xff] %v13418_v33  ;;  %v13421_v39 = vpop.f32.mrf.mxu1  ;;  %v2236_v35 = vadd.f32 %v13360_v51, %v2172_v41  ;;  %v2174_v24 = vmul.f32 %v13336_v40, %v13418_v33  ;;  %v13431_v14 = vadd.f32 %v13293_v19, %v1781_v16  ;;  %v1783_v17 = vadd.f32 %v1782_v15, %v13320_v31 }
 0x22f   : > { %2971 = vmatprep.mubr.bf16.mxu1 %v13423_v18  ;;  %v1784_v61 = vpop.f32.mrf.mxu0  ;;  %vm2283_vm6 = vcmp.gt.f32.partialorder %v2235_v28, 0.0  ;;  %v2331_v9 = vmul.f32 0.01, %v2235_v28  ;;  %v2377_v54 = vsel %vm2281_vm5, %v2233_v52, %v2329_v47 }
 0x230   : > { %16028 = vst [vmem:[#allocation62_spill] sm:$0xff] %v13431_v14  ;;  %v13435_v56 = vpop.f32.mrf.mxu1  ;;  %v13438_v0 = vadd.f32 %v13344_v44, %v2174_v24  ;;  %v2175_v55 = vmul.f32 %v13349_v46, %v13431_v14  ;;  %v13443_v12 = vadd.f32 %v13295_v20, %v1783_v17  ;;  %2972 = vmatmul.mubr.bf16.vlgmr.msra.gmra.mxu1 %v13425_v45  ;;  %vm2284_vm7 = vcmp.gt.f32.partialorder %v2236_v35, 0.0 }
 0x231   : > { %v1785_v19 = vadd.f32 %v1784_v61, %v13329_v34  ;;  %v1788_v13 = vpop.f32.mrf.mxu0  ;;  %v2332_v16 = vmul.f32 0.01, %v2236_v35  ;;  %v2379_v15 = vsel %vm2283_vm6, %v2235_v28, %v2331_v9  ;;  %11283 = vmatpush1.bf16.msra.mxu1 %v13242_v36  ;;  %v2376_v36 = vsel %vm2280_vm4, %v2232_v53, %v2328_v11 }
 0x232   : > { %16029 = vst [vmem:[#allocation63_spill] sm:$0xff] %v13443_v12  ;;  %v13447_v41 = vpop.f32.mrf.mxu1  ;;  %v2239_v24 = vadd.f32 %v13360_v51, %v2175_v55  ;;  %v2177_v14 = vmul.f32 %v13336_v40, %v13443_v12  ;;  %v1789_v17 = vadd.f32 %v1788_v13, %v13320_v31  ;;  %11276 = vmatprep.subr.bf16.mxu1 %v13247_v57  ;;  %vm2286_vm8 = vcmp.gt.f32.partialorder %v13438_v0, 0.0 }
 0x233   : > { %v13454_v20 = vadd.f32 %v13299_v22, %v1785_v19  ;;  %v1790_v61 = vpop.f32.mrf.mxu0  ;;  %v2380_v28 = vsel %vm2284_vm7, %v2236_v35, %v2332_v16  ;;  %v13474_v52 = vpack.c.bf16 %v2379_v15, %v2376_v36  ;;  %v2334_v11 = vmul.f32 0.01, %v13438_v0 }
 0x234   : > { %v13458_v33 = vpop.f32.mrf.mxu1  ;;  %v2241_v9 = vadd.f32 %v13344_v44, %v2177_v14  ;;  %v13467_v55 = vadd.f32 %v13301_v23, %v1789_v17  ;;  %v1791_v57 = vadd.f32 %v1790_v61, %v13329_v34  ;;  %v13472_v12 = vpack.c.bf16 %v2380_v28, %v2377_v54 }
 0x235   : > { %v2178_v22 = vmul.f32 %v13349_v46, %v13454_v20  ;;  %v1792_v19 = vpop.f32.mrf.mxu0  ;;  %v2335_v53 = vmul.f32 0.01, %v2239_v24  ;;  %11284 = vmatpush1.bf16.msra.mxu1 %v13245_v50  ;;  %vm2287_vm9 = vcmp.gt.f32.partialorder %v2239_v24, 0.0 }
 0x236   : > { %16030 = vst [vmem:[#allocation64_spill] sm:$0xff] %v13467_v55  ;;  %v13470_v13 = vpop.f32.mrf.mxu1  ;;  %v2180_v23 = vmul.f32 %v13336_v40, %v13467_v55  ;;  %v13482_v35 = vadd.f32 %v13306_v26, %v1791_v57  ;;  %v1793_v14 = vadd.f32 %v1792_v19, %v13320_v31  ;;  %11277 = vmatprep.subr.bf16.mxu1 %v13253_v59  ;;  %vm2289_vm10 = vcmp.gt.f32.partialorder %v2241_v9, 0.0 }
 0x237   : > { %v2242_v47 = vadd.f32 %v13360_v51, %v2178_v22  ;;  %2981 = vmatprep.mubr.bf16.mxu1 %v13472_v12  ;;  %v1794_v54 = vpop.f32.mrf.mxu0  ;;  %v2337_v50 = vmul.f32 0.01, %v2241_v9 }
 0x238   : > { %16031 = vst [vmem:[#allocation65_spill] sm:$0xff] %v13482_v35  ;;  %v13487_v16 = vpop.f32.mrf.mxu1  ;;  %v13490_v15 = vadd.f32 %v13344_v44, %v2180_v23  ;;  %v2181_v17 = vmul.f32 %v13349_v46, %v13482_v35  ;;  %v13495_v26 = vadd.f32 %v13314_v29, %v1793_v14  ;;  %2982 = vmatmul.mubr.bf16.gmra.mxu1 %v13474_v52 }
 0x239   : > { %v1795_v59 = vadd.f32 %v1794_v54, %v13329_v34  ;;  %v1798_v61 = vpop.f32.mrf.mxu0  ;;  %vm2290_vm11 = vcmp.gt.f32.partialorder %v2242_v47, 0.0  ;;  %v2338_v36 = vmul.f32 0.01, %v2242_v47  ;;  %v2385_v22 = vsel %vm2289_vm10, %v2241_v9, %v2337_v50  ;;  %11285 = vmatpush1.bf16.msra.mxu1 %v13251_v58 }
 0x23a   : > { %16032 = vst [vmem:[#allocation66_spill] sm:$0xff] %v13495_v26  ;;  %v13499_v28 = vpop.f32.mrf.mxu1  ;;  %v2245_v57 = vadd.f32 %v13360_v51, %v2181_v17  ;;  %v2183_v19 = vmul.f32 %v13336_v40, %v13495_v26  ;;  %v1799_v23 = vadd.f32 %v1798_v61, %v13320_v31  ;;  %11278 = vmatprep.subr.bf16.mxu1 %v13257_v60  ;;  %vm2292_vm12 = vcmp.gt.f32.partialorder %v13490_v15, 0.0 }
 0x23b   : > { %v13506_v29 = vadd.f32 %v13322_v32, %v1795_v59  ;;  %v1800_v14 = vpop.f32.mrf.mxu0  ;;  %v2383_v35 = vsel %vm2287_vm9, %v2239_v24, %v2335_v53  ;;  %v2386_v9 = vsel %vm2290_vm11, %v2242_v47, %v2338_v36  ;;  %v2382_v58 = vsel %vm2286_vm8, %v13438_v0, %v2334_v11 }
 0x23c   : > { %v13510_v54 = vpop.f32.mrf.mxu1  ;;  %v2247_v50 = vadd.f32 %v13344_v44, %v2183_v19  ;;  %v13521_v17 = vadd.f32 %v13331_v38, %v1799_v23  ;;  %v1801_v60 = vadd.f32 %v1800_v14, %v13329_v34  ;;  %v13526_v24 = vpack.c.bf16 %v2386_v9, %v2383_v35 }
 0x23d   : > { %16033 = vst [vmem:[#allocation67_spill] sm:$0xff] %v13506_v29  ;;  %v2184_v32 = vmul.f32 %v13349_v46, %v13506_v29  ;;  %v1802_v59 = vpop.f32.mrf.mxu0  ;;  %v13528_v53 = vpack.c.bf16 %v2385_v22, %v2382_v58  ;;  %v2341_v0 = vmul.f32 0.01, %v2245_v57  ;;  %v2340_v11 = vmul.f32 0.01, %v13490_v15  ;;  %11286 = vmatpush1.bf16.msra.mxu1 %v13259_v62 }
 0x23e   : > { %16034 = vst [vmem:[#allocation68_spill] sm:$0xff] %v13521_v17  ;;  %v13524_v61 = vpop.f32.mrf.mxu1  ;;  %v2186_v38 = vmul.f32 %v13336_v40, %v13521_v17  ;;  %v13536_v36 = vadd.f32 %v13338_v42, %v1801_v60  ;;  %v1803_v19 = vadd.f32 %v1802_v59, %v13320_v31  ;;  %11279 = vmatprep.subr.bf16.mxu1 %v13263_v63  ;;  %vm2293_vm13 = vcmp.gt.f32.partialorder %v2245_v57, 0.0 }
 0x23f   : > { %v2248_v47 = vadd.f32 %v13360_v51, %v2184_v32  ;;  %2991 = vmatprep.mubr.bf16.mxu1 %v13526_v24  ;;  %v1804_v35 = vpop.f32.mrf.mxu0  ;;  %vm2295_vm14 = vcmp.gt.f32.partialorder %v2247_v50, 0.0  ;;  %v2343_v62 = vmul.f32 0.01, %v2247_v50  ;;  %v2389_v17 = vsel %vm2293_vm13, %v2245_v57, %v2341_v0 }
 0x240   : > { %16035 = vst [vmem:[#allocation69_spill] sm:$0xff] %v13536_v36  ;;  %v13541_v22 = vpop.f32.mrf.mxu1  ;;  %v2187_v23 = vmul.f32 %v13349_v46, %v13536_v36  ;;  %v13546_v14 = vadd.f32 %v13351_v48, %v1803_v19  ;;  %2992 = vmatmul.mubr.bf16.gmra.mxu1 %v13528_v53  ;;  %v1805_v42 = vadd.f32 %v1804_v35, %v13329_v34 }
 0x241   : > { %v13551_v63 = vadd.f32 %v13344_v44, %v2186_v38  ;;  %v1808_v9 = vpop.f32.mrf.mxu0  ;;  %vm2296_vm15 = vcmp.gt.f32.partialorder %v2248_v47, 0.0  ;;  %v2344_v32 = vmul.f32 0.01, %v2248_v47  ;;  %11287 = vmatpush1.bf16.msra.mxu1 %v13265_v1  ;;  %v2391_v19 = vsel %vm2295_vm14, %v2247_v50, %v2343_v62 }
 0x242   : > { %16036 = vst [vmem:[#allocation70_spill] sm:$0xff] %v13546_v14  ;;  %v13553_v58 = vpop.f32.mrf.mxu1  ;;  %v2189_v60 = vmul.f32 %v13336_v40, %v13546_v14  ;;  %v13559_v48 = vadd.f32 %v13362_v8, %v1805_v42  ;;  %v1809_v59 = vadd.f32 %v1808_v9, %v13320_v31  ;;  %11280 = vmatprep.subr.bf16.mxu1 %v13271_v3 }
 0x243   : > { %v2251_v38 = vadd.f32 %v13360_v51, %v2187_v23  ;;  %v1810_v35 = vpop.f32.mrf.mxu0  ;;  %v2392_v29 = vsel %vm2296_vm15, %v2248_v47, %v2344_v32  ;;  %v2388_v1 = vsel %vm2292_vm12, %v13490_v15, %v2340_v11  ;;  %v2346_v0 = vmul.f32 0.01, %v13551_v63 }
 0x244   : > { %16037 = vst [vmem:[#allocation71_spill] sm:$0xff] %v13559_v48  ;;  %v13564_v36 = vpop.f32.mrf.mxu1  ;;  %v2253_v8 = vadd.f32 %v13344_v44, %v2189_v60  ;;  %v2190_v42 = vmul.f32 %v13349_v46, %v13559_v48  ;;  %v13574_v50 = vadd.f32 %v13370_v10, %v1809_v59  ;;  %v1811_v3 = vadd.f32 %v1810_v35, %v13329_v34 }
 0x245   : > { %v1812_v62 = vpop.f32.mrf.mxu0  ;;  %v13579_v9 = vpack.c.bf16 %v2392_v29, %v2389_v17  ;;  %v13581_v57 = vpack.c.bf16 %v2391_v19, %v2388_v1  ;;  %11288 = vmatpush1.bf16.msra.mxu1 %v13269_v2  ;;  %v2347_v32 = vmul.f32 0.01, %v2251_v38  ;;  %v13597_v60 = vsub.s32 2, %v13297_v21 }
 0x246   : > { %16038 = vst [vmem:[#allocation72_spill] sm:$0xff] %v13574_v50  ;;  %v13577_v23 = vpop.f32.mrf.mxu1  ;;  %v2254_v15 = vadd.f32 %v13360_v51, %v2190_v42  ;;  %v2192_v11 = vmul.f32 %v13336_v40, %v13574_v50  ;;  %v13589_v10 = vadd.f32 %v13378_v37, %v1811_v3  ;;  %v1813_v47 = vadd.f32 %v1812_v62, %v13320_v31 }
 0x247   : > { %11281 = vmatprep.subr.bf16.mxu1 %v13276_v5  ;;  %3001 = vmatprep.mubr.bf16.mxu1 %v13579_v9  ;;  %v1814_v29 = vpop.f32.mrf.mxu0  ;;  %vm2301_vm0 = vcmp.gt.f32.partialorder %v2253_v8, 0.0  ;;  %v2349_v2 = vmul.f32 0.01, %v2253_v8  ;;  %vm2299_vm1 = vcmp.gt.f32.partialorder %v2251_v38, 0.0  ;;  %vm2298_vm3 = vcmp.gt.f32.partialorder %v13551_v63, 0.0 }
 0x248   : > { %16039 = vst [vmem:[#allocation73_spill] sm:$0xff] %v13589_v10  ;;  %v13594_v17 = vpop.f32.mrf.mxu1  ;;  %v2193_v59 = vmul.f32 %v13349_v46, %v13589_v10  ;;  %v13602_v37 = vadd.f32 %v13386_v25, %v1813_v47  ;;  %3002 = vmatmul.mubr.bf16.gmra.mxu1 %v13581_v57  ;;  %v1815_v5 = vadd.f32 %v1814_v29, %v13329_v34  ;;  %vm2302_vm2 = vcmp.gt.f32.partialorder %v2254_v15, 0.0 }
 0x249   : > { %v13607_v19 = vadd.f32 %v13344_v44, %v2192_v11  ;;  %v1818_v35 = vpop.f32.mrf.mxu0  ;;  %v2350_v21 = vmul.f32 0.01, %v2254_v15  ;;  %11289 = vmatpush1.bf16.msra.mxu1 %v13274_v4  ;;  %v2397_v62 = vsel %vm2301_vm0, %v2253_v8, %v2349_v2  ;;  %v13621_v11 = vld [vmem:[#allocation7 + $0x230] ss:$12 sps:$4 sm:$0xff]   ;;  %v2395_v4 = vsel %vm2299_vm1, %v2251_v38, %v2347_v32 }
 0x24a   : > { %16040 = vst [vmem:[#allocation74_spill] sm:$0xff] %v13602_v37  ;;  %v13609_v1 = vpop.f32.mrf.mxu1  ;;  %v2195_v25 = vmul.f32 %v13336_v40, %v13602_v37  ;;  %v13616_v42 = vadd.f32 %v13394_v43, %v1815_v5  ;;  %v1819_v3 = vadd.f32 %v1818_v35, %v13320_v31  ;;  %11282 = vmatprep.subr.bf16.mxu1 %v13282_v7 }
 0x24b   : > { %v2257_v47 = vadd.f32 %v13360_v51, %v2193_v59  ;;  %v1820_v29 = vpop.f32.mrf.mxu0  ;;  %v2398_v50 = vsel %vm2302_vm2, %v2254_v15, %v2350_v21  ;;  %v13629_v43 = vrot.slane %v13309_v27, %v13597_v60  ;;  %v2394_v2 = vsel %vm2298_vm3, %v13551_v63, %v2346_v0 }
 0x24c   : > { %16041 = vst [vmem:[#allocation75_spill] sm:$0xff] %v13616_v42  ;;  %v13624_v10 = vpop.f32.mrf.mxu1  ;;  %v2259_v5 = vadd.f32 %v13344_v44, %v2195_v25  ;;  %v2196_v8 = vmul.f32 %v13349_v46, %v13616_v42  ;;  %v1821_v7 = vadd.f32 %v1820_v29, %v13329_v34  ;;  %v13639_v59 = vadd.f32 %v13403_v49, %v1819_v3  ;;  %v16043_v25 = vld [vmem:[#allocation60_spill] sm:$0xff] }
 0x24d   : > { %v1822_v38 = vpop.f32.mrf.mxu0  ;;  %v13643_v32 = vpack.c.bf16 %v2398_v50, %v2395_v4  ;;  %v13645_v27 = vpack.c.bf16 %v2397_v62, %v2394_v2  ;;  %v13649_v35 = vrot.slane %v13316_v30, %v13597_v60  ;;  %11290 = vmatpush1.bf16.msra.mxu1 %v13280_v6  ;;  %v2352_v0 = vmul.f32 0.01, %v13607_v19  ;;  %v16045_v6 = vld [vmem:[#allocation51_spill] sm:$0xff] }
 0x24e   : > { %16042 = vst [vmem:[#allocation76_spill] sm:$0xff] %v13639_v59  ;;  %v13641_v15 = vpop.f32.mrf.mxu1  ;;  %v2260_v21 = vadd.f32 %v13360_v51, %v2196_v8  ;;  %v13654_v63 = vadd.f32 %v16043_v25, %v1821_v7  ;;  %v1823_v49 = vadd.f32 %v1822_v38, %v13320_v31  ;;  %11147 = vmatprep.subr.bf16.mxu1 %v13621_v11  ;;  %v2353_v30 = vmul.f32 0.01, %v2257_v47 }
 0x24f   : > { %3011 = vmatprep.mubr.bf16.mxu1 %v13643_v32  ;;  %v1824_v50 = vpop.f32.mrf.mxu0  ;;  %vm2307_vm4 = vcmp.gt.f32.partialorder %v2259_v5, 0.0  ;;  %v2355_v62 = vmul.f32 0.01, %v2259_v5  ;;  %v13664_v29 = vrot.slane %v16045_v6, %v13597_v60  ;;  %vm2305_vm5 = vcmp.gt.f32.partialorder %v2257_v47, 0.0 }
 0x250   : > { %16044 = vst [vmem:[#allocation60_spill] sm:$0xff] %v13654_v63  ;;  %v13660_v3 = vpop.f32.mrf.mxu1  ;;  %v2199_v4 = vmul.f32 %v13349_v46, %v13654_v63  ;;  %v13669_v8 = vadd.f32 %v13421_v39, %v1823_v49  ;;  %3012 = vmatmul.mubr.bf16.gmra.mxu1 %v13645_v27  ;;  %v1825_v7 = vadd.f32 %v1824_v50, %v13329_v34  ;;  %vm2308_vm6 = vcmp.gt.f32.partialorder %v2260_v21, 0.0 }
 0x251   : > { %v2198_v2 = vmul.f32 %v13336_v40, %v13639_v59  ;;  %v1828_v38 = vpop.f32.mrf.mxu0  ;;  %v2356_v6 = vmul.f32 0.01, %v2260_v21  ;;  %vm2304_vm7 = vcmp.gt.f32.partialorder %v13607_v19, 0.0  ;;  %v10669_v63 = vadd.f32 %v13510_v54, %v13499_v28 }
 0x252   : > { %v13675_v25 = vpop.f32.mrf.mxu1  ;;  %v2201_v39 = vmul.f32 %v13336_v40, %v13669_v8  ;;  %v13683_v49 = vadd.f32 %v13435_v56, %v1825_v7  ;;  %v2403_v50 = vsel %vm2307_vm4, %v2259_v5, %v2355_v62  ;;  %v10675_v59 = vadd.f32 %v13564_v36, %v13553_v58 }
 0x253   : > { %v1829_v42 = vadd.f32 %v1828_v38, %v13320_v31  ;;  %v1830_v37 = vpop.f32.mrf.mxu0  ;;  %v2401_v14 = vsel %vm2305_vm5, %v2257_v47, %v2353_v30  ;;  %v2404_v26 = vsel %vm2308_vm6, %v2260_v21, %v2356_v6  ;;  %v2263_v55 = vadd.f32 %v13360_v51, %v2199_v4 }
 0x254   : > { %16046 = vst [vmem:[#allocation51_spill] sm:$0xff] %v13683_v49  ;;  %v10686_v48 = vpop.f32.mrf.mxu1  ;;  %v2202_v28 = vmul.f32 %v13349_v46, %v13683_v49  ;;  %v1831_v54 = vadd.f32 %v1830_v37, %v13329_v34  ;;  %v2400_v56 = vsel %vm2304_vm7, %v13607_v19, %v2352_v0  ;;  %v10678_v5 = vadd.f32 %v13594_v17, %v13577_v23 }
 0x255   : > { %v2262_v36 = vadd.f32 %v13344_v44, %v2198_v2  ;;  %v1832_v58 = vpop.f32.mrf.mxu0  ;;  %v13697_v7 = vpack.c.bf16 %v2404_v26, %v2401_v14  ;;  %v13699_v47 = vpack.c.bf16 %v2403_v50, %v2400_v56  ;;  %v2265_v21 = vadd.f32 %v13344_v44, %v2201_v39 }
 0x256   : > { %v10688_v62 = vpop.f32.mrf.mxu1  ;;  %v2266_v30 = vadd.f32 %v13360_v51, %v2202_v28  ;;  %v13704_v4 = vadd.f32 %v13458_v33, %v1831_v54  ;;  %v1833_v37 = vadd.f32 %v1832_v58, %v13320_v31  ;;  %v10672_v23 = vadd.f32 %v13541_v22, %v13524_v61 }
 0x257   : > { %v13710_v17 = vadd.f32 %v13447_v41, %v1829_v42  ;;  %3021 = vmatprep.mubr.bf16.mxu1 %v13697_v7  ;;  %v1834_v26 = vpop.f32.mrf.mxu0  ;;  %v1993_v19 = vadd.f32 %v10675_v59, %v13629_v43  ;;  %v1985_v0 = vadd.f32 %v10669_v63, %v13629_v43  ;;  %v2359_v41 = vmul.f32 0.01, %v2263_v55 }
 0x258   : > { %16047 = vst [vmem:[#allocation77_spill] sm:$0xff] %v13704_v4  ;;  %v10689_v14 = vpop.f32.mrf.mxu1  ;;  %v2205_v33 = vmul.f32 %v13349_v46, %v13704_v4  ;;  %v13718_v2 = vadd.f32 %v13470_v13, %v1833_v37  ;;  %3022 = vmatmul.mubr.bf16.gmra.mxu1 %v13699_v47  ;;  %v1835_v31 = vadd.f32 %v1834_v26, %v13329_v34  ;;  %vm2311_vm8 = vcmp.gt.f32.partialorder %v2263_v55, 0.0 }
 0x259   : > { %16048 = vst [vmem:[#allocation78_spill] sm:$0xff] %v13710_v17  ;;  %v11133_v22 = vpop.f32.mrf.mxu0  ;;  %vm2314_vm9 = vcmp.gt.f32.partialorder %v2266_v30, 0.0  ;;  %v2362_v42 = vmul.f32 0.01, %v2266_v30  ;;  %v2358_v38 = vmul.f32 0.01, %v2262_v36  ;;  %v1996_v63 = vadd.f32 %v10678_v5, %v13629_v43 }
 0x25a   : > { %16049 = vst [vmem:[#allocation79_spill] sm:$0xff] %v13718_v2  ;;  %v10691_v61 = vpop.f32.mrf.mxu1  ;;  %v13723_v59 = vadd.f32 %v13487_v16, %v1835_v31  ;;  %vm2310_vm10 = vcmp.gt.f32.partialorder %v2262_v36, 0.0  ;;  %vm2313_vm11 = vcmp.gt.f32.partialorder %v2265_v21, 0.0  ;;  %v2204_v13 = vmul.f32 %v13336_v40, %v13710_v17 }
 0x25b   : > { %v13728_v6 = vadd.f32 %v11133_v22, %v1993_v19  ;;  %v2081_v39 = vpop.f32.mrf.mxu0  ;;  %v2410_v50 = vsel %vm2314_vm9, %v2266_v30, %v2362_v42  ;;  %v2361_v28 = vmul.f32 0.01, %v2265_v21  ;;  %v2269_v54 = vadd.f32 %v13360_v51, %v2205_v33 }
 0x25c   : > { %16050 = vst [vmem:[#allocation80_spill] sm:$0xff] %v13723_v59  ;;  %v10692_v34 = vpop.f32.mrf.mxu1  ;;  %v2207_v56 = vmul.f32 %v13336_v40, %v13718_v2  ;;  %v2208_v16 = vmul.f32 %v13349_v46, %v13723_v59  ;;  %v2407_v5 = vsel %vm2311_vm8, %v2263_v55, %v2359_v41  ;;  %v13736_v58 = vadd.f32 %v2081_v39, %v1985_v0  ;;  %v11674_v2 = vld [vmem:[#allocation7 + $0x218] ss:$12 sps:$4 sm:$0xff]  }
 0x25d   : > { %16051 = vst [vmem:[#allocation81_spill] sm:$0xff] %v13728_v6  ;;  %v11134_v26 = vpop.f32.mrf.mxu0  ;;  %v13740_v19 = vpack.c.bf16 %v2410_v50, %v2407_v5  ;;  %v2406_v30 = vsel %vm2310_vm10, %v2262_v36, %v2358_v38  ;;  %v2409_v31 = vsel %vm2313_vm11, %v2265_v21, %v2361_v28  ;;  %v1988_v46 = vadd.f32 %v10672_v23, %v13629_v43 }
 0x25e   : > { %16052 = vst [vmem:[#allocation82_spill] sm:$0xff] %v13736_v58  ;;  %v13738_v37 = vpop.f32.mrf.mxu1  ;;  %v2272_v33 = vadd.f32 %v13360_v51, %v2208_v16  ;;  %v13745_v22 = vadd.f32 %v11134_v26, %v1996_v63  ;;  %v13747_v40 = vpack.c.bf16 %v2409_v31, %v2406_v30  ;;  %v10681_v55 = vadd.f32 %v13624_v10, %v13609_v1 }
 0x25f   : > { %v10687_v0 = vadd.f32 %v10686_v48, %v13675_v25  ;;  %v2170_v41 = vmul.f32 %v13649_v35, %v13728_v6  ;;  %v2164_v36 = vmul.f32 %v13649_v35, %v13736_v58  ;;  %3031 = vmatprep.mubr.bf16.mxu1 %v13740_v19  ;;  %v2084_v21 = vpop.f32.mrf.mxu0  ;;  %v10690_v42 = vadd.f32 %v10689_v14, %v10688_v62  ;;  %v11664_v6 = vld [vmem:[#allocation7 + $0x158] ss:$12 sps:$4 sm:$0xff]  }
 0x260   : > { %16053 = vst [vmem:[#allocation83_spill] sm:$0xff] %v13745_v22  ;;  %v10695_v51 = vpop.f32.mrf.mxu1  ;;  %v2173_v38 = vmul.f32 %v13649_v35, %v13745_v22  ;;  %3032 = vmatmul.mubr.bf16.gmra.mxu1 %v13747_v40  ;;  %v13761_v23 = vadd.f32 %v2084_v21, %v1988_v46  ;;  %vm2317_vm12 = vcmp.gt.f32.partialorder %v2269_v54, 0.0  ;;  %vm2320_vm13 = vcmp.gt.f32.partialorder %v2272_v33, 0.0 }
 0x261   : > { %v2228_v48 = vadd.f32 %v13664_v29, %v2164_v36  ;;  %v11137_v1 = vpop.f32.mrf.mxu0  ;;  %v2365_v25 = vmul.f32 0.01, %v2269_v54  ;;  %v2368_v63 = vmul.f32 0.01, %v2272_v33  ;;  %v10684_v39 = vadd.f32 %v13660_v3, %v13641_v15 }
 0x262   : > { %16054 = vst [vmem:[#allocation84_spill] sm:$0xff] %v13761_v23  ;;  %v10697_v10 = vpop.f32.mrf.mxu1  ;;  %v2268_v62 = vadd.f32 %v13344_v44, %v2204_v13  ;;  %v2271_v14 = vadd.f32 %v13344_v44, %v2207_v56  ;;  %v2167_v50 = vmul.f32 %v13649_v35, %v13761_v23  ;;  %v13771_v28 = vadd.f32 %v13664_v29, %v2170_v41 }
 0x263   : > { %v10693_v16 = vadd.f32 %v10692_v34, %v10691_v61  ;;  %v2009_v5 = vadd.f32 %v10687_v0, %v13629_v43  ;;  %v2097_v30 = vpop.f32.mrf.mxu0  ;;  %v2416_v31 = vsel %vm2320_vm13, %v2272_v33, %v2368_v63  ;;  %v2324_v46 = vmul.f32 0.01, %v2228_v48 }
 0x264   : > { %v10698_v26 = vpop.f32.mrf.mxu1  ;;  %v2231_v36 = vadd.f32 %v13664_v29, %v2167_v50  ;;  %v2001_v15 = vadd.f32 %v10681_v55, %v13629_v43  ;;  %v2413_v3 = vsel %vm2317_vm12, %v2269_v54, %v2365_v25  ;;  %vm2276_vm14 = vcmp.gt.f32.partialorder %v2228_v48, 0.0 }
 0x265   : > { %v13778_v44 = vadd.f32 %v13664_v29, %v2173_v38  ;;  %v2012_v56 = vadd.f32 %v10690_v42, %v13629_v43  ;;  %v11138_v61 = vpop.f32.mrf.mxu0  ;;  %v13781_v34 = vpack.c.bf16 %v2416_v31, %v2413_v3  ;;  %vm2316_vm0 = vcmp.gt.f32.partialorder %v2268_v62, 0.0  ;;  %v11663_v31 = vld [vmem:[#allocation7 + $0xb0] ss:$12 sps:$4 sm:$0xff]  }
 0x266   : > { %v10700_v13 = vpop.f32.mrf.mxu1  ;;  %vm2279_vm15 = vcmp.gt.f32.partialorder %v2231_v36, 0.0  ;;  %v2327_v0 = vmul.f32 0.01, %v2231_v36  ;;  %vm2319_vm1 = vcmp.gt.f32.partialorder %v2271_v14, 0.0  ;;  %v10699_v33 = vadd.f32 %v10698_v26, %v10697_v10 }
 0x267   : > { %v13783_v41 = vadd.f32 %v2097_v30, %v2001_v15  ;;  %3041 = vmatprep.mubr.bf16.mxu1 %v13781_v34  ;;  %v2364_v54 = vmul.f32 0.01, %v2268_v62  ;;  %v2367_v55 = vmul.f32 0.01, %v2271_v14  ;;  %v2100_v38 = vpop.f32.mrf.mxu0  ;;  %v2372_v25 = vsel %vm2276_vm14, %v2228_v48, %v2324_v46 }
 0x268   : > { %v10701_v21 = vpop.f32.mrf.mxu1  ;;  %v2375_v63 = vsel %vm2279_vm15, %v2231_v36, %v2327_v0  ;;  %v2004_v50 = vadd.f32 %v10684_v39, %v13629_v43  ;;  %v10696_v3 = vadd.f32 %v10695_v51, %v13738_v37  ;;  %v2333_v23 = vmul.f32 0.01, %v13778_v44  ;;  %v11665_v0 = vld [vmem:[#allocation7 + $0x98] ss:$12 sps:$4 sm:$0xff]  }
 0x269   : > { %16055 = vst [vmem:[#allocation85_spill] sm:$0xff] %v13783_v41  ;;  %v10702_v42 = vadd.f32 %v10701_v21, %v10700_v13  ;;  %v13789_v22 = vpack.c.bf16 %v2375_v63, %v2372_v25  ;;  %v2412_v10 = vsel %vm2316_vm0, %v2268_v62, %v2364_v54  ;;  %v2415_v26 = vsel %vm2319_vm1, %v2271_v14, %v2367_v55  ;;  %v11141_v15 = vpop.f32.mrf.mxu0 }
 0x26a   : > { %v10703_v30 = vpop.f32.mrf.mxu1  ;;  %v13794_v58 = vadd.f32 %v11138_v61, %v2012_v56  ;;  %v13796_v48 = vpack.c.bf16 %v2415_v26, %v2412_v10  ;;  %v13798_v46 = vadd.f32 %v2100_v38, %v2004_v50  ;;  %v2176_v37 = vmul.f32 %v13649_v35, %v13783_v41 }
 0x26b   : > { %v2025_v51 = vadd.f32 %v10699_v33, %v13629_v43  ;;  %v2017_v62 = vadd.f32 %v10693_v16, %v13629_v43  ;;  %v2113_v14 = vpop.f32.mrf.mxu0  ;;  %3085 = vmatmul.mubr.bf16.vlgmr.msra.gmra.mxu0 %v13789_v22  ;;  %v2028_v36 = vadd.f32 %v10702_v42, %v13629_v43  ;;  %v2330_v13 = vmul.f32 0.01, %v13771_v28 }
 0x26c   : > { %16056 = vst [vmem:[#allocation86_spill] sm:$0xff] %v13794_v58  ;;  %16057 = vst [vmem:[#allocation87_spill] sm:$0xff] %v13798_v46  ;;  %v10704_v39 = vpop.f32.mrf.mxu1  ;;  %v13807_v56 = vadd.f32 %v11137_v1, %v2009_v5  ;;  %3042 = vmatmul.mubr.bf16.gmra.mxu1 %v13796_v48  ;;  %v2179_v61 = vmul.f32 %v13649_v35, %v13798_v46  ;;  %10732 = vmatpush3.bf16.msra.mxu0 %v11663_v31  ;;  %v16060_v21 = vmov 0   ;;  %vm2282_vm2 = vcmp.gt.f32.partialorder %v13771_v28, 0.0  ;;  %v11666_v1 = vld [vmem:[#allocation7 + $0x140] ss:$12 sps:$4 sm:$0xff]  }
 0x26d   : > { %v10705_v33 = vadd.f32 %v10704_v39, %v10703_v30  ;;  %v13812_v54 = vadd.f32 %v2113_v14, %v2017_v62  ;;  %v11142_v55 = vpop.f32.mrf.mxu0  ;;  %10733 = vmatprep.subr.bf16.mxu0 %v11664_v6  ;;  %3094 = vmatprep.mubr.bf16.mxu0 %v16060_v21  ;;  %vm2285_vm3 = vcmp.gt.f32.partialorder %v13778_v44, 0.0  ;;  %v2185_v5 = vmul.f32 %v13649_v35, %v13794_v58  ;;  %v11667_v39 = vld [vmem:[#allocation7 + $0x80] ss:$12 sps:$4 sm:$0xff]  }
 0x26e   : > { %16058 = vst [vmem:[#allocation88_spill] sm:$0xff] %v13807_v56  ;;  %v10706_v16 = vpop.f32.mrf.mxu1  ;;  %v2243_v38 = vadd.f32 %v13664_v29, %v2179_v61  ;;  %v13820_v25 = vadd.f32 %v11142_v55, %v2028_v36  ;;  %v2020_v63 = vadd.f32 %v10696_v3, %v13629_v43  ;;  %3124 = vmatprep.mubr.bf16.mxu1 %v16060_v21 }
 0x26f   : > { %16059 = vst [vmem:[#allocation89_spill] sm:$0xff] %v13812_v54  ;;  %v2240_v6 = vadd.f32 %v13664_v29, %v2176_v37  ;;  %v13825_v42 = vadd.f32 %v11141_v15, %v2025_v51  ;;  %v2188_v50 = vmul.f32 %v13649_v35, %v13812_v54  ;;  %v2116_v10 = vpop.f32.mrf.mxu0  ;;  %v2381_v26 = vsel %vm2285_vm3, %v13778_v44, %v2333_v23  ;;  %v11668_v23 = vld [vmem:[#allocation7 + $0x128] ss:$12 sps:$4 sm:$0xff]  }
 0x270   : > { %16061 = vst [vmem:[#allocation90_spill] sm:$0xff] %v13820_v25  ;;  %v10707_v31 = vpop.f32.mrf.mxu1  ;;  %v13830_v30 = vadd.f32 %v2116_v10, %v2020_v63  ;;  %10734 = vmatpush3.bf16.msra.mxu0 %v11665_v0  ;;  %v2378_v3 = vsel %vm2282_vm2, %v13771_v28, %v2330_v13  ;;  %v2033_v36 = vadd.f32 %v10705_v33, %v13629_v43  ;;  %v2339_v13 = vmul.f32 0.01, %v2243_v38 }
 0x271   : > { %16062 = vst [vmem:[#allocation91_spill] sm:$0xff] %v13825_v42  ;;  %v2252_v62 = vadd.f32 %v13664_v29, %v2188_v50  ;;  %v10708_v37 = vadd.f32 %v10707_v31, %v10706_v16  ;;  %v13836_v51 = vpop.f32.mrf.mxu0  ;;  %v13838_v14 = vpack.c.bf16 %v2381_v26, %v2378_v3  ;;  %10735 = vmatprep.subr.bf16.mxu0 %v11666_v1  ;;  %v2336_v0 = vmul.f32 0.01, %v2240_v6  ;;  %v11669_v31 = vld [vmem:[#allocation7 + $0x68] ss:$12 sps:$4 sm:$0xff]  }
 0x272   : > { %16063 = vst [vmem:[#allocation92_spill] sm:$0xff] %v13830_v30  ;;  %v10709_v15 = vpop.f32.mrf.mxu1  ;;  %v2182_v44 = vmul.f32 %v13649_v35, %v13807_v56  ;;  %v2197_v61 = vmul.f32 %v13649_v35, %v13820_v25  ;;  %v2191_v28 = vmul.f32 %v13649_v35, %v13830_v30  ;;  %v2249_v16 = vadd.f32 %v13664_v29, %v2185_v5  ;;  %v11670_v25 = vld [vmem:[#allocation7 + $0x110] ss:$12 sps:$4 sm:$0xff]  }
 0x273   : > { %v2194_v55 = vmul.f32 %v13649_v35, %v13825_v42  ;;  %3095 = vmatmul.mubr.bf16.gmra.mxu0 %v13838_v14  ;;  %v2129_v33 = vpop.f32.mrf.mxu0  ;;  %vm2291_vm4 = vcmp.gt.f32.partialorder %v2243_v38, 0.0  ;;  %v2348_v63 = vmul.f32 0.01, %v2252_v62  ;;  %vm2288_vm5 = vcmp.gt.f32.partialorder %v2240_v6, 0.0 }
 0x274   : > { %v10710_v1 = vpop.f32.mrf.mxu1  ;;  %v2255_v50 = vadd.f32 %v13664_v29, %v2191_v28  ;;  %10736 = vmatpush3.bf16.msra.mxu0 %v11667_v39  ;;  %3104 = vmatprep.mubr.bf16.mxu0 %v16060_v21  ;;  %vm2300_vm6 = vcmp.gt.f32.partialorder %v2252_v62, 0.0  ;;  %v13853_v10 = vadd.f32 %v2129_v33, %v2033_v36  ;;  %v2036_v3 = vadd.f32 %v10708_v37, %v13629_v43 }
 0x275   : > { %v11146_v26 = vpop.f32.mrf.mxu0  ;;  %10737 = vmatprep.subr.bf16.mxu0 %v11668_v23  ;;  %v2261_v42 = vadd.f32 %v13664_v29, %v2197_v61  ;;  %v2387_v28 = vsel %vm2291_vm4, %v2243_v38, %v2339_v13  ;;  %v2246_v39 = vadd.f32 %v13664_v29, %v2182_v44  ;;  %v2345_v54 = vmul.f32 0.01, %v2249_v16  ;;  %v11672_v61 = vld [vmem:[#allocation7 + $0x50] ss:$12 sps:$4 sm:$0xff]  }
 0x276   : > { %16064 = vst [vmem:[#allocation93_spill] sm:$0xff] %v13853_v10  ;;  %v10712_v5 = vpop.f32.mrf.mxu1  ;;  %vm2303_vm7 = vcmp.gt.f32.partialorder %v2255_v50, 0.0  ;;  %v2351_v30 = vmul.f32 0.01, %v2255_v50  ;;  %v2258_v58 = vadd.f32 %v13664_v29, %v2194_v55  ;;  %v2384_v33 = vsel %vm2288_vm5, %v2240_v6, %v2336_v0  ;;  %v11673_v55 = vld [vmem:[#allocation7 + $0xf8] ss:$12 sps:$4 sm:$0xff]  }
 0x277   : > { %v2132_v36 = vpop.f32.mrf.mxu0  ;;  %v2396_v23 = vsel %vm2300_vm6, %v2252_v62, %v2348_v63  ;;  %v10711_v37 = vadd.f32 %v10710_v1, %v10709_v15  ;;  %v2200_v38 = vmul.f32 %v13649_v35, %v13853_v10  ;;  %v13868_v13 = vpack.c.bf16 %v2387_v28, %v2384_v33  ;;  %v11676_v1 = vld [vmem:[#allocation7 + $0xe0] ss:$12 sps:$4 sm:$0xff]   ;;  %v11679_v28 = vld [vmem:[#allocation7 + $0xc8] ss:$12 sps:$4 sm:$0xff]   ;;  %v11753_v10 = vld [vmem:[#allocation9 + $0x218] ss:$12 sps:$4 sm:$0xff]  }
 0x278   : > { %v10713_v56 = vpop.f32.mrf.mxu1  ;;  %v2399_v46 = vsel %vm2303_vm7, %v2255_v50, %v2351_v30  ;;  %10738 = vmatpush3.bf16.msra.mxu0 %v11669_v31  ;;  %v13866_v44 = vadd.f32 %v2132_v36, %v2036_v3  ;;  %v2357_v6 = vmul.f32 0.01, %v2261_v42  ;;  %vm2297_vm8 = vcmp.gt.f32.partialorder %v2249_v16, 0.0  ;;  %v11677_v63 = vld [vmem:[#allocation7 + $0x200] ss:$12 sps:$4 sm:$0xff]  }
 0x279   : > { %v10714_v41 = vadd.f32 %v10713_v56, %v10712_v5  ;;  %v13862_v59 = vpack.c.bf16 %v2399_v46, %v2396_v23  ;;  %10739 = vmatprep.subr.bf16.mxu0 %v11670_v25  ;;  %vm2309_vm9 = vcmp.gt.f32.partialorder %v2261_v42, 0.0  ;;  %v2342_v46 = vmul.f32 0.01, %v2246_v39  ;;  %v11675_v25 = vld [vmem:[#allocation7 + $0x38] ss:$12 sps:$4 sm:$0xff]  }
 0x27a   : > { %16065 = vst [vmem:[#allocation94_spill] sm:$0xff] %v13866_v44  ;;  %v2203_v56 = vmul.f32 %v13649_v35, %v13866_v44  ;;  %v2354_v30 = vmul.f32 0.01, %v2258_v58  ;;  %v2041_v15 = vadd.f32 %v10711_v37, %v13629_v43  ;;  %v2264_v0 = vadd.f32 %v13664_v29, %v2200_v38 }
 0x27b   : > { %v2044_v62 = vadd.f32 %v10714_v41, %v13629_v43  ;;  %3105 = vmatmul.mubr.bf16.gmra.mxu0 %v13868_v13  ;;  %3125 = vmatmul.mubr.bf16.vlgmr.msra.gmra.mxu1 %v13862_v59  ;;  %vm2294_vm10 = vcmp.gt.f32.partialorder %v2246_v39, 0.0  ;;  %v2393_v41 = vsel %vm2297_vm8, %v2249_v16, %v2345_v54  ;;  %vm2306_vm11 = vcmp.gt.f32.partialorder %v2258_v58, 0.0  ;;  %v11678_v16 = vld [vmem:[#allocation7 + $0x20] ss:$12 sps:$4 sm:$0xff]  }
 0x27c   : > { %10740 = vmatpush3.bf16.msra.mxu0 %v11672_v61  ;;  %11148 = vmatpush3.bf16.msra.mxu1 %v13621_v11  ;;  %v2267_v31 = vadd.f32 %v13664_v29, %v2203_v56  ;;  %v2405_v11 = vsel %vm2309_vm9, %v2261_v42, %v2357_v6  ;;  %v13885_v43 = vadd.f32 %v13836_v51, %v2041_v15  ;;  %v2360_v36 = vmul.f32 0.01, %v2264_v0  ;;  %v11680_v42 = vld [vmem:[#allocation7 + $0x1e8] ss:$12 sps:$4 sm:$0xff]   ;;  %v11688_v51 = vld [vmem:[#allocation9 + $0xac] ss:$12 sps:$4 sm:$0xff]  }
 0x27d   : > { %10741 = vmatprep.subr.bf16.mxu0 %v11673_v55  ;;  %11149 = vmatprep.subr.bf16.mxu1 %v11674_v2  ;;  %v13878_v50 = vadd.f32 %v11146_v26, %v2044_v62  ;;  %v2390_v5 = vsel %vm2294_vm10, %v2246_v39, %v2342_v46  ;;  %v2402_v54 = vsel %vm2306_vm11, %v2258_v58, %v2354_v30  ;;  %vm2312_vm12 = vcmp.gt.f32.partialorder %v2264_v0, 0.0  ;;  %v11681_v58 = vld [vmem:[#allocation7 + $0x8] ss:$12 sps:$4 sm:$0xff]   ;;  %v11682_v61 = vld [vmem:[#allocation7 + $0x1d0] ss:$12 sps:$4 sm:$0xff]  }
 0x27e   : > { %3114 = vmatprep.mubr.bf16.mxu0 %v16060_v21  ;;  %3134 = vmatprep.mubr.bf16.mxu1 %v16060_v21  ;;  %16067 = vst [vmem:[#allocation96_spill] sm:$0xff] %v13885_v43  ;;  %v13887_v3 = vpack.c.bf16 %v2393_v41, %v2390_v5  ;;  %v13889_v26 = vpack.c.bf16 %v2405_v11, %v2402_v54  ;;  %v2363_v23 = vmul.f32 0.01, %v2267_v31  ;;  %vm2315_vm13 = vcmp.gt.f32.partialorder %v2267_v31, 0.0  ;;  %v11686_v6 = vld [vmem:[#allocation9 + $0xa8] ss:$12 sps:$4 sm:$0xff]  }
 0x27f   : > { %16066 = vst [vmem:[#allocation95_spill] sm:$0xff] %v13878_v50  ;;  %v2209_v33 = vmul.f32 %v13649_v35, %v13878_v50  ;;  %v2408_v39 = vsel %vm2312_vm12, %v2264_v0, %v2360_v36  ;;  %v11691_v56 = vld [vmem:[#allocation9 + $0x94] ss:$12 sps:$4 sm:$0xff]   ;;  %v11689_v46 = vld [vmem:[#allocation9 + $0x90] ss:$12 sps:$4 sm:$0xff]  }
 0x280   : > { %10742 = vmatpush3.bf16.msra.mxu0 %v11675_v25  ;;  %11150 = vmatpush3.bf16.msra.mxu1 %v11674_v2  ;;  %v2206_v2 = vmul.f32 %v13649_v35, %v13885_v43  ;;  %v2411_v37 = vsel %vm2315_vm13, %v2267_v31, %v2363_v23  ;;  %v11684_v15 = vld [vmem:[#allocation7 + $0x1a0] ss:$12 sps:$4 sm:$0xff]   ;;  %v11694_v25 = vld [vmem:[#allocation9 + $0x7c] ss:$12 sps:$4 sm:$0xff]   ;;  %v11709_v54 = vld [vmem:[#allocation9 + $0x4] ss:$12 sps:$4 sm:$0xff]  }
 0x281   : > { %10743 = vmatprep.subr.bf16.mxu0 %v11676_v1  ;;  %11151 = vmatprep.subr.bf16.mxu1 %v11677_v63  ;;  %v2273_v38 = vadd.f32 %v13664_v29, %v2209_v33  ;;  %v13901_v35 = vpack.c.bf16 %v2411_v37, %v2408_v39  ;;  %v11685_v1 = vld [vmem:[#allocation7 + $0x188] ss:$12 sps:$4 sm:$0xff]   ;;  %v11700_v31 = vld [vmem:[#allocation9 + $0x4c] ss:$12 sps:$4 sm:$0xff]   ;;  %v11733_v36 = vld [vmem:[#allocation9 + $0xc4] ss:$12 sps:$4 sm:$0xff]  }
 0x282   : > { %v2270_v55 = vadd.f32 %v13664_v29, %v2206_v2  ;;  %v11698_v11 = vld [vmem:[#allocation9 + $0x48] ss:$12 sps:$4 sm:$0xff]   ;;  %v11731_v33 = vld [vmem:[#allocation9 + $0xc0] ss:$12 sps:$4 sm:$0xff]   ;;  %v11740_v2 = vld [vmem:[#allocation9 + $0x1f8] ss:$12 sps:$4 sm:$0xff]  }
 0x283   : > { %3115 = vmatmul.mubr.bf16.gmra.mxu0 %v13887_v3  ;;  %3135 = vmatmul.mubr.bf16.gmra.mxu1 %v13889_v26  ;;  %v2369_v62 = vmul.f32 0.01, %v2273_v38  ;;  %vm2321_vm14 = vcmp.gt.f32.partialorder %v2273_v38, 0.0  ;;  %v11703_v5 = vld [vmem:[#allocation9 + $0x34] ss:$12 sps:$4 sm:$0xff]  }
 0x284   : > { %10744 = vmatpush3.bf16.msra.mxu0 %v11678_v16  ;;  %3197 = vmatprep.mubr.bf16.mxu0 %v13423_v18  ;;  %v11683_v18 = vld [vmem:[#allocation7 + $0x1b8] ss:$12 sps:$4 sm:$0xff]   ;;  %v2366_v29 = vmul.f32 0.01, %v2270_v55  ;;  %vm2318_vm15 = vcmp.gt.f32.partialorder %v2270_v55, 0.0 }
 0x285   : > { %11152 = vmatpush3.bf16.msra.mxu1 %v11677_v63  ;;  %10745 = vmatprep.subr.bf16.mxu0 %v11679_v28  ;;  %v2417_v30 = vsel %vm2321_vm14, %v2273_v38, %v2369_v62  ;;  %v11695_v63 = vld [vmem:[#allocation9 + $0x60] ss:$12 sps:$4 sm:$0xff]   ;;  %v11721_v16 = vld [vmem:[#allocation9 + $0x124] ss:$12 sps:$4 sm:$0xff]  }
 0x286   : > { %11153 = vmatprep.subr.bf16.mxu1 %v11680_v42  ;;  %3144 = vmatprep.mubr.bf16.mxu1 %v16060_v21  ;;  %v2414_v0 = vsel %vm2318_vm15, %v2270_v55, %v2366_v29  ;;  %v11725_v28 = vld [vmem:[#allocation9 + $0xf0] ss:$12 sps:$4 sm:$0xff]   ;;  %v11736_v23 = vld [vmem:[#allocation9 + $0x22c] ss:$12 sps:$4 sm:$0xff]   ;;  %v11752_v55 = vld [vmem:[#allocation9 + $0x1b4] ss:$12 sps:$4 sm:$0xff]  }
 0x287   : > { %v2538_v41 = vpack.c.bf16 %v2417_v30, %v2414_v0  ;;  %v11743_v39 = vld [vmem:[#allocation9 + $0x1e0] ss:$12 sps:$4 sm:$0xff]   ;;  %v11750_v38 = vld [vmem:[#allocation9 + $0x1b0] ss:$12 sps:$4 sm:$0xff]  }
 0x288   : > { %10746 = vmatpush3.bf16.msra.mxu0 %v11681_v58  ;;  %v11742_v58 = vld [vmem:[#allocation9 + $0x1fc] ss:$12 sps:$4 sm:$0xff]   ;;  %v11748_v37 = vld [vmem:[#allocation9 + $0x1cc] ss:$12 sps:$4 sm:$0xff]   ;;  %v11760_v62 = vld [vmem:[#allocation9 + $0x184] ss:$12 sps:$4 sm:$0xff]  }
 0x289   : > { %11154 = vmatpush3.bf16.msra.mxu1 %v11680_v42  ;;  %4024 = vmatprep.subr.bf16.mxu0 %v11688_v51  ;;  %v11734_v42 = vld [vmem:[#allocation9 + $0x228] ss:$12 sps:$4 sm:$0xff]   ;;  %v11745_v51 = vld [vmem:[#allocation9 + $0x1e4] ss:$12 sps:$4 sm:$0xff]  }
 0x28a   : > { %11155 = vmatprep.subr.bf16.mxu1 %v11682_v61  ;;  %v11762_v29 = vld [vmem:[#allocation9 + $0x170] ss:$12 sps:$4 sm:$0xff]  }
 0x28b   : > { %3145 = vmatmul.mubr.bf16.gmra.mxu1 %v13901_v35  ;;  %3198 = vmatmul.mubr.bf16.vlgmr.msra.gmra.mxu0 %v13425_v45  ;;  %v11692_v45 = vld [vmem:[#allocation9 + $0x78] ss:$12 sps:$4 sm:$0xff]  }
 0x28c   : > { %3205 = vmatprep.mubr.bf16.mxu0 %v13472_v12  ;;  %3154 = vmatprep.mubr.bf16.mxu1 %v16060_v21  ;;  %v11697_v12 = vld [vmem:[#allocation9 + $0x64] ss:$12 sps:$4 sm:$0xff]  }
 0x28d   : > { %11156 = vmatpush3.bf16.msra.mxu1 %v11682_v61  ;;  %4025 = vmatpush1.bf16.msra.mxu0 %v11686_v6  ;;  %v13928_v61 = vld [vmem:[#allocation9 + $0x230] ss:$12 sps:$4 sm:$0xff]  }
 0x28e   : > { %11157 = vmatprep.subr.bf16.mxu1 %v11683_v18  ;;  %4026 = vmatprep.subr.bf16.mxu0 %v11691_v56  ;;  %v11756_v6 = vld [vmem:[#allocation9 + $0x19c] ss:$12 sps:$4 sm:$0xff]  }
 0x291   : > { %11158 = vmatpush3.bf16.msra.mxu1 %v11683_v18  ;;  %4027 = vmatpush1.bf16.msra.mxu0 %v11689_v46  ;;  %v11758_v18 = vld [vmem:[#allocation9 + $0x180] ss:$12 sps:$4 sm:$0xff]  }
 0x292   : > { %11159 = vmatprep.subr.bf16.mxu1 %v11684_v15  ;;  %4028 = vmatprep.subr.bf16.mxu0 %v11694_v25 }
 0x293   : > { %3155 = vmatmul.mubr.bf16.gmra.mxu1 %v2538_v41  ;;  %3206 = vmatmul.mubr.bf16.gmra.mxu0 %v13474_v52  ;;  %v11701_v52 = vld [vmem:[#allocation9 + $0x30] ss:$12 sps:$4 sm:$0xff]  }
 0x294   : > { %3213 = vmatprep.mubr.bf16.mxu0 %v13526_v24  ;;  %11163 = vmatprep.mubr.bf16.mxu1 %v13789_v22  ;;  %v11706_v24 = vld [vmem:[#allocation9 + $0x1c] ss:$12 sps:$4 sm:$0xff]   ;;  %v11704_v22 = vld [vmem:[#allocation9 + $0x18] ss:$12 sps:$4 sm:$0xff]  }
 0x295   : > { %11160 = vmatpush3.bf16.msra.mxu1 %v11684_v15  ;;  %4029 = vmatpush1.bf16.msra.mxu0 %v11692_v45 }
 0x296   : > { %11161 = vmatprep.subr.bf16.mxu1 %v11685_v1  ;;  %4030 = vmatprep.subr.bf16.mxu0 %v11697_v12 }
 0x299   : > { %11162 = vmatpush3.bf16.msra.mxu1 %v11685_v1  ;;  %4031 = vmatpush1.bf16.msra.mxu0 %v11695_v63 }
 0x29a   : > { %4032 = vmatprep.subr.bf16.mxu0 %v11700_v31  ;;  %4137 = vmatprep.subr.bf16.mxu1 %v11736_v23 }
 0x29b   : > { %3214 = vmatmul.mubr.bf16.gmra.mxu0 %v13528_v53  ;;  %v11707_v53 = vld [vmem:[#allocation9] ss:$12 sps:$4 sm:$0xff]  }
 0x29c   : > { %11164 = vmatmul.mubr.bf16.vlgmr.msra.gmra.mxu1 %v13838_v14  ;;  %3221 = vmatprep.mubr.bf16.mxu0 %v13579_v9  ;;  %v11712_v9 = vld [vmem:[#allocation9 + $0x16c] ss:$12 sps:$4 sm:$0xff]   ;;  %v11710_v14 = vld [vmem:[#allocation9 + $0x168] ss:$12 sps:$4 sm:$0xff]  }
 0x29d   : > { %11167 = vmatprep.mubr.bf16.mxu1 %v13868_v13  ;;  %4033 = vmatpush1.bf16.msra.mxu0 %v11698_v11  ;;  %v11715_v13 = vld [vmem:[#allocation9 + $0x154] ss:$12 sps:$4 sm:$0xff]  }
 0x29e   : > { %4034 = vmatprep.subr.bf16.mxu0 %v11703_v5  ;;  %4138 = vmatpush1.bf16.msra.mxu1 %v11734_v42 }
 0x2a1   : > { %4035 = vmatpush1.bf16.msra.mxu0 %v11701_v52 }
 0x2a2   : > { %4036 = vmatprep.subr.bf16.mxu0 %v11706_v24 }
 0x2a3   : > { %3222 = vmatmul.mubr.bf16.gmra.mxu0 %v13581_v57  ;;  %v11713_v57 = vld [vmem:[#allocation9 + $0x150] ss:$12 sps:$4 sm:$0xff]  }
 0x2a4   : > { %11168 = vmatmul.mubr.bf16.gmra.mxu1 %v13887_v3  ;;  %3229 = vmatprep.mubr.bf16.mxu0 %v13643_v32  ;;  %v11718_v32 = vld [vmem:[#allocation9 + $0x13c] ss:$12 sps:$4 sm:$0xff]  }
 0x2a5   : > { %11171 = vmatprep.mubr.bf16.mxu1 %v13862_v59  ;;  %4037 = vmatpush1.bf16.msra.mxu0 %v11704_v22  ;;  %v11716_v59 = vld [vmem:[#allocation9 + $0x138] ss:$12 sps:$4 sm:$0xff]   ;;  %v11722_v3 = vld [vmem:[#allocation9 + $0x108] ss:$12 sps:$4 sm:$0xff]  }
 0x2a6   : > { %4038 = vmatprep.subr.bf16.mxu0 %v11709_v54 }
 0x2a9   : > { %4039 = vmatpush1.bf16.msra.mxu0 %v11707_v53 }
 0x2aa   : > { %4040 = vmatprep.subr.bf16.mxu0 %v11712_v9 }
 0x2ab   : > { %3230 = vmatmul.mubr.bf16.gmra.mxu0 %v13645_v27  ;;  %v11719_v27 = vld [vmem:[#allocation9 + $0x120] ss:$12 sps:$4 sm:$0xff]  }
 0x2ac   : > { %11172 = vmatmul.mubr.bf16.gmra.mxu1 %v13889_v26  ;;  %3237 = vmatprep.mubr.bf16.mxu0 %v13697_v7  ;;  %v11724_v7 = vld [vmem:[#allocation9 + $0x10c] ss:$12 sps:$4 sm:$0xff]   ;;  %v11727_v26 = vld [vmem:[#allocation9 + $0xf4] ss:$12 sps:$4 sm:$0xff]  }
 0x2ad   : > { %11175 = vmatprep.mubr.bf16.mxu1 %v13901_v35  ;;  %4041 = vmatpush2.bf16.msra.mxu0 %v11710_v14  ;;  %v11754_v35 = vld [vmem:[#allocation9 + $0x198] ss:$12 sps:$4 sm:$0xff]  }
 0x2ae   : > { %4042 = vmatprep.subr.bf16.mxu0 %v11715_v13 }
 0x2b1   : > { %4043 = vmatpush2.bf16.msra.mxu0 %v11713_v57 }
 0x2b2   : > { %4044 = vmatprep.subr.bf16.mxu0 %v11718_v32 }
 0x2b3   : > { %3238 = vmatmul.mubr.bf16.gmra.mxu0 %v13699_v47  ;;  %v11730_v47 = vld [vmem:[#allocation9 + $0xdc] ss:$12 sps:$4 sm:$0xff]  }
 0x2b4   : > { %11176 = vmatmul.mubr.bf16.gmra.mxu1 %v2538_v41  ;;  %3245 = vmatprep.mubr.bf16.mxu0 %v13740_v19  ;;  %v11728_v19 = vld [vmem:[#allocation9 + $0xd8] ss:$12 sps:$4 sm:$0xff]  }
 0x2b5   : > { %4045 = vmatpush2.bf16.msra.mxu0 %v11716_v59  ;;  %4169 = vmatprep.mubr.bf16.mxu1 %v16060_v21 }
 0x2b6   : > { %4046 = vmatprep.subr.bf16.mxu0 %v11721_v16 }
 0x2b9   : > { %4047 = vmatpush2.bf16.msra.mxu0 %v11719_v27 }
 0x2ba   : > { %4048 = vmatprep.subr.bf16.mxu0 %v11724_v7  ;;  %v13970_v7 = vld [vmem:[%s16068_s5] sm:$0x7]  ;;  %s16196_s5 = sld [smem:[#allocation47_spill]] }
 0x2bb   : > { %3246 = vmatmul.mubr.bf16.gmra.mxu0 %v13747_v40  ;;  %v11737_v40 = vld [vmem:[#allocation9 + $0x210] ss:$12 sps:$4 sm:$0xff]  }
 0x2bc   : > { %3253 = vmatprep.mubr.bf16.mxu0 %v13781_v34  ;;  %v11739_v34 = vld [vmem:[#allocation9 + $0x214] ss:$12 sps:$4 sm:$0xff]  }
 0x2bd   : > { %4049 = vmatpush2.bf16.msra.mxu0 %v11722_v3  ;;  %4139 = vmatprep.subr.bf16.mxu1 %v11739_v34  ;;  %v16069_v3 = vld [vmem:[#allocation50_spill] sm:$0xff] }
 0x2be   : > { %4050 = vmatprep.subr.bf16.mxu0 %v11727_v26  ;;  %4140 = vmatpush1.bf16.msra.mxu1 %v11737_v40  ;;  %v13974_v26 = vrot.slane %v13970_v7, %v16069_v3 }
 0x2bf   : > { %4141 = vmatprep.subr.bf16.mxu1 %v11742_v58 }
 0x2c1   : > { %4051 = vmatpush2.bf16.msra.mxu0 %v11725_v28  ;;  %v16070_v28 = vld [vmem:[#allocation49_spill] sm:$0xff] }
 0x2c2   : > { %4052 = vmatprep.subr.bf16.mxu0 %v11730_v47  ;;  %4142 = vmatpush1.bf16.msra.mxu1 %v11740_v2  ;;  %v13978_v47 = vrot.slane %v13970_v7, %v16070_v28 }
 0x2c3   : > { %3254 = vmatmul.mubr.bf16.gmra.mxu0 %v13796_v48  ;;  %4143 = vmatprep.subr.bf16.mxu1 %v11745_v51  ;;  %v11746_v48 = vld [vmem:[#allocation9 + $0x1c8] ss:$12 sps:$4 sm:$0xff]  }
 0x2c5   : > { %4053 = vmatpush2.bf16.msra.mxu0 %v11728_v19 }
 0x2c6   : > { %4054 = vmatprep.subr.bf16.mxu0 %v11733_v36  ;;  %4144 = vmatpush1.bf16.msra.mxu1 %v11743_v39 }
 0x2c7   : > { %4145 = vmatprep.subr.bf16.mxu1 %v11748_v37 }
 0x2c9   : > { %4055 = vmatpush2.bf16.msra.mxu0 %v11731_v33 }
 0x2ca   : > { %11179 = vmatprep.subr.bf16.mxu0 %v13928_v61  ;;  %4146 = vmatpush1.bf16.msra.mxu1 %v11746_v48 }
 0x2cb   : > { %4147 = vmatprep.subr.bf16.mxu1 %v11752_v55 }
 0x2ce   : > { %4148 = vmatpush1.bf16.msra.mxu1 %v11750_v38 }
 0x2cf   : > { %4149 = vmatprep.subr.bf16.mxu1 %v11756_v6 }
 0x2d2   : > { %4150 = vmatpush1.bf16.msra.mxu1 %v11754_v35 }
 0x2d3   : > { %4151 = vmatprep.subr.bf16.mxu1 %v11760_v62 }
 0x2d6   : > { %4152 = vmatpush1.bf16.msra.mxu1 %v11758_v18 }
 0x2d7   : > { %10811 = vmatprep.subr.bf16.mxu1 %v11762_v29 }
 0x2f0   : > { %v2973_v56 = vpop.f32.mrf.mxu1 }
 0x2f1   : > { %v2974_v42 = vadd.f32 %v2973_v56, %v13978_v47 }
 0x2f2   : > { %v2975_v46 = vpop.f32.mrf.mxu1 }
 0x2f3   : > { %v2976_v33 = vadd.f32 %v2975_v46, %v13974_v26 }
 0x2f4   : > { %v2977_v30 = vpop.f32.mrf.mxu1 }
 0x2f5   : > { %v2978_v34 = vadd.f32 %v2977_v30, %v13978_v47 }
 0x2f6   : > { %v2979_v15 = vpop.f32.mrf.mxu1 }
 0x2f7   : > { %v2980_v39 = vadd.f32 %v2979_v15, %v13974_v26 }
 0x2f8   : > { %v2983_v25 = vpop.f32.mrf.mxu1 }
 0x2fa   : > { %v2985_v0 = vpop.f32.mrf.mxu1 }
 0x2fb   : > { %v2986_v29 = vadd.f32 %v2985_v0, %v13974_v26 }
 0x2fc   : > { %v2987_v41 = vpop.f32.mrf.mxu1 }
 0x2fe   : > { %v2989_v45 = vpop.f32.mrf.mxu1 }
 0x2ff   : > { %v2990_v50 = vadd.f32 %v2989_v45, %v13974_v26  ;;  %v11757_v45 = vld [vmem:[#allocation9 + $0x200] ss:$12 sps:$4 sm:$0xff]  }
 0x300   : > { %v13931_v1 = vpop.f32.mrf.mxu1 }
 0x302   : > { %v13933_v12 = vpop.f32.mrf.mxu1 }
 0x304   : > { %v13935_v63 = vpop.f32.mrf.mxu1 }
 0x306   : > { %v13937_v31 = vpop.f32.mrf.mxu1 }
 0x308   : > { %v13939_v11 = vpop.f32.mrf.mxu1 }
 0x30a   : > { %v13941_v5 = vpop.f32.mrf.mxu1 }
 0x30c   : > { %v13943_v52 = vpop.f32.mrf.mxu1 }
 0x30e   : > { %v13945_v24 = vpop.f32.mrf.mxu1 }
 0x310   : > { %v13947_v22 = vpop.f32.mrf.mxu1 }
 0x312   : > { %v13949_v54 = vpop.f32.mrf.mxu1 }
 0x314   : > { %v13951_v53 = vpop.f32.mrf.mxu1 }
 0x316   : > { %v13953_v9 = vpop.f32.mrf.mxu1 }
 0x318   : > { %v13955_v14 = vpop.f32.mrf.mxu1 }
 0x31a   : > { %v13957_v13 = vpop.f32.mrf.mxu1 }
 0x31c   : > { %v13959_v57 = vpop.f32.mrf.mxu1 }
 0x31e   : > { %v13961_v32 = vpop.f32.mrf.mxu1 }
 0x320   : > { %v13963_v59 = vpop.f32.mrf.mxu1 }
 0x322   : > { %v13965_v16 = vpop.f32.mrf.mxu1 }
 0x324   : > { %v13967_v27 = vpop.f32.mrf.mxu1 }
 0x326   : > { %v13980_v19 = vpop.f32.mrf.mxu1 }
 0x32b   : > { %v3086_v36 = vpop.f32.mrf.mxu0 }
 0x32c   : > { %v13984_v23 = vpop.f32.mrf.mxu1  ;;  %v3087_v58 = vadd.f32 %v3086_v36, %v2974_v42  ;;  %v2984_v36 = vadd.f32 %v2983_v25, %v13978_v47 }
 0x32d   : > { %v3088_v40 = vpop.f32.mrf.mxu0 }
 0x32e   : > { %v3089_v2 = vadd.f32 %v3088_v40, %v2976_v33  ;;  %v13988_v37 = vpop.f32.mrf.mxu1  ;;  %v3407_v18 = vmul.f32 0.01, %v3087_v58  ;;  %vm3359_vm2 = vcmp.gt.f32.partialorder %v3087_v58, 0.0  ;;  %v2988_v33 = vadd.f32 %v2987_v41, %v13978_v47 }
 0x32f   : > { %v3090_v51 = vpop.f32.mrf.mxu0 }
 0x330   : > { %v3091_v48 = vadd.f32 %v3090_v51, %v2978_v34  ;;  %v3408_v55 = vmul.f32 0.01, %v3089_v2  ;;  %vm3360_vm1 = vcmp.gt.f32.partialorder %v3089_v2, 0.0  ;;  %v13991_v46 = vpop.f32.mrf.mxu1  ;;  %v3455_v34 = vsel %vm3359_vm2, %v3087_v58, %v3407_v18 }
 0x331   : > { %v3092_v38 = vpop.f32.mrf.mxu0 }
 0x332   : > { %vm3362_vm0 = vcmp.gt.f32.partialorder %v3091_v48, 0.0  ;;  %v3410_v35 = vmul.f32 0.01, %v3091_v48  ;;  %v3093_v6 = vadd.f32 %v3092_v38, %v2980_v39  ;;  %v3456_v42 = vsel %vm3360_vm1, %v3089_v2, %v3408_v55 }
 0x333   : > { %v3096_v62 = vpop.f32.mrf.mxu0 }
 0x334   : > { %vm3363_vm3 = vcmp.gt.f32.partialorder %v3093_v6, 0.0  ;;  %v3411_v56 = vmul.f32 0.01, %v3093_v6  ;;  %v3458_v30 = vsel %vm3362_vm0, %v3091_v48, %v3410_v35  ;;  %v3097_v0 = vadd.f32 %v3096_v62, %v2984_v36  ;;  %v14000_v48 = vpop.f32.mrf.mxu1 }
 0x335   : > { %v3098_v15 = vpop.f32.mrf.mxu0  ;;  %v13998_v43 = vpack.c.bf16 %v3458_v30, %v3455_v34  ;;  %v2996_v62 = vadd.f32 %v13933_v12, %v13974_v26  ;;  %v2998_v30 = vadd.f32 %v13935_v63, %v13978_v47 }
 0x336   : > { %v3459_v40 = vsel %vm3363_vm3, %v3093_v6, %v3411_v56  ;;  %v3099_v51 = vadd.f32 %v3098_v15, %v2986_v29  ;;  %v3413_v6 = vmul.f32 0.01, %v3097_v0  ;;  %vm3365_vm7 = vcmp.gt.f32.partialorder %v3097_v0, 0.0 }
 0x337   : > { %v3100_v39 = vpop.f32.mrf.mxu0  ;;  %v13995_v38 = vpack.c.bf16 %v3459_v40, %v3456_v42  ;;  %v2994_v29 = vadd.f32 %v13931_v1, %v13978_v47  ;;  %v3000_v1 = vadd.f32 %v13937_v31, %v13974_v26  ;;  %v3016_v31 = vadd.f32 %v13949_v54, %v13974_v26 }
 0x338   : > { %v3101_v44 = vadd.f32 %v3100_v39, %v2988_v33  ;;  %v3414_v2 = vmul.f32 0.01, %v3099_v51  ;;  %vm3366_vm5 = vcmp.gt.f32.partialorder %v3099_v51, 0.0 }
 0x339   : > { %v3102_v35 = vpop.f32.mrf.mxu0  ;;  %4056 = vmatprep.mubr.bf16.mxu0 %v13995_v38 }
 0x33a   : > { %v3416_v25 = vmul.f32 0.01, %v3101_v44  ;;  %v3103_v41 = vadd.f32 %v3102_v35, %v2990_v50  ;;  %4057 = vmatmul.mubr.bf16.vlgmr.msra.gmra.mxu0 %v13998_v43  ;;  %vm3368_vm4 = vcmp.gt.f32.partialorder %v3101_v44, 0.0  ;;  %v3462_v42 = vsel %vm3366_vm5, %v3099_v51, %v3414_v2 }
 0x33b   : > { %v3106_v58 = vpop.f32.mrf.mxu0  ;;  %v14004_v55 = vpop.f32.mrf.mxu1  ;;  %11180 = vmatpush3.bf16.msra.mxu0 %v13928_v61  ;;  %v3461_v35 = vsel %vm3365_vm7, %v3097_v0, %v3413_v6  ;;  %v3006_v0 = vadd.f32 %v13941_v5, %v13974_v26  ;;  %v3020_v6 = vadd.f32 %v13953_v9, %v13974_v26  ;;  %v3008_v5 = vadd.f32 %v13943_v52, %v13978_v47 }
 0x33c   : > { %vm3369_vm6 = vcmp.gt.f32.partialorder %v3103_v41, 0.0  ;;  %v3417_v18 = vmul.f32 0.01, %v3103_v41  ;;  %11181 = vmatprep.subr.bf16.mxu0 %v11753_v10  ;;  %v3464_v61 = vsel %vm3368_vm4, %v3101_v44, %v3416_v25  ;;  %v3107_v34 = vadd.f32 %v3106_v58, %v2994_v29  ;;  %v11761_v44 = vld [vmem:[#allocation9 + $0x1e8] ss:$12 sps:$4 sm:$0xff]  }
 0x33d   : > { %v3108_v50 = vpop.f32.mrf.mxu0  ;;  %v3128_v56 = vpop.f32.mrf.mxu1  ;;  %v14020_v4 = vpack.c.bf16 %v3464_v61, %v3461_v35  ;;  %v3004_v29 = vadd.f32 %v13939_v11, %v13978_v47  ;;  %v3010_v52 = vadd.f32 %v13945_v24, %v13974_v26 }
 0x33e   : > { %v3109_v15 = vadd.f32 %v3108_v50, %v2996_v62  ;;  %v3465_v40 = vsel %vm3369_vm6, %v3103_v41, %v3417_v18  ;;  %v3419_v58 = vmul.f32 0.01, %v3107_v34  ;;  %vm3371_vm10 = vcmp.gt.f32.partialorder %v3107_v34, 0.0  ;;  %v11764_v50 = vld [vmem:[#allocation9 + $0x1d0] ss:$12 sps:$4 sm:$0xff]  }
 0x33f   : > { %v3110_v36 = vpop.f32.mrf.mxu0  ;;  %v14014_v33 = vpop.f32.mrf.mxu1  ;;  %11182 = vmatpush3.bf16.msra.mxu0 %v11753_v10  ;;  %v14016_v39 = vpack.c.bf16 %v3465_v40, %v3462_v42  ;;  %v3129_v54 = vadd.f32 %v3128_v56, %v3016_v31  ;;  %v3030_v31 = vadd.f32 %v13961_v32, %v13974_v26  ;;  %v3026_v32 = vadd.f32 %v13957_v13, %v13974_v26 }
 0x340   : > { %v3111_v12 = vadd.f32 %v3110_v36, %v2998_v30  ;;  %11183 = vmatprep.subr.bf16.mxu0 %v11757_v45  ;;  %v3420_v51 = vmul.f32 0.01, %v3109_v15  ;;  %vm3372_vm9 = vcmp.gt.f32.partialorder %v3109_v15, 0.0  ;;  %v3467_v11 = vsel %vm3371_vm10, %v3107_v34, %v3419_v58 }
 0x341   : > { %v3112_v17 = vpop.f32.mrf.mxu0  ;;  %v3132_v63 = vpop.f32.mrf.mxu1  ;;  %4066 = vmatprep.mubr.bf16.mxu0 %v14016_v39  ;;  %vm3384_vm1 = vcmp.gt.f32.partialorder %v3129_v54, 0.0 }
 0x342   : > { %v3422_v25 = vmul.f32 0.01, %v3111_v12  ;;  %vm3374_vm8 = vcmp.gt.f32.partialorder %v3111_v12, 0.0  ;;  %v3113_v10 = vadd.f32 %v3112_v17, %v3000_v1  ;;  %4067 = vmatmul.mubr.bf16.gmra.mxu0 %v14020_v4  ;;  %v3468_v42 = vsel %vm3372_vm9, %v3109_v15, %v3420_v51 }
 0x343   : > { %v3116_v41 = vpop.f32.mrf.mxu0  ;;  %v14024_v2 = vpop.f32.mrf.mxu1  ;;  %11184 = vmatpush3.bf16.msra.mxu0 %v11757_v45  ;;  %v3133_v45 = vadd.f32 %v3132_v63, %v3020_v6  ;;  %v3018_v15 = vadd.f32 %v13951_v53, %v13978_v47 }
 0x344   : > { %vm3375_vm11 = vcmp.gt.f32.partialorder %v3113_v10, 0.0  ;;  %v3423_v17 = vmul.f32 0.01, %v3113_v10  ;;  %11185 = vmatprep.subr.bf16.mxu0 %v11761_v44  ;;  %v3470_v30 = vsel %vm3374_vm8, %v3111_v12, %v3422_v25  ;;  %v3117_v35 = vadd.f32 %v3116_v41, %v3004_v29  ;;  %v11765_v25 = vld [vmem:[#allocation9 + $0x1b8] ss:$12 sps:$4 sm:$0xff]  }
 0x345   : > { %v3118_v18 = vpop.f32.mrf.mxu0  ;;  %v3138_v62 = vpop.f32.mrf.mxu1  ;;  %v14045_v63 = vpack.c.bf16 %v3470_v30, %v3467_v11  ;;  %v3435_v58 = vmul.f32 0.01, %v3133_v45  ;;  %vm3387_vm14 = vcmp.gt.f32.partialorder %v3133_v45, 0.0  ;;  %v3014_v29 = vadd.f32 %v13947_v22, %v13978_v47 }
 0x346   : > { %v3119_v61 = vadd.f32 %v3118_v18, %v3006_v0  ;;  %v3471_v40 = vsel %vm3375_vm11, %v3113_v10, %v3423_v17  ;;  %v3432_v10 = vmul.f32 0.01, %v3129_v54  ;;  %v11768_v0 = vld [vmem:[#allocation9 + $0x1a0] ss:$12 sps:$4 sm:$0xff]   ;;  %v3425_v6 = vmul.f32 0.01, %v3117_v35 }
 0x347   : > { %v3120_v36 = vpop.f32.mrf.mxu0  ;;  %v14037_v9 = vpop.f32.mrf.mxu1  ;;  %v14040_v49 = vpack.c.bf16 %v3471_v40, %v3468_v42  ;;  %11186 = vmatpush3.bf16.msra.mxu0 %v11761_v44  ;;  %vm3377_vm15 = vcmp.gt.f32.partialorder %v3117_v35, 0.0 }
 0x348   : > { %v3121_v1 = vadd.f32 %v3120_v36, %v3008_v5  ;;  %11187 = vmatprep.subr.bf16.mxu0 %v11764_v50  ;;  %v3426_v41 = vmul.f32 0.01, %v3119_v61  ;;  %vm3378_vm13 = vcmp.gt.f32.partialorder %v3119_v61, 0.0  ;;  %v3131_v5 = vadd.f32 %v14014_v33, %v3018_v15 }
 0x349   : > { %v3122_v56 = vpop.f32.mrf.mxu0  ;;  %v3142_v12 = vpop.f32.mrf.mxu1  ;;  %4076 = vmatprep.mubr.bf16.mxu0 %v14040_v49  ;;  %v3473_v22 = vsel %vm3377_vm15, %v3117_v35, %v3425_v6  ;;  %v3483_v33 = vsel %vm3387_vm14, %v3133_v45, %v3435_v58  ;;  %v3028_v35 = vadd.f32 %v13959_v57, %v13978_v47  ;;  %v3024_v6 = vadd.f32 %v13955_v14, %v13978_v47 }
 0x34a   : > { %v3428_v51 = vmul.f32 0.01, %v3121_v1  ;;  %vm3380_vm12 = vcmp.gt.f32.partialorder %v3121_v1, 0.0  ;;  %v3123_v34 = vadd.f32 %v3122_v56, %v3010_v52  ;;  %4077 = vmatmul.mubr.bf16.gmra.mxu0 %v14045_v63  ;;  %v3143_v36 = vadd.f32 %v3142_v12, %v3030_v31  ;;  %v11769_v31 = vld [vmem:[#allocation9 + $0x188] ss:$12 sps:$4 sm:$0xff]  }
 0x34b   : > { %v14051_v44 = vpop.f32.mrf.mxu1  ;;  %v14053_v24 = vpop.f32.mrf.mxu0  ;;  %11188 = vmatpush3.bf16.msra.mxu0 %v11764_v50  ;;  %v3474_v40 = vsel %vm3378_vm13, %v3119_v61, %v3426_v41  ;;  %v3127_v52 = vadd.f32 %v14004_v55, %v3014_v29  ;;  %v3434_v61 = vmul.f32 0.01, %v3131_v5  ;;  %vm3386_vm2 = vcmp.gt.f32.partialorder %v3131_v5, 0.0 }
 0x34c   : > { %vm3381_vm0 = vcmp.gt.f32.partialorder %v3123_v34, 0.0  ;;  %v3429_v53 = vmul.f32 0.01, %v3123_v34  ;;  %11189 = vmatprep.subr.bf16.mxu0 %v11765_v25  ;;  %v3476_v30 = vsel %vm3380_vm12, %v3121_v1, %v3428_v51  ;;  %v3139_v1 = vadd.f32 %v3138_v62, %v3026_v32 }
 0x34d   : > { %v3148_v17 = vpop.f32.mrf.mxu1  ;;  %v10748_v18 = vpop.f32.mrf.mxu0  ;;  %v14073_v12 = vpack.c.bf16 %v3476_v30, %v3473_v22  ;;  %v3480_v51 = vsel %vm3384_vm1, %v3129_v54, %v3432_v10  ;;  %v3441_v41 = vmul.f32 0.01, %v3143_v36  ;;  %vm3393_vm3 = vcmp.gt.f32.partialorder %v3143_v36, 0.0 }
 0x34e   : > { %v3477_v11 = vsel %vm3381_vm0, %v3123_v34, %v3429_v53  ;;  %v14077_v55 = vpack.c.bf16 %v3483_v33, %v3480_v51  ;;  %v3040_v54 = vadd.f32 %v13980_v19, %v13974_v26  ;;  %vm3383_vm4 = vcmp.gt.f32.partialorder %v3127_v52, 0.0 }
 0x34f   : > { %v14063_v50 = vpop.f32.mrf.mxu1  ;;  %v14065_v42 = vpop.f32.mrf.mxu0  ;;  %v14069_v56 = vpack.c.bf16 %v3477_v11, %v3474_v40  ;;  %11190 = vmatpush3.bf16.msra.mxu0 %v11765_v25  ;;  %v3431_v25 = vmul.f32 0.01, %v3127_v52  ;;  %v3438_v10 = vmul.f32 0.01, %v3139_v1  ;;  %v3482_v53 = vsel %vm3386_vm2, %v3131_v5, %v3434_v61 }
 0x350   : > { %11191 = vmatprep.subr.bf16.mxu0 %v11768_v0  ;;  %vm3390_vm5 = vcmp.gt.f32.partialorder %v3139_v1, 0.0  ;;  %v3141_v57 = vadd.f32 %v14037_v9, %v3028_v35  ;;  %v3036_v29 = vadd.f32 %v13965_v16, %v13974_v26  ;;  %v3489_v32 = vsel %vm3393_vm3, %v3143_v36, %v3441_v41 }
 0x351   : > { %v3152_v15 = vpop.f32.mrf.mxu1  ;;  %v10751_v13 = vpop.f32.mrf.mxu0  ;;  %4086 = vmatprep.mubr.bf16.mxu0 %v14069_v56  ;;  %v3479_v40 = vsel %vm3383_vm4, %v3127_v52, %v3431_v25  ;;  %v3137_v11 = vadd.f32 %v14024_v2, %v3024_v6  ;;  %v14101_v14 = vrot.slane %v13970_v7, %v13597_v60  ;;  %v10749_v22 = vadd.f32 %v10748_v18, %v14053_v24 }
 0x352   : > { %4087 = vmatmul.mubr.bf16.gmra.mxu0 %v14073_v12  ;;  %v14103_v5 = vpack.c.bf16 %v3482_v53, %v3479_v40  ;;  %v3149_v9 = vadd.f32 %v3148_v17, %v3036_v29  ;;  %v3440_v51 = vmul.f32 0.01, %v3141_v57  ;;  %v3034_v2 = vadd.f32 %v13963_v59, %v13978_v47 }
 0x353   : > { %v14080_v45 = vpop.f32.mrf.mxu1  ;;  %v14082_v62 = vpop.f32.mrf.mxu0  ;;  %4096 = vmatprep.mubr.bf16.mxu0 %v14077_v55  ;;  %11192 = vmatpush3.bf16.msra.mxu0 %v11768_v0  ;;  %v3153_v0 = vadd.f32 %v3152_v15, %v3040_v54  ;;  %v3486_v15 = vsel %vm3390_vm5, %v3139_v1, %v3438_v10  ;;  %v3038_v7 = vadd.f32 %v13967_v27, %v13978_v47  ;;  %vm3392_vm6 = vcmp.gt.f32.partialorder %v3141_v57, 0.0 }
 0x354   : > { %11193 = vmatprep.subr.bf16.mxu0 %v11769_v31  ;;  %v14107_v61 = vpack.c.bf16 %v3489_v32, %v3486_v15  ;;  %v3046_v24 = vadd.f32 %v13988_v37, %v13974_v26  ;;  %v3050_v18 = vadd.f32 %v14000_v48, %v13974_v26  ;;  %v3437_v52 = vmul.f32 0.01, %v3137_v11 }
 0x355   : > { %v3158_v34 = vpop.f32.mrf.mxu1  ;;  %v10754_v58 = vpop.f32.mrf.mxu0  ;;  %v3447_v36 = vmul.f32 0.01, %v3153_v0  ;;  %vm3399_vm7 = vcmp.gt.f32.partialorder %v3153_v0, 0.0  ;;  %vm3389_vm8 = vcmp.gt.f32.partialorder %v3137_v11, 0.0  ;;  %v3444_v59 = vmul.f32 0.01, %v3149_v9 }
 0x356   : > { %v10752_v27 = vadd.f32 %v10751_v13, %v14065_v42  ;;  %v3200_v41 = vadd.f32 %v10749_v22, %v14101_v14  ;;  %v3488_v35 = vsel %vm3392_vm6, %v3141_v57, %v3440_v51  ;;  %v3147_v25 = vadd.f32 %v14051_v44, %v3034_v2 }
 0x357   : > { %v14095_v30 = vpop.f32.mrf.mxu1  ;;  %v10756_v19 = vpop.f32.mrf.mxu0  ;;  %11194 = vmatpush3.bf16.msra.mxu0 %v11769_v31  ;;  %vm3396_vm9 = vcmp.gt.f32.partialorder %v3149_v9, 0.0  ;;  %v3151_v37 = vadd.f32 %v14063_v50, %v3038_v7  ;;  %v3495_v53 = vsel %vm3399_vm7, %v3153_v0, %v3447_v36  ;;  %v3044_v29 = vadd.f32 %v13984_v23, %v13978_v47 }
 0x358   : > { %v3048_v42 = vadd.f32 %v13991_v46, %v13978_v47  ;;  %v3485_v13 = vsel %vm3389_vm8, %v3137_v11, %v3437_v52  ;;  %v10755_v44 = vadd.f32 %v10754_v58, %v14082_v62  ;;  %v3159_v50 = vadd.f32 %v3158_v34, %v3046_v24 }
 0x359   : > { %v3162_v16 = vpop.f32.mrf.mxu1  ;;  %v10757_v33 = vpop.f32.mrf.mxu0  ;;  %v14132_v32 = vpack.c.bf16 %v3488_v35, %v3485_v13  ;;  %v3492_v22 = vsel %vm3396_vm9, %v3149_v9, %v3444_v59  ;;  %vm3395_vm10 = vcmp.gt.f32.partialorder %v3147_v25, 0.0  ;;  %vm3398_vm11 = vcmp.gt.f32.partialorder %v3151_v37, 0.0 }
 0x35a   : > { %4097 = vmatmul.mubr.bf16.gmra.mxu0 %v14103_v5  ;;  %v3163_v26 = vadd.f32 %v3162_v16, %v3050_v18  ;;  %v10758_v48 = vadd.f32 %v10757_v33, %v10756_v19  ;;  %v3203_v19 = vadd.f32 %v10752_v27, %v14101_v14  ;;  %v3446_v0 = vmul.f32 0.01, %v3151_v37 }
 0x35b   : > { %v14114_v17 = vpop.f32.mrf.mxu0  ;;  %4106 = vmatprep.mubr.bf16.mxu0 %v14107_v61  ;;  %v14136_v16 = vpack.c.bf16 %v3495_v53, %v3492_v22  ;;  %v3443_v34 = vmul.f32 0.01, %v3147_v25  ;;  %v3208_v33 = vadd.f32 %v10755_v44, %v14101_v14  ;;  %v3450_v15 = vmul.f32 0.01, %v3159_v50  ;;  %v11770_v22 = vld [vmem:[#allocation9 + $0x140] ss:$12 sps:$4 sm:$0xff]  }
 0x35c   : > { %v11165_v1 = vpop.f32.mrf.mxu1  ;;  %v3453_v47 = vmul.f32 0.01, %v3163_v26  ;;  %v3211_v11 = vadd.f32 %v10758_v48, %v14101_v14  ;;  %vm3405_vm12 = vcmp.gt.f32.partialorder %v3163_v26, 0.0  ;;  %v3494_v36 = vsel %vm3398_vm11, %v3151_v37, %v3446_v0 }
 0x35d   : > { %v10760_v31 = vpop.f32.mrf.mxu0  ;;  %vm3402_vm15 = vcmp.gt.f32.partialorder %v3159_v50, 0.0  ;;  %v3161_v24 = vadd.f32 %v14095_v30, %v3048_v42  ;;  %v3305_v18 = vadd.f32 %v11165_v1, %v3208_v33  ;;  %v3491_v53 = vsel %vm3395_vm10, %v3147_v25, %v3443_v34 }
 0x35e   : > { %v3296_v54 = vpop.f32.mrf.mxu1  ;;  %v3501_v48 = vsel %vm3405_vm12, %v3163_v26, %v3453_v47  ;;  %v3157_v13 = vadd.f32 %v14080_v45, %v3044_v29  ;;  %v14151_v37 = vpack.c.bf16 %v3494_v36, %v3491_v53  ;;  %v10761_v30 = vadd.f32 %v10760_v31, %v14114_v17  ;;  %v11767_v17 = vld [vmem:[#allocation9 + $0x98] ss:$12 sps:$4 sm:$0xff]  }
 0x35f   : > { %v3297_v10 = vadd.f32 %v3296_v54, %v3200_v41  ;;  %v10762_v6 = vpop.f32.mrf.mxu0  ;;  %v11763_v54 = vld [vmem:[#allocation9 + $0xb0] ss:$12 sps:$4 sm:$0xff]   ;;  %vm3404_vm1 = vcmp.gt.f32.partialorder %v3161_v24, 0.0  ;;  %v3415_v45 = vmul.f32 0.01, %v3305_v18  ;;  %vm3367_vm3 = vcmp.gt.f32.partialorder %v3305_v18, 0.0 }
 0x360   : > { %v11166_v57 = vpop.f32.mrf.mxu1  ;;  %vm3401_vm2 = vcmp.gt.f32.partialorder %v3157_v13, 0.0  ;;  %v3449_v31 = vmul.f32 0.01, %v3157_v13 }
 0x361   : > { %v10763_v40 = vpop.f32.mrf.mxu0  ;;  %v3409_v46 = vmul.f32 0.01, %v3297_v10  ;;  %vm3361_vm13 = vcmp.gt.f32.partialorder %v3297_v10, 0.0  ;;  %v3308_v51 = vadd.f32 %v11166_v57, %v3211_v11  ;;  %v3463_v33 = vsel %vm3367_vm3, %v3305_v18, %v3415_v45  ;;  %v11774_v45 = vld [vmem:[#allocation9 + $0x110] ss:$12 sps:$4 sm:$0xff]  }
 0x362   : > { %v3299_v23 = vpop.f32.mrf.mxu1  ;;  %4107 = vmatmul.mubr.bf16.gmra.mxu0 %v14132_v32  ;;  %v10764_v27 = vadd.f32 %v10763_v40, %v10762_v6  ;;  %v11766_v6 = vld [vmem:[#allocation9 + $0x158] ss:$12 sps:$4 sm:$0xff]   ;;  %v3452_v40 = vmul.f32 0.01, %v3161_v24 }
 0x363   : > { %v3300_v62 = vadd.f32 %v3299_v23, %v3203_v19  ;;  %v10765_v58 = vpop.f32.mrf.mxu0  ;;  %4116 = vmatprep.mubr.bf16.mxu0 %v14136_v16  ;;  %v3457_v59 = vsel %vm3361_vm13, %v3297_v10, %v3409_v46  ;;  %v3418_v1 = vmul.f32 0.01, %v3308_v51  ;;  %v3498_v10 = vsel %vm3402_vm15, %v3159_v50, %v3450_v15 }
 0x364   : > { %v14141_v9 = vpop.f32.mrf.mxu1  ;;  %vm3370_vm0 = vcmp.gt.f32.partialorder %v3308_v51, 0.0  ;;  %v14155_v26 = vpack.c.bf16 %v3501_v48, %v3498_v10  ;;  %v3219_v25 = vadd.f32 %v10764_v27, %v14101_v14  ;;  %v3216_v23 = vadd.f32 %v10761_v30, %v14101_v14 }
 0x365   : > { %vm3364_vm14 = vcmp.gt.f32.partialorder %v3300_v62, 0.0  ;;  %v3412_v2 = vmul.f32 0.01, %v3300_v62  ;;  %v10766_v7 = vpop.f32.mrf.mxu0  ;;  %v3466_v0 = vsel %vm3370_vm0, %v3308_v51, %v3418_v1  ;;  %v11773_v1 = vld [vmem:[#allocation9 + $0x68] ss:$12 sps:$4 sm:$0xff]  }
 0x366   : > { %v3312_v52 = vpop.f32.mrf.mxu1  ;;  %v10767_v15 = vadd.f32 %v10766_v7, %v10765_v58  ;;  %v3605_v27 = vpack.c.bf16 %v3466_v0, %v3463_v33 }
 0x367   : > { %v3460_v41 = vsel %vm3364_vm14, %v3300_v62, %v3412_v2  ;;  %v10768_v35 = vpop.f32.mrf.mxu0  ;;  %v3500_v62 = vsel %vm3404_vm1, %v3161_v24, %v3452_v40  ;;  %v3313_v2 = vadd.f32 %v3312_v52, %v3216_v23  ;;  %v11772_v24 = vld [vmem:[#allocation9 + $0x128] ss:$12 sps:$4 sm:$0xff]  }
 0x368   : > { %v3602_v44 = vpack.c.bf16 %v3460_v41, %v3457_v59  ;;  %v14149_v57 = vpop.f32.mrf.mxu1  ;;  %v3497_v59 = vsel %vm3401_vm2, %v3157_v13, %v3449_v31  ;;  %v11771_v41 = vld [vmem:[#allocation9 + $0x80] ss:$12 sps:$4 sm:$0xff]   ;;  %v3224_v58 = vadd.f32 %v10767_v15, %v14101_v14 }
 0x369   : > { %v10769_v42 = vpop.f32.mrf.mxu0  ;;  %v14167_v51 = vpack.c.bf16 %v3500_v62, %v3497_v59  ;;  %v3421_v7 = vmul.f32 0.01, %v3313_v2  ;;  %vm3373_vm5 = vcmp.gt.f32.partialorder %v3313_v2, 0.0 }
 0x36a   : > { %v3315_v19 = vpop.f32.mrf.mxu1  ;;  %4170 = vmatmul.mubr.bf16.vlgmr.msra.gmra.mxu1 %v3602_v44  ;;  %4117 = vmatmul.mubr.bf16.gmra.mxu0 %v14151_v37  ;;  %v10770_v47 = vadd.f32 %v10769_v42, %v10768_v35 }
 0x36b   : > { %10812 = vmatpush3.bf16.msra.mxu1 %v11763_v54  ;;  %v10771_v29 = vpop.f32.mrf.mxu0  ;;  %4126 = vmatprep.mubr.bf16.mxu0 %v14155_v26  ;;  %v3316_v46 = vadd.f32 %v3315_v19, %v3219_v25  ;;  %v3321_v25 = vadd.f32 %v14141_v9, %v3224_v58 }
 0x36c   : > { %v14159_v50 = vpop.f32.mrf.mxu1  ;;  %4179 = vmatprep.mubr.bf16.mxu1 %v16060_v21  ;;  %10813 = vmatprep.subr.bf16.mxu1 %v11766_v6  ;;  %v3227_v35 = vadd.f32 %v10770_v47, %v14101_v14 }
 0x36d   : > { %v10772_v11 = vpop.f32.mrf.mxu0  ;;  %v3424_v54 = vmul.f32 0.01, %v3316_v46  ;;  %vm3376_vm4 = vcmp.gt.f32.partialorder %v3316_v46, 0.0  ;;  %v3427_v33 = vmul.f32 0.01, %v3321_v25  ;;  %vm3379_vm7 = vcmp.gt.f32.partialorder %v3321_v25, 0.0 }
 0x36e   : > { %v3328_v34 = vpop.f32.mrf.mxu1  ;;  %v10773_v48 = vadd.f32 %v10772_v11, %v10771_v29  ;;  %v3324_v42 = vadd.f32 %v14149_v57, %v3227_v35  ;;  %v3469_v29 = vsel %vm3373_vm5, %v3313_v2, %v3421_v7 }
 0x36f   : > { %v10774_v36 = vpop.f32.mrf.mxu0  ;;  %10814 = vmatpush3.bf16.msra.mxu1 %v11767_v17  ;;  %v3472_v10 = vsel %vm3376_vm4, %v3316_v46, %v3424_v54  ;;  %v11776_v46 = vld [vmem:[#allocation9 + $0xf8] ss:$12 sps:$4 sm:$0xff]  }
 0x370   : > { %10815 = vmatprep.subr.bf16.mxu1 %v11770_v22  ;;  %v11174_v53 = vpop.f32.mrf.mxu1  ;;  %v3232_v6 = vadd.f32 %v10773_v48, %v14101_v14  ;;  %v3608_v22 = vpack.c.bf16 %v3472_v10, %v3469_v29  ;;  %v3430_v23 = vmul.f32 0.01, %v3324_v42  ;;  %vm3382_vm6 = vcmp.gt.f32.partialorder %v3324_v42, 0.0  ;;  %v11778_v48 = vld [vmem:[#allocation9 + $0xe0] ss:$12 sps:$4 sm:$0xff]  }
 0x371   : > { %v10775_v30 = vpop.f32.mrf.mxu0 }
 0x372   : > { %v10776_v18 = vadd.f32 %v10775_v30, %v10774_v36  ;;  %4180 = vmatmul.mubr.bf16.gmra.mxu1 %v3605_v27  ;;  %4127 = vmatmul.mubr.bf16.gmra.mxu0 %v14167_v51  ;;  %v3331_v40 = vpop.f32.mrf.mxu1  ;;  %v3329_v47 = vadd.f32 %v3328_v34, %v3232_v6  ;;  %v11777_v36 = vld [vmem:[#allocation9 + $0x38] ss:$12 sps:$4 sm:$0xff]   ;;  %v3478_v54 = vsel %vm3382_vm6, %v3324_v42, %v3430_v23 }
 0x373   : > { %v10777_v52 = vpop.f32.mrf.mxu0  ;;  %4189 = vmatprep.mubr.bf16.mxu1 %v16060_v21  ;;  %11195 = vmatprep.mubr.bf16.mxu0 %v3602_v44  ;;  %v11775_v44 = vld [vmem:[#allocation9 + $0x50] ss:$12 sps:$4 sm:$0xff]  }
 0x374   : > { %v3235_v13 = vadd.f32 %v10776_v18, %v14101_v14  ;;  %10816 = vmatpush3.bf16.msra.mxu1 %v11771_v41  ;;  %v14177_v11 = vpop.f32.mrf.mxu1  ;;  %v3433_v59 = vmul.f32 0.01, %v3329_v47  ;;  %vm3385_vm9 = vcmp.gt.f32.partialorder %v3329_v47, 0.0  ;;  %v3475_v18 = vsel %vm3379_vm7, %v3321_v25, %v3427_v33 }
 0x375   : > { %v10778_v19 = vpop.f32.mrf.mxu0  ;;  %10817 = vmatprep.subr.bf16.mxu1 %v11772_v24 }
 0x376   : > { %v3332_v17 = vadd.f32 %v3331_v40, %v3235_v13  ;;  %v10779_v0 = vadd.f32 %v10778_v19, %v10777_v52  ;;  %v3344_v41 = vpop.f32.mrf.mxu1  ;;  %v3611_v13 = vpack.c.bf16 %v3478_v54, %v3475_v18  ;;  %v3481_v42 = vsel %vm3385_vm9, %v3329_v47, %v3433_v59  ;;  %v11780_v40 = vld [vmem:[#allocation9 + $0xc8] ss:$12 sps:$4 sm:$0xff]  }
 0x377   : > { %v10780_v31 = vpop.f32.mrf.mxu0 }
 0x378   : > { %10818 = vmatpush3.bf16.msra.mxu1 %v11773_v1  ;;  %v3436_v15 = vmul.f32 0.01, %v3332_v17  ;;  %vm3388_vm8 = vcmp.gt.f32.partialorder %v3332_v17, 0.0  ;;  %v3240_v2 = vadd.f32 %v10779_v0, %v14101_v14  ;;  %v11779_v1 = vld [vmem:[#allocation9 + $0x20] ss:$12 sps:$4 sm:$0xff]   ;;  %v11178_v10 = vpop.f32.mrf.mxu1 }
 0x379   : > { %v10781_v57 = vpop.f32.mrf.mxu0  ;;  %10819 = vmatprep.subr.bf16.mxu1 %v11774_v45 }
 0x37a   : > { %v10782_v62 = vadd.f32 %v10781_v57, %v10780_v31  ;;  %4190 = vmatmul.mubr.bf16.gmra.mxu1 %v3608_v22  ;;  %11196 = vmatmul.mubr.bf16.vlgmr.msra.gmra.mxu0 %v3605_v27  ;;  %v3484_v58 = vsel %vm3388_vm8, %v3332_v17, %v3436_v15  ;;  %v3337_v7 = vadd.f32 %v14159_v50, %v3240_v2  ;;  %v11781_v31 = vld [vmem:[#allocation9 + $0x8] ss:$12 sps:$4 sm:$0xff]  }
 0x37b   : > { %v10783_v9 = vpop.f32.mrf.mxu0  ;;  %4199 = vmatprep.mubr.bf16.mxu1 %v16060_v21  ;;  %11199 = vmatprep.mubr.bf16.mxu0 %v3608_v22  ;;  %v3614_v29 = vpack.c.bf16 %v3484_v58, %v3481_v42  ;;  %v3347_v22 = vpop.f32.mrf.mxu1  ;;  %v11797_v42 = vld [vmem:[#allocation10 + $0x30] ss:$12 sps:$4 sm:$0xff]  }
 0x37c   : > { %v3243_v34 = vadd.f32 %v10782_v62, %v14101_v14  ;;  %10820 = vmatpush3.bf16.msra.mxu1 %v11775_v44  ;;  %v3439_v50 = vmul.f32 0.01, %v3337_v7  ;;  %vm3391_vm11 = vcmp.gt.f32.partialorder %v3337_v7, 0.0  ;;  %v11784_v44 = vld [vmem:[#allocation10 + $0xac] ss:$12 sps:$4 sm:$0xff]  }
 0x37d   : > { %v10784_v35 = vpop.f32.mrf.mxu0  ;;  %10821 = vmatprep.subr.bf16.mxu1 %v11776_v46 }
 0x37e   : > { %v3340_v27 = vadd.f32 %v11174_v53, %v3243_v34  ;;  %v10785_v30 = vadd.f32 %v10784_v35, %v10783_v9  ;;  %v3487_v15 = vsel %vm3391_vm11, %v3337_v7, %v3439_v50  ;;  %v11787_v7 = vld [vmem:[#allocation10 + $0x94] ss:$12 sps:$4 sm:$0xff]   ;;  %v11820_v50 = vld [vmem:[#allocation10 + $0x10c] ss:$12 sps:$4 sm:$0xff]  }
 0x37f   : > { %v10786_v24 = vpop.f32.mrf.mxu0 }
 0x380   : > { %v3248_v52 = vadd.f32 %v10785_v30, %v14101_v14  ;;  %10822 = vmatpush3.bf16.msra.mxu1 %v11777_v36  ;;  %v3442_v19 = vmul.f32 0.01, %v3340_v27  ;;  %vm3394_vm10 = vcmp.gt.f32.partialorder %v3340_v27, 0.0 }
 0x381   : > { %v10787_v6 = vpop.f32.mrf.mxu0  ;;  %10823 = vmatprep.subr.bf16.mxu1 %v11778_v48 }
 0x382   : > { %v3345_v53 = vadd.f32 %v3344_v41, %v3248_v52  ;;  %v10788_v45 = vadd.f32 %v10787_v6, %v10786_v24  ;;  %4200 = vmatmul.mubr.bf16.gmra.mxu1 %v3611_v13  ;;  %11200 = vmatmul.mubr.bf16.gmra.mxu0 %v3611_v13  ;;  %v3490_v46 = vsel %vm3394_vm10, %v3340_v27, %v3442_v19  ;;  %v11785_v52 = vld [vmem:[#allocation10 + $0x90] ss:$12 sps:$4 sm:$0xff]   ;;  %v11796_v6 = vld [vmem:[#allocation10 + $0x4c] ss:$12 sps:$4 sm:$0xff]  }
 0x383   : > { %v10789_v25 = vpop.f32.mrf.mxu0  ;;  %4209 = vmatprep.mubr.bf16.mxu1 %v16060_v21  ;;  %11203 = vmatprep.mubr.bf16.mxu0 %v3614_v29  ;;  %v3617_v34 = vpack.c.bf16 %v3490_v46, %v3487_v15  ;;  %v11790_v13 = vld [vmem:[#allocation10 + $0x7c] ss:$12 sps:$4 sm:$0xff]   ;;  %v11803_v19 = vld [vmem:[#allocation10] ss:$12 sps:$4 sm:$0xff]  }
 0x384   : > { %v3251_v17 = vadd.f32 %v10788_v45, %v14101_v14  ;;  %10824 = vmatpush3.bf16.msra.mxu1 %v11779_v1  ;;  %v3445_v23 = vmul.f32 0.01, %v3345_v53  ;;  %vm3397_vm12 = vcmp.gt.f32.partialorder %v3345_v53, 0.0  ;;  %v11788_v1 = vld [vmem:[#allocation10 + $0x78] ss:$12 sps:$4 sm:$0xff]  }
 0x385   : > { %v10790_v0 = vpop.f32.mrf.mxu0  ;;  %10825 = vmatprep.subr.bf16.mxu1 %v11780_v40  ;;  %v11802_v40 = vld [vmem:[#allocation10 + $0x1c] ss:$12 sps:$4 sm:$0xff]   ;;  %v11840_v46 = vld [vmem:[#allocation10 + $0x1e0] ss:$12 sps:$4 sm:$0xff]  }
 0x386   : > { %v3348_v47 = vadd.f32 %v3347_v22, %v3251_v17  ;;  %v10791_v57 = vadd.f32 %v10790_v0, %v10789_v25  ;;  %v3493_v41 = vsel %vm3397_vm12, %v3345_v53, %v3445_v23  ;;  %v11808_v53 = vld [vmem:[#allocation10 + $0x16c] ss:$12 sps:$4 sm:$0xff]   ;;  %v11809_v45 = vld [vmem:[#allocation10 + $0x150] ss:$12 sps:$4 sm:$0xff]   ;;  %v11830_v0 = vld [vmem:[#allocation10 + $0x228] ss:$12 sps:$4 sm:$0xff]  }
 0x387   : > { %v10792_v62 = vpop.f32.mrf.mxu0  ;;  %v11815_v25 = vld [vmem:[#allocation10 + $0x120] ss:$12 sps:$4 sm:$0xff]   ;;  %v11821_v17 = vld [vmem:[#allocation10 + $0xf0] ss:$12 sps:$4 sm:$0xff]  }
 0x388   : > { %v3256_v33 = vadd.f32 %v10791_v57, %v14101_v14  ;;  %vm3400_vm13 = vcmp.gt.f32.partialorder %v3348_v47, 0.0  ;;  %v3448_v9 = vmul.f32 0.01, %v3348_v47  ;;  %10826 = vmatpush3.bf16.msra.mxu1 %v11781_v31  ;;  %v11826_v31 = vld [vmem:[#allocation10 + $0xdc] ss:$12 sps:$4 sm:$0xff]  }
 0x389   : > { %v10793_v2 = vpop.f32.mrf.mxu0  ;;  %5287 = vmatprep.subr.bf16.mxu1 %v11784_v44  ;;  %v11827_v22 = vld [vmem:[#allocation10 + $0xc0] ss:$12 sps:$4 sm:$0xff]   ;;  %v11838_v23 = vld [vmem:[#allocation10 + $0x1fc] ss:$12 sps:$4 sm:$0xff]   ;;  %v11836_v57 = vld [vmem:[#allocation10 + $0x1f8] ss:$12 sps:$4 sm:$0xff]  }
 0x38a   : > { %v3353_v36 = vadd.f32 %v14177_v11, %v3256_v33  ;;  %v10794_v59 = vadd.f32 %v10793_v2, %v10792_v62  ;;  %4210 = vmatmul.mubr.bf16.gmra.mxu1 %v3614_v29  ;;  %v3496_v35 = vsel %vm3400_vm13, %v3348_v47, %v3448_v9  ;;  %11204 = vmatmul.mubr.bf16.gmra.mxu0 %v3617_v34  ;;  %v11814_v29 = vld [vmem:[#allocation10 + $0x13c] ss:$12 sps:$4 sm:$0xff]   ;;  %v11832_v44 = vld [vmem:[#allocation10 + $0x22c] ss:$12 sps:$4 sm:$0xff]   ;;  %v11842_v62 = vld [vmem:[#allocation10 + $0x1e4] ss:$12 sps:$4 sm:$0xff]  }
 0x38b   : > { %v3620_v54 = vpack.c.bf16 %v3496_v35, %v3493_v41  ;;  %4219 = vmatprep.mubr.bf16.mxu1 %v16060_v21  ;;  %5400 = vmatprep.subr.bf16.mxu0 %v11832_v44  ;;  %v14213_v47 = vld [vmem:[#allocation10 + $0x230] ss:$12 sps:$4 sm:$0xff]   ;;  %v11844_v2 = vld [vmem:[#allocation10 + $0x1c8] ss:$12 sps:$4 sm:$0xff]  }
 0x38c   : > { %v3259_v48 = vadd.f32 %v10794_v59, %v14101_v14  ;;  %v3451_v27 = vmul.f32 0.01, %v3353_v36  ;;  %vm3403_vm14 = vcmp.gt.f32.partialorder %v3353_v36, 0.0  ;;  %v11782_v14 = vld [vmem:[#allocation10 + $0xa8] ss:$12 sps:$4 sm:$0xff]   ;;  %5401 = vmatpush1.bf16.msra.mxu0 %v11830_v0 }
 0x38d   : > { %11207 = vmatprep.mubr.bf16.mxu0 %v3620_v54  ;;  %v11848_v41 = vld [vmem:[#allocation10 + $0x1b0] ss:$12 sps:$4 sm:$0xff]  }
 0x38e   : > { %v3356_v30 = vadd.f32 %v11178_v10, %v3259_v48  ;;  %v3499_v18 = vsel %vm3403_vm14, %v3353_v36, %v3451_v27  ;;  %v11793_v10 = vld [vmem:[#allocation10 + $0x64] ss:$12 sps:$4 sm:$0xff]   ;;  %v11850_v36 = vld [vmem:[#allocation10 + $0x1b4] ss:$12 sps:$4 sm:$0xff]   ;;  %v11854_v35 = vld [vmem:[#allocation10 + $0x19c] ss:$12 sps:$4 sm:$0xff]  }
 0x38f   : > { %v11852_v27 = vld [vmem:[#allocation10 + $0x198] ss:$12 sps:$4 sm:$0xff]  }
 0x390   : > { %vm3406_vm15 = vcmp.gt.f32.partialorder %v3356_v30, 0.0  ;;  %v3454_v24 = vmul.f32 0.01, %v3356_v30 }
 0x392   : > { %4220 = vmatmul.mubr.bf16.gmra.mxu1 %v3617_v34  ;;  %v3502_v58 = vsel %vm3406_vm15, %v3356_v30, %v3454_v24  ;;  %v11846_v34 = vld [vmem:[#allocation10 + $0x1cc] ss:$12 sps:$4 sm:$0xff]   ;;  %v11858_v30 = vld [vmem:[#allocation10 + $0x184] ss:$12 sps:$4 sm:$0xff]  }
 0x393   : > { %v3623_v11 = vpack.c.bf16 %v3502_v58, %v3499_v18  ;;  %4229 = vmatprep.mubr.bf16.mxu1 %v16060_v21  ;;  %v11856_v58 = vld [vmem:[#allocation10 + $0x180] ss:$12 sps:$4 sm:$0xff]  }
 0x395   : > { %11208 = vmatmul.mubr.bf16.gmra.mxu0 %v3623_v11 }
 0x396   : > { %5432 = vmatprep.mubr.bf16.mxu0 %v16060_v21 }
 0x39a   : > { %4230 = vmatmul.mubr.bf16.gmra.mxu1 %v3620_v54 }
 0x39b   : > { %4239 = vmatprep.mubr.bf16.mxu1 %v16060_v21 }
 0x3a2   : > { %4240 = vmatmul.mubr.bf16.gmra.mxu1 %v3623_v11  ;;  %v11860_v11 = vld [vmem:[#allocation10 + $0x170] ss:$12 sps:$4 sm:$0xff]  }
 0x3a3   : > { %4282 = vmatprep.mubr.bf16.mxu1 %v13995_v38  ;;  %v11791_v38 = vld [vmem:[#allocation10 + $0x60] ss:$12 sps:$4 sm:$0xff]  }
 0x3aa   : > { %4283 = vmatmul.mubr.bf16.vlgmr.msra.gmra.mxu1 %v13998_v43  ;;  %v11794_v43 = vld [vmem:[#allocation10 + $0x48] ss:$12 sps:$4 sm:$0xff]  }
 0x3ab   : > { %4290 = vmatprep.mubr.bf16.mxu1 %v14016_v39  ;;  %5288 = vmatpush1.bf16.msra.mxu1 %v11782_v14  ;;  %v11799_v39 = vld [vmem:[#allocation10 + $0x34] ss:$12 sps:$4 sm:$0xff]  }
 0x3ac   : > { %5289 = vmatprep.subr.bf16.mxu1 %v11787_v7 }
 0x3af   : > { %5290 = vmatpush1.bf16.msra.mxu1 %v11785_v52 }
 0x3b0   : > { %5291 = vmatprep.subr.bf16.mxu1 %v11790_v13 }
 0x3b2   : > { %4291 = vmatmul.mubr.bf16.gmra.mxu1 %v14020_v4  ;;  %v11800_v4 = vld [vmem:[#allocation10 + $0x18] ss:$12 sps:$4 sm:$0xff]  }
 0x3b3   : > { %4298 = vmatprep.mubr.bf16.mxu1 %v14040_v49  ;;  %5292 = vmatpush1.bf16.msra.mxu1 %v11788_v1  ;;  %v11805_v49 = vld [vmem:[#allocation10 + $0x4] ss:$12 sps:$4 sm:$0xff]  }
 0x3b4   : > { %5293 = vmatprep.subr.bf16.mxu1 %v11793_v10 }
 0x3b7   : > { %5294 = vmatpush1.bf16.msra.mxu1 %v11791_v38 }
 0x3b8   : > { %5295 = vmatprep.subr.bf16.mxu1 %v11796_v6  ;;  %v14217_v6 = vld [vmem:[%s16071_s7] sm:$0x7]  ;;  %s16197_s7 = sld [smem:[#allocation48_spill]] }
 0x3ba   : > { %4299 = vmatmul.mubr.bf16.gmra.mxu1 %v14045_v63  ;;  %v11806_v63 = vld [vmem:[#allocation10 + $0x168] ss:$12 sps:$4 sm:$0xff]  }
 0x3bb   : > { %4306 = vmatprep.mubr.bf16.mxu1 %v14069_v56  ;;  %5296 = vmatpush1.bf16.msra.mxu1 %v11794_v43  ;;  %v11811_v56 = vld [vmem:[#allocation10 + $0x154] ss:$12 sps:$4 sm:$0xff]  }
 0x3bc   : > { %5297 = vmatprep.subr.bf16.mxu1 %v11799_v39  ;;  %v14221_v39 = vrot.slane %v14217_v6, %v16070_v28 }
 0x3bf   : > { %5298 = vmatpush1.bf16.msra.mxu1 %v11797_v42 }
 0x3c0   : > { %5299 = vmatprep.subr.bf16.mxu1 %v11802_v40  ;;  %v14225_v40 = vrot.slane %v14217_v6, %v16069_v3 }
 0x3c2   : > { %4307 = vmatmul.mubr.bf16.gmra.mxu1 %v14073_v12  ;;  %v11812_v12 = vld [vmem:[#allocation10 + $0x138] ss:$12 sps:$4 sm:$0xff]  }
 0x3c3   : > { %4314 = vmatprep.mubr.bf16.mxu1 %v14077_v55  ;;  %5300 = vmatpush1.bf16.msra.mxu1 %v11800_v4  ;;  %v11817_v55 = vld [vmem:[#allocation10 + $0x124] ss:$12 sps:$4 sm:$0xff]  }
 0x3c4   : > { %5301 = vmatprep.subr.bf16.mxu1 %v11805_v49  ;;  %v14229_v49 = vld [vmem:[%s16072_s10] sm:$0x7]  ;;  %s16198_s10 = sadd.s32 4294967295, %s12652_s28  }
 0x3c7   : > { %5302 = vmatpush1.bf16.msra.mxu1 %v11803_v19 }
 0x3c8   : > { %5303 = vmatprep.subr.bf16.mxu1 %v11808_v53 }
 0x3ca   : > { %4315 = vmatmul.mubr.bf16.gmra.mxu1 %v14103_v5  ;;  %v11818_v5 = vld [vmem:[#allocation10 + $0x108] ss:$12 sps:$4 sm:$0xff]  }
 0x3cb   : > { %4322 = vmatprep.mubr.bf16.mxu1 %v14107_v61  ;;  %5304 = vmatpush2.bf16.msra.mxu1 %v11806_v63  ;;  %v11823_v61 = vld [vmem:[#allocation10 + $0xf4] ss:$12 sps:$4 sm:$0xff]  }
 0x3cc   : > { %5305 = vmatprep.subr.bf16.mxu1 %v11811_v56 }
 0x3cf   : > { %5306 = vmatpush2.bf16.msra.mxu1 %v11809_v45  ;;  %v14233_v45 = vld [vmem:[%s16073_s1] sm:$0x7]  ;;  %s10094_s1 = sshll.u32 %s16198_s10, 4 }
 0x3d0   : > { %5307 = vmatprep.subr.bf16.mxu1 %v11814_v29  ;;  %v14237_v29 = vrot.slane %v14229_v49, %v16070_v28  ;;  %v14257_v44 = vrot.slane %v14233_v45, %v16069_v3  ;;  %p1149_p5 = scmp.lt.s32.totalorder %s10094_s1, 31 }
 0x3d2   : > { %4323 = vmatmul.mubr.bf16.gmra.mxu1 %v14132_v32  ;;  %v11824_v32 = vld [vmem:[#allocation10 + $0xd8] ss:$12 sps:$4 sm:$0xff]   ;;  %s16204_s1 = smov (!%p1149_p5, %s10094_s1), 31 }
 0x3d3   : > { %4330 = vmatprep.mubr.bf16.mxu1 %v14136_v16  ;;  %5308 = vmatpush2.bf16.msra.mxu1 %v11812_v12  ;;  %v11829_v16 = vld [vmem:[#allocation10 + $0xc4] ss:$12 sps:$4 sm:$0xff]  }
 0x3d4   : > { %5309 = vmatprep.subr.bf16.mxu1 %v11817_v55 }
 0x3d7   : > { %5310 = vmatpush2.bf16.msra.mxu1 %v11815_v25  ;;  %v16074_v25 = vld [vmem:[#allocation52_spill] sm:$0xff] }
 0x3d8   : > { %5311 = vmatprep.subr.bf16.mxu1 %v11820_v50 }
 0x3da   : > { %4331 = vmatmul.mubr.bf16.gmra.mxu1 %v14151_v37  ;;  %v11833_v37 = vld [vmem:[#allocation10 + $0x210] ss:$12 sps:$4 sm:$0xff]  }
 0x3db   : > { %4338 = vmatprep.mubr.bf16.mxu1 %v14155_v26  ;;  %5312 = vmatpush2.bf16.msra.mxu1 %v11818_v5  ;;  %v11835_v26 = vld [vmem:[#allocation10 + $0x214] ss:$12 sps:$4 sm:$0xff]  }
 0x3dc   : > { %5313 = vmatprep.subr.bf16.mxu1 %v11823_v61  ;;  %5402 = vmatprep.subr.bf16.mxu0 %v11835_v26 }
 0x3dd   : > { %5403 = vmatpush1.bf16.msra.mxu0 %v11833_v37 }
 0x3de   : > { %5404 = vmatprep.subr.bf16.mxu0 %v11838_v23 }
 0x3df   : > { %5314 = vmatpush2.bf16.msra.mxu1 %v11821_v17  ;;  %v14245_v17 = vrot.slane %v14233_v45, %v16070_v28 }
 0x3e0   : > { %5315 = vmatprep.subr.bf16.mxu1 %v11826_v31  ;;  %v14249_v31 = vrot.slane %v14229_v49, %v16069_v3 }
 0x3e1   : > { %5405 = vmatpush1.bf16.msra.mxu0 %v11836_v57 }
 0x3e2   : > { %4339 = vmatmul.mubr.bf16.gmra.mxu1 %v14167_v51  ;;  %5406 = vmatprep.subr.bf16.mxu0 %v11842_v62 }
 0x3e3   : > { %5316 = vmatpush2.bf16.msra.mxu1 %v11824_v32 }
 0x3e4   : > { %5317 = vmatprep.subr.bf16.mxu1 %v11829_v16 }
 0x3e5   : > { %5407 = vmatpush1.bf16.msra.mxu0 %v11840_v46 }
 0x3e6   : > { %5408 = vmatprep.subr.bf16.mxu0 %v11846_v34 }
 0x3e7   : > { %5318 = vmatpush2.bf16.msra.mxu1 %v11827_v22  ;;  %v16075_v22 = vld [vmem:[#allocation53_spill] sm:$0xff] }
 0x3e8   : > { %11211 = vmatprep.subr.bf16.mxu1 %v14213_v47 }
 0x3e9   : > { %5409 = vmatpush1.bf16.msra.mxu0 %v11844_v2 }
 0x3ea   : > { %5410 = vmatprep.subr.bf16.mxu0 %v11850_v36 }
 0x3ed   : > { %5411 = vmatpush1.bf16.msra.mxu0 %v11848_v41 }
 0x3ee   : > { %5412 = vmatprep.subr.bf16.mxu0 %v11854_v35 }
 0x3f1   : > { %5413 = vmatpush1.bf16.msra.mxu0 %v11852_v27 }
 0x3f2   : > { %5414 = vmatprep.subr.bf16.mxu0 %v11858_v30 }
 0x3f5   : > { %5415 = vmatpush1.bf16.msra.mxu0 %v11856_v58 }
 0x3f6   : > { %10891 = vmatprep.subr.bf16.mxu0 %v11860_v11  ;;  %v16077_v11 = vld [vmem:[#allocation55_spill] sm:$0xff] }
 0x3fa   : > { %v4058_v51 = vpop.f32.mrf.mxu0 }
 0x3fb   : > { %v4059_v4 = vadd.f32 %v4058_v51, %v14221_v39 }
 0x3fc   : > { %v4060_v33 = vpop.f32.mrf.mxu0 }
 0x3fd   : > { %v4061_v63 = vadd.f32 %v4060_v33, %v14225_v40 }
 0x3fe   : > { %v4062_v15 = vpop.f32.mrf.mxu0 }
 0x3ff   : > { %v4063_v55 = vadd.f32 %v4062_v15, %v14221_v39  ;;  %v16076_v15 = vld [vmem:[#allocation54_spill] sm:$0xff] }
 0x400   : > { %v4064_v9 = vpop.f32.mrf.mxu0 }
 0x401   : > { %v4065_v16 = vadd.f32 %v4064_v9, %v14225_v40 }
 0x402   : > { %v4068_v59 = vpop.f32.mrf.mxu0 }
 0x403   : > { %v4069_v26 = vadd.f32 %v4068_v59, %v14221_v39 }
 0x404   : > { %v4070_v54 = vpop.f32.mrf.mxu0 }
 0x405   : > { %v4071_v23 = vadd.f32 %v4070_v54, %v14225_v40 }
 0x406   : > { %v4072_v48 = vpop.f32.mrf.mxu0 }
 0x407   : > { %v4073_v57 = vadd.f32 %v4072_v48, %v14221_v39 }
 0x408   : > { %v4074_v24 = vpop.f32.mrf.mxu0 }
 0x409   : > { %v4075_v62 = vadd.f32 %v4074_v24, %v14225_v40 }
 0x40a   : > { %v4078_v18 = vpop.f32.mrf.mxu0 }
 0x40b   : > { %v4079_v33 = vadd.f32 %v4078_v18, %v14221_v39 }
 0x40c   : > { %v4080_v14 = vpop.f32.mrf.mxu0 }
 0x40d   : > { %v4081_v34 = vadd.f32 %v4080_v14, %v14225_v40 }
 0x40e   : > { %v4082_v7 = vpop.f32.mrf.mxu0 }
 0x40f   : > { %v14271_v36 = vadd.f32 %v4082_v7, %v14221_v39 }
 0x410   : > { %v4084_v52 = vpop.f32.mrf.mxu0 }
 0x411   : > { %v14274_v59 = vadd.f32 %v4084_v52, %v14225_v40 }
 0x412   : > { %v4088_v13 = vpop.f32.mrf.mxu0 }
 0x413   : > { %v14279_v48 = vadd.f32 %v4088_v13, %v14221_v39 }
 0x414   : > { %v4090_v1 = vpop.f32.mrf.mxu0 }
 0x415   : > { %v14282_v27 = vadd.f32 %v4090_v1, %v14225_v40 }
 0x416   : > { %v4092_v10 = vpop.f32.mrf.mxu0 }
 0x417   : > { %v14285_v30 = vadd.f32 %v4092_v10, %v14221_v39 }
 0x418   : > { %v4094_v38 = vpop.f32.mrf.mxu0 }
 0x419   : > { %v14290_v18 = vadd.f32 %v4094_v38, %v14225_v40 }
 0x41a   : > { %v4098_v43 = vpop.f32.mrf.mxu0 }
 0x41b   : > { %v14297_v13 = vadd.f32 %v4098_v43, %v14221_v39 }
 0x41c   : > { %v4100_v42 = vpop.f32.mrf.mxu0 }
 0x41d   : > { %v14300_v1 = vadd.f32 %v4100_v42, %v14225_v40 }
 0x41e   : > { %v4102_v19 = vpop.f32.mrf.mxu0 }
 0x420   : > { %v4104_v61 = vpop.f32.mrf.mxu0 }
 0x422   : > { %v4108_v41 = vpop.f32.mrf.mxu0 }
 0x423   : > { %v14316_v42 = vadd.f32 %v4108_v41, %v14221_v39 }
 0x424   : > { %v4110_v38 = vpop.f32.mrf.mxu0 }
 0x42a   : > { %v4171_v53 = vpop.f32.mrf.mxu1 }
 0x42b   : > { %v4172_v56 = vadd.f32 %v4171_v53, %v4059_v4  ;;  %v14304_v53 = vadd.f32 %v4102_v19, %v14221_v39 }
 0x42c   : > { %v4173_v12 = vpop.f32.mrf.mxu1 }
 0x42d   : > { %v14241_v50 = vadd.f32 %v4172_v56, %v16074_v25  ;;  %v4174_v5 = vadd.f32 %v4173_v12, %v4061_v63  ;;  %v16078_v12 = vld [vmem:[#allocation56_spill] sm:$0xff]  ;;  %v14313_v25 = vadd.f32 %v4104_v61, %v14225_v40 }
 0x42e   : > { %v4175_v32 = vpop.f32.mrf.mxu1 }
 0x42f   : > { %v14253_v0 = vadd.f32 %v4174_v5, %v16075_v22  ;;  %v4176_v37 = vadd.f32 %v4175_v32, %v4063_v55  ;;  %v4510_v51 = vmul.f32 %v14237_v29, %v14241_v50  ;;  %v16079_v5 = vld [vmem:[#allocation57_spill] sm:$0xff] }
 0x430   : > { %v4177_v46 = vpop.f32.mrf.mxu1 }
 0x431   : > { %v14267_v9 = vadd.f32 %v4176_v37, %v16076_v15  ;;  %v4178_v2 = vadd.f32 %v4177_v46, %v4065_v16  ;;  %v4511_v35 = vmul.f32 %v14249_v31, %v14253_v0  ;;  %v4574_v58 = vadd.f32 %v14245_v17, %v4510_v51  ;;  %v4112_v15 = vpop.f32.mrf.mxu0 }
 0x432   : > { %v4181_v54 = vpop.f32.mrf.mxu1 }
 0x433   : > { %v4513_v24 = vmul.f32 %v14237_v29, %v14267_v9  ;;  %v14294_v14 = vadd.f32 %v4178_v2, %v16077_v11  ;;  %v4182_v7 = vadd.f32 %v4181_v54, %v4069_v26  ;;  %v4575_v63 = vadd.f32 %v14257_v44, %v4511_v35 }
 0x434   : > { %v4183_v52 = vpop.f32.mrf.mxu1  ;;  %vm4622_vm0 = vcmp.gt.f32.partialorder %v4574_v58, 0.0  ;;  %v4670_v2 = vmul.f32 0.01, %v4574_v58 }
 0x435   : > { %v4577_v10 = vadd.f32 %v14245_v17, %v4513_v24  ;;  %v4184_v4 = vadd.f32 %v4183_v52, %v4071_v23  ;;  %v4514_v56 = vmul.f32 %v14249_v31, %v14294_v14  ;;  %v14310_v55 = vadd.f32 %v4182_v7, %v16078_v12  ;;  %v16080_v23 = vld [vmem:[#allocation58_spill] sm:$0xff]  ;;  %v16081_v24 = vld [vmem:[#allocation59_spill] sm:$0xff] }
 0x436   : > { %v4185_v43 = vpop.f32.mrf.mxu1  ;;  %vm4623_vm2 = vcmp.gt.f32.partialorder %v4575_v63, 0.0  ;;  %v4671_v35 = vmul.f32 0.01, %v4575_v63  ;;  %v14338_v52 = vadd.f32 %v4110_v38, %v14225_v40 }
 0x437   : > { %v14319_v32 = vadd.f32 %v4184_v4, %v16079_v5  ;;  %v4186_v19 = vadd.f32 %v4185_v43, %v4073_v57  ;;  %v4673_v16 = vmul.f32 0.01, %v4577_v10  ;;  %v4578_v22 = vadd.f32 %v14257_v44, %v4514_v56 }
 0x438   : > { %v4516_v37 = vmul.f32 %v14237_v29, %v14310_v55  ;;  %v4187_v26 = vpop.f32.mrf.mxu1  ;;  %vm4625_vm1 = vcmp.gt.f32.partialorder %v4577_v10, 0.0  ;;  %v14342_v43 = vadd.f32 %v4112_v15, %v14221_v39 }
 0x439   : > { %v4517_v61 = vmul.f32 %v14249_v31, %v14319_v32  ;;  %v14327_v51 = vadd.f32 %v4186_v19, %v16080_v23  ;;  %v4188_v46 = vadd.f32 %v4187_v26, %v4075_v62  ;;  %vm4626_vm3 = vcmp.gt.f32.partialorder %v4578_v22, 0.0  ;;  %v16082_v26 = vld [vmem:[#allocation61_spill] sm:$0xff] }
 0x43a   : > { %v14330_v57 = vadd.f32 %v14245_v17, %v4516_v37  ;;  %v4191_v41 = vpop.f32.mrf.mxu1  ;;  %v4721_v62 = vsel %vm4625_vm1, %v4577_v10, %v4673_v16  ;;  %v4674_v12 = vmul.f32 0.01, %v4578_v22  ;;  %v4719_v10 = vsel %vm4623_vm2, %v4575_v63, %v4671_v35  ;;  %v11843_v35 = vld [vmem:[#allocation10 + $0x218] ss:$12 sps:$4 sm:$0xff]  }
 0x43b   : > { %v4519_v54 = vmul.f32 %v14237_v29, %v14327_v51  ;;  %v14335_v11 = vadd.f32 %v4188_v46, %v16081_v24  ;;  %v4192_v7 = vadd.f32 %v4191_v41, %v4079_v33  ;;  %v4581_v4 = vadd.f32 %v14257_v44, %v4517_v61  ;;  %v4114_v61 = vpop.f32.mrf.mxu0 }
 0x43c   : > { %v4193_v56 = vpop.f32.mrf.mxu1  ;;  %v4718_v33 = vsel %vm4622_vm0, %v4574_v58, %v4670_v2  ;;  %v4722_v16 = vsel %vm4626_vm3, %v4578_v22, %v4674_v12  ;;  %v4676_v15 = vmul.f32 0.01, %v14330_v57  ;;  %v16084_v12 = vld [vmem:[#allocation63_spill] sm:$0xff]  ;;  %vm4628_vm7 = vcmp.gt.f32.partialorder %v14330_v57, 0.0 }
 0x43d   : > { %v4583_v5 = vadd.f32 %v14245_v17, %v4519_v54  ;;  %v4520_v19 = vmul.f32 %v14249_v31, %v14335_v11  ;;  %v4194_v37 = vadd.f32 %v4193_v56, %v4081_v34  ;;  %v14349_v23 = vadd.f32 %v4192_v7, %v16082_v26  ;;  %v16083_v54 = vld [vmem:[#allocation62_spill] sm:$0xff] }
 0x43e   : > { %v4195_v38 = vpop.f32.mrf.mxu1  ;;  %v14352_v46 = vpack.c.bf16 %v4721_v62, %v4718_v33  ;;  %v14360_v58 = vpack.c.bf16 %v4722_v16, %v4719_v10  ;;  %vm4629_vm4 = vcmp.gt.f32.partialorder %v4581_v4, 0.0  ;;  %v4677_v7 = vmul.f32 0.01, %v4581_v4  ;;  %v4118_v33 = vpop.f32.mrf.mxu0 }
 0x43f   : > { %v4584_v41 = vadd.f32 %v14257_v44, %v4520_v19  ;;  %v14357_v24 = vadd.f32 %v4194_v37, %v16083_v54  ;;  %v4196_v34 = vadd.f32 %v4195_v38, %v14271_v36  ;;  %v4679_v56 = vmul.f32 0.01, %v4583_v5 }
 0x440   : > { %v4197_v2 = vpop.f32.mrf.mxu1  ;;  %v4522_v62 = vmul.f32 %v14237_v29, %v14349_v23  ;;  %5319 = vmatprep.mubr.bf16.mxu1 %v14360_v58  ;;  %vm4631_vm6 = vcmp.gt.f32.partialorder %v4583_v5, 0.0  ;;  %v14379_v10 = vadd.f32 %v4114_v61, %v14225_v40 }
 0x441   : > { %v4523_v63 = vmul.f32 %v14249_v31, %v14357_v24  ;;  %v4198_v22 = vadd.f32 %v4197_v2, %v14274_v59  ;;  %vm4632_vm5 = vcmp.gt.f32.partialorder %v4584_v41, 0.0  ;;  %v14368_v19 = vadd.f32 %v4196_v34, %v16084_v12  ;;  %5320 = vmatmul.mubr.bf16.vlgmr.msra.gmra.mxu1 %v14352_v46 }
 0x442   : > { %v4201_v36 = vpop.f32.mrf.mxu1  ;;  %v4680_v37 = vmul.f32 0.01, %v4584_v41  ;;  %v4725_v34 = vsel %vm4629_vm4, %v4581_v4, %v4677_v7  ;;  %11212 = vmatpush3.bf16.msra.mxu1 %v14213_v47  ;;  %v4727_v61 = vsel %vm4631_vm6, %v4583_v5, %v4679_v56  ;;  %v4586_v12 = vadd.f32 %v14245_v17, %v4522_v62  ;;  %v16087_v4 = vld [vmem:[#allocation64_spill] sm:$0xff] }
 0x443   : > { %16085 = vst [vmem:[#allocation50_spill] sm:$0xff] %v14368_v19  ;;  %v4587_v26 = vadd.f32 %v14257_v44, %v4523_v63  ;;  %v14374_v59 = vadd.f32 %v4198_v22, %v13454_v20  ;;  %v4202_v38 = vadd.f32 %v4201_v36, %v14279_v48  ;;  %v4525_v16 = vmul.f32 %v14237_v29, %v14368_v19  ;;  %v11847_v22 = vld [vmem:[#allocation10 + $0x200] ss:$12 sps:$4 sm:$0xff]  }
 0x444   : > { %v4203_v54 = vpop.f32.mrf.mxu1  ;;  %v4728_v2 = vsel %vm4632_vm5, %v4584_v41, %v4680_v37  ;;  %11213 = vmatprep.subr.bf16.mxu1 %v11843_v35  ;;  %v4724_v47 = vsel %vm4628_vm7, %v14330_v57, %v4676_v15  ;;  %v4120_v37 = vpop.f32.mrf.mxu0  ;;  %v14407_v62 = vadd.f32 %v4118_v33, %v14221_v39  ;;  %v16091_v15 = vld [vmem:[#allocation66_spill] sm:$0xff]  ;;  %vm4634_vm11 = vcmp.gt.f32.partialorder %v4586_v12, 0.0 }
 0x445   : > { %16086 = vst [vmem:[#allocation49_spill] sm:$0xff] %v14374_v59  ;;  %v4526_v20 = vmul.f32 %v14249_v31, %v14374_v59  ;;  %v4204_v48 = vadd.f32 %v4203_v54, %v14282_v27  ;;  %v14389_v63 = vpack.c.bf16 %v4728_v2, %v4725_v34  ;;  %v4589_v36 = vadd.f32 %v14245_v17, %v4525_v16  ;;  %v16089_v54 = vld [vmem:[#allocation65_spill] sm:$0xff] }
 0x446   : > { %v14395_v7 = vadd.f32 %v4202_v38, %v16087_v4  ;;  %v4205_v41 = vpop.f32.mrf.mxu1  ;;  %v4683_v56 = vmul.f32 0.01, %v4587_v26  ;;  %v14409_v16 = vpack.c.bf16 %v4727_v61, %v4724_v47  ;;  %vm4635_vm8 = vcmp.gt.f32.partialorder %v4587_v26, 0.0  ;;  %11214 = vmatpush3.bf16.msra.mxu1 %v11843_v35  ;;  %v4122_v47 = vpop.f32.mrf.mxu0 }
 0x447   : > { %v4590_v27 = vadd.f32 %v14257_v44, %v4526_v20  ;;  %v14402_v34 = vadd.f32 %v4204_v48, %v16089_v54  ;;  %v4206_v5 = vadd.f32 %v4205_v41, %v14285_v30  ;;  %5329 = vmatprep.mubr.bf16.mxu1 %v14389_v63  ;;  %v4685_v38 = vmul.f32 0.01, %v4589_v36  ;;  %11215 = vmatprep.subr.bf16.mxu1 %v11847_v22  ;;  %v11851_v48 = vld [vmem:[#allocation10 + $0x1e8] ss:$12 sps:$4 sm:$0xff]  }
 0x448   : > { %16088 = vst [vmem:[#allocation52_spill] sm:$0xff] %v14395_v7  ;;  %v4207_v2 = vpop.f32.mrf.mxu1  ;;  %vm4637_vm9 = vcmp.gt.f32.partialorder %v4589_v36, 0.0  ;;  %v4682_v4 = vmul.f32 0.01, %v4586_v12  ;;  %v4528_v33 = vmul.f32 %v14237_v29, %v14395_v7  ;;  %v16093_v54 = vld [vmem:[#allocation67_spill] sm:$0xff] }
 0x449   : > { %16090 = vst [vmem:[#allocation53_spill] sm:$0xff] %v14402_v34  ;;  %v4529_v57 = vmul.f32 %v14249_v31, %v14402_v34  ;;  %v14414_v20 = vadd.f32 %v4206_v5, %v16091_v15  ;;  %v4208_v30 = vadd.f32 %v4207_v2, %v14290_v18  ;;  %vm4638_vm10 = vcmp.gt.f32.partialorder %v4590_v27, 0.0  ;;  %5330 = vmatmul.mubr.bf16.gmra.mxu1 %v14409_v16 }
 0x44a   : > { %v4211_v61 = vpop.f32.mrf.mxu1  ;;  %v4686_v41 = vmul.f32 0.01, %v4590_v27  ;;  %v4731_v18 = vsel %vm4635_vm8, %v4587_v26, %v4683_v56  ;;  %v4733_v59 = vsel %vm4637_vm9, %v4589_v36, %v4685_v38  ;;  %11216 = vmatpush3.bf16.msra.mxu1 %v11847_v22  ;;  %v11855_v26 = vld [vmem:[#allocation10 + $0x1d0] ss:$12 sps:$4 sm:$0xff]   ;;  %v14436_v56 = vadd.f32 %v4120_v37, %v14225_v40  ;;  %v4124_v38 = vpop.f32.mrf.mxu0 }
 0x44b   : > { %16092 = vst [vmem:[#allocation54_spill] sm:$0xff] %v14414_v20  ;;  %v4531_v35 = vmul.f32 %v14237_v29, %v14414_v20  ;;  %v14423_v5 = vadd.f32 %v4208_v30, %v16093_v54  ;;  %v4593_v2 = vadd.f32 %v14257_v44, %v4529_v57  ;;  %v4212_v15 = vadd.f32 %v4211_v61, %v14297_v13 }
 0x44c   : > { %v4213_v7 = vpop.f32.mrf.mxu1  ;;  %v4734_v34 = vsel %vm4638_vm10, %v4590_v27, %v4686_v41  ;;  %11217 = vmatprep.subr.bf16.mxu1 %v11851_v48  ;;  %v4592_v13 = vadd.f32 %v14245_v17, %v4528_v33  ;;  %v16095_v27 = vld [vmem:[#allocation68_spill] sm:$0xff]  ;;  %v4730_v36 = vsel %vm4634_vm11, %v4586_v12, %v4682_v4  ;;  %v16097_v41 = vld [vmem:[#allocation69_spill] sm:$0xff] }
 0x44d   : > { %16094 = vst [vmem:[#allocation55_spill] sm:$0xff] %v14423_v5  ;;  %v4595_v19 = vadd.f32 %v14245_v17, %v4531_v35  ;;  %v4532_v20 = vmul.f32 %v14249_v31, %v14423_v5  ;;  %v4214_v30 = vadd.f32 %v4213_v7, %v14300_v1  ;;  %v14433_v54 = vpack.c.bf16 %v4734_v34, %v4731_v18 }
 0x44e   : > { %v14440_v57 = vadd.f32 %v4212_v15, %v16095_v27  ;;  %v4215_v22 = vpop.f32.mrf.mxu1  ;;  %v14449_v37 = vpack.c.bf16 %v4733_v59, %v4730_v36  ;;  %vm4641_vm12 = vcmp.gt.f32.partialorder %v4593_v2, 0.0  ;;  %v4689_v18 = vmul.f32 0.01, %v4593_v2  ;;  %11218 = vmatpush3.bf16.msra.mxu1 %v11851_v48  ;;  %v11859_v59 = vld [vmem:[#allocation10 + $0x1b8] ss:$12 sps:$4 sm:$0xff]   ;;  %v4128_v36 = vpop.f32.mrf.mxu0 }
 0x44f   : > { %v4596_v61 = vadd.f32 %v14257_v44, %v4532_v20  ;;  %v14445_v1 = vadd.f32 %v4214_v30, %v16097_v41  ;;  %v4216_v7 = vadd.f32 %v4215_v22, %v14304_v53  ;;  %5339 = vmatprep.mubr.bf16.mxu1 %v14433_v54  ;;  %v4691_v34 = vmul.f32 0.01, %v4595_v19  ;;  %v16099_v20 = vld [vmem:[#allocation70_spill] sm:$0xff]  ;;  %11219 = vmatprep.subr.bf16.mxu1 %v11855_v26 }
 0x450   : > { %16096 = vst [vmem:[#allocation56_spill] sm:$0xff] %v14440_v57  ;;  %v4534_v33 = vmul.f32 %v14237_v29, %v14440_v57  ;;  %v4217_v35 = vpop.f32.mrf.mxu1  ;;  %v14460_v15 = vadd.f32 %v4122_v47, %v14221_v39  ;;  %v4688_v30 = vmul.f32 0.01, %v4592_v13  ;;  %vm4643_vm14 = vcmp.gt.f32.partialorder %v4595_v19, 0.0 }
 0x451   : > { %16098 = vst [vmem:[#allocation57_spill] sm:$0xff] %v14445_v1  ;;  %v4535_v12 = vmul.f32 %v14249_v31, %v14445_v1  ;;  %v14456_v4 = vadd.f32 %v4216_v7, %v16099_v20  ;;  %v4218_v53 = vadd.f32 %v4217_v35, %v14313_v25  ;;  %vm4644_vm13 = vcmp.gt.f32.partialorder %v4596_v61, 0.0  ;;  %5340 = vmatmul.mubr.bf16.gmra.mxu1 %v14449_v37  ;;  %v16101_v25 = vld [vmem:[#allocation71_spill] sm:$0xff] }
 0x452   : > { %v4221_v27 = vpop.f32.mrf.mxu1  ;;  %v4692_v22 = vmul.f32 0.01, %v4596_v61  ;;  %v14463_v48 = vadd.f32 %v14245_v17, %v4534_v33  ;;  %v4737_v1 = vsel %vm4641_vm12, %v4593_v2, %v4689_v18  ;;  %vm4640_vm15 = vcmp.gt.f32.partialorder %v4592_v13, 0.0  ;;  %11220 = vmatpush3.bf16.msra.mxu1 %v11855_v26 }
 0x453   : > { %16100 = vst [vmem:[#allocation58_spill] sm:$0xff] %v14456_v4  ;;  %v4537_v41 = vmul.f32 %v14237_v29, %v14456_v4  ;;  %v14469_v7 = vadd.f32 %v4218_v53, %v16101_v25  ;;  %v4222_v35 = vadd.f32 %v4221_v27, %v14316_v42  ;;  %v4599_v47 = vadd.f32 %v14257_v44, %v4535_v12  ;;  %v11861_v42 = vld [vmem:[#allocation10 + $0x1a0] ss:$12 sps:$4 sm:$0xff]  }
 0x454   : > { %v4223_v20 = vpop.f32.mrf.mxu1  ;;  %v4740_v57 = vsel %vm4644_vm13, %v4596_v61, %v4692_v22  ;;  %v4739_v53 = vsel %vm4643_vm14, %v4595_v19, %v4691_v34  ;;  %11221 = vmatprep.subr.bf16.mxu1 %v11859_v59  ;;  %v14481_v12 = vadd.f32 %v4124_v38, %v14225_v40  ;;  %v14484_v2 = vadd.f32 %v4128_v36, %v14221_v39  ;;  %v16102_v61 = vld [vmem:[#allocation72_spill] sm:$0xff] }
 0x455   : > { %v4601_v33 = vadd.f32 %v14245_v17, %v4537_v41  ;;  %v4538_v4 = vmul.f32 %v14249_v31, %v14469_v7  ;;  %v4224_v5 = vadd.f32 %v4223_v20, %v14338_v52  ;;  %v14487_v18 = vadd.f32 %v4222_v35, %v16102_v61  ;;  %v16104_v41 = vld [vmem:[#allocation73_spill] sm:$0xff] }
 0x456   : > { %v4225_v26 = vpop.f32.mrf.mxu1  ;;  %v14489_v27 = vpack.c.bf16 %v4740_v57, %v4737_v1  ;;  %v4694_v22 = vmul.f32 0.01, %v14463_v48  ;;  %v4736_v34 = vsel %vm4640_vm15, %v4592_v13, %v4688_v30  ;;  %vm4647_vm0 = vcmp.gt.f32.partialorder %v4599_v47, 0.0  ;;  %11222 = vmatpush3.bf16.msra.mxu1 %v11859_v59  ;;  %v4130_v57 = vpop.f32.mrf.mxu0  ;;  %v11863_v13 = vld [vmem:[#allocation10 + $0x188] ss:$12 sps:$4 sm:$0xff]  }
 0x457   : > { %16103 = vst [vmem:[#allocation59_spill] sm:$0xff] %v14487_v18  ;;  %v4602_v52 = vadd.f32 %v14257_v44, %v4538_v4  ;;  %v14494_v19 = vadd.f32 %v4224_v5, %v16104_v41  ;;  %v4226_v38 = vadd.f32 %v4225_v26, %v14342_v43  ;;  %v14499_v36 = vpack.c.bf16 %v4739_v53, %v4736_v34  ;;  %v16106_v30 = vld [vmem:[#allocation74_spill] sm:$0xff]  ;;  %v16108_v26 = vld [vmem:[#allocation75_spill] sm:$0xff] }
 0x458   : > { %5349 = vmatprep.mubr.bf16.mxu1 %v14489_v27  ;;  %v4227_v25 = vpop.f32.mrf.mxu1  ;;  %v4695_v35 = vmul.f32 0.01, %v4599_v47  ;;  %v4697_v1 = vmul.f32 0.01, %v4601_v33  ;;  %11223 = vmatprep.subr.bf16.mxu1 %v11861_v42  ;;  %v4540_v43 = vmul.f32 %v14237_v29, %v14487_v18  ;;  %vm4649_vm2 = vcmp.gt.f32.partialorder %v4601_v33, 0.0 }
 0x459   : > { %16105 = vst [vmem:[#allocation61_spill] sm:$0xff] %v14494_v19  ;;  %v4541_v4 = vmul.f32 %v14249_v31, %v14494_v19  ;;  %v4228_v5 = vadd.f32 %v4227_v25, %v14379_v10  ;;  %vm4650_vm1 = vcmp.gt.f32.partialorder %v4602_v52, 0.0  ;;  %v14507_v20 = vadd.f32 %v4226_v38, %v16106_v30  ;;  %5350 = vmatmul.mubr.bf16.gmra.mxu1 %v14499_v36  ;;  %v16109_v19 = vld [vmem:[#allocation76_spill] sm:$0xff] }
 0x45a   : > { %v4231_v53 = vpop.f32.mrf.mxu1  ;;  %v4698_v61 = vmul.f32 0.01, %v4602_v52  ;;  %vm4646_vm3 = vcmp.gt.f32.partialorder %v14463_v48, 0.0  ;;  %v4131_v34 = vadd.f32 %v4130_v57, %v14225_v40  ;;  %v4743_v30 = vsel %vm4647_vm0, %v4599_v47, %v4695_v35  ;;  %11224 = vmatpush3.bf16.msra.mxu1 %v11861_v42 }
 0x45b   : > { %16107 = vst [vmem:[#allocation62_spill] sm:$0xff] %v14507_v20  ;;  %v4605_v59 = vadd.f32 %v14257_v44, %v4541_v4  ;;  %v14512_v41 = vadd.f32 %v4228_v5, %v16108_v26  ;;  %v4232_v10 = vadd.f32 %v4231_v53, %v14407_v62  ;;  %v4543_v38 = vmul.f32 %v14237_v29, %v14507_v20  ;;  %v4132_v4 = vpop.f32.mrf.mxu0 }
 0x45c   : > { %v4233_v25 = vpop.f32.mrf.mxu1  ;;  %v4746_v18 = vsel %vm4650_vm1, %v4602_v52, %v4698_v61  ;;  %v4745_v53 = vsel %vm4649_vm2, %v4601_v33, %v4697_v1  ;;  %11225 = vmatprep.subr.bf16.mxu1 %v11863_v13  ;;  %v4604_v57 = vadd.f32 %v14245_v17, %v4540_v43  ;;  %v4742_v42 = vsel %vm4646_vm3, %v14463_v48, %v4694_v22 }
 0x45d   : > { %v4544_v5 = vmul.f32 %v14249_v31, %v14512_v41  ;;  %v4234_v26 = vadd.f32 %v4233_v25, %v14436_v56  ;;  %v14524_v62 = vpack.c.bf16 %v4746_v18, %v4743_v30  ;;  %v4607_v20 = vadd.f32 %v14245_v17, %v4543_v38  ;;  %v16110_v56 = vld [vmem:[#allocation60_spill] sm:$0xff] }
 0x45e   : > { %v14530_v47 = vadd.f32 %v4232_v10, %v16109_v19  ;;  %v4235_v52 = vpop.f32.mrf.mxu1  ;;  %v4701_v1 = vmul.f32 0.01, %v4605_v59  ;;  %v4133_v43 = vadd.f32 %v4132_v4, %v14221_v39  ;;  %v14542_v19 = vpack.c.bf16 %v4745_v53, %v4742_v42  ;;  %11226 = vmatpush3.bf16.msra.mxu1 %v11863_v13  ;;  %v4134_v4 = vpop.f32.mrf.mxu0 }
 0x45f   : > { %v4608_v35 = vadd.f32 %v14257_v44, %v4544_v5  ;;  %v14537_v18 = vadd.f32 %v4234_v26, %v16110_v56  ;;  %v4236_v33 = vadd.f32 %v4235_v52, %v14460_v15  ;;  %5359 = vmatprep.mubr.bf16.mxu1 %v14524_v62  ;;  %v4703_v61 = vmul.f32 0.01, %v4607_v20  ;;  %v16113_v5 = vld [vmem:[#allocation51_spill] sm:$0xff] }
 0x460   : > { %v4237_v10 = vpop.f32.mrf.mxu1  ;;  %vm4653_vm4 = vcmp.gt.f32.partialorder %v4605_v59, 0.0  ;;  %vm4655_vm5 = vcmp.gt.f32.partialorder %v4607_v20, 0.0  ;;  %v4700_v15 = vmul.f32 0.01, %v4604_v57  ;;  %v4546_v25 = vmul.f32 %v14237_v29, %v14530_v47 }
 0x461   : > { %16111 = vst [vmem:[#allocation63_spill] sm:$0xff] %v14537_v18  ;;  %v4547_v48 = vmul.f32 %v14249_v31, %v14537_v18  ;;  %v14547_v22 = vadd.f32 %v4236_v33, %v13669_v8  ;;  %v4238_v38 = vadd.f32 %v4237_v10, %v14481_v12  ;;  %vm4656_vm6 = vcmp.gt.f32.partialorder %v4608_v35, 0.0  ;;  %5360 = vmatmul.mubr.bf16.gmra.mxu1 %v14542_v19 }
 0x462   : > { %v4241_v39 = vpop.f32.mrf.mxu1  ;;  %v4704_v30 = vmul.f32 0.01, %v4608_v35  ;;  %v4749_v8 = vsel %vm4653_vm4, %v4605_v59, %v4701_v1  ;;  %vm4652_vm7 = vcmp.gt.f32.partialorder %v4604_v57, 0.0  ;;  %v4751_v56 = vsel %vm4655_vm5, %v4607_v20, %v4703_v61 }
 0x463   : > { %16112 = vst [vmem:[#allocation64_spill] sm:$0xff] %v14547_v22  ;;  %v4549_v13 = vmul.f32 %v14237_v29, %v14547_v22  ;;  %v14556_v26 = vadd.f32 %v4238_v38, %v16113_v5  ;;  %v4611_v12 = vadd.f32 %v14257_v44, %v4547_v48  ;;  %v4242_v53 = vadd.f32 %v4241_v39, %v14484_v2  ;;  %v16115_v39 = vld [vmem:[#allocation77_spill] sm:$0xff] }
 0x464   : > { %v4243_v52 = vpop.f32.mrf.mxu1  ;;  %v4752_v42 = vsel %vm4656_vm6, %v4608_v35, %v4704_v30  ;;  %v4135_v38 = vadd.f32 %v4134_v4, %v14225_v40  ;;  %v4610_v59 = vadd.f32 %v14245_v17, %v4546_v25  ;;  %v4748_v48 = vsel %vm4652_vm7, %v4604_v57, %v4700_v15  ;;  %v14575_v30 = vpop.f32.mrf.mxu0  ;;  %v16119_v15 = vld [vmem:[#allocation79_spill] sm:$0xff] }
 0x465   : > { %16114 = vst [vmem:[#allocation65_spill] sm:$0xff] %v14556_v26  ;;  %v4613_v33 = vadd.f32 %v14245_v17, %v4549_v13  ;;  %v4550_v10 = vmul.f32 %v14249_v31, %v14556_v26  ;;  %v4244_v22 = vadd.f32 %v4243_v52, %v4131_v34  ;;  %v14564_v18 = vpack.c.bf16 %v4752_v42, %v4749_v8  ;;  %v16117_v13 = vld [vmem:[#allocation78_spill] sm:$0xff] }
 0x466   : > { %v4245_v1 = vpop.f32.mrf.mxu1  ;;  %v14573_v61 = vpack.c.bf16 %v4751_v56, %v4748_v48  ;;  %v14578_v5 = vadd.f32 %v4242_v53, %v16117_v13  ;;  %vm4659_vm8 = vcmp.gt.f32.partialorder %v4611_v12, 0.0  ;;  %v4707_v25 = vmul.f32 0.01, %v4611_v12 }
 0x467   : > { %v4614_v2 = vadd.f32 %v14257_v44, %v4550_v10  ;;  %v14570_v35 = vadd.f32 %v4244_v22, %v16115_v39  ;;  %v4246_v20 = vadd.f32 %v4245_v1, %v4133_v43  ;;  %5369 = vmatprep.mubr.bf16.mxu1 %v14564_v18  ;;  %v4709_v34 = vmul.f32 0.01, %v4613_v33  ;;  %v16121_v10 = vld [vmem:[#allocation80_spill] sm:$0xff] }
 0x468   : > { %16118 = vst [vmem:[#allocation67_spill] sm:$0xff] %v14578_v5  ;;  %v4247_v40 = vpop.f32.mrf.mxu1  ;;  %v14587_v8 = vrot.slane %v14217_v6, %v13597_v60  ;;  %vm4661_vm10 = vcmp.gt.f32.partialorder %v4613_v33, 0.0  ;;  %v4706_v53 = vmul.f32 0.01, %v4610_v59  ;;  %v4552_v48 = vmul.f32 %v14237_v29, %v14578_v5 }
 0x469   : > { %16116 = vst [vmem:[#allocation66_spill] sm:$0xff] %v14570_v35  ;;  %v4553_v57 = vmul.f32 %v14249_v31, %v14570_v35  ;;  %v14583_v22 = vadd.f32 %v4246_v20, %v16119_v15  ;;  %v4248_v43 = vadd.f32 %v4247_v40, %v4135_v38  ;;  %vm4662_vm9 = vcmp.gt.f32.partialorder %v4614_v2, 0.0  ;;  %5370 = vmatmul.mubr.bf16.gmra.mxu1 %v14573_v61  ;;  %v4381_v38 = vpop.f32.mrf.mxu0 }
 0x46a   : > { %v10827_v4 = vpop.f32.mrf.mxu1  ;;  %v4710_v52 = vmul.f32 0.01, %v4614_v2  ;;  %v4755_v6 = vsel %vm4659_vm8, %v4611_v12, %v4707_v25  ;;  %vm4658_vm11 = vcmp.gt.f32.partialorder %v4610_v59, 0.0  ;;  %v4757_v15 = vsel %vm4661_vm10, %v4613_v33, %v4709_v34 }
 0x46b   : > { %16120 = vst [vmem:[#allocation68_spill] sm:$0xff] %v14583_v22  ;;  %v4617_v42 = vadd.f32 %v14257_v44, %v4553_v57  ;;  %v4555_v56 = vmul.f32 %v14237_v29, %v14583_v22  ;;  %v14594_v1 = vadd.f32 %v4248_v43, %v16121_v10  ;;  %v4754_v29 = vsel %vm4658_vm11, %v4610_v59, %v4706_v53 }
 0x46c   : > { %v10828_v39 = vpop.f32.mrf.mxu1  ;;  %v4758_v20 = vsel %vm4662_vm9, %v4614_v2, %v4710_v52  ;;  %v11198_v2 = vpop.f32.mrf.mxu0  ;;  %v4616_v25 = vadd.f32 %v14245_v17, %v4552_v48  ;;  %v14616_v59 = vrot.slane %v14233_v45, %v13597_v60 }
 0x46d   : > { %16122 = vst [vmem:[#allocation69_spill] sm:$0xff] %v14594_v1  ;;  %v4556_v13 = vmul.f32 %v14249_v31, %v14594_v1  ;;  %v10829_v40 = vadd.f32 %v10828_v39, %v10827_v4  ;;  %v14601_v57 = vpack.c.bf16 %v4758_v20, %v4755_v6  ;;  %v4619_v22 = vadd.f32 %v14245_v17, %v4555_v56  ;;  %v16123_v17 = vld [vmem:[#allocation82_spill] sm:$0xff]  ;;  %v11864_v1 = vld [vmem:[#allocation10 + $0x158] ss:$12 sps:$4 sm:$0xff]  }
 0x46e   : > { %v10830_v43 = vpop.f32.mrf.mxu1  ;;  %v4713_v12 = vmul.f32 0.01, %v4617_v42  ;;  %v14610_v31 = vrot.slane %v14229_v49, %v13597_v60  ;;  %v14612_v4 = vpack.c.bf16 %v4757_v15, %v4754_v29  ;;  %vm4665_vm12 = vcmp.gt.f32.partialorder %v4617_v42, 0.0 }
 0x46f   : > { %v4620_v10 = vadd.f32 %v14257_v44, %v4556_v13  ;;  %v4285_v35 = vadd.f32 %v10829_v40, %v14587_v8  ;;  %5379 = vmatprep.mubr.bf16.mxu1 %v14601_v57  ;;  %v4715_v56 = vmul.f32 0.01, %v4619_v22  ;;  %vm4667_vm14 = vcmp.gt.f32.partialorder %v4619_v22, 0.0 }
 0x470   : > { %v10831_v33 = vpop.f32.mrf.mxu1  ;;  %v4761_v39 = vsel %vm4665_vm12, %v4617_v42, %v4713_v12  ;;  %vm4664_vm15 = vcmp.gt.f32.partialorder %v4616_v25, 0.0  ;;  %v16125_v42 = vld [vmem:[#allocation84_spill] sm:$0xff] }
 0x471   : > { %v4382_v34 = vadd.f32 %v4381_v38, %v4285_v35  ;;  %v10832_v52 = vadd.f32 %v10831_v33, %v10830_v43  ;;  %vm4668_vm13 = vcmp.gt.f32.partialorder %v4620_v10, 0.0  ;;  %v4716_v44 = vmul.f32 0.01, %v4620_v10  ;;  %5380 = vmatmul.mubr.bf16.gmra.mxu1 %v14612_v4  ;;  %v4384_v35 = vpop.f32.mrf.mxu0 }
 0x472   : > { %v10833_v53 = vpop.f32.mrf.mxu1  ;;  %v4712_v38 = vmul.f32 0.01, %v4616_v25  ;;  %v4763_v29 = vsel %vm4667_vm14, %v4619_v22, %v4715_v56 }
 0x473   : > { %v14619_v48 = vadd.f32 %v4382_v34, %v16123_v17  ;;  %v4288_v49 = vadd.f32 %v10832_v52, %v14587_v8  ;;  %v4764_v6 = vsel %vm4668_vm13, %v4620_v10, %v4716_v44  ;;  %v14634_v34 = vpop.f32.mrf.mxu0 }
 0x474   : > { %v10834_v20 = vpop.f32.mrf.mxu1  ;;  %v14623_v13 = vpack.c.bf16 %v4764_v6, %v4761_v39  ;;  %v4760_v52 = vsel %vm4664_vm15, %v4616_v25, %v4712_v38 }
 0x475   : > { %16124 = vst [vmem:[#allocation70_spill] sm:$0xff] %v14619_v48  ;;  %v4512_v45 = vmul.f32 %v14610_v31, %v14619_v48  ;;  %v4385_v40 = vadd.f32 %v4384_v35, %v4288_v49  ;;  %v10835_v15 = vadd.f32 %v10834_v20, %v10833_v53  ;;  %v14639_v49 = vpack.c.bf16 %v4763_v29, %v4760_v52  ;;  %v16127_v35 = vld [vmem:[#allocation81_spill] sm:$0xff] }
 0x476   : > { %v10836_v43 = vpop.f32.mrf.mxu1  ;;  %5389 = vmatprep.mubr.bf16.mxu1 %v14623_v13 }
 0x477   : > { %v4576_v33 = vadd.f32 %v14616_v59, %v4512_v45  ;;  %v14631_v10 = vadd.f32 %v4385_v40, %v16125_v42  ;;  %v4293_v12 = vadd.f32 %v10835_v15, %v14587_v8  ;;  %v4397_v45 = vpop.f32.mrf.mxu0 }
 0x478   : > { %v10837_v44 = vpop.f32.mrf.mxu1 }
 0x479   : > { %16126 = vst [vmem:[#allocation71_spill] sm:$0xff] %v14631_v10  ;;  %v4515_v53 = vmul.f32 %v14610_v31, %v14631_v10  ;;  %v4390_v17 = vadd.f32 %v14575_v30, %v4293_v12  ;;  %v10838_v39 = vadd.f32 %v10837_v44, %v10836_v43  ;;  %v4672_v56 = vmul.f32 0.01, %v4576_v33  ;;  %5390 = vmatmul.mubr.bf16.gmra.mxu1 %v14639_v49  ;;  %v16128_v10 = vld [vmem:[#allocation83_spill] sm:$0xff] }
 0x47a   : > { %v10839_v22 = vpop.f32.mrf.mxu1  ;;  %vm4624_vm0 = vcmp.gt.f32.partialorder %v4576_v33, 0.0 }
 0x47b   : > { %v4579_v6 = vadd.f32 %v14616_v59, %v4515_v53  ;;  %v14643_v20 = vadd.f32 %v4390_v17, %v16127_v35  ;;  %v4296_v25 = vadd.f32 %v10838_v39, %v14587_v8  ;;  %v4720_v42 = vsel %vm4624_vm0, %v4576_v33, %v4672_v56  ;;  %v11862_v53 = vld [vmem:[#allocation10 + $0xb0] ss:$12 sps:$4 sm:$0xff]   ;;  %v11202_v17 = vpop.f32.mrf.mxu0  ;;  %v16130_v33 = vld [vmem:[#allocation85_spill] sm:$0xff] }
 0x47c   : > { %v10840_v38 = vpop.f32.mrf.mxu1 }
 0x47d   : > { %vm4627_vm1 = vcmp.gt.f32.partialorder %v4579_v6, 0.0  ;;  %v4675_v40 = vmul.f32 0.01, %v4579_v6  ;;  %v4518_v30 = vmul.f32 %v14610_v31, %v14643_v20  ;;  %v10841_v15 = vadd.f32 %v10840_v38, %v10839_v22 }
 0x47e   : > { %v4393_v43 = vadd.f32 %v11198_v2, %v4296_v25  ;;  %v10842_v29 = vpop.f32.mrf.mxu1  ;;  %v4400_v25 = vpop.f32.mrf.mxu0 }
 0x47f   : > { %v4723_v12 = vsel %vm4627_vm1, %v4579_v6, %v4675_v40  ;;  %v4582_v52 = vadd.f32 %v14616_v59, %v4518_v30  ;;  %v4301_v44 = vadd.f32 %v10841_v15, %v14587_v8  ;;  %v11866_v40 = vld [vmem:[#allocation10 + $0x140] ss:$12 sps:$4 sm:$0xff]  }
 0x480   : > { %v4865_v35 = vpack.c.bf16 %v4723_v12, %v4720_v42  ;;  %v14652_v39 = vadd.f32 %v4393_v43, %v16128_v10  ;;  %v10843_v48 = vpop.f32.mrf.mxu1  ;;  %v11865_v10 = vld [vmem:[#allocation10 + $0x98] ss:$12 sps:$4 sm:$0xff]   ;;  %v16132_v42 = vld [vmem:[#allocation87_spill] sm:$0xff] }
 0x481   : > { %v4398_v5 = vadd.f32 %v4397_v45, %v4301_v44  ;;  %v10844_v26 = vadd.f32 %v10843_v48, %v10842_v29  ;;  %v4678_v48 = vmul.f32 0.01, %v4582_v52  ;;  %vm4630_vm2 = vcmp.gt.f32.partialorder %v4582_v52, 0.0 }
 0x482   : > { %16129 = vst [vmem:[#allocation72_spill] sm:$0xff] %v14652_v39  ;;  %v4521_v2 = vmul.f32 %v14610_v31, %v14652_v39  ;;  %v10845_v22 = vpop.f32.mrf.mxu1  ;;  %5433 = vmatmul.mubr.bf16.vlgmr.msra.gmra.mxu0 %v4865_v35  ;;  %11227 = vmatprep.mubr.bf16.mxu1 %v4865_v35 }
 0x483   : > { %v14657_v56 = vadd.f32 %v4398_v5, %v16130_v33  ;;  %v4304_v6 = vadd.f32 %v10844_v26, %v14587_v8  ;;  %10892 = vmatpush3.bf16.msra.mxu0 %v11862_v53  ;;  %5442 = vmatprep.mubr.bf16.mxu0 %v16060_v21  ;;  %v14669_v53 = vpop.f32.mrf.mxu0  ;;  %v4726_v35 = vsel %vm4630_vm2, %v4582_v52, %v4678_v48  ;;  %v11867_v33 = vld [vmem:[#allocation10 + $0x80] ss:$12 sps:$4 sm:$0xff]  }
 0x484   : > { %v4585_v38 = vadd.f32 %v14616_v59, %v4521_v2  ;;  %v10846_v45 = vpop.f32.mrf.mxu1  ;;  %10893 = vmatprep.subr.bf16.mxu0 %v11864_v1 }
 0x485   : > { %16131 = vst [vmem:[#allocation73_spill] sm:$0xff] %v14657_v56  ;;  %v4524_v30 = vmul.f32 %v14610_v31, %v14657_v56  ;;  %v4401_v15 = vadd.f32 %v4400_v25, %v4304_v6  ;;  %v10847_v43 = vadd.f32 %v10846_v45, %v10845_v22  ;;  %v4413_v52 = vpop.f32.mrf.mxu0 }
 0x486   : > { %v10848_v5 = vpop.f32.mrf.mxu1  ;;  %vm4633_vm3 = vcmp.gt.f32.partialorder %v4585_v38, 0.0  ;;  %v4681_v26 = vmul.f32 0.01, %v4585_v38 }
 0x487   : > { %v4588_v29 = vadd.f32 %v14616_v59, %v4524_v30  ;;  %v14666_v12 = vadd.f32 %v4401_v15, %v16132_v42  ;;  %v4309_v44 = vadd.f32 %v10847_v43, %v14587_v8  ;;  %10894 = vmatpush3.bf16.msra.mxu0 %v11865_v10  ;;  %v11868_v30 = vld [vmem:[#allocation10 + $0x128] ss:$12 sps:$4 sm:$0xff]   ;;  %v16134_v43 = vld [vmem:[#allocation88_spill] sm:$0xff] }
 0x488   : > { %v10849_v1 = vpop.f32.mrf.mxu1  ;;  %v4729_v2 = vsel %vm4633_vm3, %v4585_v38, %v4681_v26  ;;  %10895 = vmatprep.subr.bf16.mxu0 %v11866_v40 }
 0x489   : > { %16133 = vst [vmem:[#allocation74_spill] sm:$0xff] %v14666_v12  ;;  %v4527_v22 = vmul.f32 %v14610_v31, %v14666_v12  ;;  %v4406_v6 = vadd.f32 %v14634_v34, %v4309_v44  ;;  %v10850_v25 = vadd.f32 %v10849_v1, %v10848_v5  ;;  %v4868_v45 = vpack.c.bf16 %v4729_v2, %v4726_v35  ;;  %v11869_v34 = vld [vmem:[#allocation10 + $0x68] ss:$12 sps:$4 sm:$0xff]   ;;  %v11870_v44 = vld [vmem:[#allocation10 + $0x110] ss:$12 sps:$4 sm:$0xff]  }
 0x48a   : > { %v10851_v15 = vpop.f32.mrf.mxu1  ;;  %vm4636_vm4 = vcmp.gt.f32.partialorder %v4588_v29, 0.0  ;;  %v4684_v48 = vmul.f32 0.01, %v4588_v29 }
 0x48b   : > { %v4591_v42 = vadd.f32 %v14616_v59, %v4527_v22  ;;  %v14676_v10 = vadd.f32 %v4406_v6, %v16134_v43  ;;  %v4312_v56 = vadd.f32 %v10850_v25, %v14587_v8  ;;  %5443 = vmatmul.mubr.bf16.gmra.mxu0 %v4868_v45  ;;  %11228 = vmatmul.mubr.bf16.vlgmr.msra.gmra.mxu1 %v4868_v45  ;;  %v16136_v22 = vld [vmem:[#allocation86_spill] sm:$0xff]  ;;  %v11206_v45 = vpop.f32.mrf.mxu0 }
 0x48c   : > { %v10852_v38 = vpop.f32.mrf.mxu1  ;;  %5452 = vmatprep.mubr.bf16.mxu0 %v16060_v21  ;;  %10896 = vmatpush3.bf16.msra.mxu0 %v11867_v33  ;;  %v4732_v43 = vsel %vm4636_vm4, %v4588_v29, %v4684_v48 }
 0x48d   : > { %16135 = vst [vmem:[#allocation75_spill] sm:$0xff] %v14676_v10  ;;  %v4530_v40 = vmul.f32 %v14610_v31, %v14676_v10  ;;  %v4409_v5 = vadd.f32 %v11202_v17, %v4312_v56  ;;  %v10853_v26 = vadd.f32 %v10852_v38, %v10851_v15  ;;  %vm4639_vm5 = vcmp.gt.f32.partialorder %v4591_v42, 0.0  ;;  %10897 = vmatprep.subr.bf16.mxu0 %v11868_v30  ;;  %v11871_v17 = vld [vmem:[#allocation10 + $0x50] ss:$12 sps:$4 sm:$0xff]   ;;  %v4416_v29 = vpop.f32.mrf.mxu0 }
 0x48e   : > { %v10854_v1 = vpop.f32.mrf.mxu1  ;;  %v4687_v35 = vmul.f32 0.01, %v4591_v42 }
 0x48f   : > { %v4594_v2 = vadd.f32 %v14616_v59, %v4530_v40  ;;  %v14684_v6 = vadd.f32 %v4409_v5, %v16136_v22  ;;  %v4317_v25 = vadd.f32 %v10853_v26, %v14587_v8  ;;  %v11872_v40 = vld [vmem:[#allocation10 + $0xf8] ss:$12 sps:$4 sm:$0xff]  }
 0x490   : > { %v10855_v33 = vpop.f32.mrf.mxu1  ;;  %v4735_v12 = vsel %vm4639_vm5, %v4591_v42, %v4687_v35  ;;  %10898 = vmatpush3.bf16.msra.mxu0 %v11869_v34  ;;  %v16137_v22 = vld [vmem:[#allocation89_spill] sm:$0xff] }
 0x491   : > { %v4533_v56 = vmul.f32 %v14610_v31, %v14684_v6  ;;  %v4414_v30 = vadd.f32 %v4413_v52, %v4317_v25  ;;  %v10856_v15 = vadd.f32 %v10855_v33, %v10854_v1  ;;  %v4871_v38 = vpack.c.bf16 %v4735_v12, %v4732_v43  ;;  %10899 = vmatprep.subr.bf16.mxu0 %v11870_v44  ;;  %v11873_v12 = vld [vmem:[#allocation10 + $0x38] ss:$12 sps:$4 sm:$0xff]   ;;  %v11874_v1 = vld [vmem:[#allocation10 + $0xe0] ss:$12 sps:$4 sm:$0xff]  }
 0x492   : > { %v10857_v10 = vpop.f32.mrf.mxu1  ;;  %vm4642_vm6 = vcmp.gt.f32.partialorder %v4594_v2, 0.0  ;;  %v4690_v52 = vmul.f32 0.01, %v4594_v2  ;;  %v16139_v43 = vld [vmem:[#allocation92_spill] sm:$0xff] }
 0x493   : > { %v4597_v5 = vadd.f32 %v14616_v59, %v4533_v56  ;;  %v14692_v26 = vadd.f32 %v4414_v30, %v16137_v22  ;;  %v4320_v39 = vadd.f32 %v10856_v15, %v14587_v8  ;;  %5453 = vmatmul.mubr.bf16.gmra.mxu0 %v4871_v38  ;;  %11231 = vmatprep.mubr.bf16.mxu1 %v4871_v38  ;;  %v14703_v15 = vpop.f32.mrf.mxu0 }
 0x494   : > { %v10858_v42 = vpop.f32.mrf.mxu1  ;;  %5462 = vmatprep.mubr.bf16.mxu0 %v16060_v21  ;;  %10900 = vmatpush3.bf16.msra.mxu0 %v11871_v17  ;;  %v4738_v38 = vsel %vm4642_vm6, %v4594_v2, %v4690_v52 }
 0x495   : > { %16138 = vst [vmem:[#allocation76_spill] sm:$0xff] %v14692_v26  ;;  %v4536_v48 = vmul.f32 %v14610_v31, %v14692_v26  ;;  %v4417_v34 = vadd.f32 %v4416_v29, %v4320_v39  ;;  %v10859_v44 = vadd.f32 %v10858_v42, %v10857_v10  ;;  %vm4645_vm7 = vcmp.gt.f32.partialorder %v4597_v5, 0.0  ;;  %10901 = vmatprep.subr.bf16.mxu0 %v11872_v40  ;;  %v11875_v39 = vld [vmem:[#allocation10 + $0x20] ss:$12 sps:$4 sm:$0xff]  }
 0x496   : > { %v10860_v35 = vpop.f32.mrf.mxu1  ;;  %v4693_v25 = vmul.f32 0.01, %v4597_v5 }
 0x497   : > { %v4600_v33 = vadd.f32 %v14616_v59, %v4536_v48  ;;  %v14700_v56 = vadd.f32 %v4417_v34, %v16139_v43  ;;  %v4325_v30 = vadd.f32 %v10859_v44, %v14587_v8  ;;  %v11876_v48 = vld [vmem:[#allocation10 + $0xc8] ss:$12 sps:$4 sm:$0xff]  }
 0x498   : > { %v10861_v17 = vpop.f32.mrf.mxu1  ;;  %v4741_v22 = vsel %vm4645_vm7, %v4597_v5, %v4693_v25  ;;  %10902 = vmatpush3.bf16.msra.mxu0 %v11873_v12  ;;  %v16141_v43 = vld [vmem:[#allocation91_spill] sm:$0xff]  ;;  %v4429_v5 = vpop.f32.mrf.mxu0 }
 0x499   : > { %16140 = vst [vmem:[#allocation60_spill] sm:$0xff] %v14700_v56  ;;  %v4539_v10 = vmul.f32 %v14610_v31, %v14700_v56  ;;  %v4422_v40 = vadd.f32 %v14669_v53, %v4325_v30  ;;  %v10862_v29 = vadd.f32 %v10861_v17, %v10860_v35  ;;  %v4874_v42 = vpack.c.bf16 %v4741_v22, %v4738_v38  ;;  %v11877_v12 = vld [vmem:[#allocation10 + $0x8] ss:$12 sps:$4 sm:$0xff]   ;;  %v11880_v30 = vld [vmem:[#allocation12 + $0xac] ss:$12 sps:$4 sm:$0xff]  }
 0x49a   : > { %10903 = vmatprep.subr.bf16.mxu0 %v11874_v1  ;;  %v10863_v34 = vpop.f32.mrf.mxu1  ;;  %vm4648_vm8 = vcmp.gt.f32.partialorder %v4600_v33, 0.0  ;;  %v4696_v53 = vmul.f32 0.01, %v4600_v33 }
 0x49b   : > { %v4603_v44 = vadd.f32 %v14616_v59, %v4539_v10  ;;  %v14711_v26 = vadd.f32 %v4422_v40, %v16141_v43  ;;  %v4328_v2 = vadd.f32 %v10862_v29, %v14587_v8  ;;  %5463 = vmatmul.mubr.bf16.gmra.mxu0 %v4874_v42  ;;  %11232 = vmatmul.mubr.bf16.gmra.mxu1 %v4874_v42  ;;  %v16142_v10 = vld [vmem:[#allocation90_spill] sm:$0xff]  ;;  %v11210_v42 = vpop.f32.mrf.mxu0 }
 0x49c   : > { %v10864_v52 = vpop.f32.mrf.mxu1  ;;  %5472 = vmatprep.mubr.bf16.mxu0 %v16060_v21  ;;  %10904 = vmatpush3.bf16.msra.mxu0 %v11875_v39  ;;  %v4744_v43 = vsel %vm4648_vm8, %v4600_v33, %v4696_v53 }
 0x49d   : > { %v4542_v1 = vmul.f32 %v14610_v31, %v14711_v26  ;;  %v4425_v35 = vadd.f32 %v11206_v45, %v4328_v2  ;;  %v10865_v25 = vadd.f32 %v10864_v52, %v10863_v34  ;;  %vm4651_vm9 = vcmp.gt.f32.partialorder %v4603_v44, 0.0  ;;  %10905 = vmatprep.subr.bf16.mxu0 %v11876_v48  ;;  %v4432_v33 = vpop.f32.mrf.mxu0 }
 0x49e   : > { %v10866_v17 = vpop.f32.mrf.mxu1  ;;  %v4699_v38 = vmul.f32 0.01, %v4603_v44 }
 0x49f   : > { %v4606_v22 = vadd.f32 %v14616_v59, %v4542_v1  ;;  %v14719_v40 = vadd.f32 %v4425_v35, %v16142_v10  ;;  %v4333_v29 = vadd.f32 %v10865_v25, %v14587_v8  ;;  %v16144_v35 = vld [vmem:[#allocation93_spill] sm:$0xff] }
 0x4a0   : > { %v10867_v39 = vpop.f32.mrf.mxu1  ;;  %v4747_v56 = vsel %vm4651_vm9, %v4603_v44, %v4699_v38  ;;  %10906 = vmatpush3.bf16.msra.mxu0 %v11877_v12 }
 0x4a1   : > { %16143 = vst [vmem:[#allocation51_spill] sm:$0xff] %v14719_v40  ;;  %v4545_v45 = vmul.f32 %v14610_v31, %v14719_v40  ;;  %v4430_v48 = vadd.f32 %v4429_v5, %v4333_v29  ;;  %v10868_v34 = vadd.f32 %v10867_v39, %v10866_v17  ;;  %v4877_v2 = vpack.c.bf16 %v4747_v56, %v4744_v43  ;;  %v16146_v29 = vld [vmem:[#allocation94_spill] sm:$0xff] }
 0x4a2   : > { %6372 = vmatprep.subr.bf16.mxu0 %v11880_v30  ;;  %v10869_v52 = vpop.f32.mrf.mxu1  ;;  %vm4654_vm10 = vcmp.gt.f32.partialorder %v4606_v22, 0.0  ;;  %v4702_v53 = vmul.f32 0.01, %v4606_v22 }
 0x4a3   : > { %v4609_v1 = vadd.f32 %v14616_v59, %v4545_v45  ;;  %v14727_v10 = vadd.f32 %v4430_v48, %v16144_v35  ;;  %v4336_v25 = vadd.f32 %v10868_v34, %v14587_v8  ;;  %5473 = vmatmul.mubr.bf16.gmra.mxu0 %v4877_v2  ;;  %11235 = vmatprep.mubr.bf16.mxu1 %v4877_v2 }
 0x4a4   : > { %v10870_v44 = vpop.f32.mrf.mxu1  ;;  %5482 = vmatprep.mubr.bf16.mxu0 %v16060_v21  ;;  %v4750_v48 = vsel %vm4654_vm10, %v4606_v22, %v4702_v53 }
 0x4a5   : > { %16145 = vst [vmem:[#allocation77_spill] sm:$0xff] %v14727_v10  ;;  %v4548_v56 = vmul.f32 %v14610_v31, %v14727_v10  ;;  %v4433_v5 = vadd.f32 %v4432_v33, %v4336_v25  ;;  %v10871_v12 = vadd.f32 %v10870_v44, %v10869_v52  ;;  %vm4657_vm11 = vcmp.gt.f32.partialorder %v4609_v1, 0.0  ;;  %v16148_v44 = vld [vmem:[#allocation96_spill] sm:$0xff] }
 0x4a6   : > { %v10872_v30 = vpop.f32.mrf.mxu1  ;;  %v4705_v17 = vmul.f32 0.01, %v4609_v1 }
 0x4a7   : > { %v4612_v38 = vadd.f32 %v14616_v59, %v4548_v56  ;;  %v14735_v39 = vadd.f32 %v4433_v5, %v16146_v29  ;;  %v4341_v43 = vadd.f32 %v10871_v12, %v14587_v8  ;;  %v16150_v12 = vld [vmem:[#allocation95_spill] sm:$0xff] }
 0x4a8   : > { %v10873_v45 = vpop.f32.mrf.mxu1  ;;  %v4753_v34 = vsel %vm4657_vm11, %v4609_v1, %v4705_v17 }
 0x4a9   : > { %16147 = vst [vmem:[#allocation78_spill] sm:$0xff] %v14735_v39  ;;  %v4551_v2 = vmul.f32 %v14610_v31, %v14735_v39  ;;  %v4438_v35 = vadd.f32 %v14703_v15, %v4341_v43  ;;  %v10874_v25 = vadd.f32 %v10873_v45, %v10872_v30  ;;  %v4880_v52 = vpack.c.bf16 %v4753_v34, %v4750_v48  ;;  %v11939_v39 = vld [vmem:[#allocation12 + $0x218] ss:$12 sps:$4 sm:$0xff]  }
 0x4aa   : > { %v4708_v5 = vmul.f32 0.01, %v4612_v38  ;;  %vm4660_vm12 = vcmp.gt.f32.partialorder %v4612_v38, 0.0 }
 0x4ab   : > { %v4615_v33 = vadd.f32 %v14616_v59, %v4551_v2  ;;  %v14743_v10 = vadd.f32 %v4438_v35, %v16148_v44  ;;  %v4344_v56 = vadd.f32 %v10874_v25, %v14587_v8  ;;  %5483 = vmatmul.mubr.bf16.gmra.mxu0 %v4880_v52  ;;  %11236 = vmatmul.mubr.bf16.gmra.mxu1 %v4880_v52  ;;  %v11886_v25 = vld [vmem:[#allocation12 + $0x7c] ss:$12 sps:$4 sm:$0xff]   ;;  %v11884_v52 = vld [vmem:[#allocation12 + $0x78] ss:$12 sps:$4 sm:$0xff]  }
 0x4ac   : > { %5492 = vmatprep.mubr.bf16.mxu0 %v16060_v21  ;;  %v4756_v17 = vsel %vm4660_vm12, %v4612_v38, %v4708_v5  ;;  %v11883_v38 = vld [vmem:[#allocation12 + $0x94] ss:$12 sps:$4 sm:$0xff]   ;;  %v11892_v44 = vld [vmem:[#allocation12 + $0x4c] ss:$12 sps:$4 sm:$0xff]   ;;  %v11898_v5 = vld [vmem:[#allocation12 + $0x1c] ss:$12 sps:$4 sm:$0xff]  }
 0x4ad   : > { %16149 = vst [vmem:[#allocation79_spill] sm:$0xff] %v14743_v10  ;;  %v4554_v22 = vmul.f32 %v14610_v31, %v14743_v10  ;;  %v4441_v1 = vadd.f32 %v11210_v42, %v4344_v56  ;;  %vm4663_vm13 = vcmp.gt.f32.partialorder %v4615_v33, 0.0  ;;  %v4711_v15 = vmul.f32 0.01, %v4615_v33  ;;  %v11893_v56 = vld [vmem:[#allocation12 + $0x30] ss:$12 sps:$4 sm:$0xff]  }
 0x4af   : > { %v4618_v53 = vadd.f32 %v14616_v59, %v4554_v22  ;;  %v14751_v30 = vadd.f32 %v4441_v1, %v16150_v12  ;;  %v4759_v29 = vsel %vm4663_vm13, %v4615_v33, %v4711_v15  ;;  %v11889_v33 = vld [vmem:[#allocation12 + $0x64] ss:$12 sps:$4 sm:$0xff]   ;;  %v11899_v22 = vld [vmem:[#allocation12] ss:$12 sps:$4 sm:$0xff]  }
 0x4b0   : > { %v4883_v8 = vpack.c.bf16 %v4759_v29, %v4756_v17  ;;  %v11904_v1 = vld [vmem:[#allocation12 + $0x16c] ss:$12 sps:$4 sm:$0xff]   ;;  %v11905_v15 = vld [vmem:[#allocation12 + $0x150] ss:$12 sps:$4 sm:$0xff]  }
 0x4b1   : > { %16151 = vst [vmem:[#allocation80_spill] sm:$0xff] %v14751_v30  ;;  %v4557_v43 = vmul.f32 %v14610_v31, %v14751_v30  ;;  %v4714_v48 = vmul.f32 0.01, %v4618_v53  ;;  %vm4666_vm14 = vcmp.gt.f32.partialorder %v4618_v53, 0.0  ;;  %v11878_v31 = vld [vmem:[#allocation12 + $0xa8] ss:$12 sps:$4 sm:$0xff]  }
 0x4b2   : > { %11239 = vmatprep.mubr.bf16.mxu1 %v4883_v8  ;;  %v11911_v12 = vld [vmem:[#allocation12 + $0x120] ss:$12 sps:$4 sm:$0xff]   ;;  %v11917_v29 = vld [vmem:[#allocation12 + $0xf0] ss:$12 sps:$4 sm:$0xff]  }
 0x4b3   : > { %v4621_v45 = vadd.f32 %v14616_v59, %v4557_v43  ;;  %5493 = vmatmul.mubr.bf16.gmra.mxu0 %v4883_v8  ;;  %v4762_v34 = vsel %vm4666_vm14, %v4618_v53, %v4714_v48  ;;  %v11881_v59 = vld [vmem:[#allocation12 + $0x90] ss:$12 sps:$4 sm:$0xff]   ;;  %v11916_v17 = vld [vmem:[#allocation12 + $0x10c] ss:$12 sps:$4 sm:$0xff]   ;;  %v11926_v43 = vld [vmem:[#allocation12 + $0x228] ss:$12 sps:$4 sm:$0xff]  }
 0x4b4   : > { %5502 = vmatprep.mubr.bf16.mxu0 %v16060_v21  ;;  %v11910_v53 = vld [vmem:[#allocation12 + $0x13c] ss:$12 sps:$4 sm:$0xff]   ;;  %v11923_v48 = vld [vmem:[#allocation12 + $0xc0] ss:$12 sps:$4 sm:$0xff]  }
 0x4b5   : > { %vm4669_vm15 = vcmp.gt.f32.partialorder %v4621_v45, 0.0  ;;  %v4717_v42 = vmul.f32 0.01, %v4621_v45  ;;  %v11922_v8 = vld [vmem:[#allocation12 + $0xdc] ss:$12 sps:$4 sm:$0xff]  }
 0x4b7   : > { %v4765_v2 = vsel %vm4669_vm15, %v4621_v45, %v4717_v42  ;;  %v11925_v45 = vld [vmem:[#allocation12 + $0xc4] ss:$12 sps:$4 sm:$0xff]   ;;  %v11931_v42 = vld [vmem:[#allocation12 + $0x214] ss:$12 sps:$4 sm:$0xff]  }
 0x4b8   : > { %v4886_v35 = vpack.c.bf16 %v4765_v2, %v4762_v34  ;;  %v11934_v34 = vld [vmem:[#allocation12 + $0x1fc] ss:$12 sps:$4 sm:$0xff]  }
 0x4b9   : > { %v14774_v2 = vld [vmem:[#allocation12 + $0x230] ss:$12 sps:$4 sm:$0xff]  }
 0x4ba   : > { %11240 = vmatmul.mubr.bf16.gmra.mxu1 %v4886_v35 }
 0x4bb   : > { %5503 = vmatmul.mubr.bf16.gmra.mxu0 %v4886_v35  ;;  %6517 = vmatprep.mubr.bf16.mxu1 %v16060_v21 }
 0x4bc   : > { %5545 = vmatprep.mubr.bf16.mxu0 %v14360_v58  ;;  %v11887_v58 = vld [vmem:[#allocation12 + $0x60] ss:$12 sps:$4 sm:$0xff]  }
 0x4c3   : > { %5546 = vmatmul.mubr.bf16.vlgmr.msra.gmra.mxu0 %v14352_v46  ;;  %v11890_v46 = vld [vmem:[#allocation12 + $0x48] ss:$12 sps:$4 sm:$0xff]  }
 0x4c4   : > { %5553 = vmatprep.mubr.bf16.mxu0 %v14389_v63  ;;  %6373 = vmatpush1.bf16.msra.mxu0 %v11878_v31  ;;  %v11895_v63 = vld [vmem:[#allocation12 + $0x34] ss:$12 sps:$4 sm:$0xff]  }
 0x4c5   : > { %6374 = vmatprep.subr.bf16.mxu0 %v11883_v38  ;;  %v11938_v38 = vld [vmem:[#allocation12 + $0x1e4] ss:$12 sps:$4 sm:$0xff]  }
 0x4c8   : > { %6375 = vmatpush1.bf16.msra.mxu0 %v11881_v59 }
 0x4c9   : > { %6376 = vmatprep.subr.bf16.mxu0 %v11886_v25 }
 0x4cb   : > { %5554 = vmatmul.mubr.bf16.gmra.mxu0 %v14409_v16  ;;  %v11896_v16 = vld [vmem:[#allocation12 + $0x18] ss:$12 sps:$4 sm:$0xff]  }
 0x4cc   : > { %5561 = vmatprep.mubr.bf16.mxu0 %v14433_v54  ;;  %6377 = vmatpush1.bf16.msra.mxu0 %v11884_v52  ;;  %v11901_v54 = vld [vmem:[#allocation12 + $0x4] ss:$12 sps:$4 sm:$0xff]   ;;  %v11940_v52 = vld [vmem:[#allocation12 + $0x1c8] ss:$12 sps:$4 sm:$0xff]  }
 0x4cd   : > { %6378 = vmatprep.subr.bf16.mxu0 %v11889_v33  ;;  %v11942_v33 = vld [vmem:[#allocation12 + $0x1cc] ss:$12 sps:$4 sm:$0xff]  }
 0x4d0   : > { %6379 = vmatpush1.bf16.msra.mxu0 %v11887_v58 }
 0x4d1   : > { %6380 = vmatprep.subr.bf16.mxu0 %v11892_v44  ;;  %v11944_v44 = vld [vmem:[#allocation12 + $0x1b0] ss:$12 sps:$4 sm:$0xff]  }
 0x4d3   : > { %5562 = vmatmul.mubr.bf16.gmra.mxu0 %v14449_v37  ;;  %v11902_v37 = vld [vmem:[#allocation12 + $0x168] ss:$12 sps:$4 sm:$0xff]  }
 0x4d4   : > { %5569 = vmatprep.mubr.bf16.mxu0 %v14489_v27  ;;  %6381 = vmatpush1.bf16.msra.mxu0 %v11890_v46  ;;  %v11907_v27 = vld [vmem:[#allocation12 + $0x154] ss:$12 sps:$4 sm:$0xff]  }
 0x4d5   : > { %6382 = vmatprep.subr.bf16.mxu0 %v11895_v63  ;;  %v11946_v46 = vld [vmem:[#allocation12 + $0x1b4] ss:$12 sps:$4 sm:$0xff]   ;;  %v11950_v63 = vld [vmem:[#allocation12 + $0x19c] ss:$12 sps:$4 sm:$0xff]  }
 0x4d8   : > { %6383 = vmatpush1.bf16.msra.mxu0 %v11893_v56 }
 0x4d9   : > { %6384 = vmatprep.subr.bf16.mxu0 %v11898_v5  ;;  %v11948_v5 = vld [vmem:[#allocation12 + $0x198] ss:$12 sps:$4 sm:$0xff]  }
 0x4db   : > { %5570 = vmatmul.mubr.bf16.gmra.mxu0 %v14499_v36  ;;  %v11908_v36 = vld [vmem:[#allocation12 + $0x138] ss:$12 sps:$4 sm:$0xff]  }
 0x4dc   : > { %5577 = vmatprep.mubr.bf16.mxu0 %v14524_v62  ;;  %6385 = vmatpush1.bf16.msra.mxu0 %v11896_v16  ;;  %v11913_v62 = vld [vmem:[#allocation12 + $0x124] ss:$12 sps:$4 sm:$0xff]  }
 0x4dd   : > { %6386 = vmatprep.subr.bf16.mxu0 %v11901_v54  ;;  %v11954_v16 = vld [vmem:[#allocation12 + $0x184] ss:$12 sps:$4 sm:$0xff]  }
 0x4e0   : > { %6387 = vmatpush1.bf16.msra.mxu0 %v11899_v22  ;;  %v11952_v22 = vld [vmem:[#allocation12 + $0x180] ss:$12 sps:$4 sm:$0xff]  }
 0x4e1   : > { %6388 = vmatprep.subr.bf16.mxu0 %v11904_v1  ;;  %v11956_v1 = vld [vmem:[#allocation12 + $0x170] ss:$12 sps:$4 sm:$0xff]  }
 0x4e3   : > { %5578 = vmatmul.mubr.bf16.gmra.mxu0 %v14542_v19  ;;  %v11914_v19 = vld [vmem:[#allocation12 + $0x108] ss:$12 sps:$4 sm:$0xff]  }
 0x4e4   : > { %5585 = vmatprep.mubr.bf16.mxu0 %v14564_v18  ;;  %6389 = vmatpush2.bf16.msra.mxu0 %v11902_v37  ;;  %v11919_v18 = vld [vmem:[#allocation12 + $0xf4] ss:$12 sps:$4 sm:$0xff]  }
 0x4e5   : > { %6390 = vmatprep.subr.bf16.mxu0 %v11907_v27 }
 0x4e8   : > { %6391 = vmatpush2.bf16.msra.mxu0 %v11905_v15 }
 0x4e9   : > { %6392 = vmatprep.subr.bf16.mxu0 %v11910_v53 }
 0x4eb   : > { %5586 = vmatmul.mubr.bf16.gmra.mxu0 %v14573_v61  ;;  %v11920_v61 = vld [vmem:[#allocation12 + $0xd8] ss:$12 sps:$4 sm:$0xff]  }
 0x4ec   : > { %5593 = vmatprep.mubr.bf16.mxu0 %v14601_v57  ;;  %6393 = vmatpush2.bf16.msra.mxu0 %v11908_v36  ;;  %v11928_v57 = vld [vmem:[#allocation12 + $0x22c] ss:$12 sps:$4 sm:$0xff]  }
 0x4ed   : > { %6394 = vmatprep.subr.bf16.mxu0 %v11913_v62  ;;  %6485 = vmatprep.subr.bf16.mxu1 %v11928_v57 }
 0x4ee   : > { %6486 = vmatpush1.bf16.msra.mxu1 %v11926_v43 }
 0x4ef   : > { %6487 = vmatprep.subr.bf16.mxu1 %v11931_v42 }
 0x4f0   : > { %6395 = vmatpush2.bf16.msra.mxu0 %v11911_v12 }
 0x4f1   : > { %6396 = vmatprep.subr.bf16.mxu0 %v11916_v17 }
 0x4f3   : > { %5594 = vmatmul.mubr.bf16.gmra.mxu0 %v14612_v4  ;;  %v11929_v4 = vld [vmem:[#allocation12 + $0x210] ss:$12 sps:$4 sm:$0xff]  }
 0x4f4   : > { %5601 = vmatprep.mubr.bf16.mxu0 %v14623_v13  ;;  %6397 = vmatpush2.bf16.msra.mxu0 %v11914_v19  ;;  %v11932_v13 = vld [vmem:[#allocation12 + $0x1f8] ss:$12 sps:$4 sm:$0xff]   ;;  %v14792_v19 = vld [vmem:[%s16152_s29] sm:$0x7]  ;;  %s10095_s29 = sshll.u32 %s16204_s1, 3 }
 0x4f5   : > { %6398 = vmatprep.subr.bf16.mxu0 %v11919_v18  ;;  %6488 = vmatpush1.bf16.msra.mxu1 %v11929_v4 }
 0x4f6   : > { %6489 = vmatprep.subr.bf16.mxu1 %v11934_v34 }
 0x4f8   : > { %6399 = vmatpush2.bf16.msra.mxu0 %v11917_v29  ;;  %v14798_v29 = vrot.slane %v14792_v19, %v16069_v3 }
 0x4f9   : > { %6400 = vmatprep.subr.bf16.mxu0 %v11922_v8  ;;  %6490 = vmatpush1.bf16.msra.mxu1 %v11932_v13  ;;  %v14802_v8 = vrot.slane %v14792_v19, %v16070_v28 }
 0x4fa   : > { %6491 = vmatprep.subr.bf16.mxu1 %v11938_v38 }
 0x4fb   : > { %5602 = vmatmul.mubr.bf16.gmra.mxu0 %v14639_v49  ;;  %v11936_v49 = vld [vmem:[#allocation12 + $0x1e0] ss:$12 sps:$4 sm:$0xff]  }
 0x4fc   : > { %6401 = vmatpush2.bf16.msra.mxu0 %v11920_v61 }
 0x4fd   : > { %6402 = vmatprep.subr.bf16.mxu0 %v11925_v45  ;;  %6492 = vmatpush1.bf16.msra.mxu1 %v11936_v49 }
 0x4fe   : > { %6493 = vmatprep.subr.bf16.mxu1 %v11942_v33 }
 0x500   : > { %6403 = vmatpush2.bf16.msra.mxu0 %v11923_v48 }
 0x501   : > { %11243 = vmatprep.subr.bf16.mxu0 %v14774_v2  ;;  %v5321_v35 = vpop.f32.mrf.mxu1  ;;  %6494 = vmatpush1.bf16.msra.mxu1 %v11940_v52 }
 0x502   : > { %6495 = vmatprep.subr.bf16.mxu1 %v11946_v46  ;;  %v5322_v45 = vadd.f32 %v5321_v35, %v14802_v8 }
 0x503   : > { %v5323_v31 = vpop.f32.mrf.mxu1 }
 0x504   : > { %v5324_v57 = vadd.f32 %v5323_v31, %v14798_v29 }
 0x505   : > { %v5325_v59 = vpop.f32.mrf.mxu1  ;;  %6496 = vmatpush1.bf16.msra.mxu1 %v11944_v44 }
 0x506   : > { %6497 = vmatprep.subr.bf16.mxu1 %v11950_v63  ;;  %v5326_v4 = vadd.f32 %v5325_v59, %v14802_v8 }
 0x507   : > { %v5327_v25 = vpop.f32.mrf.mxu1 }
 0x508   : > { %v5328_v38 = vadd.f32 %v5327_v25, %v14798_v29 }
 0x509   : > { %v5331_v58 = vpop.f32.mrf.mxu1  ;;  %6498 = vmatpush1.bf16.msra.mxu1 %v11948_v5 }
 0x50a   : > { %6499 = vmatprep.subr.bf16.mxu1 %v11954_v16 }
 0x50b   : > { %v5333_v56 = vpop.f32.mrf.mxu1 }
 0x50c   : > { %v5334_v16 = vadd.f32 %v5333_v56, %v14798_v29 }
 0x50d   : > { %v5335_v54 = vpop.f32.mrf.mxu1  ;;  %6500 = vmatpush1.bf16.msra.mxu1 %v11952_v22 }
 0x50e   : > { %10971 = vmatprep.subr.bf16.mxu1 %v11956_v1  ;;  %v5332_v1 = vadd.f32 %v5331_v58, %v14802_v8 }
 0x50f   : > { %v5337_v37 = vpop.f32.mrf.mxu1 }
 0x510   : > { %v5338_v56 = vadd.f32 %v5337_v37, %v14798_v29 }
 0x511   : > { %v14777_v27 = vpop.f32.mrf.mxu1 }
 0x513   : > { %v14779_v15 = vpop.f32.mrf.mxu1 }
 0x515   : > { %v14781_v53 = vpop.f32.mrf.mxu1 }
 0x517   : > { %v14783_v36 = vpop.f32.mrf.mxu1 }
 0x519   : > { %v14785_v62 = vpop.f32.mrf.mxu1 }
 0x51b   : > { %v14787_v12 = vpop.f32.mrf.mxu1 }
 0x51d   : > { %v14789_v17 = vpop.f32.mrf.mxu1 }
 0x51f   : > { %v14794_v18 = vpop.f32.mrf.mxu1 }
 0x521   : > { %v14804_v61 = vpop.f32.mrf.mxu1 }
 0x523   : > { %v14809_v42 = vpop.f32.mrf.mxu1 }
 0x525   : > { %v14812_v44 = vpop.f32.mrf.mxu1 }
 0x527   : > { %v14816_v25 = vpop.f32.mrf.mxu1 }
 0x529   : > { %v14825_v58 = vpop.f32.mrf.mxu1 }
 0x542   : > { %v5434_v43 = vpop.f32.mrf.mxu0 }
 0x543   : > { %v5435_v34 = vadd.f32 %v5434_v43, %v5322_v45 }
 0x544   : > { %v5436_v48 = vpop.f32.mrf.mxu0 }
 0x545   : > { %v5437_v13 = vadd.f32 %v5436_v48, %v5324_v57  ;;  %v5755_v5 = vmul.f32 0.01, %v5435_v34  ;;  %vm5707_vm2 = vcmp.gt.f32.partialorder %v5435_v34, 0.0  ;;  %v5336_v48 = vadd.f32 %v5335_v54, %v14802_v8 }
 0x546   : > { %v5438_v49 = vpop.f32.mrf.mxu0 }
 0x547   : > { %v5439_v52 = vadd.f32 %v5438_v49, %v5326_v4  ;;  %v5756_v46 = vmul.f32 0.01, %v5437_v13  ;;  %vm5708_vm1 = vcmp.gt.f32.partialorder %v5437_v13, 0.0  ;;  %v5803_v4 = vsel %vm5707_vm2, %v5435_v34, %v5755_v5  ;;  %v11943_v5 = vld [vmem:[#allocation12 + $0x200] ss:$12 sps:$4 sm:$0xff]  }
 0x548   : > { %v5440_v33 = vpop.f32.mrf.mxu0 }
 0x549   : > { %vm5710_vm0 = vcmp.gt.f32.partialorder %v5439_v52, 0.0  ;;  %v5758_v63 = vmul.f32 0.01, %v5439_v52  ;;  %v5441_v31 = vadd.f32 %v5440_v33, %v5328_v38  ;;  %v5804_v57 = vsel %vm5708_vm1, %v5437_v13, %v5756_v46 }
 0x54b   : > { %vm5711_vm3 = vcmp.gt.f32.partialorder %v5441_v31, 0.0  ;;  %v5759_v35 = vmul.f32 0.01, %v5441_v31  ;;  %v5444_v59 = vpop.f32.mrf.mxu0  ;;  %v5806_v22 = vsel %vm5710_vm0, %v5439_v52, %v5758_v63 }
 0x54c   : > { %v14821_v33 = vpack.c.bf16 %v5806_v22, %v5803_v4  ;;  %v5445_v30 = vadd.f32 %v5444_v59, %v5332_v1  ;;  %v14833_v59 = vpop.f32.mrf.mxu1 }
 0x54d   : > { %v5446_v43 = vpop.f32.mrf.mxu0  ;;  %v5807_v45 = vsel %vm5711_vm3, %v5441_v31, %v5759_v35  ;;  %v5342_v35 = vadd.f32 %v14777_v27, %v14802_v8  ;;  %v5348_v27 = vadd.f32 %v14783_v36, %v14798_v29  ;;  %v5354_v36 = vadd.f32 %v14787_v12, %v14798_v29 }
 0x54e   : > { %v5447_v49 = vadd.f32 %v5446_v43, %v5334_v16  ;;  %v14819_v38 = vpack.c.bf16 %v5807_v45, %v5804_v57  ;;  %v5761_v63 = vmul.f32 0.01, %v5445_v30  ;;  %vm5713_vm6 = vcmp.gt.f32.partialorder %v5445_v30, 0.0 }
 0x54f   : > { %v5448_v10 = vpop.f32.mrf.mxu0 }
 0x550   : > { %v5449_v52 = vadd.f32 %v5448_v10, %v5336_v48  ;;  %6404 = vmatprep.mubr.bf16.mxu0 %v14819_v38  ;;  %v5762_v54 = vmul.f32 0.01, %v5447_v49  ;;  %vm5714_vm5 = vcmp.gt.f32.partialorder %v5447_v49, 0.0  ;;  %v5344_v10 = vadd.f32 %v14779_v15, %v14798_v29 }
 0x551   : > { %v5450_v13 = vpop.f32.mrf.mxu0  ;;  %6405 = vmatmul.mubr.bf16.vlgmr.msra.gmra.mxu0 %v14821_v33  ;;  %v5809_v45 = vsel %vm5713_vm6, %v5445_v30, %v5761_v63 }
 0x552   : > { %vm5716_vm4 = vcmp.gt.f32.partialorder %v5449_v52, 0.0  ;;  %v5764_v34 = vmul.f32 0.01, %v5449_v52  ;;  %v5451_v46 = vadd.f32 %v5450_v13, %v5338_v56  ;;  %11244 = vmatpush3.bf16.msra.mxu0 %v14774_v2  ;;  %v5346_v2 = vadd.f32 %v14781_v53, %v14802_v8  ;;  %v11947_v13 = vld [vmem:[#allocation12 + $0x1e8] ss:$12 sps:$4 sm:$0xff]  }
 0x553   : > { %v5454_v31 = vpop.f32.mrf.mxu0  ;;  %11245 = vmatprep.subr.bf16.mxu0 %v11939_v39  ;;  %v5810_v43 = vsel %vm5714_vm5, %v5447_v49, %v5762_v54 }
 0x554   : > { %vm5717_vm7 = vcmp.gt.f32.partialorder %v5451_v46, 0.0  ;;  %v5765_v37 = vmul.f32 0.01, %v5451_v46  ;;  %v5812_v16 = vsel %vm5716_vm4, %v5449_v52, %v5764_v34  ;;  %v5455_v48 = vadd.f32 %v5454_v31, %v5342_v35  ;;  %v14843_v34 = vpop.f32.mrf.mxu1  ;;  %v11951_v31 = vld [vmem:[#allocation12 + $0x1d0] ss:$12 sps:$4 sm:$0xff]  }
 0x555   : > { %v5456_v22 = vpop.f32.mrf.mxu0  ;;  %v14841_v56 = vpack.c.bf16 %v5812_v16, %v5809_v45 }
 0x556   : > { %v5457_v1 = vadd.f32 %v5456_v22, %v5344_v10  ;;  %v5813_v57 = vsel %vm5717_vm7, %v5451_v46, %v5765_v37  ;;  %11246 = vmatpush3.bf16.msra.mxu0 %v11939_v39  ;;  %v5767_v54 = vmul.f32 0.01, %v5455_v48  ;;  %vm5719_vm10 = vcmp.gt.f32.partialorder %v5455_v48, 0.0  ;;  %v14851_v37 = vpop.f32.mrf.mxu1 }
 0x557   : > { %v5458_v15 = vpop.f32.mrf.mxu0  ;;  %v14837_v4 = vpack.c.bf16 %v5813_v57, %v5810_v43  ;;  %11247 = vmatprep.subr.bf16.mxu0 %v11943_v5  ;;  %v5352_v10 = vadd.f32 %v14785_v62, %v14802_v8  ;;  %v5356_v22 = vadd.f32 %v14789_v17, %v14802_v8  ;;  %v5358_v62 = vadd.f32 %v14794_v18, %v14798_v29 }
 0x558   : > { %v5459_v52 = vadd.f32 %v5458_v15, %v5346_v2  ;;  %v5768_v49 = vmul.f32 0.01, %v5457_v1  ;;  %vm5720_vm9 = vcmp.gt.f32.partialorder %v5457_v1, 0.0  ;;  %v5815_v12 = vsel %vm5719_vm10, %v5455_v48, %v5767_v54 }
 0x559   : > { %v5460_v53 = vpop.f32.mrf.mxu0  ;;  %6414 = vmatprep.mubr.bf16.mxu0 %v14837_v4  ;;  %v5364_v18 = vadd.f32 %v14809_v42, %v14798_v29 }
 0x55a   : > { %vm5722_vm8 = vcmp.gt.f32.partialorder %v5459_v52, 0.0  ;;  %v5770_v39 = vmul.f32 0.01, %v5459_v52  ;;  %v5461_v30 = vadd.f32 %v5460_v53, %v5348_v27  ;;  %6415 = vmatmul.mubr.bf16.gmra.mxu0 %v14841_v56  ;;  %v5816_v2 = vsel %vm5720_vm9, %v5457_v1, %v5768_v49 }
 0x55b   : > { %v5464_v46 = vpop.f32.mrf.mxu0  ;;  %11248 = vmatpush3.bf16.msra.mxu0 %v11943_v5 }
 0x55c   : > { %vm5723_vm11 = vcmp.gt.f32.partialorder %v5461_v30, 0.0  ;;  %v5771_v63 = vmul.f32 0.01, %v5461_v30  ;;  %11249 = vmatprep.subr.bf16.mxu0 %v11947_v13  ;;  %v5818_v35 = vsel %vm5722_vm8, %v5459_v52, %v5770_v39  ;;  %v5465_v57 = vadd.f32 %v5464_v46, %v5352_v10  ;;  %v11955_v52 = vld [vmem:[#allocation12 + $0x1b8] ss:$12 sps:$4 sm:$0xff]   ;;  %v14862_v39 = vpop.f32.mrf.mxu1 }
 0x55d   : > { %v5466_v16 = vpop.f32.mrf.mxu0  ;;  %v14860_v27 = vpack.c.bf16 %v5818_v35, %v5815_v12  ;;  %v11957_v46 = vld [vmem:[#allocation12 + $0x1a0] ss:$12 sps:$4 sm:$0xff]  }
 0x55e   : > { %v5467_v5 = vadd.f32 %v5466_v16, %v5354_v36  ;;  %v5819_v43 = vsel %vm5723_vm11, %v5461_v30, %v5771_v63  ;;  %vm5725_vm14 = vcmp.gt.f32.partialorder %v5465_v57, 0.0  ;;  %v5362_v36 = vadd.f32 %v14804_v61, %v14802_v8  ;;  %v5383_v63 = vpop.f32.mrf.mxu1 }
 0x55f   : > { %v5468_v45 = vpop.f32.mrf.mxu0  ;;  %v14856_v15 = vpack.c.bf16 %v5819_v43, %v5816_v2  ;;  %11250 = vmatpush3.bf16.msra.mxu0 %v11947_v13  ;;  %v5773_v13 = vmul.f32 0.01, %v5465_v57  ;;  %v5366_v16 = vadd.f32 %v14812_v44, %v14802_v8 }
 0x560   : > { %v5469_v53 = vadd.f32 %v5468_v45, %v5356_v22  ;;  %11251 = vmatprep.subr.bf16.mxu0 %v11951_v31  ;;  %v5774_v1 = vmul.f32 0.01, %v5467_v5  ;;  %vm5726_vm13 = vcmp.gt.f32.partialorder %v5467_v5, 0.0 }
 0x561   : > { %v5470_v17 = vpop.f32.mrf.mxu0  ;;  %6424 = vmatprep.mubr.bf16.mxu0 %v14856_v15  ;;  %v5821_v43 = vsel %vm5725_vm14, %v5465_v57, %v5773_v13  ;;  %v5372_v13 = vadd.f32 %v14825_v58, %v14802_v8 }
 0x562   : > { %vm5728_vm12 = vcmp.gt.f32.partialorder %v5469_v53, 0.0  ;;  %v5776_v48 = vmul.f32 0.01, %v5469_v53  ;;  %v5471_v49 = vadd.f32 %v5470_v17, %v5358_v62  ;;  %6425 = vmatmul.mubr.bf16.gmra.mxu0 %v14860_v27  ;;  %v5368_v62 = vadd.f32 %v14816_v25, %v14798_v29 }
 0x563   : > { %v5474_v30 = vpop.f32.mrf.mxu0  ;;  %11252 = vmatpush3.bf16.msra.mxu0 %v11951_v31  ;;  %v5822_v31 = vsel %vm5726_vm13, %v5467_v5, %v5774_v1  ;;  %v5374_v25 = vadd.f32 %v14833_v59, %v14798_v29 }
 0x564   : > { %vm5729_vm15 = vcmp.gt.f32.partialorder %v5471_v49, 0.0  ;;  %v5777_v54 = vmul.f32 0.01, %v5471_v49  ;;  %11253 = vmatprep.subr.bf16.mxu0 %v11955_v52  ;;  %v5824_v10 = vsel %vm5728_vm12, %v5469_v53, %v5776_v48  ;;  %v5475_v42 = vadd.f32 %v5474_v30, %v5362_v36  ;;  %v11959_v53 = vld [vmem:[#allocation12 + $0x188] ss:$12 sps:$4 sm:$0xff]   ;;  %v5385_v48 = vpop.f32.mrf.mxu1 }
 0x565   : > { %v5476_v35 = vpop.f32.mrf.mxu0  ;;  %v14877_v61 = vpack.c.bf16 %v5824_v10, %v5821_v43 }
 0x566   : > { %v5477_v22 = vadd.f32 %v5476_v35, %v5364_v18  ;;  %v5825_v2 = vsel %vm5729_vm15, %v5471_v49, %v5777_v54  ;;  %v5779_v1 = vmul.f32 0.01, %v5475_v42  ;;  %vm5731_vm2 = vcmp.gt.f32.partialorder %v5475_v42, 0.0  ;;  %v5387_v30 = vpop.f32.mrf.mxu1 }
 0x567   : > { %v5478_v12 = vpop.f32.mrf.mxu0  ;;  %v14873_v45 = vpack.c.bf16 %v5825_v2, %v5822_v31  ;;  %11254 = vmatpush3.bf16.msra.mxu0 %v11955_v52  ;;  %v5378_v2 = vadd.f32 %v14851_v37, %v14798_v29 }
 0x568   : > { %v5479_v17 = vadd.f32 %v5478_v12, %v5366_v16  ;;  %11255 = vmatprep.subr.bf16.mxu0 %v11957_v46  ;;  %v5780_v44 = vmul.f32 0.01, %v5477_v22  ;;  %vm5732_vm1 = vcmp.gt.f32.partialorder %v5477_v22, 0.0  ;;  %v5391_v12 = vpop.f32.mrf.mxu1 }
 0x569   : > { %v5480_v40 = vpop.f32.mrf.mxu0  ;;  %6434 = vmatprep.mubr.bf16.mxu0 %v14873_v45 }
 0x56a   : > { %vm5734_vm0 = vcmp.gt.f32.partialorder %v5479_v17, 0.0  ;;  %v5782_v5 = vmul.f32 0.01, %v5479_v17  ;;  %v5481_v57 = vadd.f32 %v5480_v40, %v5368_v62  ;;  %6435 = vmatmul.mubr.bf16.gmra.mxu0 %v14877_v61  ;;  %v5376_v40 = vadd.f32 %v14843_v34, %v14802_v8 }
 0x56b   : > { %v5484_v52 = vpop.f32.mrf.mxu0  ;;  %11256 = vmatpush3.bf16.msra.mxu0 %v11957_v46  ;;  %v5828_v10 = vsel %vm5732_vm1, %v5477_v22, %v5780_v44  ;;  %v5827_v46 = vsel %vm5731_vm2, %v5475_v42, %v5779_v1 }
 0x56c   : > { %vm5735_vm3 = vcmp.gt.f32.partialorder %v5481_v57, 0.0  ;;  %v5783_v49 = vmul.f32 0.01, %v5481_v57  ;;  %11257 = vmatprep.subr.bf16.mxu0 %v11959_v53  ;;  %v5830_v18 = vsel %vm5734_vm0, %v5479_v17, %v5782_v5  ;;  %v5485_v16 = vadd.f32 %v5484_v52, %v5372_v13 }
 0x56d   : > { %v5486_v54 = vpop.f32.mrf.mxu0  ;;  %v14891_v43 = vpack.c.bf16 %v5830_v18, %v5827_v46  ;;  %v5382_v5 = vadd.f32 %v14862_v39, %v14802_v8 }
 0x56e   : > { %v5487_v36 = vadd.f32 %v5486_v54, %v5374_v25  ;;  %v5831_v35 = vsel %vm5735_vm3, %v5481_v57, %v5783_v49  ;;  %v5785_v42 = vmul.f32 0.01, %v5485_v16  ;;  %vm5737_vm6 = vcmp.gt.f32.partialorder %v5485_v16, 0.0  ;;  %v5393_v57 = vpop.f32.mrf.mxu1 }
 0x56f   : > { %v5488_v31 = vpop.f32.mrf.mxu0  ;;  %v14887_v59 = vpack.c.bf16 %v5831_v35, %v5828_v10  ;;  %11258 = vmatpush3.bf16.msra.mxu0 %v11959_v53  ;;  %v5384_v53 = vadd.f32 %v5383_v63, %v14798_v29  ;;  %v5386_v25 = vadd.f32 %v5385_v48, %v14802_v8  ;;  %v5388_v63 = vadd.f32 %v5387_v30, %v14798_v29 }
 0x570   : > { %v5489_v58 = vadd.f32 %v5488_v31, %v5376_v40  ;;  %v5786_v34 = vmul.f32 0.01, %v5487_v36  ;;  %vm5738_vm5 = vcmp.gt.f32.partialorder %v5487_v36, 0.0  ;;  %v5833_v54 = vsel %vm5737_vm6, %v5485_v16, %v5785_v42 }
 0x571   : > { %v5490_v62 = vpop.f32.mrf.mxu0  ;;  %6444 = vmatprep.mubr.bf16.mxu0 %v14887_v59 }
 0x572   : > { %vm5740_vm4 = vcmp.gt.f32.partialorder %v5489_v58, 0.0  ;;  %v5788_v22 = vmul.f32 0.01, %v5489_v58  ;;  %v5491_v17 = vadd.f32 %v5490_v62, %v5378_v2  ;;  %6445 = vmatmul.mubr.bf16.gmra.mxu0 %v14891_v43  ;;  %v5834_v13 = vsel %vm5738_vm5, %v5487_v36, %v5786_v34  ;;  %v5395_v2 = vpop.f32.mrf.mxu1 }
 0x573   : > { %v5494_v44 = vpop.f32.mrf.mxu0  ;;  %v5394_v34 = vadd.f32 %v5393_v57, %v14798_v29 }
 0x574   : > { %vm5741_vm7 = vcmp.gt.f32.partialorder %v5491_v17, 0.0  ;;  %v5789_v37 = vmul.f32 0.01, %v5491_v17  ;;  %v5836_v1 = vsel %vm5740_vm4, %v5489_v58, %v5788_v22  ;;  %v5495_v40 = vadd.f32 %v5494_v44, %v5382_v5 }
 0x575   : > { %v5496_v52 = vpop.f32.mrf.mxu0  ;;  %v14902_v46 = vpack.c.bf16 %v5836_v1, %v5833_v54  ;;  %v5392_v22 = vadd.f32 %v5391_v12, %v14802_v8 }
 0x576   : > { %v5497_v49 = vadd.f32 %v5496_v52, %v5384_v53  ;;  %v5837_v18 = vsel %vm5741_vm7, %v5491_v17, %v5789_v37  ;;  %v5791_v36 = vmul.f32 0.01, %v5495_v40  ;;  %vm5743_vm10 = vcmp.gt.f32.partialorder %v5495_v40, 0.0  ;;  %v5397_v17 = vpop.f32.mrf.mxu1 }
 0x577   : > { %v5498_v10 = vpop.f32.mrf.mxu0  ;;  %v14899_v35 = vpack.c.bf16 %v5837_v18, %v5834_v13  ;;  %v5396_v53 = vadd.f32 %v5395_v2, %v14802_v8  ;;  %v5398_v57 = vadd.f32 %v5397_v17, %v14798_v29  ;;  %v14918_v29 = vrot.slane %v14792_v19, %v13597_v60 }
 0x578   : > { %v5499_v31 = vadd.f32 %v5498_v10, %v5386_v25  ;;  %v5792_v58 = vmul.f32 0.01, %v5497_v49  ;;  %vm5744_vm9 = vcmp.gt.f32.partialorder %v5497_v49, 0.0  ;;  %v5839_v52 = vsel %vm5743_vm10, %v5495_v40, %v5791_v36 }
 0x579   : > { %v5500_v39 = vpop.f32.mrf.mxu0  ;;  %6454 = vmatprep.mubr.bf16.mxu0 %v14899_v35 }
 0x57a   : > { %vm5746_vm8 = vcmp.gt.f32.partialorder %v5499_v31, 0.0  ;;  %v5794_v48 = vmul.f32 0.01, %v5499_v31  ;;  %v5501_v62 = vadd.f32 %v5500_v39, %v5388_v63  ;;  %6455 = vmatmul.mubr.bf16.gmra.mxu0 %v14902_v46  ;;  %v5840_v5 = vsel %vm5744_vm9, %v5497_v49, %v5792_v58  ;;  %v11229_v63 = vpop.f32.mrf.mxu1 }
 0x57b   : > { %v5504_v16 = vpop.f32.mrf.mxu0 }
 0x57c   : > { %vm5747_vm11 = vcmp.gt.f32.partialorder %v5501_v62, 0.0  ;;  %v5795_v30 = vmul.f32 0.01, %v5501_v62  ;;  %v5842_v42 = vsel %vm5746_vm8, %v5499_v31, %v5794_v48  ;;  %v5505_v25 = vadd.f32 %v5504_v16, %v5392_v22  ;;  %v5644_v58 = vpop.f32.mrf.mxu1 }
 0x57d   : > { %v5506_v44 = vpop.f32.mrf.mxu0  ;;  %v14912_v54 = vpack.c.bf16 %v5842_v42, %v5839_v52 }
 0x57e   : > { %v5507_v37 = vadd.f32 %v5506_v44, %v5394_v34  ;;  %v5843_v1 = vsel %vm5747_vm11, %v5501_v62, %v5795_v30  ;;  %v5797_v49 = vmul.f32 0.01, %v5505_v25  ;;  %vm5749_vm14 = vcmp.gt.f32.partialorder %v5505_v25, 0.0 }
 0x57f   : > { %v5508_v13 = vpop.f32.mrf.mxu0  ;;  %v14909_v18 = vpack.c.bf16 %v5843_v1, %v5840_v5 }
 0x580   : > { %v5509_v10 = vadd.f32 %v5508_v13, %v5396_v53  ;;  %v5798_v31 = vmul.f32 0.01, %v5507_v37  ;;  %vm5750_vm13 = vcmp.gt.f32.partialorder %v5507_v37, 0.0  ;;  %v5845_v30 = vsel %vm5749_vm14, %v5505_v25, %v5797_v49  ;;  %v11230_v53 = vpop.f32.mrf.mxu1 }
 0x581   : > { %v5510_v12 = vpop.f32.mrf.mxu0  ;;  %6464 = vmatprep.mubr.bf16.mxu0 %v14909_v18 }
 0x582   : > { %vm5752_vm12 = vcmp.gt.f32.partialorder %v5509_v10, 0.0  ;;  %v5800_v8 = vmul.f32 0.01, %v5509_v10  ;;  %v5511_v2 = vadd.f32 %v5510_v12, %v5398_v57  ;;  %6465 = vmatmul.mubr.bf16.gmra.mxu0 %v14912_v54  ;;  %v5846_v16 = vsel %vm5750_vm13, %v5507_v37, %v5798_v31  ;;  %v5647_v13 = vpop.f32.mrf.mxu1 }
 0x583   : > { %v10907_v40 = vpop.f32.mrf.mxu0 }
 0x584   : > { %vm5753_vm15 = vcmp.gt.f32.partialorder %v5511_v2, 0.0  ;;  %v5801_v39 = vmul.f32 0.01, %v5511_v2  ;;  %v5848_v48 = vsel %vm5752_vm12, %v5509_v10, %v5800_v8  ;;  %v11233_v49 = vpop.f32.mrf.mxu1 }
 0x585   : > { %v10908_v62 = vpop.f32.mrf.mxu0  ;;  %v14922_v42 = vpack.c.bf16 %v5848_v48, %v5845_v30  ;;  %v11960_v30 = vld [vmem:[#allocation12 + $0x158] ss:$12 sps:$4 sm:$0xff]  }
 0x586   : > { %v10909_v36 = vadd.f32 %v10908_v62, %v10907_v40  ;;  %v5849_v34 = vsel %vm5753_vm15, %v5511_v2, %v5801_v39 }
 0x587   : > { %v10910_v22 = vpop.f32.mrf.mxu0  ;;  %v14920_v17 = vpack.c.bf16 %v5849_v34, %v5846_v16 }
 0x588   : > { %v5548_v44 = vadd.f32 %v10909_v36, %v14918_v29  ;;  %v11958_v36 = vld [vmem:[#allocation12 + $0xb0] ss:$12 sps:$4 sm:$0xff]  }
 0x589   : > { %v10911_v5 = vpop.f32.mrf.mxu0  ;;  %6474 = vmatprep.mubr.bf16.mxu0 %v14920_v17 }
 0x58a   : > { %v5645_v19 = vadd.f32 %v5644_v58, %v5548_v44  ;;  %v10912_v1 = vadd.f32 %v10911_v5, %v10910_v22  ;;  %6475 = vmatmul.mubr.bf16.gmra.mxu0 %v14922_v42  ;;  %v5660_v44 = vpop.f32.mrf.mxu1 }
 0x58b   : > { %v10913_v52 = vpop.f32.mrf.mxu0 }
 0x58c   : > { %v5551_v37 = vadd.f32 %v10912_v1, %v14918_v29  ;;  %v5757_v57 = vmul.f32 0.01, %v5645_v19  ;;  %vm5709_vm0 = vcmp.gt.f32.partialorder %v5645_v19, 0.0 }
 0x58d   : > { %v10914_v25 = vpop.f32.mrf.mxu0 }
 0x58e   : > { %v5648_v10 = vadd.f32 %v5647_v13, %v5551_v37  ;;  %v10915_v12 = vadd.f32 %v10914_v25, %v10913_v52  ;;  %v5805_v39 = vsel %vm5709_vm0, %v5645_v19, %v5757_v57  ;;  %v11961_v19 = vld [vmem:[#allocation12 + $0x98] ss:$12 sps:$4 sm:$0xff]   ;;  %v11962_v13 = vld [vmem:[#allocation12 + $0x140] ss:$12 sps:$4 sm:$0xff]  }
 0x58f   : > { %v10916_v31 = vpop.f32.mrf.mxu0 }
 0x590   : > { %vm5712_vm1 = vcmp.gt.f32.partialorder %v5648_v10, 0.0  ;;  %v5760_v8 = vmul.f32 0.01, %v5648_v10  ;;  %v5556_v2 = vadd.f32 %v10915_v12, %v14918_v29 }
 0x591   : > { %v10917_v40 = vpop.f32.mrf.mxu0 }
 0x592   : > { %v5808_v58 = vsel %vm5712_vm1, %v5648_v10, %v5760_v8  ;;  %v5653_v48 = vadd.f32 %v11229_v63, %v5556_v2  ;;  %v10918_v62 = vadd.f32 %v10917_v40, %v10916_v31  ;;  %v11234_v10 = vpop.f32.mrf.mxu1 }
 0x593   : > { %v5950_v16 = vpack.c.bf16 %v5808_v58, %v5805_v39  ;;  %v10919_v34 = vpop.f32.mrf.mxu0 }
 0x594   : > { %v5559_v22 = vadd.f32 %v10918_v62, %v14918_v29  ;;  %v5763_v1 = vmul.f32 0.01, %v5653_v48  ;;  %vm5715_vm2 = vcmp.gt.f32.partialorder %v5653_v48, 0.0  ;;  %v11964_v62 = vld [vmem:[#allocation12 + $0x128] ss:$12 sps:$4 sm:$0xff]  }
 0x595   : > { %v10920_v5 = vpop.f32.mrf.mxu0  ;;  %6518 = vmatmul.mubr.bf16.vlgmr.msra.gmra.mxu1 %v5950_v16  ;;  %11259 = vmatprep.mubr.bf16.mxu0 %v5950_v16  ;;  %v5663_v16 = vpop.f32.mrf.mxu1 }
 0x596   : > { %v5656_v52 = vadd.f32 %v11230_v53, %v5559_v22  ;;  %v10921_v37 = vadd.f32 %v10920_v5, %v10919_v34  ;;  %10972 = vmatpush3.bf16.msra.mxu1 %v11958_v36  ;;  %6527 = vmatprep.mubr.bf16.mxu1 %v16060_v21  ;;  %v5811_v2 = vsel %vm5715_vm2, %v5653_v48, %v5763_v1  ;;  %v11963_v53 = vld [vmem:[#allocation12 + $0x80] ss:$12 sps:$4 sm:$0xff]   ;;  %v11965_v48 = vld [vmem:[#allocation12 + $0x68] ss:$12 sps:$4 sm:$0xff]   ;;  %v11966_v1 = vld [vmem:[#allocation12 + $0x110] ss:$12 sps:$4 sm:$0xff]  }
 0x597   : > { %v10922_v63 = vpop.f32.mrf.mxu0  ;;  %10973 = vmatprep.subr.bf16.mxu1 %v11960_v30 }
 0x598   : > { %vm5718_vm3 = vcmp.gt.f32.partialorder %v5656_v52, 0.0  ;;  %v5766_v25 = vmul.f32 0.01, %v5656_v52  ;;  %v5564_v57 = vadd.f32 %v10921_v37, %v14918_v29 }
 0x599   : > { %v10923_v12 = vpop.f32.mrf.mxu0 }
 0x59a   : > { %v5661_v31 = vadd.f32 %v5660_v44, %v5564_v57  ;;  %v10924_v8 = vadd.f32 %v10923_v12, %v10922_v63  ;;  %v5814_v40 = vsel %vm5718_vm3, %v5656_v52, %v5766_v25  ;;  %10974 = vmatpush3.bf16.msra.mxu1 %v11961_v19  ;;  %v11237_v19 = vpop.f32.mrf.mxu1 }
 0x59b   : > { %v10925_v39 = vpop.f32.mrf.mxu0  ;;  %v5953_v58 = vpack.c.bf16 %v5814_v40, %v5811_v2  ;;  %10975 = vmatprep.subr.bf16.mxu1 %v11962_v13 }
 0x59c   : > { %v5567_v36 = vadd.f32 %v10924_v8, %v14918_v29  ;;  %v5769_v30 = vmul.f32 0.01, %v5661_v31  ;;  %vm5721_vm4 = vcmp.gt.f32.partialorder %v5661_v31, 0.0  ;;  %v11967_v8 = vld [vmem:[#allocation12 + $0x50] ss:$12 sps:$4 sm:$0xff]  }
 0x59d   : > { %v10926_v34 = vpop.f32.mrf.mxu0  ;;  %6528 = vmatmul.mubr.bf16.gmra.mxu1 %v5953_v58  ;;  %11260 = vmatmul.mubr.bf16.vlgmr.msra.gmra.mxu0 %v5953_v58  ;;  %v5676_v58 = vpop.f32.mrf.mxu1 }
 0x59e   : > { %v5664_v22 = vadd.f32 %v5663_v16, %v5567_v36  ;;  %v10927_v5 = vadd.f32 %v10926_v34, %v10925_v39  ;;  %6537 = vmatprep.mubr.bf16.mxu1 %v16060_v21  ;;  %10976 = vmatpush3.bf16.msra.mxu1 %v11963_v53  ;;  %v5817_v57 = vsel %vm5721_vm4, %v5661_v31, %v5769_v30  ;;  %v11968_v53 = vld [vmem:[#allocation12 + $0xf8] ss:$12 sps:$4 sm:$0xff]   ;;  %v11970_v30 = vld [vmem:[#allocation12 + $0xe0] ss:$12 sps:$4 sm:$0xff]  }
 0x59f   : > { %v10928_v44 = vpop.f32.mrf.mxu0  ;;  %10977 = vmatprep.subr.bf16.mxu1 %v11964_v62 }
 0x5a0   : > { %vm5724_vm5 = vcmp.gt.f32.partialorder %v5664_v22, 0.0  ;;  %v5772_v52 = vmul.f32 0.01, %v5664_v22  ;;  %v5572_v37 = vadd.f32 %v10927_v5, %v14918_v29 }
 0x5a1   : > { %v10929_v63 = vpop.f32.mrf.mxu0 }
 0x5a2   : > { %v5669_v13 = vadd.f32 %v11233_v49, %v5572_v37  ;;  %v10930_v25 = vadd.f32 %v10929_v63, %v10928_v44  ;;  %v5820_v12 = vsel %vm5724_vm5, %v5664_v22, %v5772_v52  ;;  %10978 = vmatpush3.bf16.msra.mxu1 %v11965_v48  ;;  %v11969_v49 = vld [vmem:[#allocation12 + $0x38] ss:$12 sps:$4 sm:$0xff]   ;;  %v11238_v48 = vpop.f32.mrf.mxu1 }
 0x5a3   : > { %v10931_v2 = vpop.f32.mrf.mxu0  ;;  %v5956_v40 = vpack.c.bf16 %v5820_v12, %v5817_v57  ;;  %10979 = vmatprep.subr.bf16.mxu1 %v11966_v1  ;;  %v11972_v12 = vld [vmem:[#allocation12 + $0xc8] ss:$12 sps:$4 sm:$0xff]  }
 0x5a4   : > { %v5575_v39 = vadd.f32 %v10930_v25, %v14918_v29  ;;  %v5775_v36 = vmul.f32 0.01, %v5669_v13  ;;  %vm5727_vm6 = vcmp.gt.f32.partialorder %v5669_v13, 0.0 }
 0x5a5   : > { %v10932_v62 = vpop.f32.mrf.mxu0  ;;  %6538 = vmatmul.mubr.bf16.gmra.mxu1 %v5956_v40  ;;  %11263 = vmatprep.mubr.bf16.mxu0 %v5956_v40 }
 0x5a6   : > { %v5672_v16 = vadd.f32 %v11234_v10, %v5575_v39  ;;  %v10933_v34 = vadd.f32 %v10932_v62, %v10931_v2  ;;  %6547 = vmatprep.mubr.bf16.mxu1 %v16060_v21  ;;  %10980 = vmatpush3.bf16.msra.mxu1 %v11967_v8  ;;  %v5823_v37 = vsel %vm5727_vm6, %v5669_v13, %v5775_v36  ;;  %v11971_v10 = vld [vmem:[#allocation12 + $0x20] ss:$12 sps:$4 sm:$0xff]   ;;  %v5679_v2 = vpop.f32.mrf.mxu1  ;;  %v11973_v13 = vld [vmem:[#allocation12 + $0x8] ss:$12 sps:$4 sm:$0xff]  }
 0x5a7   : > { %v10934_v31 = vpop.f32.mrf.mxu0  ;;  %10981 = vmatprep.subr.bf16.mxu1 %v11968_v53  ;;  %v11976_v36 = vld [vmem:[#allocation13 + $0x74] ss:$8 sps:$4 sm:$0xff]  }
 0x5a8   : > { %vm5730_vm7 = vcmp.gt.f32.partialorder %v5672_v16, 0.0  ;;  %v5778_v22 = vmul.f32 0.01, %v5672_v16  ;;  %v5580_v5 = vadd.f32 %v10933_v34, %v14918_v29 }
 0x5a9   : > { %v10935_v44 = vpop.f32.mrf.mxu0 }
 0x5aa   : > { %v5677_v1 = vadd.f32 %v5676_v58, %v5580_v5  ;;  %v10936_v52 = vadd.f32 %v10935_v44, %v10934_v31  ;;  %v5826_v63 = vsel %vm5730_vm7, %v5672_v16, %v5778_v22  ;;  %10982 = vmatpush3.bf16.msra.mxu1 %v11969_v49  ;;  %v11241_v49 = vpop.f32.mrf.mxu1 }
 0x5ab   : > { %v10937_v25 = vpop.f32.mrf.mxu0  ;;  %v5959_v57 = vpack.c.bf16 %v5826_v63, %v5823_v37  ;;  %10983 = vmatprep.subr.bf16.mxu1 %v11970_v30 }
 0x5ac   : > { %v5583_v8 = vadd.f32 %v10936_v52, %v14918_v29  ;;  %v5781_v53 = vmul.f32 0.01, %v5677_v1  ;;  %vm5733_vm8 = vcmp.gt.f32.partialorder %v5677_v1, 0.0 }
 0x5ad   : > { %v10938_v40 = vpop.f32.mrf.mxu0  ;;  %6548 = vmatmul.mubr.bf16.gmra.mxu1 %v5959_v57  ;;  %11264 = vmatmul.mubr.bf16.gmra.mxu0 %v5959_v57 }
 0x5ae   : > { %v5680_v39 = vadd.f32 %v5679_v2, %v5583_v8  ;;  %v10939_v62 = vadd.f32 %v10938_v40, %v10937_v25  ;;  %6557 = vmatprep.mubr.bf16.mxu1 %v16060_v21  ;;  %10984 = vmatpush3.bf16.msra.mxu1 %v11971_v10  ;;  %v5829_v5 = vsel %vm5733_vm8, %v5677_v1, %v5781_v53  ;;  %v5692_v10 = vpop.f32.mrf.mxu1 }
 0x5af   : > { %v10940_v58 = vpop.f32.mrf.mxu0  ;;  %10985 = vmatprep.subr.bf16.mxu1 %v11972_v12 }
 0x5b0   : > { %vm5736_vm9 = vcmp.gt.f32.partialorder %v5680_v39, 0.0  ;;  %v5784_v16 = vmul.f32 0.01, %v5680_v39  ;;  %v5588_v34 = vadd.f32 %v10939_v62, %v14918_v29  ;;  %v11242_v40 = vpop.f32.mrf.mxu1 }
 0x5b1   : > { %v10941_v31 = vpop.f32.mrf.mxu0 }
 0x5b2   : > { %v5685_v30 = vadd.f32 %v11237_v19, %v5588_v34  ;;  %v10942_v22 = vadd.f32 %v10941_v31, %v10940_v58  ;;  %v5832_v44 = vsel %vm5736_vm9, %v5680_v39, %v5784_v16  ;;  %10986 = vmatpush3.bf16.msra.mxu1 %v11973_v13 }
 0x5b3   : > { %v10943_v52 = vpop.f32.mrf.mxu0  ;;  %v5962_v37 = vpack.c.bf16 %v5832_v44, %v5829_v5  ;;  %7308 = vmatprep.subr.bf16.mxu1 %v11976_v36 }
 0x5b4   : > { %v5591_v63 = vadd.f32 %v10942_v22, %v14918_v29  ;;  %v5787_v57 = vmul.f32 0.01, %v5685_v30  ;;  %vm5739_vm10 = vcmp.gt.f32.partialorder %v5685_v30, 0.0 }
 0x5b5   : > { %v10944_v25 = vpop.f32.mrf.mxu0  ;;  %6558 = vmatmul.mubr.bf16.gmra.mxu1 %v5962_v37  ;;  %11267 = vmatprep.mubr.bf16.mxu0 %v5962_v37 }
 0x5b6   : > { %v5688_v12 = vadd.f32 %v11238_v48, %v5591_v63  ;;  %v10945_v8 = vadd.f32 %v10944_v25, %v10943_v52  ;;  %6567 = vmatprep.mubr.bf16.mxu1 %v16060_v21  ;;  %v5835_v13 = vsel %vm5739_vm10, %v5685_v30, %v5787_v57  ;;  %v5695_v48 = vpop.f32.mrf.mxu1 }
 0x5b7   : > { %v10946_v19 = vpop.f32.mrf.mxu0 }
 0x5b8   : > { %vm5742_vm11 = vcmp.gt.f32.partialorder %v5688_v12, 0.0  ;;  %v5790_v1 = vmul.f32 0.01, %v5688_v12  ;;  %v5596_v2 = vadd.f32 %v10945_v8, %v14918_v29 }
 0x5b9   : > { %v10947_v53 = vpop.f32.mrf.mxu0 }
 0x5ba   : > { %v5693_v39 = vadd.f32 %v5692_v10, %v5596_v2  ;;  %v10948_v62 = vadd.f32 %v10947_v53, %v10946_v19  ;;  %v5838_v58 = vsel %vm5742_vm11, %v5688_v12, %v5790_v1 }
 0x5bb   : > { %v10949_v36 = vpop.f32.mrf.mxu0  ;;  %v5965_v16 = vpack.c.bf16 %v5838_v58, %v5835_v13 }
 0x5bc   : > { %v5599_v34 = vadd.f32 %v10948_v62, %v14918_v29  ;;  %v5793_v22 = vmul.f32 0.01, %v5693_v39  ;;  %vm5745_vm12 = vcmp.gt.f32.partialorder %v5693_v39, 0.0 }
 0x5bd   : > { %v10950_v31 = vpop.f32.mrf.mxu0  ;;  %6568 = vmatmul.mubr.bf16.gmra.mxu1 %v5965_v16  ;;  %11268 = vmatmul.mubr.bf16.gmra.mxu0 %v5965_v16  ;;  %v11985_v16 = vld [vmem:[#allocation13 + $0x44] ss:$8 sps:$4 sm:$0xff]  }
 0x5be   : > { %v5696_v5 = vadd.f32 %v5695_v48, %v5599_v34  ;;  %v10951_v44 = vadd.f32 %v10950_v31, %v10949_v36  ;;  %6577 = vmatprep.mubr.bf16.mxu1 %v16060_v21  ;;  %v5841_v57 = vsel %vm5745_vm12, %v5693_v39, %v5793_v22  ;;  %v11982_v39 = vld [vmem:[#allocation13 + $0x54] ss:$8 sps:$4 sm:$0xff]   ;;  %v11980_v36 = vld [vmem:[#allocation13 + $0x50] ss:$8 sps:$4 sm:$0xff]   ;;  %v11989_v48 = vld [vmem:[#allocation13 + $0x20] ss:$8 sps:$4 sm:$0xff]  }
 0x5bf   : > { %v10952_v52 = vpop.f32.mrf.mxu0  ;;  %v11988_v34 = vld [vmem:[#allocation13 + $0x34] ss:$8 sps:$4 sm:$0xff]   ;;  %v11995_v22 = vld [vmem:[#allocation13] ss:$8 sps:$4 sm:$0xff]  }
 0x5c0   : > { %vm5748_vm13 = vcmp.gt.f32.partialorder %v5696_v5, 0.0  ;;  %v5796_v37 = vmul.f32 0.01, %v5696_v5  ;;  %v5604_v30 = vadd.f32 %v10951_v44, %v14918_v29  ;;  %v11994_v31 = vld [vmem:[#allocation13 + $0x14] ss:$8 sps:$4 sm:$0xff]  }
 0x5c1   : > { %v10953_v63 = vpop.f32.mrf.mxu0  ;;  %v12001_v44 = vld [vmem:[#allocation13 + $0xe0] ss:$8 sps:$4 sm:$0xff]  }
 0x5c2   : > { %v5701_v10 = vadd.f32 %v11241_v49, %v5604_v30  ;;  %v10954_v25 = vadd.f32 %v10953_v63, %v10952_v52  ;;  %v5844_v12 = vsel %vm5748_vm13, %v5696_v5, %v5796_v37  ;;  %v11974_v49 = vld [vmem:[#allocation13 + $0x70] ss:$8 sps:$4 sm:$0xff]   ;;  %v12000_v5 = vld [vmem:[#allocation13 + $0xf4] ss:$8 sps:$4 sm:$0xff]   ;;  %v12007_v37 = vld [vmem:[#allocation13 + $0xc0] ss:$8 sps:$4 sm:$0xff]  }
 0x5c3   : > { %v5968_v8 = vpack.c.bf16 %v5844_v12, %v5841_v57  ;;  %v12006_v52 = vld [vmem:[#allocation13 + $0xd4] ss:$8 sps:$4 sm:$0xff]   ;;  %v12013_v63 = vld [vmem:[#allocation13 + $0xa0] ss:$8 sps:$4 sm:$0xff]   ;;  %v12022_v57 = vld [vmem:[#allocation13 + $0x170] ss:$8 sps:$4 sm:$0xff]  }
 0x5c4   : > { %v5607_v19 = vadd.f32 %v10954_v25, %v14918_v29  ;;  %v5799_v1 = vmul.f32 0.01, %v5701_v10  ;;  %vm5751_vm14 = vcmp.gt.f32.partialorder %v5701_v10, 0.0  ;;  %v11979_v29 = vld [vmem:[#allocation13 + $0x64] ss:$8 sps:$4 sm:$0xff]  }
 0x5c5   : > { %6578 = vmatmul.mubr.bf16.gmra.mxu1 %v5968_v8  ;;  %11271 = vmatprep.mubr.bf16.mxu0 %v5968_v8  ;;  %v12012_v30 = vld [vmem:[#allocation13 + $0xb4] ss:$8 sps:$4 sm:$0xff]   ;;  %v12019_v25 = vld [vmem:[#allocation13 + $0x80] ss:$8 sps:$4 sm:$0xff]   ;;  %v12027_v8 = vld [vmem:[#allocation13 + $0x164] ss:$8 sps:$4 sm:$0xff]  }
 0x5c6   : > { %v5704_v2 = vadd.f32 %v11242_v40, %v5607_v19  ;;  %6587 = vmatprep.mubr.bf16.mxu1 %v16060_v21  ;;  %v5847_v62 = vsel %vm5751_vm14, %v5701_v10, %v5799_v1  ;;  %v11977_v40 = vld [vmem:[#allocation13 + $0x60] ss:$8 sps:$4 sm:$0xff]   ;;  %v12018_v10 = vld [vmem:[#allocation13 + $0x94] ss:$8 sps:$4 sm:$0xff]   ;;  %v12028_v1 = vld [vmem:[#allocation13 + $0x150] ss:$8 sps:$4 sm:$0xff]  }
 0x5c7   : > { %v12024_v12 = vld [vmem:[#allocation13 + $0x174] ss:$8 sps:$4 sm:$0xff]  }
 0x5c8   : > { %vm5754_vm15 = vcmp.gt.f32.partialorder %v5704_v2, 0.0  ;;  %v5802_v53 = vmul.f32 0.01, %v5704_v2  ;;  %7421 = vmatprep.subr.bf16.mxu0 %v12024_v12 }
 0x5c9   : > { %7422 = vmatpush1.bf16.msra.mxu0 %v12022_v57 }
 0x5ca   : > { %v5850_v13 = vsel %vm5754_vm15, %v5704_v2, %v5802_v53  ;;  %7423 = vmatprep.subr.bf16.mxu0 %v12027_v8  ;;  %v12030_v2 = vld [vmem:[#allocation13 + $0x154] ss:$8 sps:$4 sm:$0xff]   ;;  %v12033_v53 = vld [vmem:[#allocation13 + $0x144] ss:$8 sps:$4 sm:$0xff]  }
 0x5cb   : > { %v5971_v58 = vpack.c.bf16 %v5850_v13, %v5847_v62 }
 0x5cd   : > { %6588 = vmatmul.mubr.bf16.gmra.mxu1 %v5971_v58  ;;  %11272 = vmatmul.mubr.bf16.gmra.mxu0 %v5971_v58  ;;  %v12034_v58 = vld [vmem:[#allocation13 + $0x130] ss:$8 sps:$4 sm:$0xff]  }
 0x5ce   : > { %6630 = vmatprep.mubr.bf16.mxu1 %v14819_v38  ;;  %7453 = vmatprep.mubr.bf16.mxu0 %v16060_v21  ;;  %v11983_v38 = vld [vmem:[#allocation13 + $0x40] ss:$8 sps:$4 sm:$0xff]  }
 0x5d5   : > { %6631 = vmatmul.mubr.bf16.vlgmr.msra.gmra.mxu1 %v14821_v33  ;;  %v11986_v33 = vld [vmem:[#allocation13 + $0x30] ss:$8 sps:$4 sm:$0xff]  }
 0x5d6   : > { %6638 = vmatprep.mubr.bf16.mxu1 %v14837_v4  ;;  %7309 = vmatpush1.bf16.msra.mxu1 %v11974_v49  ;;  %v11991_v4 = vld [vmem:[#allocation13 + $0x24] ss:$8 sps:$4 sm:$0xff]   ;;  %v12036_v49 = vld [vmem:[#allocation13 + $0x134] ss:$8 sps:$4 sm:$0xff]  }
 0x5d7   : > { %7310 = vmatprep.subr.bf16.mxu1 %v11979_v29 }
 0x5da   : > { %7311 = vmatpush1.bf16.msra.mxu1 %v11977_v40  ;;  %v12037_v40 = vld [vmem:[#allocation13 + $0x120] ss:$8 sps:$4 sm:$0xff]  }
 0x5db   : > { %7312 = vmatprep.subr.bf16.mxu1 %v11982_v39  ;;  %v12039_v39 = vld [vmem:[#allocation13 + $0x124] ss:$8 sps:$4 sm:$0xff]  }
 0x5dd   : > { %6639 = vmatmul.mubr.bf16.gmra.mxu1 %v14841_v56  ;;  %v11992_v56 = vld [vmem:[#allocation13 + $0x10] ss:$8 sps:$4 sm:$0xff]  }
 0x5de   : > { %6646 = vmatprep.mubr.bf16.mxu1 %v14856_v15  ;;  %7313 = vmatpush1.bf16.msra.mxu1 %v11980_v36  ;;  %v11997_v15 = vld [vmem:[#allocation13 + $0x4] ss:$8 sps:$4 sm:$0xff]  }
 0x5df   : > { %7314 = vmatprep.subr.bf16.mxu1 %v11985_v16  ;;  %v12042_v16 = vld [vmem:[#allocation13 + $0x114] ss:$8 sps:$4 sm:$0xff]  }
 0x5e2   : > { %7315 = vmatpush1.bf16.msra.mxu1 %v11983_v38  ;;  %v12040_v38 = vld [vmem:[#allocation13 + $0x110] ss:$8 sps:$4 sm:$0xff]  }
 0x5e3   : > { %7316 = vmatprep.subr.bf16.mxu1 %v11988_v34 }
 0x5e5   : > { %6647 = vmatmul.mubr.bf16.gmra.mxu1 %v14860_v27  ;;  %v11998_v27 = vld [vmem:[#allocation13 + $0xf0] ss:$8 sps:$4 sm:$0xff]  }
 0x5e6   : > { %6654 = vmatprep.mubr.bf16.mxu1 %v14873_v45  ;;  %7317 = vmatpush1.bf16.msra.mxu1 %v11986_v33  ;;  %v12003_v45 = vld [vmem:[#allocation13 + $0xe4] ss:$8 sps:$4 sm:$0xff]  }
 0x5e7   : > { %7318 = vmatprep.subr.bf16.mxu1 %v11991_v4  ;;  %v12045_v33 = vld [vmem:[#allocation13 + $0x104] ss:$8 sps:$4 sm:$0xff]   ;;  %v12043_v4 = vld [vmem:[#allocation13 + $0x100] ss:$8 sps:$4 sm:$0xff]  }
 0x5ea   : > { %7319 = vmatpush1.bf16.msra.mxu1 %v11989_v48 }
 0x5eb   : > { %7320 = vmatprep.subr.bf16.mxu1 %v11994_v31 }
 0x5ed   : > { %6655 = vmatmul.mubr.bf16.gmra.mxu1 %v14877_v61  ;;  %v12004_v61 = vld [vmem:[#allocation13 + $0xd0] ss:$8 sps:$4 sm:$0xff]  }
 0x5ee   : > { %6662 = vmatprep.mubr.bf16.mxu1 %v14887_v59  ;;  %7321 = vmatpush1.bf16.msra.mxu1 %v11992_v56  ;;  %v12009_v59 = vld [vmem:[#allocation13 + $0xc4] ss:$8 sps:$4 sm:$0xff]  }
 0x5ef   : > { %7322 = vmatprep.subr.bf16.mxu1 %v11997_v15 }
 0x5f2   : > { %7323 = vmatpush1.bf16.msra.mxu1 %v11995_v22 }
 0x5f3   : > { %7324 = vmatprep.subr.bf16.mxu1 %v12000_v5 }
 0x5f5   : > { %6663 = vmatmul.mubr.bf16.gmra.mxu1 %v14891_v43  ;;  %v12010_v43 = vld [vmem:[#allocation13 + $0xb0] ss:$8 sps:$4 sm:$0xff]  }
 0x5f6   : > { %6670 = vmatprep.mubr.bf16.mxu1 %v14899_v35  ;;  %7325 = vmatpush2.bf16.msra.mxu1 %v11998_v27  ;;  %v12015_v35 = vld [vmem:[#allocation13 + $0xa4] ss:$8 sps:$4 sm:$0xff]  }
 0x5f7   : > { %7326 = vmatprep.subr.bf16.mxu1 %v12003_v45 }
 0x5fa   : > { %7327 = vmatpush2.bf16.msra.mxu1 %v12001_v44  ;;  %v14975_v44 = vld [vmem:[%s16153_s22] sm:$0x7]  ;;  %s15829_s22 = scalar_lea.vmem %s16197_s7, %s10095_s29 }
 0x5fb   : > { %7328 = vmatprep.subr.bf16.mxu1 %v12006_v52 }
 0x5fd   : > { %6671 = vmatmul.mubr.bf16.gmra.mxu1 %v14902_v46  ;;  %v12016_v46 = vld [vmem:[#allocation13 + $0x90] ss:$8 sps:$4 sm:$0xff]  }
 0x5fe   : > { %6678 = vmatprep.mubr.bf16.mxu1 %v14909_v18  ;;  %7329 = vmatpush2.bf16.msra.mxu1 %v12004_v61  ;;  %v12021_v18 = vld [vmem:[#allocation13 + $0x84] ss:$8 sps:$4 sm:$0xff]   ;;  %v14981_v61 = vrot.slane %v14975_v44, %v16070_v28 }
 0x5ff   : > { %7330 = vmatprep.subr.bf16.mxu1 %v12009_v59  ;;  %v14985_v59 = vrot.slane %v14975_v44, %v16069_v3 }
 0x602   : > { %7331 = vmatpush2.bf16.msra.mxu1 %v12007_v37 }
 0x603   : > { %7332 = vmatprep.subr.bf16.mxu1 %v12012_v30 }
 0x605   : > { %6679 = vmatmul.mubr.bf16.gmra.mxu1 %v14912_v54 }
 0x606   : > { %6686 = vmatprep.mubr.bf16.mxu1 %v14920_v17  ;;  %7333 = vmatpush2.bf16.msra.mxu1 %v12010_v43  ;;  %v12025_v17 = vld [vmem:[#allocation13 + $0x160] ss:$8 sps:$4 sm:$0xff]  }
 0x607   : > { %7334 = vmatprep.subr.bf16.mxu1 %v12015_v35  ;;  %7424 = vmatpush1.bf16.msra.mxu0 %v12025_v17 }
 0x608   : > { %7425 = vmatprep.subr.bf16.mxu0 %v12030_v2 }
 0x60a   : > { %7335 = vmatpush2.bf16.msra.mxu1 %v12013_v63 }
 0x60b   : > { %7336 = vmatprep.subr.bf16.mxu1 %v12018_v10  ;;  %7426 = vmatpush1.bf16.msra.mxu0 %v12028_v1 }
 0x60c   : > { %7427 = vmatprep.subr.bf16.mxu0 %v12033_v53 }
 0x60d   : > { %6687 = vmatmul.mubr.bf16.gmra.mxu1 %v14922_v42  ;;  %v12031_v42 = vld [vmem:[#allocation13 + $0x140] ss:$8 sps:$4 sm:$0xff]  }
 0x60e   : > { %7337 = vmatpush2.bf16.msra.mxu1 %v12016_v46 }
 0x60f   : > { %7338 = vmatprep.subr.bf16.mxu1 %v12021_v18  ;;  %7428 = vmatpush1.bf16.msra.mxu0 %v12031_v42 }
 0x610   : > { %7429 = vmatprep.subr.bf16.mxu0 %v12036_v49 }
 0x611   : > { %v6406_v54 = vpop.f32.mrf.mxu0 }
 0x612   : > { %7339 = vmatpush2.bf16.msra.mxu1 %v12019_v25  ;;  %v6407_v43 = vadd.f32 %v6406_v54, %v14981_v61 }
 0x613   : > { %v6408_v19 = vpop.f32.mrf.mxu0  ;;  %7430 = vmatpush1.bf16.msra.mxu0 %v12034_v58 }
 0x614   : > { %7431 = vmatprep.subr.bf16.mxu0 %v12039_v39  ;;  %v6409_v35 = vadd.f32 %v6408_v19, %v14985_v59 }
 0x615   : > { %v6410_v62 = vpop.f32.mrf.mxu0 }
 0x616   : > { %v6411_v10 = vadd.f32 %v6410_v62, %v14981_v61 }
 0x617   : > { %v6412_v13 = vpop.f32.mrf.mxu0  ;;  %7432 = vmatpush1.bf16.msra.mxu0 %v12037_v40 }
 0x618   : > { %7433 = vmatprep.subr.bf16.mxu0 %v12042_v16  ;;  %v6413_v17 = vadd.f32 %v6412_v13, %v14985_v59 }
 0x61a   : > { %v6416_v29 = vpop.f32.mrf.mxu0 }
 0x61b   : > { %7434 = vmatpush1.bf16.msra.mxu0 %v12040_v38  ;;  %v6417_v58 = vadd.f32 %v6416_v29, %v14981_v61 }
 0x61c   : > { %v6418_v36 = vpop.f32.mrf.mxu0  ;;  %7435 = vmatprep.subr.bf16.mxu0 %v12045_v33 }
 0x61d   : > { %v6419_v62 = vadd.f32 %v6418_v36, %v14985_v59 }
 0x61e   : > { %v6420_v34 = vpop.f32.mrf.mxu0 }
 0x61f   : > { %7436 = vmatpush1.bf16.msra.mxu0 %v12043_v4  ;;  %v6421_v49 = vadd.f32 %v6420_v34, %v14981_v61 }
 0x620   : > { %v6422_v48 = vpop.f32.mrf.mxu0 }
 0x621   : > { %v6423_v29 = vadd.f32 %v6422_v48, %v14985_v59 }
 0x622   : > { %v6426_v31 = vpop.f32.mrf.mxu0 }
 0x624   : > { %v6428_v56 = vpop.f32.mrf.mxu0 }
 0x625   : > { %v6429_v48 = vadd.f32 %v6428_v56, %v14985_v59 }
 0x626   : > { %v6430_v15 = vpop.f32.mrf.mxu0 }
 0x628   : > { %v14966_v22 = vpop.f32.mrf.mxu0 }
 0x62a   : > { %v14968_v5 = vpop.f32.mrf.mxu0 }
 0x62c   : > { %v14970_v27 = vpop.f32.mrf.mxu0 }
 0x62e   : > { %v14972_v45 = vpop.f32.mrf.mxu0 }
 0x630   : > { %v14977_v52 = vpop.f32.mrf.mxu0 }
 0x632   : > { %v14987_v37 = vpop.f32.mrf.mxu0 }
 0x634   : > { %v14992_v46 = vpop.f32.mrf.mxu0 }
 0x636   : > { %v14995_v1 = vpop.f32.mrf.mxu0 }
 0x638   : > { %v15004_v16 = vpop.f32.mrf.mxu0 }
 0x655   : > { %v6519_v30 = vpop.f32.mrf.mxu1 }
 0x656   : > { %v6520_v18 = vadd.f32 %v6519_v30, %v6407_v43 }
 0x657   : > { %v6521_v63 = vpop.f32.mrf.mxu1 }
 0x658   : > { %v6522_v25 = vadd.f32 %v6521_v63, %v6409_v35  ;;  %v6792_v2 = vadd.f32 %v6520_v18, %v14241_v50 }
 0x659   : > { %v6523_v57 = vpop.f32.mrf.mxu1 }
 0x65a   : > { %v6524_v12 = vadd.f32 %v6523_v57, %v6411_v10  ;;  %v6793_v54 = vadd.f32 %v6522_v25, %v14253_v0  ;;  %v6888_v38 = vmul.f32 0.01, %v6792_v2  ;;  %vm6840_vm3 = vcmp.gt.f32.partialorder %v6792_v2, 0.0 }
 0x65b   : > { %v6525_v8 = vpop.f32.mrf.mxu1 }
 0x65c   : > { %v6795_v19 = vadd.f32 %v6524_v12, %v14267_v9  ;;  %v6526_v53 = vadd.f32 %v6525_v8, %v6413_v17  ;;  %v6889_v50 = vmul.f32 0.01, %v6793_v54  ;;  %vm6841_vm1 = vcmp.gt.f32.partialorder %v6793_v54, 0.0 }
 0x65d   : > { %v6529_v42 = vpop.f32.mrf.mxu1  ;;  %v6936_v18 = vsel %vm6840_vm3, %v6792_v2, %v6888_v38  ;;  %v6427_v8 = vadd.f32 %v6426_v31, %v14981_v61 }
 0x65e   : > { %v6891_v40 = vmul.f32 0.01, %v6795_v19  ;;  %v6796_v13 = vadd.f32 %v6526_v53, %v14294_v14  ;;  %vm6843_vm0 = vcmp.gt.f32.partialorder %v6795_v19, 0.0  ;;  %v6530_v33 = vadd.f32 %v6529_v42, %v6417_v58  ;;  %v15007_v14 = vpop.f32.mrf.mxu0 }
 0x65f   : > { %v6531_v39 = vpop.f32.mrf.mxu1  ;;  %v6937_v10 = vsel %vm6841_vm1, %v6793_v54, %v6889_v50  ;;  %v6431_v53 = vadd.f32 %v6430_v15, %v14981_v61  ;;  %v6433_v15 = vadd.f32 %v14966_v22, %v14985_v59 }
 0x660   : > { %v6532_v0 = vadd.f32 %v6531_v39, %v6419_v62  ;;  %v6892_v9 = vmul.f32 0.01, %v6796_v13  ;;  %vm6844_vm2 = vcmp.gt.f32.partialorder %v6796_v13, 0.0  ;;  %v6939_v34 = vsel %vm6843_vm0, %v6795_v19, %v6891_v40 }
 0x661   : > { %v6533_v4 = vpop.f32.mrf.mxu1  ;;  %v6798_v25 = vadd.f32 %v6530_v33, %v14310_v55  ;;  %v7033_v19 = vpack.c.bf16 %v6939_v34, %v6936_v18 }
 0x662   : > { %v6534_v36 = vadd.f32 %v6533_v4, %v6421_v49  ;;  %v6940_v43 = vsel %vm6844_vm2, %v6796_v13, %v6892_v9  ;;  %v6799_v35 = vadd.f32 %v6532_v0, %v14319_v32  ;;  %v16154_v0 = vld [vmem:[#allocation50_spill] sm:$0xff] }
 0x663   : > { %v6535_v30 = vpop.f32.mrf.mxu1  ;;  %v7034_v17 = vpack.c.bf16 %v6940_v43, %v6937_v10  ;;  %v6894_v58 = vmul.f32 0.01, %v6798_v25  ;;  %vm6846_vm7 = vcmp.gt.f32.partialorder %v6798_v25, 0.0  ;;  %v6437_v43 = vadd.f32 %v14968_v5, %v14981_v61  ;;  %v16155_v10 = vld [vmem:[#allocation49_spill] sm:$0xff] }
 0x664   : > { %v6801_v63 = vadd.f32 %v6534_v36, %v14327_v51  ;;  %v6536_v57 = vadd.f32 %v6535_v30, %v6423_v29  ;;  %v15016_v51 = vpop.f32.mrf.mxu0  ;;  %v6895_v2 = vmul.f32 0.01, %v6799_v35  ;;  %vm6847_vm5 = vcmp.gt.f32.partialorder %v6799_v35, 0.0 }
 0x665   : > { %v6539_v12 = vpop.f32.mrf.mxu1  ;;  %7340 = vmatprep.mubr.bf16.mxu1 %v7034_v17  ;;  %v6942_v4 = vsel %vm6846_vm7, %v6798_v25, %v6894_v58  ;;  %v6439_v30 = vadd.f32 %v14970_v27, %v14985_v59 }
 0x666   : > { %v6897_v42 = vmul.f32 0.01, %v6801_v63  ;;  %v6802_v62 = vadd.f32 %v6536_v57, %v14335_v11  ;;  %vm6849_vm4 = vcmp.gt.f32.partialorder %v6801_v63, 0.0  ;;  %v6540_v55 = vadd.f32 %v6539_v12, %v6427_v8  ;;  %7341 = vmatmul.mubr.bf16.vlgmr.msra.gmra.mxu1 %v7033_v19  ;;  %v15020_v39 = vpop.f32.mrf.mxu0 }
 0x667   : > { %v6541_v32 = vpop.f32.mrf.mxu1  ;;  %v6943_v33 = vsel %vm6847_vm5, %v6799_v35, %v6895_v2  ;;  %v16157_v2 = vld [vmem:[#allocation54_spill] sm:$0xff] }
 0x668   : > { %v6542_v54 = vadd.f32 %v6541_v32, %v6429_v48  ;;  %v6898_v31 = vmul.f32 0.01, %v6802_v62  ;;  %vm6850_vm6 = vcmp.gt.f32.partialorder %v6802_v62, 0.0  ;;  %v6945_v11 = vsel %vm6849_vm4, %v6801_v63, %v6897_v42  ;;  %v15032_v35 = vpop.f32.mrf.mxu0 }
 0x669   : > { %v6543_v49 = vpop.f32.mrf.mxu1  ;;  %v6804_v38 = vadd.f32 %v6540_v55, %v14349_v23  ;;  %v7036_v22 = vpack.c.bf16 %v6945_v11, %v6942_v4  ;;  %v6441_v63 = vadd.f32 %v14972_v45, %v14981_v61  ;;  %v6443_v45 = vadd.f32 %v14977_v52, %v14985_v59 }
 0x66a   : > { %v6544_v56 = vadd.f32 %v6543_v49, %v6431_v53  ;;  %v6946_v13 = vsel %vm6850_vm6, %v6802_v62, %v6898_v31  ;;  %v6805_v50 = vadd.f32 %v6542_v54, %v14357_v24  ;;  %v15036_v42 = vpop.f32.mrf.mxu0  ;;  %v16156_v62 = vld [vmem:[#allocation53_spill] sm:$0xff]  ;;  %v16158_v31 = vld [vmem:[#allocation52_spill] sm:$0xff]  ;;  %v6449_v52 = vadd.f32 %v14992_v46, %v14985_v59 }
 0x66b   : > { %v6545_v40 = vpop.f32.mrf.mxu1  ;;  %v7037_v34 = vpack.c.bf16 %v6946_v13, %v6943_v33  ;;  %v6900_v25 = vmul.f32 0.01, %v6804_v38  ;;  %vm6852_vm11 = vcmp.gt.f32.partialorder %v6804_v38, 0.0  ;;  %v16159_v33 = vld [vmem:[#allocation55_spill] sm:$0xff] }
 0x66c   : > { %v6807_v9 = vadd.f32 %v6544_v56, %v16154_v0  ;;  %v6546_v36 = vadd.f32 %v6545_v40, %v6433_v15  ;;  %v6901_v57 = vmul.f32 0.01, %v6805_v50  ;;  %vm6853_vm9 = vcmp.gt.f32.partialorder %v6805_v50, 0.0 }
 0x66d   : > { %v6549_v29 = vpop.f32.mrf.mxu1  ;;  %7350 = vmatprep.mubr.bf16.mxu1 %v7037_v34  ;;  %v6948_v58 = vsel %vm6852_vm11, %v6804_v38, %v6900_v25  ;;  %v6447_v40 = vadd.f32 %v14987_v37, %v14981_v61  ;;  %v6451_v0 = vadd.f32 %v14995_v1, %v14981_v61  ;;  %v6453_v1 = vadd.f32 %v15004_v16, %v14985_v59  ;;  %v16161_v25 = vld [vmem:[#allocation57_spill] sm:$0xff] }
 0x66e   : > { %v6903_v23 = vmul.f32 0.01, %v6807_v9  ;;  %v6808_v24 = vadd.f32 %v6546_v36, %v16155_v10  ;;  %vm6855_vm8 = vcmp.gt.f32.partialorder %v6807_v9, 0.0  ;;  %7351 = vmatmul.mubr.bf16.gmra.mxu1 %v7036_v22  ;;  %v6550_v17 = vadd.f32 %v6549_v29, %v6437_v43 }
 0x66f   : > { %v6551_v18 = vpop.f32.mrf.mxu1  ;;  %v6949_v54 = vsel %vm6853_vm9, %v6805_v50, %v6901_v57  ;;  %v6468_v50 = vpop.f32.mrf.mxu0  ;;  %v6457_v16 = vadd.f32 %v15007_v14, %v14981_v61 }
 0x670   : > { %v6552_v12 = vadd.f32 %v6551_v18, %v6439_v30  ;;  %v6904_v27 = vmul.f32 0.01, %v6808_v24  ;;  %vm6856_vm10 = vcmp.gt.f32.partialorder %v6808_v24, 0.0  ;;  %v6951_v48 = vsel %vm6855_vm8, %v6807_v9, %v6903_v23 }
 0x671   : > { %v6553_v8 = vpop.f32.mrf.mxu1  ;;  %v6810_v49 = vadd.f32 %v6550_v17, %v16158_v31  ;;  %v7039_v13 = vpack.c.bf16 %v6951_v48, %v6948_v58  ;;  %v6470_v10 = vpop.f32.mrf.mxu0 }
 0x672   : > { %v6554_v5 = vadd.f32 %v6553_v8, %v6441_v63  ;;  %v6952_v53 = vsel %vm6856_vm10, %v6808_v24, %v6904_v27  ;;  %v6811_v32 = vadd.f32 %v6552_v12, %v16156_v62  ;;  %v16160_v24 = vld [vmem:[#allocation56_spill] sm:$0xff]  ;;  %v16162_v12 = vld [vmem:[#allocation58_spill] sm:$0xff]  ;;  %v6461_v62 = vadd.f32 %v15020_v39, %v14981_v61 }
 0x673   : > { %v6555_v19 = vpop.f32.mrf.mxu1  ;;  %v7040_v11 = vpack.c.bf16 %v6952_v53, %v6949_v54  ;;  %v6906_v30 = vmul.f32 0.01, %v6810_v49  ;;  %vm6858_vm15 = vcmp.gt.f32.partialorder %v6810_v49, 0.0  ;;  %v6463_v39 = vadd.f32 %v15032_v35, %v14985_v59 }
 0x674   : > { %v6813_v55 = vadd.f32 %v6554_v5, %v16157_v2  ;;  %v6556_v56 = vadd.f32 %v6555_v19, %v6443_v45  ;;  %v6907_v36 = vmul.f32 0.01, %v6811_v32  ;;  %vm6859_vm13 = vcmp.gt.f32.partialorder %v6811_v32, 0.0 }
 0x675   : > { %v6559_v15 = vpop.f32.mrf.mxu1  ;;  %7360 = vmatprep.mubr.bf16.mxu1 %v7040_v11  ;;  %v6954_v8 = vsel %vm6858_vm15, %v6810_v49, %v6906_v30  ;;  %v6459_v19 = vadd.f32 %v15016_v51, %v14985_v59  ;;  %v6469_v35 = vadd.f32 %v6468_v50, %v14985_v59 }
 0x676   : > { %v6909_v9 = vmul.f32 0.01, %v6813_v55  ;;  %v6814_v4 = vadd.f32 %v6556_v56, %v16159_v33  ;;  %vm6861_vm12 = vcmp.gt.f32.partialorder %v6813_v55, 0.0  ;;  %v6560_v29 = vadd.f32 %v6559_v15, %v6447_v40  ;;  %7361 = vmatmul.mubr.bf16.gmra.mxu1 %v7039_v13  ;;  %v16163_v13 = vld [vmem:[#allocation61_spill] sm:$0xff] }
 0x677   : > { %v6561_v38 = vpop.f32.mrf.mxu1  ;;  %v6955_v17 = vsel %vm6859_vm13, %v6811_v32, %v6907_v36  ;;  %v6472_v32 = vpop.f32.mrf.mxu0  ;;  %v16165_v36 = vld [vmem:[#allocation59_spill] sm:$0xff] }
 0x678   : > { %v6562_v34 = vadd.f32 %v6561_v38, %v6449_v52  ;;  %v6910_v37 = vmul.f32 0.01, %v6814_v4  ;;  %vm6862_vm14 = vcmp.gt.f32.partialorder %v6814_v4, 0.0  ;;  %v6957_v43 = vsel %vm6861_vm12, %v6813_v55, %v6909_v9  ;;  %v16164_v9 = vld [vmem:[#allocation62_spill] sm:$0xff] }
 0x679   : > { %v6563_v22 = vpop.f32.mrf.mxu1  ;;  %v6816_v18 = vadd.f32 %v6560_v29, %v16160_v24  ;;  %v7042_v53 = vpack.c.bf16 %v6957_v43, %v6954_v8  ;;  %v6476_v52 = vpop.f32.mrf.mxu0 }
 0x67a   : > { %v6564_v46 = vadd.f32 %v6563_v22, %v6451_v0  ;;  %v6958_v23 = vsel %vm6862_vm14, %v6814_v4, %v6910_v37  ;;  %v6817_v57 = vadd.f32 %v6562_v34, %v16161_v25  ;;  %v6467_v22 = vadd.f32 %v15036_v42, %v14981_v61 }
 0x67b   : > { %v6565_v63 = vpop.f32.mrf.mxu1  ;;  %v7043_v48 = vpack.c.bf16 %v6958_v23, %v6955_v17  ;;  %v6912_v58 = vmul.f32 0.01, %v6816_v18  ;;  %vm6864_vm3 = vcmp.gt.f32.partialorder %v6816_v18, 0.0  ;;  %v6478_v24 = vpop.f32.mrf.mxu0 }
 0x67c   : > { %v6819_v27 = vadd.f32 %v6564_v46, %v16162_v12  ;;  %v6566_v5 = vadd.f32 %v6565_v63, %v6453_v1  ;;  %v6913_v31 = vmul.f32 0.01, %v6817_v57  ;;  %vm6865_vm1 = vcmp.gt.f32.partialorder %v6817_v57, 0.0 }
 0x67d   : > { %v6569_v45 = vpop.f32.mrf.mxu1  ;;  %7370 = vmatprep.mubr.bf16.mxu1 %v7043_v48  ;;  %v6960_v38 = vsel %vm6864_vm3, %v6816_v18, %v6912_v58  ;;  %v6471_v1 = vadd.f32 %v6470_v10, %v14981_v61  ;;  %v6473_v10 = vadd.f32 %v6472_v32, %v14985_v59  ;;  %v16166_v48 = vld [vmem:[#allocation63_spill] sm:$0xff]  ;;  %v6477_v32 = vadd.f32 %v6476_v52, %v14981_v61 }
 0x67e   : > { %v6915_v2 = vmul.f32 0.01, %v6819_v27  ;;  %v6820_v55 = vadd.f32 %v6566_v5, %v14469_v7  ;;  %vm6867_vm0 = vcmp.gt.f32.partialorder %v6819_v27, 0.0  ;;  %7371 = vmatmul.mubr.bf16.gmra.mxu1 %v7042_v53  ;;  %v6570_v56 = vadd.f32 %v6569_v45, %v6457_v16  ;;  %v6480_v5 = vpop.f32.mrf.mxu0  ;;  %v16167_v53 = vld [vmem:[#allocation64_spill] sm:$0xff] }
 0x67f   : > { %v6571_v54 = vpop.f32.mrf.mxu1  ;;  %v6961_v4 = vsel %vm6865_vm1, %v6817_v57, %v6913_v31  ;;  %v6479_v31 = vadd.f32 %v6478_v24, %v14985_v59 }
 0x680   : > { %v6572_v49 = vadd.f32 %v6571_v54, %v6459_v19  ;;  %v6916_v51 = vmul.f32 0.01, %v6820_v55  ;;  %vm6868_vm2 = vcmp.gt.f32.partialorder %v6820_v55, 0.0  ;;  %v6963_v11 = vsel %vm6867_vm0, %v6819_v27, %v6915_v2 }
 0x681   : > { %v6573_v15 = vpop.f32.mrf.mxu1  ;;  %v6822_v29 = vadd.f32 %v6570_v56, %v16165_v36  ;;  %v7045_v46 = vpack.c.bf16 %v6963_v11, %v6960_v38  ;;  %v16169_v38 = vld [vmem:[#allocation66_spill] sm:$0xff] }
 0x682   : > { %v6574_v14 = vadd.f32 %v6573_v15, %v6461_v62  ;;  %v6964_v40 = vsel %vm6868_vm2, %v6820_v55, %v6916_v51  ;;  %v6823_v0 = vadd.f32 %v6572_v49, %v16163_v13  ;;  %v6481_v51 = vadd.f32 %v6480_v5, %v14981_v61  ;;  %v16168_v15 = vld [vmem:[#allocation65_spill] sm:$0xff] }
 0x683   : > { %v6575_v7 = vpop.f32.mrf.mxu1  ;;  %v7046_v37 = vpack.c.bf16 %v6964_v40, %v6961_v4  ;;  %v6918_v12 = vmul.f32 0.01, %v6822_v29  ;;  %vm6870_vm7 = vcmp.gt.f32.partialorder %v6822_v29, 0.0 }
 0x684   : > { %v6825_v33 = vadd.f32 %v6574_v14, %v16164_v9  ;;  %v6576_v34 = vadd.f32 %v6575_v7, %v6463_v39  ;;  %v6919_v18 = vmul.f32 0.01, %v6823_v0  ;;  %vm6871_vm5 = vcmp.gt.f32.partialorder %v6823_v0, 0.0  ;;  %v6482_v39 = vpop.f32.mrf.mxu0 }
 0x685   : > { %v6579_v30 = vpop.f32.mrf.mxu1  ;;  %7380 = vmatprep.mubr.bf16.mxu1 %v7046_v37  ;;  %v6966_v2 = vsel %vm6870_vm7, %v6822_v29, %v6918_v12  ;;  %v6483_v61 = vadd.f32 %v6482_v39, %v14985_v59  ;;  %v16172_v12 = vld [vmem:[#allocation69_spill] sm:$0xff] }
 0x686   : > { %v6921_v43 = vmul.f32 0.01, %v6825_v33  ;;  %v6826_v63 = vadd.f32 %v6576_v34, %v14512_v41  ;;  %vm6873_vm4 = vcmp.gt.f32.partialorder %v6825_v33, 0.0  ;;  %v6580_v25 = vadd.f32 %v6579_v30, %v6467_v22  ;;  %7381 = vmatmul.mubr.bf16.gmra.mxu1 %v7045_v46  ;;  %v16170_v30 = vld [vmem:[#allocation68_spill] sm:$0xff]  ;;  %v16171_v46 = vld [vmem:[#allocation67_spill] sm:$0xff] }
 0x687   : > { %v6581_v23 = vpop.f32.mrf.mxu1  ;;  %v6967_v62 = vsel %vm6871_vm5, %v6823_v0, %v6919_v18  ;;  %v15084_v18 = vrot.slane %v14975_v44, %v13597_v60 }
 0x688   : > { %v6582_v57 = vadd.f32 %v6581_v23, %v6469_v35  ;;  %v6922_v27 = vmul.f32 0.01, %v6826_v63  ;;  %vm6874_vm6 = vcmp.gt.f32.partialorder %v6826_v63, 0.0  ;;  %v6969_v17 = vsel %vm6873_vm4, %v6825_v33, %v6921_v43  ;;  %v11261_v33 = vpop.f32.mrf.mxu0 }
 0x689   : > { %v6583_v42 = vpop.f32.mrf.mxu1  ;;  %v6828_v45 = vadd.f32 %v6580_v25, %v14530_v47  ;;  %v7048_v49 = vpack.c.bf16 %v6969_v17, %v6966_v2 }
 0x68a   : > { %v6584_v50 = vadd.f32 %v6583_v42, %v6471_v1  ;;  %v6970_v41 = vsel %vm6874_vm6, %v6826_v63, %v6922_v27  ;;  %v6829_v19 = vadd.f32 %v6582_v57, %v16166_v48  ;;  %v6729_v59 = vpop.f32.mrf.mxu0 }
 0x68b   : > { %v6585_v8 = vpop.f32.mrf.mxu1  ;;  %v7049_v58 = vpack.c.bf16 %v6970_v41, %v6967_v62  ;;  %v6924_v11 = vmul.f32 0.01, %v6828_v45  ;;  %vm6876_vm11 = vcmp.gt.f32.partialorder %v6828_v45, 0.0 }
 0x68c   : > { %v6831_v16 = vadd.f32 %v6584_v50, %v16167_v53  ;;  %v6586_v55 = vadd.f32 %v6585_v8, %v6473_v10  ;;  %v6925_v7 = vmul.f32 0.01, %v6829_v19  ;;  %vm6877_vm9 = vcmp.gt.f32.partialorder %v6829_v19, 0.0  ;;  %v11262_v60 = vpop.f32.mrf.mxu0 }
 0x68d   : > { %v6589_v54 = vpop.f32.mrf.mxu1  ;;  %7390 = vmatprep.mubr.bf16.mxu1 %v7049_v58  ;;  %v6972_v35 = vsel %vm6876_vm11, %v6828_v45, %v6924_v11 }
 0x68e   : > { %v6927_v56 = vmul.f32 0.01, %v6831_v16  ;;  %v6832_v14 = vadd.f32 %v6586_v55, %v16168_v15  ;;  %vm6879_vm8 = vcmp.gt.f32.partialorder %v6831_v16, 0.0  ;;  %7391 = vmatmul.mubr.bf16.gmra.mxu1 %v7048_v49  ;;  %v6590_v0 = vadd.f32 %v6589_v54, %v6477_v32  ;;  %v16173_v55 = vld [vmem:[#allocation70_spill] sm:$0xff]  ;;  %v6732_v49 = vpop.f32.mrf.mxu0 }
 0x68f   : > { %v6591_v47 = vpop.f32.mrf.mxu1  ;;  %v6973_v22 = vsel %vm6877_vm9, %v6829_v19, %v6925_v7 }
 0x690   : > { %v6592_v40 = vadd.f32 %v6591_v47, %v6479_v31  ;;  %v6928_v13 = vmul.f32 0.01, %v6832_v14  ;;  %vm6880_vm10 = vcmp.gt.f32.partialorder %v6832_v14, 0.0  ;;  %v6975_v4 = vsel %vm6879_vm8, %v6831_v16, %v6927_v56  ;;  %v16174_v47 = vld [vmem:[#allocation71_spill] sm:$0xff]  ;;  %v11265_v7 = vpop.f32.mrf.mxu0 }
 0x691   : > { %v6593_v9 = vpop.f32.mrf.mxu1  ;;  %v6834_v1 = vadd.f32 %v6590_v0, %v16171_v46  ;;  %v7051_v24 = vpack.c.bf16 %v6975_v4, %v6972_v35 }
 0x692   : > { %v6594_v52 = vadd.f32 %v6593_v9, %v6481_v51  ;;  %v6835_v36 = vadd.f32 %v6592_v40, %v16169_v38  ;;  %v6976_v34 = vsel %vm6880_vm10, %v6832_v14, %v6928_v13 }
 0x693   : > { %v6595_v29 = vpop.f32.mrf.mxu1  ;;  %v7052_v23 = vpack.c.bf16 %v6976_v34, %v6973_v22  ;;  %v6930_v10 = vmul.f32 0.01, %v6834_v1  ;;  %vm6882_vm15 = vcmp.gt.f32.partialorder %v6834_v1, 0.0 }
 0x694   : > { %v6837_v37 = vadd.f32 %v6594_v52, %v16170_v30  ;;  %v6596_v43 = vadd.f32 %v6595_v29, %v6483_v61  ;;  %v6931_v25 = vmul.f32 0.01, %v6835_v36  ;;  %vm6883_vm12 = vcmp.gt.f32.partialorder %v6835_v36, 0.0  ;;  %v6745_v29 = vpop.f32.mrf.mxu0 }
 0x695   : > { %v10987_v63 = vpop.f32.mrf.mxu1  ;;  %7400 = vmatprep.mubr.bf16.mxu1 %v7052_v23  ;;  %v6978_v62 = vsel %vm6882_vm15, %v6834_v1, %v6930_v10  ;;  %v16175_v1 = vld [vmem:[#allocation72_spill] sm:$0xff] }
 0x696   : > { %v6933_v57 = vmul.f32 0.01, %v6837_v37  ;;  %v6838_v27 = vadd.f32 %v6596_v43, %v16172_v12  ;;  %vm6885_vm13 = vcmp.gt.f32.partialorder %v6837_v37, 0.0  ;;  %7401 = vmatmul.mubr.bf16.gmra.mxu1 %v7051_v24  ;;  %v6979_v45 = vsel %vm6883_vm12, %v6835_v36, %v6931_v25 }
 0x697   : > { %v10988_v42 = vpop.f32.mrf.mxu1 }
 0x698   : > { %v10989_v50 = vadd.f32 %v10988_v42, %v10987_v63  ;;  %v6934_v17 = vmul.f32 0.01, %v6838_v27  ;;  %vm6886_vm14 = vcmp.gt.f32.partialorder %v6838_v27, 0.0  ;;  %v6981_v44 = vsel %vm6885_vm13, %v6837_v37, %v6933_v57  ;;  %v11266_v63 = vpop.f32.mrf.mxu0  ;;  %v16176_v57 = vld [vmem:[#allocation73_spill] sm:$0xff] }
 0x699   : > { %v10990_v8 = vpop.f32.mrf.mxu1  ;;  %v7054_v31 = vpack.c.bf16 %v6981_v44, %v6978_v62 }
 0x69a   : > { %v6633_v41 = vadd.f32 %v10989_v50, %v15084_v18  ;;  %v6982_v48 = vsel %vm6886_vm14, %v6838_v27, %v6934_v17  ;;  %v6748_v10 = vpop.f32.mrf.mxu0 }
 0x69b   : > { %v10991_v5 = vpop.f32.mrf.mxu1  ;;  %v7055_v16 = vpack.c.bf16 %v6982_v48, %v6979_v45  ;;  %v16177_v45 = vld [vmem:[#allocation74_spill] sm:$0xff] }
 0x69c   : > { %v6730_v19 = vadd.f32 %v6729_v59, %v6633_v41  ;;  %v10992_v53 = vadd.f32 %v10991_v5, %v10990_v8 }
 0x69d   : > { %v10993_v2 = vpop.f32.mrf.mxu1  ;;  %7410 = vmatprep.mubr.bf16.mxu1 %v7055_v16 }
 0x69e   : > { %v6794_v54 = vadd.f32 %v6730_v19, %v16173_v55  ;;  %v6636_v58 = vadd.f32 %v10992_v53, %v15084_v18  ;;  %7411 = vmatmul.mubr.bf16.gmra.mxu1 %v7054_v31  ;;  %v11269_v53 = vpop.f32.mrf.mxu0 }
 0x69f   : > { %v10994_v32 = vpop.f32.mrf.mxu1 }
 0x6a0   : > { %v6733_v51 = vadd.f32 %v6732_v49, %v6636_v58  ;;  %v10995_v56 = vadd.f32 %v10994_v32, %v10993_v2  ;;  %v6890_v14 = vmul.f32 0.01, %v6794_v54  ;;  %vm6842_vm0 = vcmp.gt.f32.partialorder %v6794_v54, 0.0  ;;  %v16178_v58 = vld [vmem:[#allocation75_spill] sm:$0xff] }
 0x6a1   : > { %v10996_v15 = vpop.f32.mrf.mxu1 }
 0x6a2   : > { %v6797_v39 = vadd.f32 %v6733_v51, %v16174_v47  ;;  %v6641_v11 = vadd.f32 %v10995_v56, %v15084_v18  ;;  %v6938_v61 = vsel %vm6842_vm0, %v6794_v54, %v6890_v14  ;;  %v6761_v56 = vpop.f32.mrf.mxu0 }
 0x6a3   : > { %v10997_v40 = vpop.f32.mrf.mxu1 }
 0x6a4   : > { %vm6845_vm1 = vcmp.gt.f32.partialorder %v6797_v39, 0.0  ;;  %v6893_v13 = vmul.f32 0.01, %v6797_v39  ;;  %v6738_v0 = vadd.f32 %v11261_v33, %v6641_v11  ;;  %v10998_v9 = vadd.f32 %v10997_v40, %v10996_v15 }
 0x6a5   : > { %v10999_v52 = vpop.f32.mrf.mxu1 }
 0x6a6   : > { %v6941_v4 = vsel %vm6845_vm1, %v6797_v39, %v6893_v13  ;;  %v6800_v38 = vadd.f32 %v6738_v0, %v14643_v20  ;;  %v6644_v36 = vadd.f32 %v10998_v9, %v15084_v18  ;;  %v11270_v0 = vpop.f32.mrf.mxu0 }
 0x6a7   : > { %v7035_v34 = vpack.c.bf16 %v6941_v4, %v6938_v61  ;;  %v11000_v30 = vpop.f32.mrf.mxu1 }
 0x6a8   : > { %v6741_v37 = vadd.f32 %v11262_v60, %v6644_v36  ;;  %v11001_v22 = vadd.f32 %v11000_v30, %v10999_v52  ;;  %v6896_v46 = vmul.f32 0.01, %v6800_v38  ;;  %vm6848_vm2 = vcmp.gt.f32.partialorder %v6800_v38, 0.0  ;;  %v16179_v36 = vld [vmem:[#allocation76_spill] sm:$0xff] }
 0x6a9   : > { %v11002_v35 = vpop.f32.mrf.mxu1  ;;  %7454 = vmatmul.mubr.bf16.vlgmr.msra.gmra.mxu0 %v7035_v34 }
 0x6aa   : > { %v6803_v43 = vadd.f32 %v6741_v37, %v16175_v1  ;;  %v6649_v33 = vadd.f32 %v11001_v22, %v15084_v18  ;;  %7463 = vmatprep.mubr.bf16.mxu0 %v16060_v21  ;;  %v6944_v42 = vsel %vm6848_vm2, %v6800_v38, %v6896_v46  ;;  %v6764_v22 = vpop.f32.mrf.mxu0  ;;  %v12046_v46 = vld [vmem:[#allocation15 + $0x70] ss:$8 sps:$4 sm:$0xff]   ;;  %v12048_v1 = vld [vmem:[#allocation15 + $0x74] ss:$8 sps:$4 sm:$0xff]  }
 0x6ab   : > { %v11003_v23 = vpop.f32.mrf.mxu1  ;;  %7938 = vmatprep.subr.bf16.mxu0 %v12048_v1 }
 0x6ac   : > { %v6899_v20 = vmul.f32 0.01, %v6803_v43  ;;  %v6746_v24 = vadd.f32 %v6745_v29, %v6649_v33  ;;  %v11004_v59 = vadd.f32 %v11003_v23, %v11002_v35  ;;  %vm6851_vm3 = vcmp.gt.f32.partialorder %v6803_v43, 0.0  ;;  %7939 = vmatpush1.bf16.msra.mxu0 %v12046_v46  ;;  %v12063_v46 = vld [vmem:[#allocation15 + $0x24] ss:$8 sps:$4 sm:$0xff]  }
 0x6ad   : > { %v11005_v25 = vpop.f32.mrf.mxu1 }
 0x6ae   : > { %v6806_v12 = vadd.f32 %v6746_v24, %v16176_v57  ;;  %v6652_v27 = vadd.f32 %v11004_v59, %v15084_v18  ;;  %v6947_v50 = vsel %vm6851_vm3, %v6803_v43, %v6899_v20  ;;  %v16180_v20 = vld [vmem:[#allocation60_spill] sm:$0xff] }
 0x6af   : > { %v11006_v17 = vpop.f32.mrf.mxu1  ;;  %v7038_v8 = vpack.c.bf16 %v6947_v50, %v6944_v42 }
 0x6b0   : > { %v6749_v41 = vadd.f32 %v6748_v10, %v6652_v27  ;;  %v11007_v60 = vadd.f32 %v11006_v17, %v11005_v25  ;;  %v6902_v5 = vmul.f32 0.01, %v6806_v12  ;;  %vm6854_vm4 = vcmp.gt.f32.partialorder %v6806_v12, 0.0  ;;  %v15112_v25 = vpop.f32.mrf.mxu0  ;;  %v12051_v27 = vld [vmem:[#allocation15 + $0x64] ss:$8 sps:$4 sm:$0xff]  }
 0x6b1   : > { %v11008_v44 = vpop.f32.mrf.mxu1  ;;  %7464 = vmatmul.mubr.bf16.gmra.mxu0 %v7038_v8  ;;  %7940 = vmatprep.subr.bf16.mxu0 %v12051_v27  ;;  %v12066_v27 = vld [vmem:[#allocation15 + $0x14] ss:$8 sps:$4 sm:$0xff]  }
 0x6b2   : > { %v6809_v48 = vadd.f32 %v6749_v41, %v16177_v45  ;;  %v6657_v19 = vadd.f32 %v11007_v60, %v15084_v18  ;;  %7473 = vmatprep.mubr.bf16.mxu0 %v16060_v21  ;;  %v6950_v32 = vsel %vm6854_vm4, %v6806_v12, %v6902_v5  ;;  %v12049_v12 = vld [vmem:[#allocation15 + $0x60] ss:$8 sps:$4 sm:$0xff]   ;;  %v6777_v5 = vpop.f32.mrf.mxu0 }
 0x6b3   : > { %v11009_v16 = vpop.f32.mrf.mxu1  ;;  %7941 = vmatpush1.bf16.msra.mxu0 %v12049_v12  ;;  %v12064_v12 = vld [vmem:[#allocation15 + $0x10] ss:$8 sps:$4 sm:$0xff]  }
 0x6b4   : > { %v6905_v62 = vmul.f32 0.01, %v6809_v48  ;;  %v6754_v2 = vadd.f32 %v11265_v7, %v6657_v19  ;;  %v11010_v55 = vadd.f32 %v11009_v16, %v11008_v44  ;;  %vm6857_vm5 = vcmp.gt.f32.partialorder %v6809_v48, 0.0  ;;  %v12052_v19 = vld [vmem:[#allocation15 + $0x50] ss:$8 sps:$4 sm:$0xff]  }
 0x6b5   : > { %v11011_v54 = vpop.f32.mrf.mxu1  ;;  %v12054_v16 = vld [vmem:[#allocation15 + $0x54] ss:$8 sps:$4 sm:$0xff]  }
 0x6b6   : > { %v6812_v31 = vadd.f32 %v6754_v2, %v16178_v58  ;;  %v6660_v49 = vadd.f32 %v11010_v55, %v15084_v18  ;;  %v6953_v51 = vsel %vm6857_vm5, %v6809_v48, %v6905_v62  ;;  %7942 = vmatprep.subr.bf16.mxu0 %v12054_v16  ;;  %v12078_v16 = vld [vmem:[#allocation15 + $0xd4] ss:$8 sps:$4 sm:$0xff]  }
 0x6b7   : > { %v11012_v15 = vpop.f32.mrf.mxu1  ;;  %v7041_v14 = vpack.c.bf16 %v6953_v51, %v6950_v32  ;;  %7943 = vmatpush1.bf16.msra.mxu0 %v12052_v19  ;;  %v12055_v32 = vld [vmem:[#allocation15 + $0x40] ss:$8 sps:$4 sm:$0xff]   ;;  %v12057_v51 = vld [vmem:[#allocation15 + $0x44] ss:$8 sps:$4 sm:$0xff]  }
 0x6b8   : > { %v6757_v47 = vadd.f32 %v11266_v63, %v6660_v49  ;;  %v11013_v39 = vadd.f32 %v11012_v15, %v11011_v54  ;;  %v6908_v40 = vmul.f32 0.01, %v6812_v31  ;;  %vm6860_vm6 = vcmp.gt.f32.partialorder %v6812_v31, 0.0  ;;  %v16181_v54 = vld [vmem:[#allocation51_spill] sm:$0xff]  ;;  %7944 = vmatprep.subr.bf16.mxu0 %v12057_v51  ;;  %v12075_v19 = vld [vmem:[#allocation15 + $0xe4] ss:$8 sps:$4 sm:$0xff]  }
 0x6b9   : > { %v11014_v11 = vpop.f32.mrf.mxu1  ;;  %7474 = vmatmul.mubr.bf16.gmra.mxu0 %v7041_v14 }
 0x6ba   : > { %v6815_v13 = vadd.f32 %v6757_v47, %v14684_v6  ;;  %v6665_v7 = vadd.f32 %v11013_v39, %v15084_v18  ;;  %7483 = vmatprep.mubr.bf16.mxu0 %v16060_v21  ;;  %v6956_v30 = vsel %vm6860_vm6, %v6812_v31, %v6908_v40  ;;  %v11274_v31 = vpop.f32.mrf.mxu0  ;;  %v16182_v39 = vld [vmem:[#allocation77_spill] sm:$0xff] }
 0x6bb   : > { %v11015_v9 = vpop.f32.mrf.mxu1  ;;  %7945 = vmatpush1.bf16.msra.mxu0 %v12055_v32  ;;  %v12091_v32 = vld [vmem:[#allocation15 + $0x80] ss:$8 sps:$4 sm:$0xff]  }
 0x6bc   : > { %v6911_v52 = vmul.f32 0.01, %v6815_v13  ;;  %v6762_v61 = vadd.f32 %v6761_v56, %v6665_v7  ;;  %v11016_v4 = vadd.f32 %v11015_v9, %v11014_v11  ;;  %vm6863_vm7 = vcmp.gt.f32.partialorder %v6815_v13, 0.0 }
 0x6bd   : > { %v11017_v38 = vpop.f32.mrf.mxu1 }
 0x6be   : > { %v6818_v29 = vadd.f32 %v6762_v61, %v16179_v36  ;;  %v6668_v34 = vadd.f32 %v11016_v4, %v15084_v18  ;;  %v6959_v37 = vsel %vm6863_vm7, %v6815_v13, %v6911_v52  ;;  %v12058_v61 = vld [vmem:[#allocation15 + $0x30] ss:$8 sps:$4 sm:$0xff]   ;;  %v12060_v4 = vld [vmem:[#allocation15 + $0x34] ss:$8 sps:$4 sm:$0xff]  }
 0x6bf   : > { %v11018_v6 = vpop.f32.mrf.mxu1  ;;  %v7044_v35 = vpack.c.bf16 %v6959_v37, %v6956_v30  ;;  %7946 = vmatprep.subr.bf16.mxu0 %v12060_v4  ;;  %v16183_v30 = vld [vmem:[#allocation78_spill] sm:$0xff] }
 0x6c0   : > { %v6765_v43 = vadd.f32 %v6764_v22, %v6668_v34  ;;  %v11019_v33 = vadd.f32 %v11018_v6, %v11017_v38  ;;  %v6914_v23 = vmul.f32 0.01, %v6818_v29  ;;  %vm6866_vm8 = vcmp.gt.f32.partialorder %v6818_v29, 0.0  ;;  %7947 = vmatpush1.bf16.msra.mxu0 %v12058_v61  ;;  %v12103_v4 = vld [vmem:[#allocation16 + $0x40] ss:$8 sps:$4 sm:$0xff]  }
 0x6c1   : > { %v11020_v63 = vpop.f32.mrf.mxu1  ;;  %7484 = vmatmul.mubr.bf16.gmra.mxu0 %v7044_v35  ;;  %v12061_v35 = vld [vmem:[#allocation15 + $0x20] ss:$8 sps:$4 sm:$0xff]   ;;  %7948 = vmatprep.subr.bf16.mxu0 %v12063_v46  ;;  %v12117_v46 = vld [vmem:[#allocation16 + $0x4] ss:$8 sps:$4 sm:$0xff]  }
 0x6c2   : > { %v6821_v24 = vadd.f32 %v6765_v43, %v16180_v20  ;;  %v6673_v59 = vadd.f32 %v11019_v33, %v15084_v18  ;;  %7493 = vmatprep.mubr.bf16.mxu0 %v16060_v21  ;;  %v6962_v60 = vsel %vm6866_vm8, %v6818_v29, %v6914_v23 }
 0x6c3   : > { %v11021_v57 = vpop.f32.mrf.mxu1 }
 0x6c4   : > { %v6917_v42 = vmul.f32 0.01, %v6821_v24  ;;  %v6770_v50 = vadd.f32 %v11269_v53, %v6673_v59  ;;  %v11022_v10 = vadd.f32 %v11021_v57, %v11020_v63  ;;  %vm6869_vm9 = vcmp.gt.f32.partialorder %v6821_v24, 0.0  ;;  %v16184_v63 = vld [vmem:[#allocation79_spill] sm:$0xff]  ;;  %7949 = vmatpush1.bf16.msra.mxu0 %v12061_v35 }
 0x6c5   : > { %v11023_v17 = vpop.f32.mrf.mxu1  ;;  %7950 = vmatprep.subr.bf16.mxu0 %v12066_v27  ;;  %v12112_v35 = vld [vmem:[#allocation16 + $0x10] ss:$8 sps:$4 sm:$0xff]  }
 0x6c6   : > { %v6824_v8 = vadd.f32 %v6770_v50, %v14711_v26  ;;  %v6676_v41 = vadd.f32 %v11022_v10, %v15084_v18  ;;  %v6965_v44 = vsel %vm6869_vm9, %v6821_v24, %v6917_v42  ;;  %v16185_v10 = vld [vmem:[#allocation80_spill] sm:$0xff] }
 0x6c7   : > { %v11024_v45 = vpop.f32.mrf.mxu1  ;;  %v7047_v48 = vpack.c.bf16 %v6965_v44, %v6962_v60  ;;  %v12124_v27 = vld [vmem:[#allocation16 + $0xd0] ss:$8 sps:$4 sm:$0xff]  }
 0x6c8   : > { %v6773_v62 = vadd.f32 %v11270_v0, %v6676_v41  ;;  %v11025_v2 = vadd.f32 %v11024_v45, %v11023_v17  ;;  %v6920_v53 = vmul.f32 0.01, %v6824_v8  ;;  %vm6872_vm10 = vcmp.gt.f32.partialorder %v6824_v8, 0.0  ;;  %v6780_v0 = vpop.f32.mrf.mxu0  ;;  %7951 = vmatpush1.bf16.msra.mxu0 %v12064_v12  ;;  %v12072_v45 = vld [vmem:[#allocation15 + $0xf4] ss:$8 sps:$4 sm:$0xff]  }
 0x6c9   : > { %v11026_v55 = vpop.f32.mrf.mxu1  ;;  %7494 = vmatmul.mubr.bf16.gmra.mxu0 %v7047_v48  ;;  %v12073_v48 = vld [vmem:[#allocation15 + $0xe0] ss:$8 sps:$4 sm:$0xff]  }
 0x6ca   : > { %v6827_v58 = vadd.f32 %v6773_v62, %v16181_v54  ;;  %v6681_v26 = vadd.f32 %v11025_v2, %v15084_v18  ;;  %7503 = vmatprep.mubr.bf16.mxu0 %v16060_v21  ;;  %v6968_v13 = vsel %vm6872_vm10, %v6824_v8, %v6920_v53  ;;  %v12069_v8 = vld [vmem:[#allocation15 + $0x4] ss:$8 sps:$4 sm:$0xff]   ;;  %v12079_v2 = vld [vmem:[#allocation15 + $0xc0] ss:$8 sps:$4 sm:$0xff]   ;;  %v12084_v53 = vld [vmem:[#allocation15 + $0xb4] ss:$8 sps:$4 sm:$0xff]  }
 0x6cb   : > { %v11027_v49 = vpop.f32.mrf.mxu1  ;;  %7952 = vmatprep.subr.bf16.mxu0 %v12069_v8  ;;  %v12081_v62 = vld [vmem:[#allocation15 + $0xc4] ss:$8 sps:$4 sm:$0xff]   ;;  %v12085_v54 = vld [vmem:[#allocation15 + $0xa0] ss:$8 sps:$4 sm:$0xff]  }
 0x6cc   : > { %v6923_v56 = vmul.f32 0.01, %v6827_v58  ;;  %v6778_v15 = vadd.f32 %v6777_v5, %v6681_v26  ;;  %v11028_v14 = vadd.f32 %v11027_v49, %v11026_v55  ;;  %vm6875_vm11 = vcmp.gt.f32.partialorder %v6827_v58, 0.0  ;;  %v12070_v5 = vld [vmem:[#allocation15 + $0xf0] ss:$8 sps:$4 sm:$0xff]  }
 0x6cd   : > { %v11029_v47 = vpop.f32.mrf.mxu1  ;;  %v12082_v55 = vld [vmem:[#allocation15 + $0xb0] ss:$8 sps:$4 sm:$0xff]   ;;  %v12093_v49 = vld [vmem:[#allocation15 + $0x84] ss:$8 sps:$4 sm:$0xff]  }
 0x6ce   : > { %v6830_v11 = vadd.f32 %v6778_v15, %v16182_v39  ;;  %v6684_v40 = vadd.f32 %v11028_v14, %v15084_v18  ;;  %v6971_v7 = vsel %vm6875_vm11, %v6827_v58, %v6923_v56  ;;  %v12087_v58 = vld [vmem:[#allocation15 + $0xa4] ss:$8 sps:$4 sm:$0xff]   ;;  %v12088_v26 = vld [vmem:[#allocation15 + $0x90] ss:$8 sps:$4 sm:$0xff]   ;;  %v12096_v39 = vld [vmem:[#allocation16 + $0x74] ss:$8 sps:$4 sm:$0xff]  }
 0x6cf   : > { %v11030_v9 = vpop.f32.mrf.mxu1  ;;  %v7050_v52 = vpack.c.bf16 %v6971_v7, %v6968_v13  ;;  %8367 = vmatprep.subr.bf16.mxu1 %v12096_v39  ;;  %v12097_v13 = vld [vmem:[#allocation16 + $0x60] ss:$8 sps:$4 sm:$0xff]   ;;  %v12102_v7 = vld [vmem:[#allocation16 + $0x54] ss:$8 sps:$4 sm:$0xff]  }
 0x6d0   : > { %v6781_v38 = vadd.f32 %v6780_v0, %v6684_v40  ;;  %v11031_v36 = vadd.f32 %v11030_v9, %v11029_v47  ;;  %v6926_v34 = vmul.f32 0.01, %v6830_v11  ;;  %vm6878_vm12 = vcmp.gt.f32.partialorder %v6830_v11, 0.0  ;;  %v12094_v47 = vld [vmem:[#allocation16 + $0x70] ss:$8 sps:$4 sm:$0xff]  }
 0x6d1   : > { %v11032_v29 = vpop.f32.mrf.mxu1  ;;  %7504 = vmatmul.mubr.bf16.gmra.mxu0 %v7050_v52  ;;  %8368 = vmatpush1.bf16.msra.mxu1 %v12094_v47  ;;  %v12100_v9 = vld [vmem:[#allocation16 + $0x50] ss:$8 sps:$4 sm:$0xff]   ;;  %v12105_v52 = vld [vmem:[#allocation16 + $0x44] ss:$8 sps:$4 sm:$0xff]  }
 0x6d2   : > { %v6833_v37 = vadd.f32 %v6781_v38, %v16183_v30  ;;  %v6689_v22 = vadd.f32 %v11031_v36, %v15084_v18  ;;  %7513 = vmatprep.mubr.bf16.mxu0 %v16060_v21  ;;  %v6974_v24 = vsel %vm6878_vm12, %v6830_v11, %v6926_v34  ;;  %v12099_v11 = vld [vmem:[#allocation16 + $0x64] ss:$8 sps:$4 sm:$0xff]   ;;  %v12108_v38 = vld [vmem:[#allocation16 + $0x34] ss:$8 sps:$4 sm:$0xff]  }
 0x6d3   : > { %v11033_v6 = vpop.f32.mrf.mxu1  ;;  %8369 = vmatprep.subr.bf16.mxu1 %v12099_v11  ;;  %v12111_v34 = vld [vmem:[#allocation16 + $0x24] ss:$8 sps:$4 sm:$0xff]  }
 0x6d4   : > { %v6929_v1 = vmul.f32 0.01, %v6833_v37  ;;  %v6786_v43 = vadd.f32 %v15112_v25, %v6689_v22  ;;  %v11034_v33 = vadd.f32 %v11033_v6, %v11032_v29  ;;  %vm6881_vm13 = vcmp.gt.f32.partialorder %v6833_v37, 0.0  ;;  %v12067_v25 = vld [vmem:[#allocation15] ss:$8 sps:$4 sm:$0xff]  }
 0x6d5   : > { %7953 = vmatpush1.bf16.msra.mxu0 %v12067_v25  ;;  %8370 = vmatpush1.bf16.msra.mxu1 %v12097_v13  ;;  %v12106_v29 = vld [vmem:[#allocation16 + $0x30] ss:$8 sps:$4 sm:$0xff]   ;;  %v12114_v22 = vld [vmem:[#allocation16 + $0x14] ss:$8 sps:$4 sm:$0xff]  }
 0x6d6   : > { %v6836_v23 = vadd.f32 %v6786_v43, %v16184_v63  ;;  %v6692_v20 = vadd.f32 %v11034_v33, %v15084_v18  ;;  %v6977_v59 = vsel %vm6881_vm13, %v6833_v37, %v6929_v1  ;;  %7954 = vmatprep.subr.bf16.mxu0 %v12072_v45  ;;  %8371 = vmatprep.subr.bf16.mxu1 %v12102_v7  ;;  %v12109_v37 = vld [vmem:[#allocation16 + $0x20] ss:$8 sps:$4 sm:$0xff]   ;;  %v12120_v33 = vld [vmem:[#allocation16 + $0xf4] ss:$8 sps:$4 sm:$0xff]  }
 0x6d7   : > { %v7053_v57 = vpack.c.bf16 %v6977_v59, %v6974_v24  ;;  %v12115_v43 = vld [vmem:[#allocation16] ss:$8 sps:$4 sm:$0xff]   ;;  %v12132_v25 = vld [vmem:[#allocation16 + $0xb4] ss:$8 sps:$4 sm:$0xff]  }
 0x6d8   : > { %v6789_v42 = vadd.f32 %v11274_v31, %v6692_v20  ;;  %v6932_v50 = vmul.f32 0.01, %v6836_v23  ;;  %vm6884_vm14 = vcmp.gt.f32.partialorder %v6836_v23, 0.0  ;;  %v12090_v31 = vld [vmem:[#allocation15 + $0x94] ss:$8 sps:$4 sm:$0xff]  }
 0x6d9   : > { %7514 = vmatmul.mubr.bf16.gmra.mxu0 %v7053_v57  ;;  %8372 = vmatpush1.bf16.msra.mxu1 %v12100_v9  ;;  %v12123_v20 = vld [vmem:[#allocation16 + $0xe4] ss:$8 sps:$4 sm:$0xff]   ;;  %v12121_v59 = vld [vmem:[#allocation16 + $0xe0] ss:$8 sps:$4 sm:$0xff]   ;;  %v12126_v57 = vld [vmem:[#allocation16 + $0xd4] ss:$8 sps:$4 sm:$0xff]  }
 0x6da   : > { %v6839_v17 = vadd.f32 %v6789_v42, %v16185_v10  ;;  %7523 = vmatprep.mubr.bf16.mxu0 %v16060_v21  ;;  %v6980_v18 = vsel %vm6884_vm14, %v6836_v23, %v6932_v50  ;;  %7955 = vmatpush2.bf16.msra.mxu0 %v12070_v5  ;;  %v12076_v21 = vld [vmem:[#allocation15 + $0xd0] ss:$8 sps:$4 sm:$0xff]   ;;  %v12129_v42 = vld [vmem:[#allocation16 + $0xc4] ss:$8 sps:$4 sm:$0xff]   ;;  %v12127_v10 = vld [vmem:[#allocation16 + $0xc0] ss:$8 sps:$4 sm:$0xff]  }
 0x6db   : > { %7956 = vmatprep.subr.bf16.mxu0 %v12075_v19  ;;  %8373 = vmatprep.subr.bf16.mxu1 %v12105_v52  ;;  %v12118_v23 = vld [vmem:[#allocation16 + $0xf0] ss:$8 sps:$4 sm:$0xff]  }
 0x6dc   : > { %v6935_v41 = vmul.f32 0.01, %v6839_v17  ;;  %vm6887_vm15 = vcmp.gt.f32.partialorder %v6839_v17, 0.0 }
 0x6dd   : > { %8374 = vmatpush1.bf16.msra.mxu1 %v12103_v4 }
 0x6de   : > { %v6983_v60 = vsel %vm6887_vm15, %v6839_v17, %v6935_v41  ;;  %7957 = vmatpush2.bf16.msra.mxu0 %v12073_v48  ;;  %8375 = vmatprep.subr.bf16.mxu1 %v12108_v38  ;;  %v7032_v17 = vld [vmem:[%s16186_s2] sm:$0x3] }
 0x6df   : > { %v7056_v44 = vpack.c.bf16 %v6983_v60, %v6980_v18  ;;  %7958 = vmatprep.subr.bf16.mxu0 %v12078_v16  ;;  %v15161_v8 = vrot.slane %v7032_v17, %v16070_v28  ;;  %v12130_v18 = vld [vmem:[#allocation16 + $0xb0] ss:$8 sps:$4 sm:$0xff]   ;;  %v7534_v60 = vld [vmem:[%s16187_s18] sm:$0x3] }
 0x6e0   : > { %v15174_v48 = vrot.slane %v7534_v60, %v16070_v28 }
 0x6e1   : > { %7524 = vmatmul.mubr.bf16.gmra.mxu0 %v7056_v44  ;;  %8376 = vmatpush1.bf16.msra.mxu1 %v12106_v29  ;;  %v15167_v44 = vrot.slane %v7032_v17, %v16069_v3 }
 0x6e2   : > { %7959 = vmatpush2.bf16.msra.mxu0 %v12076_v21  ;;  %8377 = vmatprep.subr.bf16.mxu1 %v12111_v34  ;;  %v7535_v21 = vld [vmem:[%s16188_s11] sm:$0x3] }
 0x6e3   : > { %7960 = vmatprep.subr.bf16.mxu0 %v12081_v62 }
 0x6e5   : > { %8378 = vmatpush1.bf16.msra.mxu1 %v12109_v37 }
 0x6e6   : > { %7961 = vmatpush2.bf16.msra.mxu0 %v12079_v2  ;;  %8379 = vmatprep.subr.bf16.mxu1 %v12114_v22  ;;  %v15182_v2 = vrot.slane %v7534_v60, %v16069_v3 }
 0x6e7   : > { %7962 = vmatprep.subr.bf16.mxu0 %v12084_v53 }
 0x6e9   : > { %8380 = vmatpush1.bf16.msra.mxu1 %v12112_v35 }
 0x6ea   : > { %7963 = vmatpush2.bf16.msra.mxu0 %v12082_v55  ;;  %8381 = vmatprep.subr.bf16.mxu1 %v12117_v46 }
 0x6eb   : > { %7964 = vmatprep.subr.bf16.mxu0 %v12087_v58 }
 0x6ed   : > { %8382 = vmatpush1.bf16.msra.mxu1 %v12115_v43 }
 0x6ee   : > { %7965 = vmatpush2.bf16.msra.mxu0 %v12085_v54  ;;  %8383 = vmatprep.subr.bf16.mxu1 %v12120_v33 }
 0x6ef   : > { %7966 = vmatprep.subr.bf16.mxu0 %v12090_v31 }
 0x6f1   : > { %8384 = vmatpush2.bf16.msra.mxu1 %v12118_v23 }
 0x6f2   : > { %7967 = vmatpush2.bf16.msra.mxu0 %v12088_v26  ;;  %8385 = vmatprep.subr.bf16.mxu1 %v12123_v20  ;;  %v15191_v26 = vrot.slane %v7535_v21, %v16070_v28 }
 0x6f3   : > { %7968 = vmatprep.subr.bf16.mxu0 %v12093_v49  ;;  %v15196_v49 = vrot.slane %v7535_v21, %v16069_v3 }
 0x6f5   : > { %8386 = vmatpush2.bf16.msra.mxu1 %v12121_v59 }
 0x6f6   : > { %7969 = vmatpush2.bf16.msra.mxu0 %v12091_v32  ;;  %8387 = vmatprep.subr.bf16.mxu1 %v12126_v57 }
 0x6f9   : > { %8388 = vmatpush2.bf16.msra.mxu1 %v12124_v27 }
 0x6fa   : > { %8389 = vmatprep.subr.bf16.mxu1 %v12129_v42 }
 0x6fd   : > { %8390 = vmatpush2.bf16.msra.mxu1 %v12127_v10 }
 0x6fe   : > { %8391 = vmatprep.subr.bf16.mxu1 %v12132_v25 }
 0x701   : > { %8392 = vmatpush2.bf16.msra.mxu1 %v12130_v18 }
 0x726   : > { %v15129_v51 = vpop.f32.mrf.mxu1 }
 0x727   : > { %v7343_v5 = vadd.f32 %v15129_v51, %v15161_v8 }
 0x728   : > { %v15131_v56 = vpop.f32.mrf.mxu1 }
 0x729   : > { %v7345_v16 = vadd.f32 %v15131_v56, %v15167_v44 }
 0x72a   : > { %v15133_v15 = vpop.f32.mrf.mxu1 }
 0x72b   : > { %v7347_v53 = vadd.f32 %v15133_v15, %v15161_v8 }
 0x72c   : > { %v15135_v14 = vpop.f32.mrf.mxu1 }
 0x72d   : > { %v7349_v15 = vadd.f32 %v15135_v14, %v15167_v44 }
 0x72e   : > { %v15137_v40 = vpop.f32.mrf.mxu1 }
 0x72f   : > { %v7353_v39 = vadd.f32 %v15137_v40, %v15161_v8 }
 0x730   : > { %v15139_v0 = vpop.f32.mrf.mxu1 }
 0x731   : > { %v7355_v38 = vadd.f32 %v15139_v0, %v15167_v44 }
 0x732   : > { %v15141_v61 = vpop.f32.mrf.mxu1 }
 0x733   : > { %v7357_v37 = vadd.f32 %v15141_v61, %v15161_v8 }
 0x734   : > { %v15143_v36 = vpop.f32.mrf.mxu1 }
 0x735   : > { %v7359_v61 = vadd.f32 %v15143_v36, %v15167_v44 }
 0x736   : > { %v15145_v30 = vpop.f32.mrf.mxu1 }
 0x737   : > { %v7363_v27 = vadd.f32 %v15145_v30, %v15161_v8 }
 0x738   : > { %v15147_v6 = vpop.f32.mrf.mxu1 }
 0x739   : > { %v7365_v17 = vadd.f32 %v15147_v6, %v15167_v44 }
 0x73a   : > { %v15149_v1 = vpop.f32.mrf.mxu1 }
 0x73c   : > { %v15151_v63 = vpop.f32.mrf.mxu1 }
 0x73e   : > { %v15153_v24 = vpop.f32.mrf.mxu1 }
 0x740   : > { %v15155_v12 = vpop.f32.mrf.mxu1 }
 0x742   : > { %v15157_v50 = vpop.f32.mrf.mxu1 }
 0x744   : > { %v15163_v41 = vpop.f32.mrf.mxu1 }
 0x746   : > { %v15171_v45 = vpop.f32.mrf.mxu1 }
 0x748   : > { %v15186_v54 = vpop.f32.mrf.mxu1 }
 0x74a   : > { %v15206_v11 = vpop.f32.mrf.mxu1 }
 0x74c   : > { %v15223_v22 = vpop.f32.mrf.mxu1 }
 0x74e   : > { %v15240_v25 = vpop.f32.mrf.mxu1 }
 0x769   : > { %v7455_v19 = vpop.f32.mrf.mxu0 }
 0x76a   : > { %v15179_v62 = vadd.f32 %v7455_v19, %v7343_v5 }
 0x76b   : > { %v7457_v55 = vpop.f32.mrf.mxu0 }
 0x76c   : > { %v7547_v58 = vmul.f32 %v15174_v48, %v15179_v62  ;;  %v15193_v31 = vadd.f32 %v7457_v55, %v7345_v16 }
 0x76d   : > { %v7459_v32 = vpop.f32.mrf.mxu0 }
 0x76e   : > { %v7548_v51 = vmul.f32 %v15182_v2, %v15193_v31  ;;  %v15200_v56 = vadd.f32 %v7459_v32, %v7347_v53  ;;  %v7590_v13 = vadd.f32 %v15191_v26, %v7547_v58 }
 0x76f   : > { %v7461_v47 = vpop.f32.mrf.mxu0 }
 0x770   : > { %v7549_v7 = vmul.f32 %v15174_v48, %v15200_v56  ;;  %v7591_v9 = vadd.f32 %v15196_v49, %v7548_v51  ;;  %v15212_v52 = vadd.f32 %v7461_v47, %v7349_v15  ;;  %v7654_v35 = vmul.f32 0.01, %v7590_v13 }
 0x771   : > { %v7465_v4 = vpop.f32.mrf.mxu0  ;;  %vm7622_vm0 = vcmp.gt.f32.partialorder %v7590_v13, 0.0  ;;  %v7367_v47 = vadd.f32 %v15149_v1, %v15161_v8 }
 0x772   : > { %v7592_v14 = vadd.f32 %v15191_v26, %v7549_v7  ;;  %v15217_v29 = vadd.f32 %v7465_v4, %v7353_v39  ;;  %v7550_v40 = vmul.f32 %v15182_v2, %v15212_v52  ;;  %v7655_v33 = vmul.f32 0.01, %v7591_v9  ;;  %v15256_v39 = vpop.f32.mrf.mxu1 }
 0x773   : > { %v7467_v34 = vpop.f32.mrf.mxu0  ;;  %vm7623_vm2 = vcmp.gt.f32.partialorder %v7591_v9, 0.0  ;;  %v7686_v18 = vsel %vm7622_vm0, %v7590_v13, %v7654_v35  ;;  %v7369_v4 = vadd.f32 %v15151_v63, %v15167_v44  ;;  %v7373_v35 = vadd.f32 %v15153_v24, %v15161_v8 }
 0x774   : > { %v7656_v46 = vmul.f32 0.01, %v7592_v14  ;;  %v15225_v43 = vadd.f32 %v7467_v34, %v7355_v38  ;;  %vm7624_vm1 = vcmp.gt.f32.partialorder %v7592_v14, 0.0  ;;  %v7593_v0 = vadd.f32 %v15196_v49, %v7550_v40 }
 0x775   : > { %v7469_v23 = vpop.f32.mrf.mxu0  ;;  %v7551_v20 = vmul.f32 %v15174_v48, %v15217_v29  ;;  %v7687_v30 = vsel %vm7623_vm2, %v7591_v9, %v7655_v33  ;;  %v7375_v33 = vadd.f32 %v15155_v12, %v15167_v44 }
 0x776   : > { %v7552_v59 = vmul.f32 %v15182_v2, %v15225_v43  ;;  %v15232_v57 = vadd.f32 %v7469_v23, %v7357_v37  ;;  %vm7625_vm3 = vcmp.gt.f32.partialorder %v7593_v0, 0.0  ;;  %v7657_v10 = vmul.f32 0.01, %v7593_v0 }
 0x777   : > { %v7471_v42 = vpop.f32.mrf.mxu0  ;;  %v7688_v60 = vsel %vm7624_vm1, %v7592_v14, %v7656_v46  ;;  %v7594_v55 = vadd.f32 %v15191_v26, %v7551_v20 }
 0x778   : > { %v7553_v5 = vmul.f32 %v15174_v48, %v15232_v57  ;;  %v7595_v19 = vadd.f32 %v15196_v49, %v7552_v59  ;;  %v15246_v36 = vadd.f32 %v7471_v42, %v7359_v61  ;;  %v7689_v16 = vsel %vm7625_vm3, %v7593_v0, %v7657_v10  ;;  %v15273_v0 = vpop.f32.mrf.mxu1 }
 0x779   : > { %v7475_v21 = vpop.f32.mrf.mxu0  ;;  %v7752_v58 = vpack.c.bf16 %v7689_v16, %v7687_v30  ;;  %v7751_v32 = vpack.c.bf16 %v7688_v60, %v7686_v18  ;;  %v7658_v34 = vmul.f32 0.01, %v7594_v55  ;;  %vm7626_vm6 = vcmp.gt.f32.partialorder %v7594_v55, 0.0 }
 0x77a   : > { %v7596_v53 = vadd.f32 %v15191_v26, %v7553_v5  ;;  %v15250_v6 = vadd.f32 %v7475_v21, %v7363_v27  ;;  %v7554_v51 = vmul.f32 %v15182_v2, %v15246_v36  ;;  %v7659_v38 = vmul.f32 0.01, %v7595_v19 }
 0x77b   : > { %v7477_v15 = vpop.f32.mrf.mxu0  ;;  %7970 = vmatprep.mubr.bf16.mxu0 %v7752_v58  ;;  %vm7627_vm5 = vcmp.gt.f32.partialorder %v7595_v19, 0.0  ;;  %v7690_v60 = vsel %vm7626_vm6, %v7594_v55, %v7658_v34  ;;  %v7377_v16 = vadd.f32 %v15157_v50, %v15161_v8 }
 0x77c   : > { %v7660_v13 = vmul.f32 0.01, %v7596_v53  ;;  %v7555_v7 = vmul.f32 %v15174_v48, %v15250_v6  ;;  %v15260_v9 = vadd.f32 %v7477_v15, %v7365_v17  ;;  %vm7628_vm4 = vcmp.gt.f32.partialorder %v7596_v53, 0.0  ;;  %7971 = vmatmul.mubr.bf16.vlgmr.msra.gmra.mxu0 %v7751_v32 }
 0x77d   : > { %v7597_v14 = vadd.f32 %v15196_v49, %v7554_v51  ;;  %v7479_v40 = vpop.f32.mrf.mxu0  ;;  %v7691_v42 = vsel %vm7627_vm5, %v7595_v19, %v7659_v38 }
 0x77e   : > { %v7556_v1 = vmul.f32 %v15182_v2, %v15260_v9  ;;  %v15267_v37 = vadd.f32 %v7479_v40, %v7367_v47  ;;  %v7598_v23 = vadd.f32 %v15191_v26, %v7555_v7  ;;  %v7692_v59 = vsel %vm7628_vm4, %v7596_v53, %v7660_v13  ;;  %v15290_v53 = vpop.f32.mrf.mxu1 }
 0x77f   : > { %v7481_v46 = vpop.f32.mrf.mxu0  ;;  %vm7629_vm7 = vcmp.gt.f32.partialorder %v7597_v14, 0.0  ;;  %v7661_v63 = vmul.f32 0.01, %v7597_v14  ;;  %v7753_v30 = vpack.c.bf16 %v7692_v59, %v7690_v60  ;;  %v7379_v7 = vadd.f32 %v15163_v41, %v15167_v44 }
 0x780   : > { %v7557_v20 = vmul.f32 %v15174_v48, %v15267_v37  ;;  %v7599_v61 = vadd.f32 %v15196_v49, %v7556_v1  ;;  %v15280_v27 = vadd.f32 %v7481_v46, %v7369_v4  ;;  %v7662_v58 = vmul.f32 0.01, %v7598_v23  ;;  %v15307_v34 = vpop.f32.mrf.mxu1 }
 0x781   : > { %v7485_v24 = vpop.f32.mrf.mxu0  ;;  %v7693_v10 = vsel %vm7629_vm7, %v7597_v14, %v7661_v63  ;;  %vm7630_vm8 = vcmp.gt.f32.partialorder %v7598_v23, 0.0  ;;  %v7383_v4 = vadd.f32 %v15171_v45, %v15161_v8  ;;  %v7385_v40 = vadd.f32 %v15186_v54, %v15167_v44 }
 0x782   : > { %v7600_v17 = vadd.f32 %v15191_v26, %v7557_v20  ;;  %v15283_v18 = vadd.f32 %v7485_v24, %v7373_v35  ;;  %v7754_v12 = vpack.c.bf16 %v7693_v10, %v7691_v42  ;;  %v7558_v5 = vmul.f32 %v15182_v2, %v15280_v27  ;;  %v7404_v60 = vpop.f32.mrf.mxu1 }
 0x783   : > { %v7487_v21 = vpop.f32.mrf.mxu0  ;;  %v7663_v51 = vmul.f32 0.01, %v7599_v61  ;;  %vm7631_vm10 = vcmp.gt.f32.partialorder %v7599_v61, 0.0  ;;  %v7694_v35 = vsel %vm7630_vm8, %v7598_v23, %v7662_v58 }
 0x784   : > { %v7664_v19 = vmul.f32 0.01, %v7600_v17  ;;  %v15292_v32 = vadd.f32 %v7487_v21, %v7375_v33  ;;  %7980 = vmatprep.mubr.bf16.mxu0 %v7754_v12  ;;  %vm7632_vm9 = vcmp.gt.f32.partialorder %v7600_v17, 0.0  ;;  %v7601_v55 = vadd.f32 %v15196_v49, %v7558_v5 }
 0x785   : > { %7981 = vmatmul.mubr.bf16.gmra.mxu0 %v7753_v30  ;;  %v7489_v15 = vpop.f32.mrf.mxu0  ;;  %v7559_v47 = vmul.f32 %v15174_v48, %v15283_v18  ;;  %v7695_v33 = vsel %vm7631_vm10, %v7599_v61, %v7663_v51  ;;  %v7389_v30 = vadd.f32 %v15223_v22, %v15167_v44 }
 0x786   : > { %v7560_v50 = vmul.f32 %v15182_v2, %v15292_v32  ;;  %v15299_v13 = vadd.f32 %v7489_v15, %v7377_v16  ;;  %vm7633_vm11 = vcmp.gt.f32.partialorder %v7601_v55, 0.0  ;;  %v7665_v14 = vmul.f32 0.01, %v7601_v55 }
 0x787   : > { %v7491_v38 = vpop.f32.mrf.mxu0  ;;  %v7696_v46 = vsel %vm7632_vm9, %v7600_v17, %v7664_v19  ;;  %v7602_v59 = vadd.f32 %v15191_v26, %v7559_v47  ;;  %v7387_v17 = vadd.f32 %v15206_v11, %v15161_v8  ;;  %v7393_v15 = vadd.f32 %v15240_v25, %v15161_v8 }
 0x788   : > { %v7561_v1 = vmul.f32 %v15174_v48, %v15299_v13  ;;  %v7603_v41 = vadd.f32 %v15196_v49, %v7560_v50  ;;  %v15314_v63 = vadd.f32 %v7491_v38, %v7379_v7  ;;  %v7697_v20 = vsel %vm7633_vm11, %v7601_v55, %v7665_v14  ;;  %v7406_v7 = vpop.f32.mrf.mxu1 }
 0x789   : > { %v7495_v45 = vpop.f32.mrf.mxu0  ;;  %v7756_v42 = vpack.c.bf16 %v7697_v20, %v7695_v33  ;;  %v7755_v12 = vpack.c.bf16 %v7696_v46, %v7694_v35  ;;  %v7666_v51 = vmul.f32 0.01, %v7602_v59  ;;  %vm7634_vm14 = vcmp.gt.f32.partialorder %v7602_v59, 0.0 }
 0x78a   : > { %v7604_v54 = vadd.f32 %v15191_v26, %v7561_v1  ;;  %v15318_v24 = vadd.f32 %v7495_v45, %v7383_v4  ;;  %v7562_v10 = vmul.f32 %v15182_v2, %v15314_v63  ;;  %v7667_v16 = vmul.f32 0.01, %v7603_v41 }
 0x78b   : > { %v7497_v23 = vpop.f32.mrf.mxu0  ;;  %7990 = vmatprep.mubr.bf16.mxu0 %v7756_v42  ;;  %vm7635_vm13 = vcmp.gt.f32.partialorder %v7603_v41, 0.0  ;;  %v7395_v50 = vadd.f32 %v15256_v39, %v15167_v44  ;;  %v7698_v20 = vsel %vm7634_vm14, %v7602_v59, %v7666_v51  ;;  %v7403_v51 = vadd.f32 %v15307_v34, %v15161_v8 }
 0x78c   : > { %v7668_v5 = vmul.f32 0.01, %v7604_v54  ;;  %v7563_v61 = vmul.f32 %v15174_v48, %v15318_v24  ;;  %v15326_v21 = vadd.f32 %v7497_v23, %v7385_v40  ;;  %vm7636_vm12 = vcmp.gt.f32.partialorder %v7604_v54, 0.0 }
 0x78d   : > { %v7605_v58 = vadd.f32 %v15196_v49, %v7562_v10  ;;  %7991 = vmatmul.mubr.bf16.gmra.mxu0 %v7755_v12  ;;  %v7499_v19 = vpop.f32.mrf.mxu0  ;;  %v7699_v35 = vsel %vm7635_vm13, %v7603_v41, %v7667_v16  ;;  %v7408_v12 = vpop.f32.mrf.mxu1 }
 0x78e   : > { %v7564_v11 = vmul.f32 %v15182_v2, %v15326_v21  ;;  %v15333_v55 = vadd.f32 %v7499_v19, %v7387_v17  ;;  %v7606_v4 = vadd.f32 %v15191_v26, %v7563_v61  ;;  %v7700_v14 = vsel %vm7636_vm12, %v7604_v54, %v7668_v5 }
 0x78f   : > { %v7501_v47 = vpop.f32.mrf.mxu0  ;;  %vm7637_vm15 = vcmp.gt.f32.partialorder %v7605_v58, 0.0  ;;  %v7669_v22 = vmul.f32 0.01, %v7605_v58  ;;  %v7757_v23 = vpack.c.bf16 %v7700_v14, %v7698_v20  ;;  %v7397_v54 = vadd.f32 %v15273_v0, %v15161_v8 }
 0x790   : > { %v7565_v38 = vmul.f32 %v15174_v48, %v15333_v55  ;;  %v7607_v40 = vadd.f32 %v15196_v49, %v7564_v11  ;;  %v15344_v1 = vadd.f32 %v7501_v47, %v7389_v30  ;;  %vm7638_vm0 = vcmp.gt.f32.partialorder %v7606_v4, 0.0 }
 0x791   : > { %v7505_v25 = vpop.f32.mrf.mxu0  ;;  %v7701_v46 = vsel %vm7637_vm15, %v7605_v58, %v7669_v22  ;;  %v7670_v5 = vmul.f32 0.01, %v7606_v4  ;;  %v7399_v19 = vadd.f32 %v15290_v53, %v15167_v44  ;;  %v7405_v47 = vadd.f32 %v7404_v60, %v15167_v44  ;;  %v7412_v22 = vpop.f32.mrf.mxu1 }
 0x792   : > { %v7608_v45 = vadd.f32 %v15191_v26, %v7565_v38  ;;  %v15347_v33 = vadd.f32 %v7505_v25, %v7393_v15  ;;  %v7758_v39 = vpack.c.bf16 %v7701_v46, %v7699_v35  ;;  %v7566_v42 = vmul.f32 %v15182_v2, %v15344_v1 }
 0x793   : > { %v7507_v10 = vpop.f32.mrf.mxu0  ;;  %v7671_v61 = vmul.f32 0.01, %v7607_v40  ;;  %vm7639_vm2 = vcmp.gt.f32.partialorder %v7607_v40, 0.0  ;;  %v7702_v34 = vsel %vm7638_vm0, %v7606_v4, %v7670_v5 }
 0x794   : > { %v7672_v17 = vmul.f32 0.01, %v7608_v45  ;;  %v15354_v41 = vadd.f32 %v7507_v10, %v7395_v50  ;;  %8000 = vmatprep.mubr.bf16.mxu0 %v7758_v39  ;;  %vm7640_vm1 = vcmp.gt.f32.partialorder %v7608_v45, 0.0  ;;  %v7609_v30 = vadd.f32 %v15196_v49, %v7566_v42 }
 0x795   : > { %8001 = vmatmul.mubr.bf16.gmra.mxu0 %v7757_v23  ;;  %v7509_v59 = vpop.f32.mrf.mxu0  ;;  %v7567_v16 = vmul.f32 %v15174_v48, %v15347_v33  ;;  %v7703_v53 = vsel %vm7639_vm2, %v7607_v40, %v7671_v61 }
 0x796   : > { %v7568_v58 = vmul.f32 %v15182_v2, %v15354_v41  ;;  %v15361_v0 = vadd.f32 %v7509_v59, %v7397_v54  ;;  %v7673_v11 = vmul.f32 0.01, %v7609_v30  ;;  %vm7641_vm3 = vcmp.gt.f32.partialorder %v7609_v30, 0.0 }
 0x797   : > { %v7511_v15 = vpop.f32.mrf.mxu0  ;;  %v7704_v14 = vsel %vm7640_vm1, %v7608_v45, %v7672_v17  ;;  %v7610_v39 = vadd.f32 %v15191_v26, %v7567_v16  ;;  %v7407_v45 = vadd.f32 %v7406_v7, %v15161_v8  ;;  %v7414_v17 = vpop.f32.mrf.mxu1  ;;  %v7409_v16 = vadd.f32 %v7408_v12, %v15167_v44 }
 0x798   : > { %v7611_v50 = vadd.f32 %v15196_v49, %v7568_v58  ;;  %v7569_v38 = vmul.f32 %v15174_v48, %v15361_v0  ;;  %v15372_v25 = vadd.f32 %v7511_v15, %v7399_v19  ;;  %v7705_v46 = vsel %vm7641_vm3, %v7609_v30, %v7673_v11 }
 0x799   : > { %v7515_v35 = vpop.f32.mrf.mxu0  ;;  %v7760_v42 = vpack.c.bf16 %v7705_v46, %v7703_v53  ;;  %v7759_v54 = vpack.c.bf16 %v7704_v14, %v7702_v34  ;;  %v7674_v58 = vmul.f32 0.01, %v7610_v39  ;;  %vm7642_vm6 = vcmp.gt.f32.partialorder %v7610_v39, 0.0 }
 0x79a   : > { %v7612_v20 = vadd.f32 %v15191_v26, %v7569_v38  ;;  %v15377_v60 = vadd.f32 %v7515_v35, %v7403_v51  ;;  %v7570_v10 = vmul.f32 %v15182_v2, %v15372_v25  ;;  %v7675_v59 = vmul.f32 0.01, %v7611_v50  ;;  %v7416_v38 = vpop.f32.mrf.mxu1 }
 0x79b   : > { %v7517_v23 = vpop.f32.mrf.mxu0  ;;  %8010 = vmatprep.mubr.bf16.mxu0 %v7760_v42  ;;  %vm7643_vm5 = vcmp.gt.f32.partialorder %v7611_v50, 0.0  ;;  %v7413_v51 = vadd.f32 %v7412_v22, %v15161_v8 }
 0x79c   : > { %v7676_v40 = vmul.f32 0.01, %v7612_v20  ;;  %v15382_v61 = vadd.f32 %v7517_v23, %v7405_v47  ;;  %vm7644_vm4 = vcmp.gt.f32.partialorder %v7612_v20, 0.0  ;;  %v7613_v4 = vadd.f32 %v15196_v49, %v7570_v10 }
 0x79d   : > { %v7571_v5 = vmul.f32 %v15174_v48, %v15377_v60  ;;  %8011 = vmatmul.mubr.bf16.gmra.mxu0 %v7759_v54  ;;  %v7519_v30 = vpop.f32.mrf.mxu0  ;;  %v7415_v47 = vadd.f32 %v7414_v17, %v15167_v44  ;;  %v7707_v35 = vsel %vm7643_vm5, %v7611_v50, %v7675_v59  ;;  %v7417_v59 = vadd.f32 %v7416_v38, %v15161_v8 }
 0x79e   : > { %v7572_v7 = vmul.f32 %v15182_v2, %v15382_v61  ;;  %v15390_v19 = vadd.f32 %v7519_v30, %v7407_v45  ;;  %v7677_v11 = vmul.f32 0.01, %v7613_v4  ;;  %vm7645_vm7 = vcmp.gt.f32.partialorder %v7613_v4, 0.0 }
 0x79f   : > { %v7521_v15 = vpop.f32.mrf.mxu0  ;;  %v7708_v12 = vsel %vm7644_vm4, %v7612_v20, %v7676_v40  ;;  %v7614_v53 = vadd.f32 %v15191_v26, %v7571_v5  ;;  %v7706_v45 = vsel %vm7642_vm6, %v7610_v39, %v7674_v58  ;;  %v7418_v40 = vpop.f32.mrf.mxu1 }
 0x7a0   : > { %v7573_v14 = vmul.f32 %v15174_v48, %v15390_v19  ;;  %v7615_v46 = vadd.f32 %v15196_v49, %v7572_v7  ;;  %v15399_v34 = vadd.f32 %v7521_v15, %v7409_v16  ;;  %v7709_v42 = vsel %vm7645_vm7, %v7613_v4, %v7677_v11 }
 0x7a1   : > { %v7525_v22 = vpop.f32.mrf.mxu0  ;;  %v7762_v54 = vpack.c.bf16 %v7709_v42, %v7707_v35  ;;  %v7761_v20 = vpack.c.bf16 %v7708_v12, %v7706_v45  ;;  %v7678_v4 = vmul.f32 0.01, %v7614_v53  ;;  %v7419_v8 = vadd.f32 %v7418_v40, %v15167_v44 }
 0x7a2   : > { %v7616_v10 = vadd.f32 %v15191_v26, %v7573_v14  ;;  %v15402_v23 = vadd.f32 %v7525_v22, %v7413_v51  ;;  %v7574_v50 = vmul.f32 %v15182_v2, %v15399_v34  ;;  %v7679_v16 = vmul.f32 0.01, %v7615_v46 }
 0x7a3   : > { %v7527_v17 = vpop.f32.mrf.mxu0  ;;  %8020 = vmatprep.mubr.bf16.mxu0 %v7762_v54  ;;  %vm7647_vm9 = vcmp.gt.f32.partialorder %v7615_v46, 0.0  ;;  %vm7646_vm10 = vcmp.gt.f32.partialorder %v7614_v53, 0.0 }
 0x7a4   : > { %v7680_v5 = vmul.f32 0.01, %v7616_v10  ;;  %v15408_v30 = vadd.f32 %v7527_v17, %v7415_v47  ;;  %vm7648_vm8 = vcmp.gt.f32.partialorder %v7616_v10, 0.0  ;;  %v7617_v7 = vadd.f32 %v15196_v49, %v7574_v50 }
 0x7a5   : > { %8021 = vmatmul.mubr.bf16.gmra.mxu0 %v7761_v20  ;;  %v7529_v51 = vpop.f32.mrf.mxu0  ;;  %v7575_v39 = vmul.f32 %v15174_v48, %v15402_v23  ;;  %v7711_v22 = vsel %vm7647_vm9, %v7615_v46, %v7679_v16  ;;  %v7710_v44 = vsel %vm7646_vm10, %v7614_v53, %v7678_v4 }
 0x7a6   : > { %v7576_v58 = vmul.f32 %v15182_v2, %v15408_v30  ;;  %v15415_v11 = vadd.f32 %v7529_v51, %v7417_v59  ;;  %v7681_v15 = vmul.f32 0.01, %v7617_v7  ;;  %vm7649_vm11 = vcmp.gt.f32.partialorder %v7617_v7, 0.0  ;;  %v12135_v51 = vld [vmem:[#allocation16 + $0xa4] ss:$8 sps:$4 sm:$0xff]  }
 0x7a7   : > { %v7531_v47 = vpop.f32.mrf.mxu0  ;;  %v7712_v14 = vsel %vm7648_vm8, %v7616_v10, %v7680_v5  ;;  %v7618_v54 = vadd.f32 %v15191_v26, %v7575_v39  ;;  %8393 = vmatprep.subr.bf16.mxu1 %v12135_v51  ;;  %v12136_v39 = vld [vmem:[#allocation16 + $0x90] ss:$8 sps:$4 sm:$0xff]  }
 0x7a8   : > { %v7577_v38 = vmul.f32 %v15174_v48, %v15415_v11  ;;  %v7619_v35 = vadd.f32 %v15196_v49, %v7576_v58  ;;  %v15421_v12 = vadd.f32 %v7531_v47, %v7419_v8  ;;  %v7713_v42 = vsel %vm7649_vm11, %v7617_v7, %v7681_v15  ;;  %v12139_v58 = vld [vmem:[#allocation16 + $0x80] ss:$8 sps:$4 sm:$0xff]   ;;  %v12141_v8 = vld [vmem:[#allocation16 + $0x84] ss:$8 sps:$4 sm:$0xff]   ;;  %v12142_v15 = vld [vmem:[#allocation18 + $0x70] ss:$8 sps:$4 sm:$0xff]  }
 0x7a9   : > { %v7764_v50 = vpack.c.bf16 %v7713_v42, %v7711_v22  ;;  %v7763_v20 = vpack.c.bf16 %v7712_v14, %v7710_v44  ;;  %v7682_v40 = vmul.f32 0.01, %v7618_v54  ;;  %vm7650_vm14 = vcmp.gt.f32.partialorder %v7618_v54, 0.0  ;;  %v12144_v47 = vld [vmem:[#allocation18 + $0x74] ss:$8 sps:$4 sm:$0xff]  }
 0x7aa   : > { %v7620_v45 = vadd.f32 %v15191_v26, %v7577_v38  ;;  %v7578_v17 = vmul.f32 %v15182_v2, %v15421_v12  ;;  %v7683_v48 = vmul.f32 0.01, %v7619_v35  ;;  %vm7651_vm13 = vcmp.gt.f32.partialorder %v7619_v35, 0.0  ;;  %v12133_v2 = vld [vmem:[#allocation16 + $0xa0] ss:$8 sps:$4 sm:$0xff]   ;;  %8916 = vmatprep.subr.bf16.mxu0 %v12144_v47 }
 0x7ab   : > { %8030 = vmatprep.mubr.bf16.mxu0 %v7764_v50  ;;  %v7714_v4 = vsel %vm7650_vm14, %v7618_v54, %v7682_v40  ;;  %8394 = vmatpush2.bf16.msra.mxu1 %v12133_v2  ;;  %v12147_v38 = vld [vmem:[#allocation18 + $0x64] ss:$8 sps:$4 sm:$0xff]   ;;  %v12145_v14 = vld [vmem:[#allocation18 + $0x60] ss:$8 sps:$4 sm:$0xff]   ;;  %v12148_v22 = vld [vmem:[#allocation18 + $0x50] ss:$8 sps:$4 sm:$0xff]  }
 0x7ac   : > { %v7684_v59 = vmul.f32 0.01, %v7620_v45  ;;  %vm7652_vm12 = vcmp.gt.f32.partialorder %v7620_v45, 0.0  ;;  %v7621_v10 = vadd.f32 %v15196_v49, %v7578_v17  ;;  %v7715_v26 = vsel %vm7651_vm13, %v7619_v35, %v7683_v48  ;;  %v12138_v49 = vld [vmem:[#allocation16 + $0x94] ss:$8 sps:$4 sm:$0xff]   ;;  %8917 = vmatpush1.bf16.msra.mxu0 %v12142_v15 }
 0x7ad   : > { %8031 = vmatmul.mubr.bf16.gmra.mxu0 %v7763_v20  ;;  %8395 = vmatprep.subr.bf16.mxu1 %v12138_v49  ;;  %v12150_v35 = vld [vmem:[#allocation18 + $0x54] ss:$8 sps:$4 sm:$0xff]   ;;  %v12153_v42 = vld [vmem:[#allocation18 + $0x44] ss:$8 sps:$4 sm:$0xff]   ;;  %v12151_v54 = vld [vmem:[#allocation18 + $0x40] ss:$8 sps:$4 sm:$0xff]  }
 0x7ae   : > { %v7685_v46 = vmul.f32 0.01, %v7621_v10  ;;  %vm7653_vm15 = vcmp.gt.f32.partialorder %v7621_v10, 0.0  ;;  %v7716_v5 = vsel %vm7652_vm12, %v7620_v45, %v7684_v59  ;;  %8918 = vmatprep.subr.bf16.mxu0 %v12147_v38  ;;  %v12156_v45 = vld [vmem:[#allocation18 + $0x34] ss:$8 sps:$4 sm:$0xff]  }
 0x7af   : > { %v7765_v7 = vpack.c.bf16 %v7716_v5, %v7714_v4  ;;  %8396 = vmatpush2.bf16.msra.mxu1 %v12136_v39  ;;  %v12154_v50 = vld [vmem:[#allocation18 + $0x30] ss:$8 sps:$4 sm:$0xff]   ;;  %v12159_v44 = vld [vmem:[#allocation18 + $0x24] ss:$8 sps:$4 sm:$0xff]   ;;  %v12157_v17 = vld [vmem:[#allocation18 + $0x20] ss:$8 sps:$4 sm:$0xff]  }
 0x7b0   : > { %v7717_v16 = vsel %vm7653_vm15, %v7621_v10, %v7685_v46  ;;  %8397 = vmatprep.subr.bf16.mxu1 %v12141_v8  ;;  %8919 = vmatpush1.bf16.msra.mxu0 %v12145_v14  ;;  %v12162_v20 = vld [vmem:[#allocation18 + $0x14] ss:$8 sps:$4 sm:$0xff]   ;;  %v12160_v59 = vld [vmem:[#allocation18 + $0x10] ss:$8 sps:$4 sm:$0xff]   ;;  %v12165_v48 = vld [vmem:[#allocation18 + $0x4] ss:$8 sps:$4 sm:$0xff]  }
 0x7b1   : > { %v7766_v53 = vpack.c.bf16 %v7717_v16, %v7715_v26  ;;  %8920 = vmatprep.subr.bf16.mxu0 %v12150_v35  ;;  %v12163_v10 = vld [vmem:[#allocation18] ss:$8 sps:$4 sm:$0xff]   ;;  %v12168_v40 = vld [vmem:[#allocation18 + $0xf4] ss:$8 sps:$4 sm:$0xff]   ;;  %v12166_v46 = vld [vmem:[#allocation18 + $0xf0] ss:$8 sps:$4 sm:$0xff]  }
 0x7b2   : > { %v12171_v5 = vld [vmem:[#allocation18 + $0xe4] ss:$8 sps:$4 sm:$0xff]   ;;  %v12169_v26 = vld [vmem:[#allocation18 + $0xe0] ss:$8 sps:$4 sm:$0xff]   ;;  %v12174_v16 = vld [vmem:[#allocation18 + $0xd4] ss:$8 sps:$4 sm:$0xff]  }
 0x7b3   : > { %8040 = vmatprep.mubr.bf16.mxu0 %v7766_v53  ;;  %8398 = vmatpush2.bf16.msra.mxu1 %v12139_v58  ;;  %v12172_v53 = vld [vmem:[#allocation18 + $0xd0] ss:$8 sps:$4 sm:$0xff]   ;;  %v7750_v4 = vld [vmem:[%s16189_s12] sm:$0x3] }
 0x7b4   : > { %8921 = vmatpush1.bf16.msra.mxu0 %v12148_v22  ;;  %v15433_v2 = vrot.slane %v7750_v4, %v16070_v28 }
 0x7b5   : > { %8041 = vmatmul.mubr.bf16.gmra.mxu0 %v7765_v7  ;;  %8922 = vmatprep.subr.bf16.mxu0 %v12153_v42  ;;  %v15430_v7 = vrot.slane %v7750_v4, %v16069_v3 }
 0x7b8   : > { %8923 = vmatpush1.bf16.msra.mxu0 %v12151_v54 }
 0x7b9   : > { %8924 = vmatprep.subr.bf16.mxu0 %v12156_v45 }
 0x7bc   : > { %8925 = vmatpush1.bf16.msra.mxu0 %v12154_v50 }
 0x7bd   : > { %8926 = vmatprep.subr.bf16.mxu0 %v12159_v44 }
 0x7c0   : > { %8927 = vmatpush1.bf16.msra.mxu0 %v12157_v17 }
 0x7c1   : > { %8928 = vmatprep.subr.bf16.mxu0 %v12162_v20 }
 0x7c4   : > { %8929 = vmatpush1.bf16.msra.mxu0 %v12160_v59 }
 0x7c5   : > { %8930 = vmatprep.subr.bf16.mxu0 %v12165_v48 }
 0x7c8   : > { %8931 = vmatpush1.bf16.msra.mxu0 %v12163_v10 }
 0x7c9   : > { %8932 = vmatprep.subr.bf16.mxu0 %v12168_v40 }
 0x7cc   : > { %8933 = vmatpush2.bf16.msra.mxu0 %v12166_v46 }
 0x7cd   : > { %8934 = vmatprep.subr.bf16.mxu0 %v12171_v5 }
 0x7d0   : > { %8935 = vmatpush2.bf16.msra.mxu0 %v12169_v26 }
 0x7d1   : > { %8936 = vmatprep.subr.bf16.mxu0 %v12174_v16 }
 0x7d4   : > { %8937 = vmatpush2.bf16.msra.mxu0 %v12172_v53 }
 0x83c   : > { %v7972_v51 = vpop.f32.mrf.mxu0 }
 0x83d   : > { %v7973_v58 = vadd.f32 %v7972_v51, %v15433_v2 }
 0x83e   : > { %v7974_v39 = vpop.f32.mrf.mxu0 }
 0x83f   : > { %v7975_v49 = vadd.f32 %v7974_v39, %v15430_v7  ;;  %v8083_v22 = vmul.f32 0.01, %v7973_v58  ;;  %vm8051_vm2 = vcmp.gt.f32.partialorder %v7973_v58, 0.0 }
 0x840   : > { %v7976_v8 = vpop.f32.mrf.mxu0 }
 0x841   : > { %v7977_v15 = vadd.f32 %v7976_v8, %v15433_v2  ;;  %v8084_v38 = vmul.f32 0.01, %v7975_v49  ;;  %vm8052_vm1 = vcmp.gt.f32.partialorder %v7975_v49, 0.0  ;;  %v8115_v59 = vsel %vm8051_vm2, %v7973_v58, %v8083_v22 }
 0x842   : > { %v7978_v47 = vpop.f32.mrf.mxu0 }
 0x843   : > { %vm8053_vm0 = vcmp.gt.f32.partialorder %v7977_v15, 0.0  ;;  %v8085_v14 = vmul.f32 0.01, %v7977_v15  ;;  %v7979_v35 = vadd.f32 %v7978_v47, %v15430_v7  ;;  %v8116_v17 = vsel %vm8052_vm1, %v7975_v49, %v8084_v38 }
 0x845   : > { %v7982_v42 = vpop.f32.mrf.mxu0  ;;  %vm8054_vm3 = vcmp.gt.f32.partialorder %v7979_v35, 0.0  ;;  %v8086_v54 = vmul.f32 0.01, %v7979_v35  ;;  %v8117_v45 = vsel %vm8053_vm0, %v7977_v15, %v8085_v14 }
 0x846   : > { %v7983_v48 = vadd.f32 %v7982_v42, %v15433_v2  ;;  %v8180_v46 = vpack.c.bf16 %v8117_v45, %v8115_v59 }
 0x847   : > { %v7984_v50 = vpop.f32.mrf.mxu0  ;;  %v8118_v20 = vsel %vm8054_vm3, %v7979_v35, %v8086_v54 }
 0x848   : > { %v7985_v44 = vadd.f32 %v7984_v50, %v15430_v7  ;;  %v8181_v40 = vpack.c.bf16 %v8118_v20, %v8116_v17  ;;  %v8087_v51 = vmul.f32 0.01, %v7983_v48  ;;  %vm8055_vm6 = vcmp.gt.f32.partialorder %v7983_v48, 0.0 }
 0x849   : > { %v7986_v10 = vpop.f32.mrf.mxu0 }
 0x84a   : > { %v7987_v5 = vadd.f32 %v7986_v10, %v15433_v2  ;;  %8399 = vmatprep.mubr.bf16.mxu1 %v8181_v40  ;;  %v8088_v16 = vmul.f32 0.01, %v7985_v44  ;;  %vm8056_vm5 = vcmp.gt.f32.partialorder %v7985_v44, 0.0  ;;  %v8119_v14 = vsel %vm8055_vm6, %v7983_v48, %v8087_v51 }
 0x84b   : > { %v7988_v26 = vpop.f32.mrf.mxu0  ;;  %8400 = vmatmul.mubr.bf16.vlgmr.msra.gmra.mxu1 %v8180_v46 }
 0x84c   : > { %vm8057_vm4 = vcmp.gt.f32.partialorder %v7987_v5, 0.0  ;;  %v8089_v53 = vmul.f32 0.01, %v7987_v5  ;;  %v7989_v4 = vadd.f32 %v7988_v26, %v15430_v7  ;;  %v8120_v47 = vsel %vm8056_vm5, %v7985_v44, %v8088_v16 }
 0x84d   : > { %v7992_v39 = vpop.f32.mrf.mxu0 }
 0x84e   : > { %vm8058_vm7 = vcmp.gt.f32.partialorder %v7989_v4, 0.0  ;;  %v8090_v49 = vmul.f32 0.01, %v7989_v4  ;;  %v8121_v58 = vsel %vm8057_vm4, %v7987_v5, %v8089_v53  ;;  %v7993_v35 = vadd.f32 %v7992_v39, %v15433_v2 }
 0x84f   : > { %v7994_v8 = vpop.f32.mrf.mxu0  ;;  %v8182_v54 = vpack.c.bf16 %v8121_v58, %v8119_v14 }
 0x850   : > { %v7995_v15 = vadd.f32 %v7994_v8, %v15430_v7  ;;  %v8122_v38 = vsel %vm8058_vm7, %v7989_v4, %v8090_v49  ;;  %v8091_v10 = vmul.f32 0.01, %v7993_v35  ;;  %vm8059_vm10 = vcmp.gt.f32.partialorder %v7993_v35, 0.0 }
 0x851   : > { %v7996_v22 = vpop.f32.mrf.mxu0  ;;  %v8183_v42 = vpack.c.bf16 %v8122_v38, %v8120_v47 }
 0x852   : > { %v7997_v45 = vadd.f32 %v7996_v22, %v15433_v2  ;;  %v8092_v17 = vmul.f32 0.01, %v7995_v15  ;;  %vm8060_vm9 = vcmp.gt.f32.partialorder %v7995_v15, 0.0  ;;  %v8123_v53 = vsel %vm8059_vm10, %v7993_v35, %v8091_v10 }
 0x853   : > { %v7998_v50 = vpop.f32.mrf.mxu0  ;;  %8409 = vmatprep.mubr.bf16.mxu1 %v8183_v42 }
 0x854   : > { %vm8061_vm8 = vcmp.gt.f32.partialorder %v7997_v45, 0.0  ;;  %v8093_v20 = vmul.f32 0.01, %v7997_v45  ;;  %v7999_v59 = vadd.f32 %v7998_v50, %v15430_v7  ;;  %8410 = vmatmul.mubr.bf16.gmra.mxu1 %v8182_v54  ;;  %v8124_v26 = vsel %vm8060_vm9, %v7995_v15, %v8092_v17 }
 0x855   : > { %v8002_v44 = vpop.f32.mrf.mxu0 }
 0x856   : > { %vm8062_vm11 = vcmp.gt.f32.partialorder %v7999_v59, 0.0  ;;  %v8094_v48 = vmul.f32 0.01, %v7999_v59  ;;  %v8125_v40 = vsel %vm8061_vm8, %v7997_v45, %v8093_v20  ;;  %v8003_v4 = vadd.f32 %v8002_v44, %v15433_v2 }
 0x857   : > { %v8004_v46 = vpop.f32.mrf.mxu0  ;;  %v8184_v49 = vpack.c.bf16 %v8125_v40, %v8123_v53 }
 0x858   : > { %v8005_v5 = vadd.f32 %v8004_v46, %v15430_v7  ;;  %v8126_v16 = vsel %vm8062_vm11, %v7999_v59, %v8094_v48  ;;  %v8095_v22 = vmul.f32 0.01, %v8003_v4  ;;  %vm8063_vm14 = vcmp.gt.f32.partialorder %v8003_v4, 0.0 }
 0x859   : > { %v8006_v51 = vpop.f32.mrf.mxu0  ;;  %v8185_v39 = vpack.c.bf16 %v8126_v16, %v8124_v26 }
 0x85a   : > { %v8007_v58 = vadd.f32 %v8006_v51, %v15433_v2  ;;  %v8096_v47 = vmul.f32 0.01, %v8005_v5  ;;  %vm8064_vm13 = vcmp.gt.f32.partialorder %v8005_v5, 0.0  ;;  %v8127_v20 = vsel %vm8063_vm14, %v8003_v4, %v8095_v22 }
 0x85b   : > { %v8008_v8 = vpop.f32.mrf.mxu0  ;;  %8419 = vmatprep.mubr.bf16.mxu1 %v8185_v39 }
 0x85c   : > { %vm8065_vm12 = vcmp.gt.f32.partialorder %v8007_v58, 0.0  ;;  %v8097_v38 = vmul.f32 0.01, %v8007_v58  ;;  %v8009_v14 = vadd.f32 %v8008_v8, %v15430_v7  ;;  %8420 = vmatmul.mubr.bf16.gmra.mxu1 %v8184_v49  ;;  %v8128_v50 = vsel %vm8064_vm13, %v8005_v5, %v8096_v47 }
 0x85d   : > { %v8012_v15 = vpop.f32.mrf.mxu0 }
 0x85e   : > { %vm8066_vm15 = vcmp.gt.f32.partialorder %v8009_v14, 0.0  ;;  %v8098_v35 = vmul.f32 0.01, %v8009_v14  ;;  %v8129_v42 = vsel %vm8065_vm12, %v8007_v58, %v8097_v38  ;;  %v8013_v59 = vadd.f32 %v8012_v15, %v15433_v2 }
 0x85f   : > { %v8014_v54 = vpop.f32.mrf.mxu0  ;;  %v8186_v48 = vpack.c.bf16 %v8129_v42, %v8127_v20 }
 0x860   : > { %v8015_v45 = vadd.f32 %v8014_v54, %v15430_v7  ;;  %v8130_v17 = vsel %vm8066_vm15, %v8009_v14, %v8098_v35  ;;  %v8099_v51 = vmul.f32 0.01, %v8013_v59  ;;  %vm8067_vm2 = vcmp.gt.f32.partialorder %v8013_v59, 0.0 }
 0x861   : > { %v8016_v10 = vpop.f32.mrf.mxu0  ;;  %v8187_v44 = vpack.c.bf16 %v8130_v17, %v8128_v50 }
 0x862   : > { %v8017_v40 = vadd.f32 %v8016_v10, %v15433_v2  ;;  %v8100_v26 = vmul.f32 0.01, %v8015_v45  ;;  %vm8068_vm1 = vcmp.gt.f32.partialorder %v8015_v45, 0.0  ;;  %v8131_v38 = vsel %vm8067_vm2, %v8013_v59, %v8099_v51 }
 0x863   : > { %v8018_v46 = vpop.f32.mrf.mxu0  ;;  %8429 = vmatprep.mubr.bf16.mxu1 %v8187_v44 }
 0x864   : > { %vm8069_vm0 = vcmp.gt.f32.partialorder %v8017_v40, 0.0  ;;  %v8101_v16 = vmul.f32 0.01, %v8017_v40  ;;  %v8019_v53 = vadd.f32 %v8018_v46, %v15430_v7  ;;  %8430 = vmatmul.mubr.bf16.gmra.mxu1 %v8186_v48  ;;  %v8132_v8 = vsel %vm8068_vm1, %v8015_v45, %v8100_v26 }
 0x865   : > { %v8022_v5 = vpop.f32.mrf.mxu0 }
 0x866   : > { %vm8070_vm3 = vcmp.gt.f32.partialorder %v8019_v53, 0.0  ;;  %v8102_v4 = vmul.f32 0.01, %v8019_v53  ;;  %v8133_v39 = vsel %vm8069_vm0, %v8017_v40, %v8101_v16  ;;  %v8023_v14 = vadd.f32 %v8022_v5, %v15433_v2 }
 0x867   : > { %v8024_v49 = vpop.f32.mrf.mxu0  ;;  %v8188_v35 = vpack.c.bf16 %v8133_v39, %v8131_v38 }
 0x868   : > { %v8025_v58 = vadd.f32 %v8024_v49, %v15430_v7  ;;  %v8134_v47 = vsel %vm8070_vm3, %v8019_v53, %v8102_v4  ;;  %v8103_v10 = vmul.f32 0.01, %v8023_v14  ;;  %vm8071_vm6 = vcmp.gt.f32.partialorder %v8023_v14, 0.0 }
 0x869   : > { %v8026_v22 = vpop.f32.mrf.mxu0  ;;  %v8189_v15 = vpack.c.bf16 %v8134_v47, %v8132_v8 }
 0x86a   : > { %v8027_v42 = vadd.f32 %v8026_v22, %v15433_v2  ;;  %v8104_v50 = vmul.f32 0.01, %v8025_v58  ;;  %vm8072_vm5 = vcmp.gt.f32.partialorder %v8025_v58, 0.0  ;;  %v8135_v16 = vsel %vm8071_vm6, %v8023_v14, %v8103_v10 }
 0x86b   : > { %v8028_v54 = vpop.f32.mrf.mxu0  ;;  %8439 = vmatprep.mubr.bf16.mxu1 %v8189_v15 }
 0x86c   : > { %vm8073_vm4 = vcmp.gt.f32.partialorder %v8027_v42, 0.0  ;;  %v8105_v17 = vmul.f32 0.01, %v8027_v42  ;;  %v8029_v20 = vadd.f32 %v8028_v54, %v15430_v7  ;;  %8440 = vmatmul.mubr.bf16.gmra.mxu1 %v8188_v35  ;;  %v8136_v46 = vsel %vm8072_vm5, %v8025_v58, %v8104_v50 }
 0x86d   : > { %v8032_v45 = vpop.f32.mrf.mxu0 }
 0x86e   : > { %vm8074_vm7 = vcmp.gt.f32.partialorder %v8029_v20, 0.0  ;;  %v8106_v59 = vmul.f32 0.01, %v8029_v20  ;;  %v8137_v44 = vsel %vm8073_vm4, %v8027_v42, %v8105_v17  ;;  %v8033_v53 = vadd.f32 %v8032_v45, %v15433_v2 }
 0x86f   : > { %v8034_v48 = vpop.f32.mrf.mxu0  ;;  %v8190_v4 = vpack.c.bf16 %v8137_v44, %v8135_v16 }
 0x870   : > { %v8035_v40 = vadd.f32 %v8034_v48, %v15430_v7  ;;  %v8138_v26 = vsel %vm8074_vm7, %v8029_v20, %v8106_v59  ;;  %v8107_v22 = vmul.f32 0.01, %v8033_v53  ;;  %vm8075_vm10 = vcmp.gt.f32.partialorder %v8033_v53, 0.0 }
 0x871   : > { %v8036_v51 = vpop.f32.mrf.mxu0  ;;  %v8191_v5 = vpack.c.bf16 %v8138_v26, %v8136_v46 }
 0x872   : > { %v8037_v39 = vadd.f32 %v8036_v51, %v15433_v2  ;;  %v8108_v8 = vmul.f32 0.01, %v8035_v40  ;;  %vm8076_vm9 = vcmp.gt.f32.partialorder %v8035_v40, 0.0  ;;  %v8139_v17 = vsel %vm8075_vm10, %v8033_v53, %v8107_v22  ;;  %v12183_v22 = vld [vmem:[#allocation18 + $0xa4] ss:$8 sps:$4 sm:$0xff]  }
 0x873   : > { %v8038_v49 = vpop.f32.mrf.mxu0  ;;  %8449 = vmatprep.mubr.bf16.mxu1 %v8191_v5 }
 0x874   : > { %vm8077_vm8 = vcmp.gt.f32.partialorder %v8037_v39, 0.0  ;;  %v8109_v47 = vmul.f32 0.01, %v8037_v39  ;;  %v8039_v38 = vadd.f32 %v8038_v49, %v15430_v7  ;;  %8450 = vmatmul.mubr.bf16.gmra.mxu1 %v8190_v4  ;;  %v8140_v54 = vsel %vm8076_vm9, %v8035_v40, %v8108_v8 }
 0x875   : > { %v8042_v58 = vpop.f32.mrf.mxu0 }
 0x876   : > { %vm8078_vm11 = vcmp.gt.f32.partialorder %v8039_v38, 0.0  ;;  %v8110_v14 = vmul.f32 0.01, %v8039_v38  ;;  %v8141_v15 = vsel %vm8077_vm8, %v8037_v39, %v8109_v47  ;;  %v8043_v20 = vadd.f32 %v8042_v58, %v15433_v2  ;;  %v12177_v47 = vld [vmem:[#allocation18 + $0xc4] ss:$8 sps:$4 sm:$0xff]  }
 0x877   : > { %v8044_v35 = vpop.f32.mrf.mxu0  ;;  %v8192_v59 = vpack.c.bf16 %v8141_v15, %v8139_v17  ;;  %8938 = vmatprep.subr.bf16.mxu0 %v12177_v47  ;;  %v12181_v58 = vld [vmem:[#allocation18 + $0xa0] ss:$8 sps:$4 sm:$0xff]   ;;  %v12184_v15 = vld [vmem:[#allocation18 + $0x90] ss:$8 sps:$4 sm:$0xff]   ;;  %v12195_v17 = vld [vmem:[#allocation19 + $0x64] ss:$8 sps:$4 sm:$0xff]  }
 0x878   : > { %v8045_v42 = vadd.f32 %v8044_v35, %v15430_v7  ;;  %v8142_v50 = vsel %vm8078_vm11, %v8039_v38, %v8110_v14  ;;  %v8111_v51 = vmul.f32 0.01, %v8043_v20  ;;  %vm8079_vm14 = vcmp.gt.f32.partialorder %v8043_v20, 0.0  ;;  %v12178_v38 = vld [vmem:[#allocation18 + $0xb0] ss:$8 sps:$4 sm:$0xff]  }
 0x879   : > { %v8046_v10 = vpop.f32.mrf.mxu0  ;;  %v8193_v45 = vpack.c.bf16 %v8142_v50, %v8140_v54  ;;  %v12186_v14 = vld [vmem:[#allocation18 + $0x94] ss:$8 sps:$4 sm:$0xff]   ;;  %v12189_v35 = vld [vmem:[#allocation18 + $0x84] ss:$8 sps:$4 sm:$0xff]   ;;  %v12190_v54 = vld [vmem:[#allocation19 + $0x70] ss:$8 sps:$4 sm:$0xff]  }
 0x87a   : > { %v8047_v44 = vadd.f32 %v8046_v10, %v15433_v2  ;;  %v8112_v46 = vmul.f32 0.01, %v8045_v42  ;;  %vm8080_vm13 = vcmp.gt.f32.partialorder %v8045_v42, 0.0  ;;  %v8143_v39 = vsel %vm8079_vm14, %v8043_v20, %v8111_v51  ;;  %v12175_v2 = vld [vmem:[#allocation18 + $0xc0] ss:$8 sps:$4 sm:$0xff]  }
 0x87b   : > { %v8048_v48 = vpop.f32.mrf.mxu0  ;;  %8459 = vmatprep.mubr.bf16.mxu1 %v8193_v45  ;;  %8939 = vmatpush2.bf16.msra.mxu0 %v12175_v2  ;;  %v12192_v50 = vld [vmem:[#allocation19 + $0x74] ss:$8 sps:$4 sm:$0xff]   ;;  %v12193_v20 = vld [vmem:[#allocation19 + $0x60] ss:$8 sps:$4 sm:$0xff]   ;;  %v12196_v45 = vld [vmem:[#allocation19 + $0x50] ss:$8 sps:$4 sm:$0xff]  }
 0x87c   : > { %vm8081_vm12 = vcmp.gt.f32.partialorder %v8047_v44, 0.0  ;;  %v8113_v26 = vmul.f32 0.01, %v8047_v44  ;;  %v8049_v16 = vadd.f32 %v8048_v48, %v15430_v7  ;;  %8460 = vmatmul.mubr.bf16.gmra.mxu1 %v8192_v59  ;;  %v8144_v5 = vsel %vm8080_vm13, %v8045_v42, %v8112_v46  ;;  %v12180_v7 = vld [vmem:[#allocation18 + $0xb4] ss:$8 sps:$4 sm:$0xff]   ;;  %9345 = vmatprep.subr.bf16.mxu1 %v12192_v50 }
 0x87d   : > { %8940 = vmatprep.subr.bf16.mxu0 %v12180_v7  ;;  %v12187_v42 = vld [vmem:[#allocation18 + $0x80] ss:$8 sps:$4 sm:$0xff]   ;;  %9346 = vmatpush1.bf16.msra.mxu1 %v12190_v54  ;;  %v12198_v10 = vld [vmem:[#allocation19 + $0x54] ss:$8 sps:$4 sm:$0xff]   ;;  %v12201_v59 = vld [vmem:[#allocation19 + $0x44] ss:$8 sps:$4 sm:$0xff]  }
 0x87e   : > { %vm8082_vm15 = vcmp.gt.f32.partialorder %v8049_v16, 0.0  ;;  %v8114_v40 = vmul.f32 0.01, %v8049_v16  ;;  %v8145_v53 = vsel %vm8081_vm12, %v8047_v44, %v8113_v26  ;;  %9347 = vmatprep.subr.bf16.mxu1 %v12195_v17  ;;  %v12199_v44 = vld [vmem:[#allocation19 + $0x40] ss:$8 sps:$4 sm:$0xff]  }
 0x87f   : > { %v8194_v8 = vpack.c.bf16 %v8145_v53, %v8143_v39  ;;  %8941 = vmatpush2.bf16.msra.mxu0 %v12178_v38  ;;  %v12204_v48 = vld [vmem:[#allocation19 + $0x34] ss:$8 sps:$4 sm:$0xff]   ;;  %v12202_v46 = vld [vmem:[#allocation19 + $0x30] ss:$8 sps:$4 sm:$0xff]   ;;  %v12207_v26 = vld [vmem:[#allocation19 + $0x24] ss:$8 sps:$4 sm:$0xff]  }
 0x880   : > { %v8146_v4 = vsel %vm8082_vm15, %v8049_v16, %v8114_v40  ;;  %8942 = vmatprep.subr.bf16.mxu0 %v12183_v22  ;;  %v12205_v16 = vld [vmem:[#allocation19 + $0x20] ss:$8 sps:$4 sm:$0xff]   ;;  %v12210_v51 = vld [vmem:[#allocation19 + $0x14] ss:$8 sps:$4 sm:$0xff]   ;;  %v12208_v40 = vld [vmem:[#allocation19 + $0x10] ss:$8 sps:$4 sm:$0xff]  }
 0x881   : > { %v8195_v49 = vpack.c.bf16 %v8146_v4, %v8144_v5  ;;  %9348 = vmatpush1.bf16.msra.mxu1 %v12193_v20  ;;  %v12213_v53 = vld [vmem:[#allocation19 + $0x4] ss:$8 sps:$4 sm:$0xff]   ;;  %v12211_v5 = vld [vmem:[#allocation19] ss:$8 sps:$4 sm:$0xff]   ;;  %v12216_v4 = vld [vmem:[#allocation19 + $0xf4] ss:$8 sps:$4 sm:$0xff]  }
 0x882   : > { %9349 = vmatprep.subr.bf16.mxu1 %v12198_v10  ;;  %v12214_v39 = vld [vmem:[#allocation19 + $0xf0] ss:$8 sps:$4 sm:$0xff]   ;;  %v12222_v2 = vld [vmem:[#allocation19 + $0xd4] ss:$8 sps:$4 sm:$0xff]   ;;  %v12225_v38 = vld [vmem:[#allocation19 + $0xc4] ss:$8 sps:$4 sm:$0xff]  }
 0x883   : > { %8469 = vmatprep.mubr.bf16.mxu1 %v8195_v49  ;;  %8943 = vmatpush2.bf16.msra.mxu0 %v12181_v58  ;;  %v12219_v49 = vld [vmem:[#allocation19 + $0xe4] ss:$8 sps:$4 sm:$0xff]   ;;  %v12220_v47 = vld [vmem:[#allocation19 + $0xd0] ss:$8 sps:$4 sm:$0xff]   ;;  %v8179_v7 = vld [vmem:[%s16190_s0] sm:$0x3] }
 0x884   : > { %8470 = vmatmul.mubr.bf16.gmra.mxu1 %v8194_v8  ;;  %8944 = vmatprep.subr.bf16.mxu0 %v12186_v14  ;;  %v12217_v8 = vld [vmem:[#allocation19 + $0xe0] ss:$8 sps:$4 sm:$0xff]   ;;  %v12228_v58 = vld [vmem:[#allocation19 + $0xb4] ss:$8 sps:$4 sm:$0xff]   ;;  %v15469_v14 = vrot.slane %v8179_v7, %v16070_v28 }
 0x885   : > { %9350 = vmatpush1.bf16.msra.mxu1 %v12196_v45  ;;  %v12223_v22 = vld [vmem:[#allocation19 + $0xc0] ss:$8 sps:$4 sm:$0xff]   ;;  %v8512_v50 = vld [vmem:[%s16191_s16] sm:$0x3] }
 0x886   : > { %9351 = vmatprep.subr.bf16.mxu1 %v12201_v59  ;;  %v15478_v10 = vrot.slane %v8512_v50, %v16069_v3  ;;  %v15484_v59 = vrot.slane %v8512_v50, %v16070_v28 }
 0x887   : > { %8945 = vmatpush2.bf16.msra.mxu0 %v12184_v15  ;;  %v12226_v15 = vld [vmem:[#allocation19 + $0xb0] ss:$8 sps:$4 sm:$0xff]  }
 0x888   : > { %8946 = vmatprep.subr.bf16.mxu0 %v12189_v35  ;;  %v15472_v35 = vrot.slane %v8179_v7, %v16069_v3 }
 0x889   : > { %9352 = vmatpush1.bf16.msra.mxu1 %v12199_v44 }
 0x88a   : > { %9353 = vmatprep.subr.bf16.mxu1 %v12204_v48  ;;  %v8513_v48 = vld [vmem:[%s16192_s15] sm:$0x3] }
 0x88b   : > { %8947 = vmatpush2.bf16.msra.mxu0 %v12187_v42 }
 0x88d   : > { %9354 = vmatpush1.bf16.msra.mxu1 %v12202_v46 }
 0x88e   : > { %9355 = vmatprep.subr.bf16.mxu1 %v12207_v26 }
 0x891   : > { %9356 = vmatpush1.bf16.msra.mxu1 %v12205_v16  ;;  %v15492_v16 = vrot.slane %v8513_v48, %v16069_v3 }
 0x892   : > { %9357 = vmatprep.subr.bf16.mxu1 %v12210_v51 }
 0x895   : > { %9358 = vmatpush1.bf16.msra.mxu1 %v12208_v40 }
 0x896   : > { %9359 = vmatprep.subr.bf16.mxu1 %v12213_v53 }
 0x899   : > { %9360 = vmatpush1.bf16.msra.mxu1 %v12211_v5 }
 0x89a   : > { %9361 = vmatprep.subr.bf16.mxu1 %v12216_v4 }
 0x89d   : > { %9362 = vmatpush2.bf16.msra.mxu1 %v12214_v39 }
 0x89e   : > { %9363 = vmatprep.subr.bf16.mxu1 %v12219_v49 }
 0x8a1   : > { %9364 = vmatpush2.bf16.msra.mxu1 %v12217_v8 }
 0x8a2   : > { %9365 = vmatprep.subr.bf16.mxu1 %v12222_v2 }
 0x8a5   : > { %9366 = vmatpush2.bf16.msra.mxu1 %v12220_v47 }
 0x8a6   : > { %9367 = vmatprep.subr.bf16.mxu1 %v12225_v38 }
 0x8a9   : > { %9368 = vmatpush2.bf16.msra.mxu1 %v12223_v22 }
 0x8aa   : > { %9369 = vmatprep.subr.bf16.mxu1 %v12228_v58 }
 0x8ad   : > { %9370 = vmatpush2.bf16.msra.mxu1 %v12226_v15 }
 0x90b   : > { %v8401_v42 = vpop.f32.mrf.mxu1 }
 0x90c   : > { %v8402_v54 = vadd.f32 %v8401_v42, %v15469_v14 }
 0x90d   : > { %v8403_v17 = vpop.f32.mrf.mxu1 }
 0x90e   : > { %v8404_v20 = vadd.f32 %v8403_v17, %v15472_v35  ;;  %v15481_v45 = vadd.f32 %v8402_v54, %v15179_v62 }
 0x90f   : > { %v8405_v44 = vpop.f32.mrf.mxu1 }
 0x910   : > { %v15488_v46 = vadd.f32 %v8404_v20, %v15193_v31  ;;  %v8406_v26 = vadd.f32 %v8405_v44, %v15469_v14  ;;  %v8525_v5 = vmul.f32 %v15484_v59, %v15481_v45  ;;  %v15503_v31 = vrot.slane %v8513_v48, %v16070_v28 }
 0x911   : > { %v8407_v51 = vpop.f32.mrf.mxu1 }
 0x912   : > { %v8526_v40 = vmul.f32 %v15478_v10, %v15488_v46  ;;  %v15497_v62 = vadd.f32 %v8406_v26, %v15200_v56  ;;  %v8408_v53 = vadd.f32 %v8407_v51, %v15472_v35  ;;  %v8568_v7 = vadd.f32 %v15503_v31, %v8525_v5 }
 0x914   : > { %v8411_v4 = vpop.f32.mrf.mxu1  ;;  %v8527_v39 = vmul.f32 %v15484_v59, %v15497_v62  ;;  %v8569_v49 = vadd.f32 %v15492_v16, %v8526_v40  ;;  %v15509_v8 = vadd.f32 %v8408_v53, %v15212_v52  ;;  %v8632_v26 = vmul.f32 0.01, %v8568_v7 }
 0x915   : > { %v8412_v56 = vadd.f32 %v8411_v4, %v15469_v14  ;;  %vm8600_vm3 = vcmp.gt.f32.partialorder %v8568_v7, 0.0 }
 0x916   : > { %v8413_v2 = vpop.f32.mrf.mxu1  ;;  %v8570_v47 = vadd.f32 %v15503_v31, %v8527_v39  ;;  %v8528_v22 = vmul.f32 %v15478_v10, %v15509_v8  ;;  %v8633_v44 = vmul.f32 0.01, %v8569_v49  ;;  %vm8601_vm1 = vcmp.gt.f32.partialorder %v8569_v49, 0.0 }
 0x917   : > { %v8414_v38 = vadd.f32 %v8413_v2, %v15472_v35  ;;  %v15518_v58 = vadd.f32 %v8412_v56, %v15217_v29 }
 0x918   : > { %v8415_v15 = vpop.f32.mrf.mxu1  ;;  %v8634_v54 = vmul.f32 0.01, %v8570_v47  ;;  %v8571_v50 = vadd.f32 %v15492_v16, %v8528_v22  ;;  %vm8602_vm0 = vcmp.gt.f32.partialorder %v8570_v47, 0.0 }
 0x919   : > { %16193 = vst [vmem:[#allocation82_spill] sm:$0xff] %v15518_v58  ;;  %v15521_v42 = vadd.f32 %v8414_v38, %v15225_v43  ;;  %v8416_v52 = vadd.f32 %v8415_v15, %v15469_v14  ;;  %v8529_v17 = vmul.f32 %v15484_v59, %v15518_v58  ;;  %v8664_v58 = vsel %vm8600_vm3, %v8568_v7, %v8632_v26 }
 0x91a   : > { %v8417_v20 = vpop.f32.mrf.mxu1  ;;  %vm8603_vm2 = vcmp.gt.f32.partialorder %v8571_v50, 0.0  ;;  %v8635_v40 = vmul.f32 0.01, %v8571_v50  ;;  %v8666_v39 = vsel %vm8602_vm0, %v8570_v47, %v8634_v54 }
 0x91b   : > { %v8530_v48 = vmul.f32 %v15478_v10, %v15521_v42  ;;  %v15530_v29 = vadd.f32 %v8416_v52, %v15232_v57  ;;  %v8418_v43 = vadd.f32 %v8417_v20, %v15472_v35  ;;  %v8572_v57 = vadd.f32 %v15503_v31, %v8529_v17 }
 0x91c   : > { %v8421_v51 = vpop.f32.mrf.mxu1  ;;  %v8667_v38 = vsel %vm8603_vm2, %v8571_v50, %v8635_v40  ;;  %v8665_v20 = vsel %vm8601_vm1, %v8569_v49, %v8633_v44  ;;  %v8729_v54 = vpack.c.bf16 %v8666_v39, %v8664_v58 }
 0x91d   : > { %v8531_v53 = vmul.f32 %v15484_v59, %v15530_v29  ;;  %v15536_v5 = vadd.f32 %v8418_v43, %v15246_v36  ;;  %v8422_v4 = vadd.f32 %v8421_v51, %v15469_v14  ;;  %v8573_v56 = vadd.f32 %v15492_v16, %v8530_v48 }
 0x91e   : > { %v8423_v2 = vpop.f32.mrf.mxu1  ;;  %v8730_v47 = vpack.c.bf16 %v8667_v38, %v8665_v20  ;;  %v8636_v51 = vmul.f32 0.01, %v8572_v57  ;;  %vm8604_vm7 = vcmp.gt.f32.partialorder %v8572_v57, 0.0 }
 0x91f   : > { %v8574_v22 = vadd.f32 %v15503_v31, %v8531_v53  ;;  %v8532_v15 = vmul.f32 %v15478_v10, %v15536_v5  ;;  %v8424_v52 = vadd.f32 %v8423_v2, %v15472_v35  ;;  %v15546_v36 = vadd.f32 %v8422_v4, %v15250_v6 }
 0x920   : > { %v8425_v43 = vpop.f32.mrf.mxu1  ;;  %8948 = vmatprep.mubr.bf16.mxu0 %v8730_v47  ;;  %v8637_v2 = vmul.f32 0.01, %v8573_v56  ;;  %vm8605_vm5 = vcmp.gt.f32.partialorder %v8573_v56, 0.0 }
 0x921   : > { %v8638_v17 = vmul.f32 0.01, %v8574_v22  ;;  %v8575_v48 = vadd.f32 %v15492_v16, %v8532_v15  ;;  %v15550_v50 = vadd.f32 %v8424_v52, %v15260_v9  ;;  %v8426_v40 = vadd.f32 %v8425_v43, %v15469_v14  ;;  %8949 = vmatmul.mubr.bf16.vlgmr.msra.gmra.mxu0 %v8729_v54 }
 0x922   : > { %v8427_v53 = vpop.f32.mrf.mxu1  ;;  %vm8606_vm4 = vcmp.gt.f32.partialorder %v8574_v22, 0.0  ;;  %v8533_v7 = vmul.f32 %v15484_v59, %v15546_v36  ;;  %v8669_v20 = vsel %vm8605_vm5, %v8573_v56, %v8637_v2 }
 0x923   : > { %v8534_v6 = vmul.f32 %v15478_v10, %v15550_v50  ;;  %v8428_v49 = vadd.f32 %v8427_v53, %v15472_v35  ;;  %vm8607_vm6 = vcmp.gt.f32.partialorder %v8575_v48, 0.0  ;;  %v15559_v9 = vadd.f32 %v8426_v40, %v15267_v37 }
 0x924   : > { %v8431_v58 = vpop.f32.mrf.mxu1  ;;  %v8639_v44 = vmul.f32 0.01, %v8575_v48  ;;  %v8670_v38 = vsel %vm8606_vm4, %v8574_v22, %v8638_v17  ;;  %v8668_v40 = vsel %vm8604_vm7, %v8572_v57, %v8636_v51  ;;  %v8576_v53 = vadd.f32 %v15503_v31, %v8533_v7 }
 0x925   : > { %v8577_v26 = vadd.f32 %v15492_v16, %v8534_v6  ;;  %v15563_v4 = vadd.f32 %v8428_v49, %v15280_v27  ;;  %v8432_v39 = vadd.f32 %v8431_v58, %v15469_v14  ;;  %v8535_v15 = vmul.f32 %v15484_v59, %v15559_v9 }
 0x926   : > { %v8433_v52 = vpop.f32.mrf.mxu1  ;;  %v8671_v43 = vsel %vm8607_vm6, %v8575_v48, %v8639_v44  ;;  %v8731_v17 = vpack.c.bf16 %v8670_v38, %v8668_v40  ;;  %v8640_v44 = vmul.f32 0.01, %v8576_v53  ;;  %vm8608_vm11 = vcmp.gt.f32.partialorder %v8576_v53, 0.0 }
 0x927   : > { %v8536_v37 = vmul.f32 %v15478_v10, %v15563_v4  ;;  %v8434_v47 = vadd.f32 %v8433_v52, %v15472_v35  ;;  %v8732_v54 = vpack.c.bf16 %v8671_v43, %v8669_v20  ;;  %v8578_v27 = vadd.f32 %v15503_v31, %v8535_v15 }
 0x928   : > { %v15574_v6 = vadd.f32 %v8432_v39, %v15283_v18  ;;  %v8435_v22 = vpop.f32.mrf.mxu1  ;;  %v8641_v2 = vmul.f32 0.01, %v8577_v26  ;;  %vm8609_vm8 = vcmp.gt.f32.partialorder %v8577_v26, 0.0 }
 0x929   : > { %v8579_v49 = vadd.f32 %v15492_v16, %v8536_v37  ;;  %v15578_v56 = vadd.f32 %v8434_v47, %v15292_v32  ;;  %v8436_v48 = vadd.f32 %v8435_v22, %v15469_v14  ;;  %8958 = vmatprep.mubr.bf16.mxu0 %v8732_v54  ;;  %v8642_v58 = vmul.f32 0.01, %v8578_v27 }
 0x92a   : > { %v8437_v57 = vpop.f32.mrf.mxu1  ;;  %8959 = vmatmul.mubr.bf16.gmra.mxu0 %v8731_v17  ;;  %vm8610_vm9 = vcmp.gt.f32.partialorder %v8578_v27, 0.0  ;;  %v8537_v32 = vmul.f32 %v15484_v59, %v15574_v6  ;;  %v8673_v20 = vsel %vm8609_vm8, %v8577_v26, %v8641_v2 }
 0x92b   : > { %v8538_v51 = vmul.f32 %v15478_v10, %v15578_v56  ;;  %v15584_v18 = vadd.f32 %v8436_v48, %v15299_v13  ;;  %v8438_v7 = vadd.f32 %v8437_v57, %v15472_v35  ;;  %vm8611_vm10 = vcmp.gt.f32.partialorder %v8579_v49, 0.0 }
 0x92c   : > { %v8441_v39 = vpop.f32.mrf.mxu1  ;;  %v8643_v38 = vmul.f32 0.01, %v8579_v49  ;;  %v8674_v54 = vsel %vm8610_vm9, %v8578_v27, %v8642_v58  ;;  %v8672_v57 = vsel %vm8608_vm11, %v8576_v53, %v8640_v44 }
 0x92d   : > { %v8539_v15 = vmul.f32 %v15484_v59, %v15584_v18  ;;  %v15592_v52 = vadd.f32 %v8438_v7, %v15314_v63  ;;  %v8581_v13 = vadd.f32 %v15492_v16, %v8538_v51  ;;  %v8442_v43 = vadd.f32 %v8441_v39, %v15469_v14 }
 0x92e   : > { %v8443_v37 = vpop.f32.mrf.mxu1  ;;  %v8675_v47 = vsel %vm8611_vm10, %v8579_v49, %v8643_v38  ;;  %v8580_v63 = vadd.f32 %v15503_v31, %v8537_v32  ;;  %v8733_v58 = vpack.c.bf16 %v8674_v54, %v8672_v57 }
 0x92f   : > { %v8582_v40 = vadd.f32 %v15503_v31, %v8539_v15  ;;  %v8540_v22 = vmul.f32 %v15478_v10, %v15592_v52  ;;  %v8444_v17 = vadd.f32 %v8443_v37, %v15472_v35  ;;  %v8734_v48 = vpack.c.bf16 %v8675_v47, %v8673_v20 }
 0x930   : > { %v15602_v26 = vadd.f32 %v8442_v43, %v15318_v24  ;;  %v8445_v2 = vpop.f32.mrf.mxu1  ;;  %v8645_v32 = vmul.f32 0.01, %v8581_v13  ;;  %v8644_v44 = vmul.f32 0.01, %v8580_v63  ;;  %vm8613_vm14 = vcmp.gt.f32.partialorder %v8581_v13, 0.0 }
 0x931   : > { %v8583_v51 = vadd.f32 %v15492_v16, %v8540_v22  ;;  %v15606_v49 = vadd.f32 %v8444_v17, %v15326_v21  ;;  %v8446_v27 = vadd.f32 %v8445_v2, %v15469_v14  ;;  %8968 = vmatprep.mubr.bf16.mxu0 %v8734_v48  ;;  %v8646_v7 = vmul.f32 0.01, %v8582_v40 }
 0x932   : > { %v8541_v39 = vmul.f32 %v15484_v59, %v15602_v26  ;;  %v8447_v38 = vpop.f32.mrf.mxu1  ;;  %vm8614_vm12 = vcmp.gt.f32.partialorder %v8582_v40, 0.0  ;;  %8969 = vmatmul.mubr.bf16.gmra.mxu0 %v8733_v58  ;;  %vm8612_vm15 = vcmp.gt.f32.partialorder %v8580_v63, 0.0 }
 0x933   : > { %v8542_v24 = vmul.f32 %v15478_v10, %v15606_v49  ;;  %v15614_v53 = vadd.f32 %v8446_v27, %v15333_v55  ;;  %v8448_v21 = vadd.f32 %v8447_v38, %v15472_v35  ;;  %vm8615_vm13 = vcmp.gt.f32.partialorder %v8583_v51, 0.0 }
 0x934   : > { %v8451_v15 = vpop.f32.mrf.mxu1  ;;  %v8647_v20 = vmul.f32 0.01, %v8583_v51  ;;  %v8584_v55 = vadd.f32 %v15503_v31, %v8541_v39  ;;  %v8678_v48 = vsel %vm8614_vm12, %v8582_v40, %v8646_v7  ;;  %v8676_v39 = vsel %vm8612_vm15, %v8580_v63, %v8644_v44 }
 0x935   : > { %v8543_v43 = vmul.f32 %v15484_v59, %v15614_v53  ;;  %v15620_v37 = vadd.f32 %v8448_v21, %v15344_v1  ;;  %v8452_v47 = vadd.f32 %v8451_v15, %v15469_v14  ;;  %v8585_v54 = vadd.f32 %v15492_v16, %v8542_v24 }
 0x936   : > { %v8453_v22 = vpop.f32.mrf.mxu1  ;;  %v8679_v17 = vsel %vm8615_vm13, %v8583_v51, %v8647_v20  ;;  %v8677_v1 = vsel %vm8613_vm14, %v8581_v13, %v8645_v32  ;;  %v8735_v40 = vpack.c.bf16 %v8678_v48, %v8676_v39  ;;  %v8648_v7 = vmul.f32 0.01, %v8584_v55 }
 0x937   : > { %v8586_v2 = vadd.f32 %v15503_v31, %v8543_v43  ;;  %v8544_v57 = vmul.f32 %v15478_v10, %v15620_v37  ;;  %v8454_v27 = vadd.f32 %v8453_v22, %v15472_v35  ;;  %v15631_v58 = vadd.f32 %v8452_v47, %v15347_v33 }
 0x938   : > { %v8455_v38 = vpop.f32.mrf.mxu1  ;;  %v8736_v21 = vpack.c.bf16 %v8679_v17, %v8677_v1  ;;  %v8649_v22 = vmul.f32 0.01, %v8585_v54  ;;  %vm8617_vm1 = vcmp.gt.f32.partialorder %v8585_v54, 0.0  ;;  %vm8616_vm3 = vcmp.gt.f32.partialorder %v8584_v55, 0.0 }
 0x939   : > { %v8650_v15 = vmul.f32 0.01, %v8586_v2  ;;  %v8587_v24 = vadd.f32 %v15492_v16, %v8544_v57  ;;  %v15635_v51 = vadd.f32 %v8454_v27, %v15354_v41  ;;  %v8456_v20 = vadd.f32 %v8455_v38, %v15469_v14 }
 0x93a   : > { %8978 = vmatprep.mubr.bf16.mxu0 %v8736_v21  ;;  %v8457_v43 = vpop.f32.mrf.mxu1  ;;  %vm8618_vm0 = vcmp.gt.f32.partialorder %v8586_v2, 0.0  ;;  %v8545_v41 = vmul.f32 %v15484_v59, %v15631_v58  ;;  %v8681_v38 = vsel %vm8617_vm1, %v8585_v54, %v8649_v22 }
 0x93b   : > { %v8546_v33 = vmul.f32 %v15478_v10, %v15635_v51  ;;  %8979 = vmatmul.mubr.bf16.gmra.mxu0 %v8735_v40  ;;  %v8458_v13 = vadd.f32 %v8457_v43, %v15472_v35  ;;  %vm8619_vm2 = vcmp.gt.f32.partialorder %v8587_v24, 0.0  ;;  %v15644_v63 = vadd.f32 %v8456_v20, %v15361_v0 }
 0x93c   : > { %v8461_v32 = vpop.f32.mrf.mxu1  ;;  %v8651_v44 = vmul.f32 0.01, %v8587_v24  ;;  %v8682_v57 = vsel %vm8618_vm0, %v8586_v2, %v8650_v15  ;;  %v8680_v20 = vsel %vm8616_vm3, %v8584_v55, %v8648_v7  ;;  %v8588_v43 = vadd.f32 %v15503_v31, %v8545_v41 }
 0x93d   : > { %v8589_v47 = vadd.f32 %v15492_v16, %v8546_v33  ;;  %v15648_v17 = vadd.f32 %v8458_v13, %v15372_v25  ;;  %v8462_v48 = vadd.f32 %v8461_v32, %v15469_v14  ;;  %v8547_v27 = vmul.f32 %v15484_v59, %v15644_v63 }
 0x93e   : > { %v8463_v1 = vpop.f32.mrf.mxu1  ;;  %v8683_v21 = vsel %vm8619_vm2, %v8587_v24, %v8651_v44  ;;  %v8737_v15 = vpack.c.bf16 %v8682_v57, %v8680_v20  ;;  %v8652_v44 = vmul.f32 0.01, %v8588_v43  ;;  %vm8620_vm7 = vcmp.gt.f32.partialorder %v8588_v43, 0.0 }
 0x93f   : > { %v8548_v0 = vmul.f32 %v15478_v10, %v15648_v17  ;;  %v8464_v39 = vadd.f32 %v8463_v1, %v15472_v35  ;;  %v8738_v40 = vpack.c.bf16 %v8683_v21, %v8681_v38  ;;  %v8590_v25 = vadd.f32 %v15503_v31, %v8547_v27 }
 0x940   : > { %v15659_v33 = vadd.f32 %v8462_v48, %v15377_v60  ;;  %v8465_v2 = vpop.f32.mrf.mxu1  ;;  %v8653_v22 = vmul.f32 0.01, %v8589_v47  ;;  %vm8621_vm4 = vcmp.gt.f32.partialorder %v8589_v47, 0.0 }
 0x941   : > { %v8591_v13 = vadd.f32 %v15492_v16, %v8548_v0  ;;  %v15663_v54 = vadd.f32 %v8464_v39, %v15382_v61  ;;  %v8466_v24 = vadd.f32 %v8465_v2, %v15469_v14  ;;  %8988 = vmatprep.mubr.bf16.mxu0 %v8738_v40  ;;  %v8654_v32 = vmul.f32 0.01, %v8590_v25 }
 0x942   : > { %v8467_v55 = vpop.f32.mrf.mxu1  ;;  %vm8622_vm5 = vcmp.gt.f32.partialorder %v8590_v25, 0.0  ;;  %v8549_v61 = vmul.f32 %v15484_v59, %v15659_v33  ;;  %v8685_v38 = vsel %vm8621_vm4, %v8589_v47, %v8653_v22 }
 0x943   : > { %v8550_v7 = vmul.f32 %v15478_v10, %v15663_v54  ;;  %v15669_v60 = vadd.f32 %v8466_v24, %v15390_v19  ;;  %8989 = vmatmul.mubr.bf16.gmra.mxu0 %v8737_v15  ;;  %v8468_v41 = vadd.f32 %v8467_v55, %v15472_v35  ;;  %vm8623_vm6 = vcmp.gt.f32.partialorder %v8591_v13, 0.0 }
 0x944   : > { %v8471_v48 = vpop.f32.mrf.mxu1  ;;  %v8655_v57 = vmul.f32 0.01, %v8591_v13  ;;  %v8686_v40 = vsel %vm8622_vm5, %v8590_v25, %v8654_v32  ;;  %v8684_v55 = vsel %vm8620_vm7, %v8588_v43, %v8652_v44 }
 0x945   : > { %v8551_v27 = vmul.f32 %v15484_v59, %v15669_v60  ;;  %v15677_v1 = vadd.f32 %v8468_v41, %v15399_v34  ;;  %v8593_v19 = vadd.f32 %v15492_v16, %v8550_v7  ;;  %v8472_v21 = vadd.f32 %v8471_v48, %v15469_v14 }
 0x946   : > { %v8473_v0 = vpop.f32.mrf.mxu1  ;;  %v8687_v39 = vsel %vm8623_vm6, %v8591_v13, %v8655_v57  ;;  %v8592_v34 = vadd.f32 %v15503_v31, %v8549_v61  ;;  %v8739_v32 = vpack.c.bf16 %v8686_v40, %v8684_v55 }
 0x947   : > { %v8594_v20 = vadd.f32 %v15503_v31, %v8551_v27  ;;  %v8552_v2 = vmul.f32 %v15478_v10, %v15677_v1  ;;  %v8474_v15 = vadd.f32 %v8473_v0, %v15472_v35  ;;  %v8740_v24 = vpack.c.bf16 %v8687_v39, %v8685_v38 }
 0x948   : > { %v15687_v47 = vadd.f32 %v8472_v21, %v15402_v23  ;;  %v8475_v22 = vpop.f32.mrf.mxu1  ;;  %vm8625_vm8 = vcmp.gt.f32.partialorder %v8593_v19, 0.0  ;;  %v8657_v57 = vmul.f32 0.01, %v8593_v19  ;;  %vm8624_vm11 = vcmp.gt.f32.partialorder %v8592_v34, 0.0 }
 0x949   : > { %v8595_v7 = vadd.f32 %v15492_v16, %v8552_v2  ;;  %v15691_v13 = vadd.f32 %v8474_v15, %v15408_v30  ;;  %v8476_v25 = vadd.f32 %v8475_v22, %v15469_v14  ;;  %8998 = vmatprep.mubr.bf16.mxu0 %v8740_v24  ;;  %v8658_v41 = vmul.f32 0.01, %v8594_v20 }
 0x94a   : > { %v8477_v48 = vpop.f32.mrf.mxu1  ;;  %vm8626_vm9 = vcmp.gt.f32.partialorder %v8594_v20, 0.0  ;;  %v8656_v30 = vmul.f32 0.01, %v8592_v34  ;;  %v8553_v14 = vmul.f32 %v15484_v59, %v15687_v47 }
 0x94b   : > { %v8554_v23 = vmul.f32 %v15478_v10, %v15691_v13  ;;  %v15697_v61 = vadd.f32 %v8476_v25, %v15415_v11  ;;  %8999 = vmatmul.mubr.bf16.gmra.mxu0 %v8739_v32  ;;  %v8478_v43 = vadd.f32 %v8477_v48, %v15472_v35  ;;  %vm8627_vm10 = vcmp.gt.f32.partialorder %v8595_v7, 0.0  ;;  %v12232_v48 = vld [vmem:[#allocation19 + $0x90] ss:$8 sps:$4 sm:$0xff]  }
 0x94c   : > { %v8659_v44 = vmul.f32 0.01, %v8595_v7  ;;  %v8689_v11 = vsel %vm8625_vm8, %v8593_v19, %v8657_v57  ;;  %v8690_v39 = vsel %vm8626_vm9, %v8594_v20, %v8658_v41  ;;  %v8596_v15 = vadd.f32 %v15503_v31, %v8553_v14  ;;  %v12231_v41 = vld [vmem:[#allocation19 + $0xa4] ss:$8 sps:$4 sm:$0xff]   ;;  %v12234_v57 = vld [vmem:[#allocation19 + $0x94] ss:$8 sps:$4 sm:$0xff]  }
 0x94d   : > { %v8597_v27 = vadd.f32 %v15492_v16, %v8554_v23  ;;  %v8555_v38 = vmul.f32 %v15484_v59, %v15697_v61  ;;  %v15706_v21 = vadd.f32 %v8478_v43, %v15421_v12  ;;  %v8688_v24 = vsel %vm8624_vm11, %v8592_v34, %v8656_v30  ;;  %9371 = vmatprep.subr.bf16.mxu1 %v12231_v41  ;;  %v12235_v23 = vld [vmem:[#allocation19 + $0x80] ss:$8 sps:$4 sm:$0xff]   ;;  %v12237_v43 = vld [vmem:[#allocation19 + $0x84] ss:$8 sps:$4 sm:$0xff]   ;;  %v12238_v30 = vld [vmem:[#allocation21 + $0x78] sm:$0xff]  }
 0x94e   : > { %v8691_v0 = vsel %vm8627_vm10, %v8595_v7, %v8659_v44  ;;  %v8741_v59 = vpack.c.bf16 %v8690_v39, %v8688_v24  ;;  %v8660_v20 = vmul.f32 0.01, %v8596_v15  ;;  %vm8628_vm15 = vcmp.gt.f32.partialorder %v8596_v15, 0.0  ;;  %v12239_v14 = vld [vmem:[#allocation21 + $0x38] sm:$0xff]   ;;  %v12240_v44 = vld [vmem:[#allocation21 + $0x70] sm:$0xff]   ;;  %11051 = vmatprep.subr.bf16.mxu0 %v12238_v30  ;;  %v12245_v39 = vld [vmem:[#allocation21 + $0x20] sm:$0xff]  }
 0x94f   : > { %v8598_v35 = vadd.f32 %v15503_v31, %v8555_v38  ;;  %v8556_v40 = vmul.f32 %v15478_v10, %v15706_v21  ;;  %v8742_v2 = vpack.c.bf16 %v8691_v0, %v8689_v11  ;;  %v8661_v55 = vmul.f32 0.01, %v8597_v27  ;;  %11052 = vmatpush3.bf16.msra.mxu0 %v12239_v14  ;;  %v12242_v38 = vld [vmem:[#allocation21 + $0x68] sm:$0xff]   ;;  %v12244_v0 = vld [vmem:[#allocation21 + $0x60] sm:$0xff]   ;;  %v8728_v24 = vld [vmem:[%s16194_s3] sm:$0x3] }
 0x950   : > { %vm8629_vm12 = vcmp.gt.f32.partialorder %v8597_v27, 0.0  ;;  %v8692_v31 = vsel %vm8628_vm15, %v8596_v15, %v8660_v20  ;;  %11053 = vmatprep.subr.bf16.mxu0 %v12240_v44  ;;  %v12243_v11 = vld [vmem:[#allocation21 + $0x28] sm:$0xff]   ;;  %v12249_v15 = vld [vmem:[#allocation21 + $0x10] sm:$0xff]  }
 0x951   : > { %v8599_v22 = vadd.f32 %v15492_v16, %v8556_v40  ;;  %9008 = vmatprep.mubr.bf16.mxu0 %v8742_v2  ;;  %v8662_v12 = vmul.f32 0.01, %v8598_v35  ;;  %vm8630_vm14 = vcmp.gt.f32.partialorder %v8598_v35, 0.0  ;;  %v8693_v7 = vsel %vm8629_vm12, %v8597_v27, %v8661_v55  ;;  %v12229_v16 = vld [vmem:[#allocation19 + $0xa0] ss:$8 sps:$4 sm:$0xff]   ;;  %v12241_v27 = vld [vmem:[#allocation21 + $0x30] sm:$0xff]  }
 0x952   : > { %9372 = vmatpush2.bf16.msra.mxu1 %v12229_v16  ;;  %v12247_v40 = vld [vmem:[#allocation21 + $0x18] sm:$0xff]   ;;  %v12248_v2 = vld [vmem:[#allocation21 + $0x50] sm:$0xff]  }
 0x953   : > { %9009 = vmatmul.mubr.bf16.gmra.mxu0 %v8741_v59  ;;  %vm8631_vm13 = vcmp.gt.f32.partialorder %v8599_v22, 0.0  ;;  %v8663_v19 = vmul.f32 0.01, %v8599_v22  ;;  %v8694_v32 = vsel %vm8630_vm14, %v8598_v35, %v8662_v12  ;;  %9373 = vmatprep.subr.bf16.mxu1 %v12234_v57  ;;  %v12246_v35 = vld [vmem:[#allocation21 + $0x58] sm:$0xff]   ;;  %v15718_v59 = vrot.slane %v8728_v24, %v16070_v28 }
 0x954   : > { %v8743_v34 = vpack.c.bf16 %v8694_v32, %v8692_v31  ;;  %11054 = vmatpush3.bf16.msra.mxu0 %v12241_v27 }
 0x955   : > { %v8695_v25 = vsel %vm8631_vm13, %v8599_v22, %v8663_v19  ;;  %11055 = vmatprep.subr.bf16.mxu0 %v12242_v38  ;;  %v15715_v22 = vrot.slane %v8728_v24, %v16069_v3 }
 0x956   : > { %v8744_v10 = vpack.c.bf16 %v8695_v25, %v8693_v7  ;;  %9374 = vmatpush2.bf16.msra.mxu1 %v12232_v48 }
 0x957   : > { %9375 = vmatprep.subr.bf16.mxu1 %v12237_v43 }
 0x958   : > { %9018 = vmatprep.mubr.bf16.mxu0 %v8744_v10  ;;  %11056 = vmatpush3.bf16.msra.mxu0 %v12243_v11 }
 0x959   : > { %11057 = vmatprep.subr.bf16.mxu0 %v12244_v0 }
 0x95a   : > { %9376 = vmatpush2.bf16.msra.mxu1 %v12235_v23 }
 0x95b   : > { %9019 = vmatmul.mubr.bf16.gmra.mxu0 %v8743_v34 }
 0x95c   : > { %11058 = vmatpush3.bf16.msra.mxu0 %v12245_v39 }
 0x95d   : > { %11059 = vmatprep.subr.bf16.mxu0 %v12246_v35 }
 0x960   : > { %11060 = vmatpush3.bf16.msra.mxu0 %v12247_v40 }
 0x961   : > { %11061 = vmatprep.subr.bf16.mxu0 %v12248_v2 }
 0x964   : > { %11062 = vmatpush3.bf16.msra.mxu0 %v12249_v15 }
 0x9e1   : > { %v8950_v55 = vpop.f32.mrf.mxu0 }
 0x9e2   : > { %v8951_v20 = vadd.f32 %v8950_v55, %v15718_v59 }
 0x9e3   : > { %v8952_v12 = vpop.f32.mrf.mxu0 }
 0x9e4   : > { %v8953_v19 = vadd.f32 %v8952_v12, %v15715_v22  ;;  %v9061_v16 = vmul.f32 0.01, %v8951_v20  ;;  %vm9029_vm2 = vcmp.gt.f32.partialorder %v8951_v20, 0.0 }
 0x9e5   : > { %v8954_v7 = vpop.f32.mrf.mxu0 }
 0x9e6   : > { %v8955_v25 = vadd.f32 %v8954_v7, %v15718_v59  ;;  %v9062_v32 = vmul.f32 0.01, %v8953_v19  ;;  %vm9030_vm1 = vcmp.gt.f32.partialorder %v8953_v19, 0.0  ;;  %v9093_v44 = vsel %vm9029_vm2, %v8951_v20, %v9061_v16 }
 0x9e7   : > { %v8956_v10 = vpop.f32.mrf.mxu0 }
 0x9e8   : > { %vm9031_vm0 = vcmp.gt.f32.partialorder %v8955_v25, 0.0  ;;  %v9063_v31 = vmul.f32 0.01, %v8955_v25  ;;  %v8957_v34 = vadd.f32 %v8956_v10, %v15715_v22  ;;  %v9094_v30 = vsel %vm9030_vm1, %v8953_v19, %v9062_v32 }
 0x9ea   : > { %v8960_v41 = vpop.f32.mrf.mxu0  ;;  %vm9032_vm3 = vcmp.gt.f32.partialorder %v8957_v34, 0.0  ;;  %v9064_v48 = vmul.f32 0.01, %v8957_v34  ;;  %v9095_v57 = vsel %vm9031_vm0, %v8955_v25, %v9063_v31 }
 0x9eb   : > { %v8961_v27 = vadd.f32 %v8960_v41, %v15718_v59  ;;  %v9158_v0 = vpack.c.bf16 %v9095_v57, %v9093_v44 }
 0x9ec   : > { %v8962_v23 = vpop.f32.mrf.mxu0  ;;  %v9096_v14 = vsel %vm9032_vm3, %v8957_v34, %v9064_v48 }
 0x9ed   : > { %v8963_v43 = vadd.f32 %v8962_v23, %v15715_v22  ;;  %v9159_v11 = vpack.c.bf16 %v9096_v14, %v9094_v30  ;;  %v9065_v24 = vmul.f32 0.01, %v8961_v27  ;;  %vm9033_vm6 = vcmp.gt.f32.partialorder %v8961_v27, 0.0 }
 0x9ee   : > { %v8964_v38 = vpop.f32.mrf.mxu0 }
 0x9ef   : > { %v8965_v39 = vadd.f32 %v8964_v38, %v15718_v59  ;;  %9377 = vmatprep.mubr.bf16.mxu1 %v9159_v11  ;;  %v9066_v40 = vmul.f32 0.01, %v8963_v43  ;;  %vm9034_vm5 = vcmp.gt.f32.partialorder %v8963_v43, 0.0  ;;  %v9097_v32 = vsel %vm9033_vm6, %v8961_v27, %v9065_v24 }
 0x9f0   : > { %v8966_v35 = vpop.f32.mrf.mxu0  ;;  %9378 = vmatmul.mubr.bf16.vlgmr.msra.gmra.mxu1 %v9158_v0 }
 0x9f1   : > { %vm9035_vm4 = vcmp.gt.f32.partialorder %v8965_v39, 0.0  ;;  %v9067_v2 = vmul.f32 0.01, %v8965_v39  ;;  %v8967_v15 = vadd.f32 %v8966_v35, %v15715_v22  ;;  %v9098_v25 = vsel %vm9034_vm5, %v8963_v43, %v9066_v40 }
 0x9f2   : > { %v8970_v55 = vpop.f32.mrf.mxu0 }
 0x9f3   : > { %vm9036_vm7 = vcmp.gt.f32.partialorder %v8967_v15, 0.0  ;;  %v9068_v12 = vmul.f32 0.01, %v8967_v15  ;;  %v9099_v19 = vsel %vm9035_vm4, %v8965_v39, %v9067_v2  ;;  %v8971_v31 = vadd.f32 %v8970_v55, %v15718_v59 }
 0x9f4   : > { %v8972_v20 = vpop.f32.mrf.mxu0  ;;  %v9160_v41 = vpack.c.bf16 %v9099_v19, %v9097_v32 }
 0x9f5   : > { %v8973_v7 = vadd.f32 %v8972_v20, %v15715_v22  ;;  %v9100_v10 = vsel %vm9036_vm7, %v8967_v15, %v9068_v12  ;;  %v9069_v44 = vmul.f32 0.01, %v8971_v31  ;;  %vm9037_vm10 = vcmp.gt.f32.partialorder %v8971_v31, 0.0 }
 0x9f6   : > { %v8974_v34 = vpop.f32.mrf.mxu0  ;;  %v9161_v16 = vpack.c.bf16 %v9100_v10, %v9098_v25 }
 0x9f7   : > { %v8975_v48 = vadd.f32 %v8974_v34, %v15718_v59  ;;  %v9070_v23 = vmul.f32 0.01, %v8973_v7  ;;  %vm9038_vm9 = vcmp.gt.f32.partialorder %v8973_v7, 0.0  ;;  %v9101_v40 = vsel %vm9037_vm10, %v8971_v31, %v9069_v44 }
 0x9f8   : > { %v8976_v57 = vpop.f32.mrf.mxu0  ;;  %9387 = vmatprep.mubr.bf16.mxu1 %v9161_v16 }
 0x9f9   : > { %vm9039_vm8 = vcmp.gt.f32.partialorder %v8975_v48, 0.0  ;;  %v9071_v30 = vmul.f32 0.01, %v8975_v48  ;;  %v8977_v14 = vadd.f32 %v8976_v57, %v15715_v22  ;;  %9388 = vmatmul.mubr.bf16.gmra.mxu1 %v9160_v41  ;;  %v9102_v39 = vsel %vm9038_vm9, %v8973_v7, %v9070_v23 }
 0x9fb   : > { %v8980_v43 = vpop.f32.mrf.mxu0  ;;  %vm9040_vm11 = vcmp.gt.f32.partialorder %v8977_v14, 0.0  ;;  %v9072_v27 = vmul.f32 0.01, %v8977_v14  ;;  %v9103_v38 = vsel %vm9039_vm8, %v8975_v48, %v9071_v30 }
 0x9fc   : > { %v8981_v2 = vadd.f32 %v8980_v43, %v15718_v59  ;;  %v9162_v55 = vpack.c.bf16 %v9103_v38, %v9101_v40 }
 0x9fd   : > { %v8982_v11 = vpop.f32.mrf.mxu0  ;;  %v9104_v35 = vsel %vm9040_vm11, %v8977_v14, %v9072_v27 }
 0x9fe   : > { %v8983_v0 = vadd.f32 %v8982_v11, %v15715_v22  ;;  %v9163_v24 = vpack.c.bf16 %v9104_v35, %v9102_v39  ;;  %v9073_v32 = vmul.f32 0.01, %v8981_v2  ;;  %vm9041_vm14 = vcmp.gt.f32.partialorder %v8981_v2, 0.0 }
 0x9ff   : > { %v8984_v15 = vpop.f32.mrf.mxu0 }
 0xa00   : > { %v8985_v12 = vadd.f32 %v8984_v15, %v15718_v59  ;;  %9397 = vmatprep.mubr.bf16.mxu1 %v9163_v24  ;;  %v9074_v20 = vmul.f32 0.01, %v8983_v0  ;;  %vm9042_vm13 = vcmp.gt.f32.partialorder %v8983_v0, 0.0  ;;  %v9105_v23 = vsel %vm9041_vm14, %v8981_v2, %v9073_v32 }
 0xa01   : > { %v8986_v19 = vpop.f32.mrf.mxu0  ;;  %9398 = vmatmul.mubr.bf16.gmra.mxu1 %v9162_v55 }
 0xa02   : > { %vm9043_vm12 = vcmp.gt.f32.partialorder %v8985_v12, 0.0  ;;  %v9075_v25 = vmul.f32 0.01, %v8985_v12  ;;  %v8987_v10 = vadd.f32 %v8986_v19, %v15715_v22  ;;  %v9106_v48 = vsel %vm9042_vm13, %v8983_v0, %v9074_v20 }
 0xa03   : > { %v8990_v7 = vpop.f32.mrf.mxu0 }
 0xa04   : > { %vm9044_vm15 = vcmp.gt.f32.partialorder %v8987_v10, 0.0  ;;  %v9076_v31 = vmul.f32 0.01, %v8987_v10  ;;  %v9107_v34 = vsel %vm9043_vm12, %v8985_v12, %v9075_v25  ;;  %v8991_v30 = vadd.f32 %v8990_v7, %v15718_v59 }
 0xa05   : > { %v8992_v16 = vpop.f32.mrf.mxu0  ;;  %v9164_v43 = vpack.c.bf16 %v9107_v34, %v9105_v23 }
 0xa06   : > { %v8993_v41 = vadd.f32 %v8992_v16, %v15715_v22  ;;  %v9108_v57 = vsel %vm9044_vm15, %v8987_v10, %v9076_v31  ;;  %v9077_v40 = vmul.f32 0.01, %v8991_v30  ;;  %vm9045_vm2 = vcmp.gt.f32.partialorder %v8991_v30, 0.0 }
 0xa07   : > { %v8994_v14 = vpop.f32.mrf.mxu0  ;;  %v9165_v44 = vpack.c.bf16 %v9108_v57, %v9106_v48 }
 0xa08   : > { %v8995_v27 = vadd.f32 %v8994_v14, %v15718_v59  ;;  %v9078_v11 = vmul.f32 0.01, %v8993_v41  ;;  %vm9046_vm1 = vcmp.gt.f32.partialorder %v8993_v41, 0.0  ;;  %v9109_v20 = vsel %vm9045_vm2, %v8991_v30, %v9077_v40 }
 0xa09   : > { %v8996_v38 = vpop.f32.mrf.mxu0  ;;  %9407 = vmatprep.mubr.bf16.mxu1 %v9165_v44 }
 0xa0a   : > { %vm9047_vm0 = vcmp.gt.f32.partialorder %v8995_v27, 0.0  ;;  %v9079_v39 = vmul.f32 0.01, %v8995_v27  ;;  %v8997_v35 = vadd.f32 %v8996_v38, %v15715_v22  ;;  %9408 = vmatmul.mubr.bf16.gmra.mxu1 %v9164_v43  ;;  %v9110_v12 = vsel %vm9046_vm1, %v8993_v41, %v9078_v11 }
 0xa0b   : > { %v9000_v0 = vpop.f32.mrf.mxu0 }
 0xa0c   : > { %vm9048_vm3 = vcmp.gt.f32.partialorder %v8997_v35, 0.0  ;;  %v9080_v2 = vmul.f32 0.01, %v8997_v35  ;;  %v9111_v15 = vsel %vm9047_vm0, %v8995_v27, %v9079_v39  ;;  %v9001_v25 = vadd.f32 %v9000_v0, %v15718_v59 }
 0xa0d   : > { %v9002_v24 = vpop.f32.mrf.mxu0  ;;  %v9166_v7 = vpack.c.bf16 %v9111_v15, %v9109_v20 }
 0xa0e   : > { %v9003_v55 = vadd.f32 %v9002_v24, %v15715_v22  ;;  %v9112_v19 = vsel %vm9048_vm3, %v8997_v35, %v9080_v2  ;;  %v9081_v23 = vmul.f32 0.01, %v9001_v25  ;;  %vm9049_vm6 = vcmp.gt.f32.partialorder %v9001_v25, 0.0 }
 0xa0f   : > { %v9004_v10 = vpop.f32.mrf.mxu0  ;;  %v9167_v32 = vpack.c.bf16 %v9112_v19, %v9110_v12 }
 0xa10   : > { %v9005_v31 = vadd.f32 %v9004_v10, %v15718_v59  ;;  %v9082_v16 = vmul.f32 0.01, %v9003_v55  ;;  %vm9050_vm5 = vcmp.gt.f32.partialorder %v9003_v55, 0.0  ;;  %v9113_v11 = vsel %vm9049_vm6, %v9001_v25, %v9081_v23 }
 0xa11   : > { %v9006_v34 = vpop.f32.mrf.mxu0  ;;  %9417 = vmatprep.mubr.bf16.mxu1 %v9167_v32 }
 0xa12   : > { %vm9051_vm4 = vcmp.gt.f32.partialorder %v9005_v31, 0.0  ;;  %v9083_v48 = vmul.f32 0.01, %v9005_v31  ;;  %v9007_v57 = vadd.f32 %v9006_v34, %v15715_v22  ;;  %9418 = vmatmul.mubr.bf16.gmra.mxu1 %v9166_v7  ;;  %v9114_v27 = vsel %vm9050_vm5, %v9003_v55, %v9082_v16 }
 0xa13   : > { %v9010_v41 = vpop.f32.mrf.mxu0 }
 0xa14   : > { %vm9052_vm7 = vcmp.gt.f32.partialorder %v9007_v57, 0.0  ;;  %v9084_v30 = vmul.f32 0.01, %v9007_v57  ;;  %v9115_v14 = vsel %vm9051_vm4, %v9005_v31, %v9083_v48  ;;  %v9011_v39 = vadd.f32 %v9010_v41, %v15718_v59 }
 0xa15   : > { %v9012_v44 = vpop.f32.mrf.mxu0  ;;  %v9168_v0 = vpack.c.bf16 %v9115_v14, %v9113_v11 }
 0xa16   : > { %v9013_v43 = vadd.f32 %v9012_v44, %v15715_v22  ;;  %v9116_v38 = vsel %vm9052_vm7, %v9007_v57, %v9084_v30  ;;  %v9085_v20 = vmul.f32 0.01, %v9011_v39  ;;  %vm9053_vm10 = vcmp.gt.f32.partialorder %v9011_v39, 0.0 }
 0xa17   : > { %v9014_v35 = vpop.f32.mrf.mxu0  ;;  %v9169_v40 = vpack.c.bf16 %v9116_v38, %v9114_v27 }
 0xa18   : > { %v9015_v2 = vadd.f32 %v9014_v35, %v15718_v59  ;;  %v9086_v24 = vmul.f32 0.01, %v9013_v43  ;;  %vm9054_vm9 = vcmp.gt.f32.partialorder %v9013_v43, 0.0  ;;  %v9117_v16 = vsel %vm9053_vm10, %v9011_v39, %v9085_v20 }
 0xa19   : > { %v9016_v15 = vpop.f32.mrf.mxu0  ;;  %9427 = vmatprep.mubr.bf16.mxu1 %v9169_v40 }
 0xa1a   : > { %vm9055_vm8 = vcmp.gt.f32.partialorder %v9015_v2, 0.0  ;;  %v9087_v12 = vmul.f32 0.01, %v9015_v2  ;;  %v9017_v19 = vadd.f32 %v9016_v15, %v15715_v22  ;;  %9428 = vmatmul.mubr.bf16.gmra.mxu1 %v9168_v0  ;;  %v9118_v31 = vsel %vm9054_vm9, %v9013_v43, %v9086_v24  ;;  %v12250_v15 = vld [vmem:[#allocation21 + $0x48] sm:$0xff]  }
 0xa1b   : > { %v9020_v55 = vpop.f32.mrf.mxu0  ;;  %v12251_v24 = vld [vmem:[#allocation21 + $0x8] sm:$0xff]   ;;  %11063 = vmatprep.subr.bf16.mxu0 %v12250_v15 }
 0xa1c   : > { %vm9056_vm11 = vcmp.gt.f32.partialorder %v9017_v19, 0.0  ;;  %v9088_v25 = vmul.f32 0.01, %v9017_v19  ;;  %v9119_v10 = vsel %vm9055_vm8, %v9015_v2, %v9087_v12  ;;  %v9021_v48 = vadd.f32 %v9020_v55, %v15718_v59  ;;  %11064 = vmatpush3.bf16.msra.mxu0 %v12251_v24  ;;  %v12253_v12 = vld [vmem:[#allocation21] sm:$0xff]  }
 0xa1d   : > { %v9022_v32 = vpop.f32.mrf.mxu0  ;;  %v9170_v41 = vpack.c.bf16 %v9119_v10, %v9117_v16 }
 0xa1e   : > { %v9023_v7 = vadd.f32 %v9022_v32, %v15715_v22  ;;  %v9120_v34 = vsel %vm9056_vm11, %v9017_v19, %v9088_v25  ;;  %v9089_v11 = vmul.f32 0.01, %v9021_v48  ;;  %vm9057_vm14 = vcmp.gt.f32.partialorder %v9021_v48, 0.0  ;;  %v9157_v19 = vld [vmem:[%s12855_s27] sm:$0x3] }
 0xa1f   : > { %v9024_v57 = vpop.f32.mrf.mxu0  ;;  %v9171_v23 = vpack.c.bf16 %v9120_v34, %v9118_v31  ;;  %v15754_v20 = vrot.slane %v9157_v19, %v16070_v28  ;;  %v15757_v55 = vrot.slane %v9157_v19, %v16069_v3 }
 0xa20   : > { %v9025_v30 = vadd.f32 %v9024_v57, %v15718_v59  ;;  %v9090_v44 = vmul.f32 0.01, %v9023_v7  ;;  %vm9058_vm13 = vcmp.gt.f32.partialorder %v9023_v7, 0.0  ;;  %v9121_v0 = vsel %vm9057_vm14, %v9021_v48, %v9089_v11 }
 0xa21   : > { %v9026_v14 = vpop.f32.mrf.mxu0  ;;  %9437 = vmatprep.mubr.bf16.mxu1 %v9171_v23 }
 0xa22   : > { %vm9059_vm12 = vcmp.gt.f32.partialorder %v9025_v30, 0.0  ;;  %v9091_v27 = vmul.f32 0.01, %v9025_v30  ;;  %v9027_v38 = vadd.f32 %v9026_v14, %v15715_v22  ;;  %9438 = vmatmul.mubr.bf16.gmra.mxu1 %v9170_v41  ;;  %v9122_v35 = vsel %vm9058_vm13, %v9023_v7, %v9090_v44  ;;  %v12252_v22 = vld [vmem:[#allocation21 + $0x40] sm:$0xff]  }
 0xa23   : > { %11065 = vmatprep.subr.bf16.mxu0 %v12252_v22 }
 0xa24   : > { %vm9060_vm15 = vcmp.gt.f32.partialorder %v9027_v38, 0.0  ;;  %v9092_v43 = vmul.f32 0.01, %v9027_v38  ;;  %v9123_v39 = vsel %vm9059_vm12, %v9025_v30, %v9091_v27  ;;  %11066 = vmatpush3.bf16.msra.mxu0 %v12253_v12 }
 0xa25   : > { %v9172_v59 = vpack.c.bf16 %v9123_v39, %v9121_v0 }
 0xa26   : > { %v9124_v40 = vsel %vm9060_vm15, %v9027_v38, %v9092_v43 }
 0xa27   : > { %v9173_v2 = vpack.c.bf16 %v9124_v40, %v9122_v35 }
 0xa29   : > { %9447 = vmatprep.mubr.bf16.mxu1 %v9173_v2 }
 0xa2a   : > { %9448 = vmatmul.mubr.bf16.gmra.mxu1 %v9172_v59  ;;  %v16195_v59 = vld [vmem:[#allocation82_spill] sm:$0xff] }
 0xab0   : > { %v9379_v25 = vpop.f32.mrf.mxu1 }
 0xab1   : > { %v9380_v32 = vadd.f32 %v9379_v25, %v15754_v20 }
 0xab2   : > { %v9381_v10 = vpop.f32.mrf.mxu1 }
 0xab3   : > { %v9382_v7 = vadd.f32 %v9381_v10, %v15757_v55  ;;  %v9458_v48 = vadd.f32 %v9380_v32, %v15481_v45 }
 0xab4   : > { %v9383_v31 = vpop.f32.mrf.mxu1 }
 0xab5   : > { %v9384_v34 = vadd.f32 %v9383_v31, %v15754_v20  ;;  %v9459_v57 = vadd.f32 %v9382_v7, %v15488_v46  ;;  %v9522_v44 = vmul.f32 0.01, %v9458_v48  ;;  %vm9490_vm3 = vcmp.gt.f32.partialorder %v9458_v48, 0.0 }
 0xab6   : > { %v9385_v16 = vpop.f32.mrf.mxu1 }
 0xab7   : > { %v9460_v28 = vadd.f32 %v9384_v34, %v15497_v62  ;;  %v9386_v23 = vadd.f32 %v9385_v16, %v15757_v55  ;;  %v9523_v27 = vmul.f32 0.01, %v9459_v57  ;;  %vm9491_vm1 = vcmp.gt.f32.partialorder %v9459_v57, 0.0 }
 0xab8   : > { %v9554_v2 = vsel %vm9490_vm3, %v9458_v48, %v9522_v44 }
 0xab9   : > { %v9389_v3 = vpop.f32.mrf.mxu1  ;;  %v9524_v41 = vmul.f32 0.01, %v9460_v28  ;;  %v9461_v30 = vadd.f32 %v9386_v23, %v15509_v8  ;;  %vm9492_vm0 = vcmp.gt.f32.partialorder %v9460_v28, 0.0  ;;  %v9555_v0 = vsel %vm9491_vm1, %v9459_v57, %v9523_v27 }
 0xaba   : > { %v9390_v45 = vadd.f32 %v9389_v3, %v15754_v20 }
 0xabb   : > { %v9391_v14 = vpop.f32.mrf.mxu1  ;;  %vm9493_vm2 = vcmp.gt.f32.partialorder %v9461_v30, 0.0  ;;  %v9525_v11 = vmul.f32 0.01, %v9461_v30  ;;  %v9556_v43 = vsel %vm9492_vm0, %v9460_v28, %v9524_v41 }
 0xabc   : > { %v9392_v38 = vadd.f32 %v9391_v14, %v15757_v55  ;;  %v9462_v15 = vadd.f32 %v9390_v45, %v16195_v59  ;;  %v9619_v19 = vpack.c.bf16 %v9556_v43, %v9554_v2 }
 0xabd   : > { %v9393_v46 = vpop.f32.mrf.mxu1  ;;  %v9557_v35 = vsel %vm9493_vm2, %v9461_v30, %v9525_v11 }
 0xabe   : > { %v9394_v62 = vadd.f32 %v9393_v46, %v15754_v20  ;;  %v9463_v8 = vadd.f32 %v9392_v38, %v15521_v42  ;;  %v9620_v12 = vpack.c.bf16 %v9557_v35, %v9555_v0  ;;  %v9526_v31 = vmul.f32 0.01, %v9462_v15 }
 0xabf   : > { %v9395_v39 = vpop.f32.mrf.mxu1  ;;  %vm9494_vm7 = vcmp.gt.f32.partialorder %v9462_v15, 0.0 }
 0xac0   : > { %v9464_v40 = vadd.f32 %v9394_v62, %v15530_v29  ;;  %v9396_v24 = vadd.f32 %v9395_v39, %v15757_v55  ;;  %9769 = vmatprep.mubr.bf16.mxu0 %v9620_v12  ;;  %v9527_v7 = vmul.f32 0.01, %v9463_v8  ;;  %vm9495_vm5 = vcmp.gt.f32.partialorder %v9463_v8, 0.0 }
 0xac1   : > { %v9399_v22 = vpop.f32.mrf.mxu1  ;;  %9770 = vmatmul.mubr.bf16.vlgmr.msra.gmra.mxu0 %v9619_v19  ;;  %v9558_v14 = vsel %vm9494_vm7, %v9462_v15, %v9526_v31 }
 0xac2   : > { %v9528_v25 = vmul.f32 0.01, %v9464_v40  ;;  %v9465_v10 = vadd.f32 %v9396_v24, %v15536_v5  ;;  %vm9496_vm4 = vcmp.gt.f32.partialorder %v9464_v40, 0.0  ;;  %v9400_v42 = vadd.f32 %v9399_v22, %v15754_v20 }
 0xac3   : > { %v9401_v32 = vpop.f32.mrf.mxu1  ;;  %v9559_v30 = vsel %vm9495_vm5, %v9463_v8, %v9527_v7 }
 0xac4   : > { %v9402_v29 = vadd.f32 %v9401_v32, %v15757_v55  ;;  %vm9497_vm6 = vcmp.gt.f32.partialorder %v9465_v10, 0.0  ;;  %v9529_v34 = vmul.f32 0.01, %v9465_v10  ;;  %v9560_v57 = vsel %vm9496_vm4, %v9464_v40, %v9528_v25 }
 0xac5   : > { %v9403_v16 = vpop.f32.mrf.mxu1  ;;  %v9466_v23 = vadd.f32 %v9400_v42, %v15546_v36  ;;  %v9621_v11 = vpack.c.bf16 %v9560_v57, %v9558_v14 }
 0xac6   : > { %v9404_v48 = vadd.f32 %v9403_v16, %v15754_v20  ;;  %v9561_v5 = vsel %vm9497_vm6, %v9465_v10, %v9529_v34  ;;  %v9467_v3 = vadd.f32 %v9402_v29, %v15550_v50 }
 0xac7   : > { %v9405_v28 = vpop.f32.mrf.mxu1  ;;  %v9622_v38 = vpack.c.bf16 %v9561_v5, %v9559_v30  ;;  %v9530_v43 = vmul.f32 0.01, %v9466_v23  ;;  %vm9498_vm11 = vcmp.gt.f32.partialorder %v9466_v23, 0.0 }
 0xac8   : > { %v9468_v41 = vadd.f32 %v9404_v48, %v15559_v9  ;;  %v9406_v44 = vadd.f32 %v9405_v28, %v15757_v55  ;;  %v9531_v39 = vmul.f32 0.01, %v9467_v3  ;;  %vm9499_vm9 = vcmp.gt.f32.partialorder %v9467_v3, 0.0 }
 0xac9   : > { %9777 = vmatprep.mubr.bf16.mxu0 %v9622_v38  ;;  %v9562_v24 = vsel %vm9498_vm11, %v9466_v23, %v9530_v43 }
 0xaca   : > { %v9409_v27 = vpop.f32.mrf.mxu1  ;;  %v9532_v45 = vmul.f32 0.01, %v9468_v41  ;;  %v9469_v46 = vadd.f32 %v9406_v44, %v15563_v4  ;;  %vm9500_vm8 = vcmp.gt.f32.partialorder %v9468_v41, 0.0  ;;  %9778 = vmatmul.mubr.bf16.gmra.mxu0 %v9621_v11  ;;  %v9563_v15 = vsel %vm9499_vm9, %v9467_v3, %v9531_v39 }
 0xacb   : > { %v9410_v9 = vadd.f32 %v9409_v27, %v15754_v20 }
 0xacc   : > { %v9411_v62 = vpop.f32.mrf.mxu1  ;;  %vm9501_vm10 = vcmp.gt.f32.partialorder %v9469_v46, 0.0  ;;  %v9533_v50 = vmul.f32 0.01, %v9469_v46  ;;  %v9564_v40 = vsel %vm9500_vm8, %v9468_v41, %v9532_v45 }
 0xacd   : > { %v9412_v36 = vadd.f32 %v9411_v62, %v15757_v55  ;;  %v9470_v22 = vadd.f32 %v9410_v9, %v15574_v6  ;;  %v9623_v10 = vpack.c.bf16 %v9564_v40, %v9562_v24 }
 0xace   : > { %v9413_v35 = vpop.f32.mrf.mxu1  ;;  %v9565_v4 = vsel %vm9501_vm10, %v9469_v46, %v9533_v50 }
 0xacf   : > { %v9414_v8 = vadd.f32 %v9413_v35, %v15754_v20  ;;  %v9471_v2 = vadd.f32 %v9412_v36, %v15578_v56  ;;  %v9624_v25 = vpack.c.bf16 %v9565_v4, %v9563_v15  ;;  %v9534_v31 = vmul.f32 0.01, %v9470_v22 }
 0xad0   : > { %v9415_v0 = vpop.f32.mrf.mxu1  ;;  %vm9502_vm15 = vcmp.gt.f32.partialorder %v9470_v22, 0.0 }
 0xad1   : > { %v9472_v59 = vadd.f32 %v9414_v8, %v15584_v18  ;;  %v9416_v12 = vadd.f32 %v9415_v0, %v15757_v55  ;;  %9785 = vmatprep.mubr.bf16.mxu0 %v9624_v25  ;;  %v9535_v29 = vmul.f32 0.01, %v9471_v2  ;;  %vm9503_vm13 = vcmp.gt.f32.partialorder %v9471_v2, 0.0 }
 0xad2   : > { %v9419_v19 = vpop.f32.mrf.mxu1  ;;  %9786 = vmatmul.mubr.bf16.gmra.mxu0 %v9623_v10  ;;  %v9566_v41 = vsel %vm9502_vm15, %v9470_v22, %v9534_v31 }
 0xad3   : > { %v9536_v32 = vmul.f32 0.01, %v9472_v59  ;;  %v9473_v7 = vadd.f32 %v9416_v12, %v15592_v52  ;;  %vm9504_vm12 = vcmp.gt.f32.partialorder %v9472_v59, 0.0  ;;  %v9420_v56 = vadd.f32 %v9419_v19, %v15754_v20 }
 0xad4   : > { %v9421_v42 = vpop.f32.mrf.mxu1  ;;  %v9567_v3 = vsel %vm9503_vm13, %v9471_v2, %v9535_v29 }
 0xad5   : > { %v9422_v18 = vadd.f32 %v9421_v42, %v15757_v55  ;;  %vm9505_vm14 = vcmp.gt.f32.partialorder %v9473_v7, 0.0  ;;  %v9537_v6 = vmul.f32 0.01, %v9473_v7  ;;  %v9568_v48 = vsel %vm9504_vm12, %v9472_v59, %v9536_v32 }
 0xad6   : > { %v9423_v34 = vpop.f32.mrf.mxu1  ;;  %v9474_v28 = vadd.f32 %v9420_v56, %v15602_v26  ;;  %v9625_v27 = vpack.c.bf16 %v9568_v48, %v9566_v41 }
 0xad7   : > { %v9424_v16 = vadd.f32 %v9423_v34, %v15754_v20  ;;  %v9569_v52 = vsel %vm9505_vm14, %v9473_v7, %v9537_v6  ;;  %v9475_v5 = vadd.f32 %v9422_v18, %v15606_v49 }
 0xad8   : > { %v9425_v57 = vpop.f32.mrf.mxu1  ;;  %v9626_v44 = vpack.c.bf16 %v9569_v52, %v9567_v3  ;;  %v9538_v46 = vmul.f32 0.01, %v9474_v28  ;;  %vm9506_vm3 = vcmp.gt.f32.partialorder %v9474_v28, 0.0 }
 0xad9   : > { %v9476_v23 = vadd.f32 %v9424_v16, %v15614_v53  ;;  %v9426_v30 = vadd.f32 %v9425_v57, %v15757_v55  ;;  %v9539_v62 = vmul.f32 0.01, %v9475_v5  ;;  %vm9507_vm1 = vcmp.gt.f32.partialorder %v9475_v5, 0.0 }
 0xada   : > { %v9429_v14 = vpop.f32.mrf.mxu1  ;;  %9793 = vmatprep.mubr.bf16.mxu0 %v9626_v44  ;;  %v9570_v40 = vsel %vm9506_vm3, %v9474_v28, %v9538_v46 }
 0xadb   : > { %v9540_v38 = vmul.f32 0.01, %v9476_v23  ;;  %v9477_v11 = vadd.f32 %v9426_v30, %v15620_v37  ;;  %vm9508_vm0 = vcmp.gt.f32.partialorder %v9476_v23, 0.0  ;;  %9794 = vmatmul.mubr.bf16.gmra.mxu0 %v9625_v27  ;;  %v9430_v53 = vadd.f32 %v9429_v14, %v15754_v20 }
 0xadc   : > { %v9431_v45 = vpop.f32.mrf.mxu1  ;;  %v9571_v8 = vsel %vm9507_vm1, %v9475_v5, %v9539_v62 }
 0xadd   : > { %v9432_v26 = vadd.f32 %v9431_v45, %v15757_v55  ;;  %vm9509_vm2 = vcmp.gt.f32.partialorder %v9477_v11, 0.0  ;;  %v9541_v49 = vmul.f32 0.01, %v9477_v11  ;;  %v9572_v36 = vsel %vm9508_vm0, %v9476_v23, %v9540_v38 }
 0xade   : > { %v9433_v43 = vpop.f32.mrf.mxu1  ;;  %v9478_v0 = vadd.f32 %v9430_v53, %v15631_v58  ;;  %v9627_v15 = vpack.c.bf16 %v9572_v36, %v9570_v40 }
 0xadf   : > { %v9434_v39 = vadd.f32 %v9433_v43, %v15754_v20  ;;  %v9573_v37 = vsel %vm9509_vm2, %v9477_v11, %v9541_v49  ;;  %v9479_v9 = vadd.f32 %v9432_v26, %v15635_v51 }
 0xae0   : > { %v9435_v50 = vpop.f32.mrf.mxu1  ;;  %v9628_v59 = vpack.c.bf16 %v9573_v37, %v9571_v8  ;;  %v9542_v25 = vmul.f32 0.01, %v9478_v0  ;;  %vm9510_vm7 = vcmp.gt.f32.partialorder %v9478_v0, 0.0 }
 0xae1   : > { %v9480_v35 = vadd.f32 %v9434_v39, %v15644_v63  ;;  %v9436_v4 = vadd.f32 %v9435_v50, %v15757_v55  ;;  %v9543_v19 = vmul.f32 0.01, %v9479_v9  ;;  %vm9511_vm5 = vcmp.gt.f32.partialorder %v9479_v9, 0.0 }
 0xae2   : > { %v9439_v2 = vpop.f32.mrf.mxu1  ;;  %9801 = vmatprep.mubr.bf16.mxu0 %v9628_v59  ;;  %v9574_v6 = vsel %vm9510_vm7, %v9478_v0, %v9542_v25 }
 0xae3   : > { %v9544_v24 = vmul.f32 0.01, %v9480_v35  ;;  %v9481_v22 = vadd.f32 %v9436_v4, %v15648_v17  ;;  %vm9512_vm4 = vcmp.gt.f32.partialorder %v9480_v35, 0.0  ;;  %v9440_v51 = vadd.f32 %v9439_v2, %v15754_v20  ;;  %9802 = vmatmul.mubr.bf16.gmra.mxu0 %v9627_v15 }
 0xae4   : > { %v9441_v12 = vpop.f32.mrf.mxu1  ;;  %v9575_v31 = vsel %vm9511_vm5, %v9479_v9, %v9543_v19  ;;  %v15826_v9 = vld [vmem:[%s16196_s5] ss:$0 sm:$0xff] }
 0xae5   : > { %v9442_v63 = vadd.f32 %v9441_v12, %v15757_v55  ;;  %vm9513_vm6 = vcmp.gt.f32.partialorder %v9481_v22, 0.0  ;;  %v9545_v58 = vmul.f32 0.01, %v9481_v22  ;;  %v9576_v7 = vsel %vm9512_vm4, %v9480_v35, %v9544_v24 }
 0xae6   : > { %v9443_v10 = vpop.f32.mrf.mxu1  ;;  %v9482_v29 = vadd.f32 %v9440_v51, %v15659_v33  ;;  %v9629_v57 = vpack.c.bf16 %v9576_v7, %v9574_v6 }
 0xae7   : > { %v9444_v32 = vadd.f32 %v9443_v10, %v15754_v20  ;;  %v9577_v17 = vsel %vm9513_vm6, %v9481_v22, %v9545_v58  ;;  %v9483_v56 = vadd.f32 %v9442_v63, %v15663_v54 }
 0xae8   : > { %v9445_v42 = vpop.f32.mrf.mxu1  ;;  %v9630_v48 = vpack.c.bf16 %v9577_v17, %v9575_v31  ;;  %v9546_v23 = vmul.f32 0.01, %v9482_v29  ;;  %vm9514_vm11 = vcmp.gt.f32.partialorder %v9482_v29, 0.0 }
 0xae9   : > { %v9484_v18 = vadd.f32 %v9444_v32, %v15669_v60  ;;  %v9446_v34 = vadd.f32 %v9445_v42, %v15757_v55  ;;  %v9547_v3 = vmul.f32 0.01, %v9483_v56  ;;  %vm9515_vm9 = vcmp.gt.f32.partialorder %v9483_v56, 0.0 }
 0xaea   : > { %v9449_v16 = vpop.f32.mrf.mxu1  ;;  %9809 = vmatprep.mubr.bf16.mxu0 %v9630_v48  ;;  %v9578_v45 = vsel %vm9514_vm11, %v9482_v29, %v9546_v23 }
 0xaeb   : > { %v9548_v52 = vmul.f32 0.01, %v9484_v18  ;;  %v9485_v28 = vadd.f32 %v9446_v34, %v15677_v1  ;;  %vm9516_vm8 = vcmp.gt.f32.partialorder %v9484_v18, 0.0  ;;  %9810 = vmatmul.mubr.bf16.gmra.mxu0 %v9629_v57  ;;  %v9450_v60 = vadd.f32 %v9449_v16, %v15754_v20 }
 0xaec   : > { %v9451_v5 = vpop.f32.mrf.mxu1  ;;  %v9579_v11 = vsel %vm9515_vm9, %v9483_v56, %v9547_v3 }
 0xaed   : > { %v9452_v33 = vadd.f32 %v9451_v5, %v15757_v55  ;;  %vm9517_vm10 = vcmp.gt.f32.partialorder %v9485_v28, 0.0  ;;  %v9549_v54 = vmul.f32 0.01, %v9485_v28  ;;  %v9580_v14 = vsel %vm9516_vm8, %v9484_v18, %v9548_v52 }
 0xaee   : > { %v9453_v41 = vpop.f32.mrf.mxu1  ;;  %v9486_v46 = vadd.f32 %v9450_v60, %v15687_v47  ;;  %v9631_v49 = vpack.c.bf16 %v9580_v14, %v9578_v45 }
 0xaef   : > { %v9454_v30 = vadd.f32 %v9453_v41, %v15754_v20  ;;  %v9487_v1 = vadd.f32 %v9452_v33, %v15691_v13  ;;  %v9581_v27 = vsel %vm9517_vm10, %v9485_v28, %v9549_v54 }
 0xaf0   : > { %v9455_v44 = vpop.f32.mrf.mxu1  ;;  %v9632_v26 = vpack.c.bf16 %v9581_v27, %v9579_v11  ;;  %v9550_v13 = vmul.f32 0.01, %v9486_v46  ;;  %vm9518_vm15 = vcmp.gt.f32.partialorder %v9486_v46, 0.0 }
 0xaf1   : > { %v9488_v38 = vadd.f32 %v9454_v30, %v15697_v61  ;;  %v9456_v62 = vadd.f32 %v9455_v44, %v15757_v55  ;;  %v9551_v53 = vmul.f32 0.01, %v9487_v1  ;;  %vm9519_vm12 = vcmp.gt.f32.partialorder %v9487_v1, 0.0 }
 0xaf2   : > { %9817 = vmatprep.mubr.bf16.mxu0 %v9632_v26  ;;  %v9582_v50 = vsel %vm9518_vm15, %v9486_v46, %v9550_v13 }
 0xaf3   : > { %v9552_v43 = vmul.f32 0.01, %v9488_v38  ;;  %v9489_v39 = vadd.f32 %v9456_v62, %v15706_v21  ;;  %vm9520_vm13 = vcmp.gt.f32.partialorder %v9488_v38, 0.0  ;;  %9818 = vmatmul.mubr.bf16.gmra.mxu0 %v9631_v49  ;;  %v9583_v47 = vsel %vm9519_vm12, %v9487_v1, %v9551_v53 }
 0xaf5   : > { %vm9521_vm14 = vcmp.gt.f32.partialorder %v9489_v39, 0.0  ;;  %v9553_v61 = vmul.f32 0.01, %v9489_v39  ;;  %v9584_v20 = vsel %vm9520_vm13, %v9488_v38, %v9552_v43 }
 0xaf6   : > { %v9633_v37 = vpack.c.bf16 %v9584_v20, %v9582_v50 }
 0xaf7   : > { %v9585_v55 = vsel %vm9521_vm14, %v9489_v39, %v9553_v61 }
 0xaf8   : > { %v9634_v36 = vpack.c.bf16 %v9585_v55, %v9583_v47 }
 0xafa   : > { %9825 = vmatprep.mubr.bf16.mxu0 %v9634_v36 }
 0xafb   : > { %9826 = vmatmul.mubr.bf16.gmra.mxu0 %v9633_v37 }
 0xb81   : > { %v11067_v21 = vpop.f32.mrf.mxu0 }
 0xb83   : > { %v11068_v35 = vpop.f32.mrf.mxu0 }
 0xb84   : > { %v11069_v8 = vadd.f32 %v11068_v35, %v11067_v21 }
 0xb85   : > { %v11070_v40 = vpop.f32.mrf.mxu0 }
 0xb86   : > { %v9772_v0 = vadd.f32 %v11069_v8, %v15826_v9 }
 0xb87   : > { %v11071_v4 = vpop.f32.mrf.mxu0 }
 0xb88   : > { %9834 = vst [vmem:[%s15829_s22] sm:$0xff] %v9772_v0  ;;  %v11072_v2 = vadd.f32 %v11071_v4, %v11070_v40 }
 0xb8a   : > { %v11073_v59 = vpop.f32.mrf.mxu0  ;;  %v9775_v15 = vadd.f32 %v11072_v2, %v15826_v9 }
 0xb8c   : > { %v11074_v24 = vpop.f32.mrf.mxu0  ;;  %9835 = vst [vmem:[%s15829_s22 + $0x8] sm:$0xff] %v9775_v15 }
 0xb8d   : > { %v11075_v22 = vadd.f32 %v11074_v24, %v11073_v59 }
 0xb8e   : > { %v11076_v12 = vpop.f32.mrf.mxu0 }
 0xb8f   : > { %v9780_v19 = vadd.f32 %v11075_v22, %v15826_v9 }
 0xb90   : > { %v11077_v51 = vpop.f32.mrf.mxu0 }
 0xb91   : > { %9836 = vst [vmem:[%s15829_s22 + $0x10] sm:$0xff] %v9780_v19  ;;  %v11078_v63 = vadd.f32 %v11077_v51, %v11076_v12 }
 0xb92   : > { %v11079_v25 = vpop.f32.mrf.mxu0 }
 0xb93   : > { %v9783_v58 = vadd.f32 %v11078_v63, %v15826_v9 }
 0xb94   : > { %v11080_v10 = vpop.f32.mrf.mxu0 }
 0xb95   : > { %9837 = vst [vmem:[%s15829_s22 + $0x18] sm:$0xff] %v9783_v58  ;;  %v11081_v32 = vadd.f32 %v11080_v10, %v11079_v25 }
 0xb96   : > { %v11082_v7 = vpop.f32.mrf.mxu0 }
 0xb97   : > { %v9788_v42 = vadd.f32 %v11081_v32, %v15826_v9 }
 0xb98   : > { %v11083_v17 = vpop.f32.mrf.mxu0 }
 0xb99   : > { %9838 = vst [vmem:[%s15829_s22 + $0x20] sm:$0xff] %v9788_v42  ;;  %v11084_v29 = vadd.f32 %v11083_v17, %v11082_v7 }
 0xb9b   : > { %v11085_v56 = vpop.f32.mrf.mxu0  ;;  %v9791_v18 = vadd.f32 %v11084_v29, %v15826_v9 }
 0xb9d   : > { %v11086_v31 = vpop.f32.mrf.mxu0  ;;  %9839 = vst [vmem:[%s15829_s22 + $0x28] sm:$0xff] %v9791_v18 }
 0xb9e   : > { %v11087_v6 = vadd.f32 %v11086_v31, %v11085_v56 }
 0xb9f   : > { %v11088_v34 = vpop.f32.mrf.mxu0 }
 0xba0   : > { %v9796_v16 = vadd.f32 %v11087_v6, %v15826_v9 }
 0xba1   : > { %v11089_v48 = vpop.f32.mrf.mxu0 }
 0xba2   : > { %9840 = vst [vmem:[%s15829_s22 + $0x30] sm:$0xff] %v9796_v16  ;;  %v11090_v57 = vadd.f32 %v11089_v48, %v11088_v34 }
 0xba3   : > { %v11091_v52 = vpop.f32.mrf.mxu0 }
 0xba4   : > { %v9799_v28 = vadd.f32 %v11090_v57, %v15826_v9 }
 0xba5   : > { %v11092_v5 = vpop.f32.mrf.mxu0 }
 0xba6   : > { %9841 = vst [vmem:[%s15829_s22 + $0x38] sm:$0xff] %v9799_v28  ;;  %v11093_v23 = vadd.f32 %v11092_v5, %v11091_v52 }
 0xba7   : > { %v11094_v3 = vpop.f32.mrf.mxu0 }
 0xba8   : > { %v9804_v33 = vadd.f32 %v11093_v23, %v15826_v9 }
 0xba9   : > { %v11095_v54 = vpop.f32.mrf.mxu0 }
 0xbaa   : > { %9842 = vst [vmem:[%s15829_s22 + $0x40] sm:$0xff] %v9804_v33  ;;  %v11096_v60 = vadd.f32 %v11095_v54, %v11094_v3 }
 0xbab   : > { %v11097_v41 = vpop.f32.mrf.mxu0 }
 0xbac   : > { %v9807_v30 = vadd.f32 %v11096_v60, %v15826_v9 }
 0xbad   : > { %v11098_v14 = vpop.f32.mrf.mxu0 }
 0xbae   : > { %9843 = vst [vmem:[%s15829_s22 + $0x48] sm:$0xff] %v9807_v30  ;;  %v11099_v1 = vadd.f32 %v11098_v14, %v11097_v41 }
 0xbaf   : > { %v11100_v44 = vpop.f32.mrf.mxu0 }
 0xbb0   : > { %v9812_v27 = vadd.f32 %v11099_v1, %v15826_v9 }
 0xbb1   : > { %v11101_v38 = vpop.f32.mrf.mxu0 }
 0xbb2   : > { %9844 = vst [vmem:[%s15829_s22 + $0x50] sm:$0xff] %v9812_v27  ;;  %v11102_v11 = vadd.f32 %v11101_v38, %v11100_v44 }
 0xbb3   : > { %v11103_v45 = vpop.f32.mrf.mxu0 }
 0xbb4   : > { %v9815_v46 = vadd.f32 %v11102_v11, %v15826_v9 }
 0xbb5   : > { %v11104_v62 = vpop.f32.mrf.mxu0 }
 0xbb6   : > { %9845 = vst [vmem:[%s15829_s22 + $0x58] sm:$0xff] %v9815_v46  ;;  %v11105_v26 = vadd.f32 %v11104_v62, %v11103_v45 }
 0xbb7   : > { %v11106_v49 = vpop.f32.mrf.mxu0 }
 0xbb8   : > { %v9820_v53 = vadd.f32 %v11105_v26, %v15826_v9 }
 0xbb9   : > { %v11107_v43 = vpop.f32.mrf.mxu0 }
 0xbba   : > { %9846 = vst [vmem:[%s15829_s22 + $0x60] sm:$0xff] %v9820_v53  ;;  %v11108_v39 = vadd.f32 %v11107_v43, %v11106_v49 }
 0xbbb   : > { %v11109_v13 = vpop.f32.mrf.mxu0 }
 0xbbc   : > { %v9823_v61 = vadd.f32 %v11108_v39, %v15826_v9 }
 0xbbd   : > { %v11110_v20 = vpop.f32.mrf.mxu0 }
 0xbbe   : > { %9847 = vst [vmem:[%s15829_s22 + $0x68] sm:$0xff] %v9823_v61  ;;  %v11111_v47 = vadd.f32 %v11110_v20, %v11109_v13 }
 0xbbf   : > { %v11112_v55 = vpop.f32.mrf.mxu0 }
 0xbc0   : > { %v9828_v36 = vadd.f32 %v11111_v47, %v15826_v9 }
 0xbc1   : > { %v11113_v50 = vpop.f32.mrf.mxu0 }
 0xbc2   : > { %9848 = vst [vmem:[%s15829_s22 + $0x70] sm:$0xff] %v9828_v36  ;;  %v11114_v37 = vadd.f32 %v11113_v50, %v11112_v55 }
 0xbc4   : > { %v9831_v21 = vadd.f32 %v11114_v37, %v15826_v9 }
 0xbc6   : > { %9849 = vst [vmem:[%s15829_s22 + $0x78] sm:$0xff] %v9831_v21 }
 0xbc7 PF: > { %p79_p10 = scmp.ge.s32.totalorder %s13024_s9, 4   ;;  %s16199_s22 = smov %s12644_s23 }
 0xbc8   : > { %s16200_s23 = smov %s12648_s26  ;;  %s16201_s26 = smov %s13036_s4 }
 0xbc9   : > { %s16202_s28 = smov %s13024_s9  ;;  %81 = sbr.rel (!%p79_p10) target bundleno = 66 (0x42), region = 263 }
 0xbce   :  { %9872 = vsyncpa [#allocation3], 1 }
 0xbcf   :  { %9874 = vsyncpa [#allocation3 + $0x1], 1 }
 0xbd0   :  { %9875 = vsyncpa [#allocation5], 1 }
 0xbd1   :  { %9876 = vsyncpa [#allocation8], 1 }
 0xbd2   :  { %9877 = vsyncpa [#allocation11], 1 }
 0xbd3   :  { %9878 = vsyncpa [#allocation14], 1 }
 0xbd4   :  { %9879 = vsyncpa [#allocation17], 1 }
 0xbd5   :  { %9880 = vsyncpa [#allocation20], 1 }

</bundles_post_ra>
